<compile_context>
chip_gen: v5e
topology: v5e:2x2
jax: 0.10.0
libtpu: 0.0.40
codegen_flags: <defaults>
</compile_context>

<pallas_src>
import functools

import jax
import jax.numpy as jnp
from jax import lax
from jax.experimental import pallas as pl
from jax.experimental.pallas import tpu as pltpu

_BN_EPS = 1e-5
_LANE = 128
_CH_ALIGN = 16            # bf16 sublane tile -> im2col concat stays tile-aligned


def _round_up(a, b):
    return (a + b - 1) // b * b


# --------------------------------------------------------------------------
# Fused ConvBlockRes kernel
# --------------------------------------------------------------------------

def _conv_block_res_kernel(*refs, H, W, Wp, Cin, Cout, has_shortcut, pool_hw):
    """One fused ConvBlockRes on one image (flat padded layout).

    Refs (in order):
      mask   : (1, M)          f32   1.0 at valid columns, 0.0 at junk columns
      xf     : (1, Cin, Lf)    bf16  padded-flat input
      w1     : (Cout, 9*Cin)   bf16  conv1 weights, columns ordered (tap, cin)
      s1, b1 : (Cout, 1)       f32   folded BatchNorm 1
      w2     : (Cout, 9*Cout)  bf16  conv2 weights
      s2, b2 : (Cout, 1)       f32   folded BatchNorm 2
      [ws]   : (Cout, Cin)     bf16  1x1 shortcut weight (Cin != Cout only)
      [bs]   : (Cout, 1)       f32   shortcut bias
      of     : (1, Cout, Lf)   bf16  output, same padded-flat layout
      [op]   : (1, Cout, Ho*Wp) f32  pooled row sums (last block only)
      h_s    : (Cout, Lf)      bf16  VMEM scratch for the intermediate act
    """
    it = iter(refs)
    mask_ref = next(it)
    xf_ref = next(it)
    w1_ref, s1_ref, b1_ref = next(it), next(it), next(it)
    w2_ref, s2_ref, b2_ref = next(it), next(it), next(it)
    if has_shortcut:
        ws_ref, bs_ref = next(it), next(it)
    of_ref = next(it)
    if pool_hw is not None:
        op_ref = next(it)
    h_s = next(it)

    M = H * Wp
    b0 = 2 * Wp
    Lf = (H + 4) * Wp
    mask = mask_ref[...]                                       # (1, M) f32

    def im2col(slicer):
        # (9*C, M) bf16: one statically-shifted copy of the padded image per
        # 3x3 tap, concatenated along sublanes (chunks are 16-row aligned).
        cols = []
        for dh in range(3):
            for dw in range(3):
                st = (dh + 1) * Wp + (dw - 1)
                cols.append(slicer(st))
        return jnp.concatenate(cols, axis=0)

    # ---- conv1 + BN + ReLU: one MXU matmul, contraction = 9*Cin ----
    rhs1 = im2col(lambda st: xf_ref[0, :, st:st + M])
    y1 = jnp.dot(w1_ref[...], rhs1, preferred_element_type=jnp.float32)
    h = jnp.maximum(y1 * s1_ref[...] + b1_ref[...], 0.0) * mask

    # Keep the intermediate in VMEM (bf16); zero only the 2-row margins
    # (kept per-step: with "parallel" megacore split, program_id 0 may never
    # run on the second core, so a pl.when(pid == 0) init would be unsafe).
    zm = jnp.zeros((Cout, 2 * Wp), h_s.dtype)
    h_s[:, 0:b0] = zm
    h_s[:, b0:b0 + M] = h.astype(h_s.dtype)
    h_s[:, b0 + M:Lf] = zm

    # ---- conv2 + BN + ReLU straight from the VMEM scratch ----
    rhs2 = im2col(lambda st: h_s[:, st:st + M])
    y2 = jnp.dot(w2_ref[...], rhs2, preferred_element_type=jnp.float32)
    a2 = jnp.maximum(y2 * s2_ref[...] + b2_ref[...], 0.0)

    # ---- residual: identity or folded 1x1 shortcut conv ----
    x_c = xf_ref[0, :, b0:b0 + M]                              # (Cin, M) bf16
    if has_shortcut:
        res = jnp.dot(ws_ref[...], x_c,
                      preferred_element_type=jnp.float32) + bs_ref[...]
    else:
        res = x_c.astype(jnp.float32)
    out = (a2 + res) * mask                                    # (Cout, M) f32

    # Lane-dense 128-aligned stores; only the margins are zeroed.
    zo = jnp.zeros((Cout, 2 * Wp), of_ref.dtype)
    of_ref[0, :, 0:b0] = zo
    of_ref[0, :, b0:b0 + M] = out.astype(of_ref.dtype)
    of_ref[0, :, b0 + M:Lf] = zo

    # ---- AvgPool2d (last block only): kh*kw shifted slice-adds ----
    if pool_hw is not None:
        kh, kw = pool_hw
        Ho = H // kh
        inv = 1.0 / float(kh * kw)
        rows = []
        for io in range(Ho):
            acc = None
            for a in range(kh):
                for b in range(kw):
                    st = b0 + (io * kh + a) * Wp + b
                    sl = of_ref[0, :, st:st + Wp].astype(jnp.float32)
                    acc = sl if acc is None else acc + sl
            rows.append(acc * inv)
        op_ref[0] = jnp.concatenate(rows, axis=1).astype(op_ref.dtype)


def _conv_block_res_call(xf, mask, kp, *, H, W, Wp, pool_hw):
    """Run one fused ConvBlockRes. xf: (N, Cin, (H+4)*Wp) bf16 padded-flat."""
    N, Cin, Lf = xf.shape
    Cout = kp["w1p"].shape[0]
    has_shortcut = "wsp" in kp
    M = H * Wp

    args = [mask, xf, kp["w1p"], kp["s1"], kp["b1"],
            kp["w2p"], kp["s2"], kp["b2"]]
    in_specs = [
        pl.BlockSpec((1, M), lambda n: (0, 0)),
        pl.BlockSpec((1, Cin, Lf), lambda n: (n, 0, 0)),
        pl.BlockSpec((Cout, 9 * Cin), lambda n: (0, 0)),
        pl.BlockSpec((Cout, 1), lambda n: (0, 0)),
        pl.BlockSpec((Cout, 1), lambda n: (0, 0)),
        pl.BlockSpec((Cout, 9 * Cout), lambda n: (0, 0)),
        pl.BlockSpec((Cout, 1), lambda n: (0, 0)),
        pl.BlockSpec((Cout, 1), lambda n: (0, 0)),
    ]
    if has_shortcut:
        args += [kp["wsp"], kp["bsp"]]
        in_specs += [pl.BlockSpec((Cout, Cin), lambda n: (0, 0)),
                     pl.BlockSpec((Cout, 1), lambda n: (0, 0))]

    out_shape = [jax.ShapeDtypeStruct((N, Cout, Lf), jnp.bfloat16)]
    out_specs = [pl.BlockSpec((1, Cout, Lf), lambda n: (n, 0, 0))]
    if pool_hw is not None:
        Ho = H // pool_hw[0]
        out_shape.append(jax.ShapeDtypeStruct((N, Cout, Ho * Wp), jnp.float32))
        out_specs.append(pl.BlockSpec((1, Cout, Ho * Wp), lambda n: (n, 0, 0)))

    kernel = functools.partial(
        _conv_block_res_kernel, H=H, W=W, Wp=Wp, Cin=Cin, Cout=Cout,
        has_shortcut=has_shortcut, pool_hw=pool_hw)

    return pl.pallas_call(
        kernel,
        grid=(N,),
        in_specs=in_specs,
        out_specs=tuple(out_specs) if pool_hw is not None else out_specs[0],
        out_shape=tuple(out_shape) if pool_hw is not None else out_shape[0],
        scratch_shapes=[pltpu.VMEM((Cout, Lf), jnp.bfloat16)],
        compiler_params=pltpu.CompilerParams(
            dimension_semantics=("parallel",),
            vmem_limit_bytes=32 * 1024 * 1024),
    )(*args)


# --------------------------------------------------------------------------
# ResEncoderBlock forward (NCHW in, NCHW out, like PyTorch)
# --------------------------------------------------------------------------

def res_encoder_block_forward(x_nchw, params, kernel_size):
    N, Cin, H, W = x_nchw.shape
    Cout = params[0]["bn1_scale"].shape[0]
    cin_p = _round_up(Cin, _CH_ALIGN)
    cout_p = _round_up(Cout, _CH_ALIGN)
    Wp = _round_up(W + 1, _LANE)          # lane-aligned row pitch, >=1 zero col
    Hp = H + 4
    Lf = Hp * Wp
    M = H * Wp

    # Zero-padded flat layout: 2 margin rows top/bottom, junk columns [W, Wp).
    xpad = jnp.pad(x_nchw, ((0, 0), (0, cin_p - Cin), (2, 2), (0, Wp - W)))
    xf = xpad.reshape(N, cin_p, Lf).astype(jnp.bfloat16)

    # Lane-validity mask precomputed once outside the kernel.
    col = jnp.arange(M, dtype=jnp.int32) % Wp
    mask = (col < W).astype(jnp.float32)[None, :]

    if kernel_size is not None:
        if isinstance(kernel_size, (tuple, list)):
            kh, kw = int(kernel_size[0]), int(kernel_size[1])
        else:
            kh = kw = int(kernel_size)
        pool_hw = (kh, kw)
    else:
        pool_hw = None

    pooled_rows = None
    n_blocks = len(params)
    for i, p in enumerate(params):
        last = (i == n_blocks - 1)
        ph = pool_hw if (last and pool_hw is not None) else None
        res = _conv_block_res_call(xf, mask, p["kernel"],
                                   H=H, W=W, Wp=Wp, pool_hw=ph)
        if ph is not None:
            xf, pooled_rows = res
        else:
            xf = res

    out = xf.reshape(N, cout_p, Hp, Wp)[:, :Cout, 2:2 + H, :W]
    out = out.astype(jnp.float32)
    if pool_hw is None:
        return out
    Ho, Wo = H // kh, W // kw
    pooled = pooled_rows.reshape(N, cout_p, Ho, Wp)[:, :Cout, :, 0:Wo * kw:kw]
    return out, pooled


# --------------------------------------------------------------------------
# Parameters (deterministic, synthetic) + kernel-ready packing (done at init)
# --------------------------------------------------------------------------

def _fold_bn(gamma, beta, mean, var):
    scale = gamma / jnp.sqrt(var + _BN_EPS)
    bias = beta - mean * scale
    return scale.astype(jnp.float32), bias.astype(jnp.float32)


def _pack_conv3x3(w, cin_p, cout_p):
    # (3,3,cin,cout) HWIO -> (cout_p, 9*cin_p) bf16, columns ordered (tap, cin)
    cin, cout = w.shape[2], w.shape[3]
    wp = jnp.pad(w, ((0, 0), (0, 0), (0, cin_p - cin), (0, cout_p - cout)))
    return jnp.transpose(wp, (3, 0, 1, 2)).reshape(
        cout_p, 9 * cin_p).astype(jnp.bfloat16)


def _pack_vec(v, cout_p):
    return jnp.pad(v, (0, cout_p - v.shape[0])).astype(jnp.float32)[:, None]


def init_conv_block_res(key, cin, cout):
    ks = jax.random.split(key, 10)
    p = {
        "w1": 0.1 * jax.random.normal(ks[0], (3, 3, cin, cout), jnp.float32),
        "w2": 0.1 * jax.random.normal(ks[1], (3, 3, cout, cout), jnp.float32),
    }
    g1 = 1.0 + 0.1 * jax.random.normal(ks[2], (cout,), jnp.float32)
    b1 = 0.1 * jax.random.normal(ks[3], (cout,), jnp.float32)
    m1 = 0.1 * jax.random.normal(ks[4], (cout,), jnp.float32)
    v1 = jnp.abs(1.0 + 0.1 * jax.random.normal(ks[5], (cout,), jnp.float32))
    p["bn1_scale"], p["bn1_bias"] = _fold_bn(g1, b1, m1, v1)
    g2 = 1.0 + 0.1 * jax.random.normal(ks[6], (cout,), jnp.float32)
    b2 = 0.1 * jax.random.normal(ks[7], (cout,), jnp.float32)
    m2 = 0.1 * jax.random.normal(ks[8], (cout,), jnp.float32)
    v2 = jnp.abs(1.0 + 0.1 * jax.random.normal(ks[9], (cout,), jnp.float32))
    p["bn2_scale"], p["bn2_bias"] = _fold_bn(g2, b2, m2, v2)
    if cin != cout:  # 1x1 shortcut conv with bias, like nn.Conv2d(cin, cout, 1)
        k1, k2 = jax.random.split(jax.random.fold_in(key, 123))
        p["ws"] = 0.1 * jax.random.normal(k1, (cout, cin), jnp.float32)
        p["bs"] = 0.1 * jax.random.normal(k2, (cout,), jnp.float32)

    # Kernel-ready padded/packed params (hoisted out of the forward pass).
    cin_p = _round_up(cin, _CH_ALIGN)
    cout_p = _round_up(cout, _CH_ALIGN)
    kp = {
        "w1p": _pack_conv3x3(p["w1"], cin_p, cout_p),
        "s1": _pack_vec(p["bn1_scale"], cout_p),
        "b1": _pack_vec(p["bn1_bias"], cout_p),
        "w2p": _pack_conv3x3(p["w2"], cout_p, cout_p),
        "s2": _pack_vec(p["bn2_scale"], cout_p),
        "b2": _pack_vec(p["bn2_bias"], cout_p),
    }
    if cin != cout:
        kp["wsp"] = jnp.pad(
            p["ws"], ((0, cout_p - cout), (0, cin_p - cin))).astype(jnp.bfloat16)
        kp["bsp"] = _pack_vec(p["bs"], cout_p)
    p["kernel"] = kp
    return p


def init_res_encoder_block(key, in_channels, out_channels, n_blocks):
    keys = jax.random.split(key, n_blocks)
    params = [init_conv_block_res(keys[0], in_channels, out_channels)]
    for i in range(1, n_blocks):
        params.append(init_conv_block_res(keys[i], out_channels, out_channels))
    return params


# --------------------------------------------------------------------------
# Pure-JAX reference (mirrors the kernel's bf16 matmul / activation rounding)
# --------------------------------------------------------------------------

def _ref_conv_block_res(x, p):
    dn = ("NCHW", "HWIO", "NCHW")
    xb = x.astype(jnp.bfloat16)
    h = lax.conv_general_dilated(xb, p["w1"].astype(jnp.bfloat16), (1, 1),
                                 "SAME", dimension_numbers=dn,
                                 preferred_element_type=jnp.float32)
    h = h * p["bn1_scale"][None, :, None, None] + p["bn1_bias"][None, :, None, None]
    h = jnp.maximum(h, 0.0)
    hb = h.astype(jnp.bfloat16)
    y = lax.conv_general_dilated(hb, p["w2"].astype(jnp.bfloat16), (1, 1),
                                 "SAME", dimension_numbers=dn,
                                 preferred_element_type=jnp.float32)
    y = y * p["bn2_scale"][None, :, None, None] + p["bn2_bias"][None, :, None, None]
    y = jnp.maximum(y, 0.0)
    if "ws" in p:
        wk = jnp.transpose(p["ws"]).astype(jnp.bfloat16)[None, None]
        res = lax.conv_general_dilated(xb, wk, (1, 1), "VALID",
                                       dimension_numbers=dn,
                                       preferred_element_type=jnp.float32)
        res = res + p["bs"][None, :, None, None]
    else:
        res = xb.astype(jnp.float32)
    return y + res


def _ref_blocks(x, params):
    for p in params:
        x = _ref_conv_block_res(x, p)
    return x


def _avg_pool_ref(x, kh, kw):
    N, C, H, W = x.shape
    Ho, Wo = H // kh, W // kw
    return x[:, :, :Ho * kh, :Wo * kw].reshape(
        N, C, Ho, kh, Wo, kw).mean(axis=(3, 5))


# --------------------------------------------------------------------------

if __name__ == "__main__":
    key = jax.random.PRNGKey(0)
    kx, kparam = jax.random.split(key)

    N, Cin, Cout, H, W = 2, 4, 8, 16, 16
    n_blocks = 2
    kernel_size = (2, 2)

    x = jax.random.normal(kx, (N, Cin, H, W), jnp.float32)   # NCHW like PyTorch
    params = init_res_encoder_block(kparam, Cin, Cout, n_blocks)

    fwd = jax.jit(lambda xx, pp: res_encoder_block_forward(xx, pp, kernel_size))
    out, pooled = fwd(x, params)
    out = jax.block_until_ready(out)
    pooled = jax.block_until_ready(pooled)

    ref_out = _ref_blocks(x, params)
    ref_out_b = ref_out.astype(jnp.bfloat16).astype(jnp.float32)
    ref_pooled = _avg_pool_ref(ref_out_b, kernel_size[0], kernel_size[1])

    assert out.shape == (N, Cout, H, W)
    assert pooled.shape == (N, Cout, H // 2, W // 2)
    assert jnp.allclose(out, ref_out_b, atol=1e-2, rtol=1e-2)
    assert jnp.allclose(pooled, ref_pooled, atol=1e-2, rtol=1e-2)

    print("KERNEL_OK")
</pallas_src>

<mosaic_0001>
module attributes {stable_mosaic.version = 11 : i64} {
  func.func @_conv_block_res_kernel(%arg0: i32, %arg1: memref<1x2048xf32, #tpu.memory_space<vmem>>, %arg2: memref<1x16x2560xbf16, #tpu.memory_space<vmem>>, %arg3: memref<16x144xbf16, #tpu.memory_space<vmem>>, %arg4: memref<16x1xf32, #tpu.memory_space<vmem>>, %arg5: memref<16x1xf32, #tpu.memory_space<vmem>>, %arg6: memref<16x144xbf16, #tpu.memory_space<vmem>>, %arg7: memref<16x1xf32, #tpu.memory_space<vmem>>, %arg8: memref<16x1xf32, #tpu.memory_space<vmem>>, %arg9: memref<16x16xbf16, #tpu.memory_space<vmem>>, %arg10: memref<16x1xf32, #tpu.memory_space<vmem>>, %arg11: memref<1x16x2560xbf16, #tpu.memory_space<vmem>>, %arg12: memref<16x2560xbf16, #tpu.memory_space<vmem>>) attributes {dimension_semantics = [#tpu.dimension_semantics<parallel>], iteration_bounds = array<i64: 2>, scalar_prefetch = 0 : i64, scratch_operands = 1 : i64, tpu.core_type = #tpu.core_type<tc>, window_params = [{pipeline_mode = #tpu.pipeline_mode<synchronous>, transform_indices = @transform_0, window_bounds = array<i64: 1, 2048>}, {transform_indices = @transform_1, window_bounds = array<i64: 1, 16, 2560>}, {pipeline_mode = #tpu.pipeline_mode<synchronous>, transform_indices = @transform_2, window_bounds = array<i64: 16, 144>}, {pipeline_mode = #tpu.pipeline_mode<synchronous>, transform_indices = @transform_3, window_bounds = array<i64: 16, 1>}, {pipeline_mode = #tpu.pipeline_mode<synchronous>, transform_indices = @transform_4, window_bounds = array<i64: 16, 1>}, {pipeline_mode = #tpu.pipeline_mode<synchronous>, transform_indices = @transform_5, window_bounds = array<i64: 16, 144>}, {pipeline_mode = #tpu.pipeline_mode<synchronous>, transform_indices = @transform_6, window_bounds = array<i64: 16, 1>}, {pipeline_mode = #tpu.pipeline_mode<synchronous>, transform_indices = @transform_7, window_bounds = array<i64: 16, 1>}, {pipeline_mode = #tpu.pipeline_mode<synchronous>, transform_indices = @transform_8, window_bounds = array<i64: 16, 16>}, {pipeline_mode = #tpu.pipeline_mode<synchronous>, transform_indices = @transform_9, window_bounds = array<i64: 16, 1>}, {transform_indices = @transform_10, window_bounds = array<i64: 1, 16, 2560>}]} {
    %c0 = arith.constant 0 : index
    %c0_0 = arith.constant 0 : index
    %0 = vector.load %arg1[%c0, %c0_0] : memref<1x2048xf32, #tpu.memory_space<vmem>>, vector<1x2048xf32>
    %c0_1 = arith.constant 0 : index
    %c0_2 = arith.constant 0 : index
    %c127 = arith.constant 127 : index
    %1 = vector.load %arg2[%c0_1, %c0_2, %c127] : memref<1x16x2560xbf16, #tpu.memory_space<vmem>>, vector<1x16x2048xbf16>
    %2 = vector.shape_cast %1 : vector<1x16x2048xbf16> to vector<16x2048xbf16>
    %c0_3 = arith.constant 0 : index
    %c0_4 = arith.constant 0 : index
    %c128 = arith.constant 128 : index
    %3 = vector.load %arg2[%c0_3, %c0_4, %c128] : memref<1x16x2560xbf16, #tpu.memory_space<vmem>>, vector<1x16x2048xbf16>
    %4 = vector.shape_cast %3 : vector<1x16x2048xbf16> to vector<16x2048xbf16>
    %c0_5 = arith.constant 0 : index
    %c0_6 = arith.constant 0 : index
    %c129 = arith.constant 129 : index
    %5 = vector.load %arg2[%c0_5, %c0_6, %c129] : memref<1x16x2560xbf16, #tpu.memory_space<vmem>>, vector<1x16x2048xbf16>
    %6 = vector.shape_cast %5 : vector<1x16x2048xbf16> to vector<16x2048xbf16>
    %c0_7 = arith.constant 0 : index
    %c0_8 = arith.constant 0 : index
    %c255 = arith.constant 255 : index
    %7 = vector.load %arg2[%c0_7, %c0_8, %c255] : memref<1x16x2560xbf16, #tpu.memory_space<vmem>>, vector<1x16x2048xbf16>
    %8 = vector.shape_cast %7 : vector<1x16x2048xbf16> to vector<16x2048xbf16>
    %c0_9 = arith.constant 0 : index
    %c0_10 = arith.constant 0 : index
    %c256 = arith.constant 256 : index
    %9 = vector.load %arg2[%c0_9, %c0_10, %c256] : memref<1x16x2560xbf16, #tpu.memory_space<vmem>>, vector<1x16x2048xbf16>
    %10 = vector.shape_cast %9 : vector<1x16x2048xbf16> to vector<16x2048xbf16>
    %c0_11 = arith.constant 0 : index
    %c0_12 = arith.constant 0 : index
    %c257 = arith.constant 257 : index
    %11 = vector.load %arg2[%c0_11, %c0_12, %c257] : memref<1x16x2560xbf16, #tpu.memory_space<vmem>>, vector<1x16x2048xbf16>
    %12 = vector.shape_cast %11 : vector<1x16x2048xbf16> to vector<16x2048xbf16>
    %c0_13 = arith.constant 0 : index
    %c0_14 = arith.constant 0 : index
    %c383 = arith.constant 383 : index
    %13 = vector.load %arg2[%c0_13, %c0_14, %c383] : memref<1x16x2560xbf16, #tpu.memory_space<vmem>>, vector<1x16x2048xbf16>
    %14 = vector.shape_cast %13 : vector<1x16x2048xbf16> to vector<16x2048xbf16>
    %c0_15 = arith.constant 0 : index
    %c0_16 = arith.constant 0 : index
    %c384 = arith.constant 384 : index
    %15 = vector.load %arg2[%c0_15, %c0_16, %c384] : memref<1x16x2560xbf16, #tpu.memory_space<vmem>>, vector<1x16x2048xbf16>
    %16 = vector.shape_cast %15 : vector<1x16x2048xbf16> to vector<16x2048xbf16>
    %c0_17 = arith.constant 0 : index
    %c0_18 = arith.constant 0 : index
    %c385 = arith.constant 385 : index
    %17 = vector.load %arg2[%c0_17, %c0_18, %c385] : memref<1x16x2560xbf16, #tpu.memory_space<vmem>>, vector<1x16x2048xbf16>
    %18 = vector.shape_cast %17 : vector<1x16x2048xbf16> to vector<16x2048xbf16>
    %19 = tpu.concatenate %2, %4, %6, %8, %10, %12, %14, %16, %18 in 0 : vector<16x2048xbf16>, vector<16x2048xbf16>, vector<16x2048xbf16>, vector<16x2048xbf16>, vector<16x2048xbf16>, vector<16x2048xbf16>, vector<16x2048xbf16>, vector<16x2048xbf16>, vector<16x2048xbf16> -> vector<144x2048xbf16>
    %c0_19 = arith.constant 0 : index
    %c0_20 = arith.constant 0 : index
    %20 = vector.load %arg3[%c0_19, %c0_20] : memref<16x144xbf16, #tpu.memory_space<vmem>>, vector<16x144xbf16>
    %cst = arith.constant dense<0.000000e+00> : vector<16x2048xf32>
    %21 = tpu.matmul %20, %19, %cst {dimension_numbers = #tpu.dot_dimension_numbers<[1], [0], [0], [1], [0, 0, 1, 1], [], []>} : vector<16x144xbf16>, vector<144x2048xbf16>, vector<16x2048xf32> -> vector<16x2048xf32>
    %c0_21 = arith.constant 0 : index
    %c0_22 = arith.constant 0 : index
    %22 = vector.load %arg4[%c0_21, %c0_22] : memref<16x1xf32, #tpu.memory_space<vmem>>, vector<16x1xf32>
    %23 = vector.broadcast %22 : vector<16x1xf32> to vector<16x2048xf32>
    %24 = arith.mulf %21, %23 : vector<16x2048xf32>
    %c0_23 = arith.constant 0 : index
    %c0_24 = arith.constant 0 : index
    %25 = vector.load %arg5[%c0_23, %c0_24] : memref<16x1xf32, #tpu.memory_space<vmem>>, vector<16x1xf32>
    %26 = vector.broadcast %25 : vector<16x1xf32> to vector<16x2048xf32>
    %27 = arith.addf %24, %26 : vector<16x2048xf32>
    %cst_25 = arith.constant 0.000000e+00 : f32
    %28 = vector.broadcast %cst_25 : f32 to vector<16x2048xf32>
    %29 = arith.maximumf %27, %28 : vector<16x2048xf32>
    %30 = vector.broadcast %0 : vector<1x2048xf32> to vector<16x2048xf32>
    %31 = arith.mulf %29, %30 : vector<16x2048xf32>
    %cst_26 = arith.constant 0.000000e+00 : bf16
    %32 = vector.broadcast %cst_26 : bf16 to vector<16x256xbf16>
    %c0_27 = arith.constant 0 : index
    %c0_28 = arith.constant 0 : index
    %33 = vector.load %arg12[%c0_27, %c0_28] : memref<16x2560xbf16, #tpu.memory_space<vmem>>, vector<16x256xbf16>
    tpu.vector_store %arg12[%c0_27, %c0_28], %32 {strides = array<i32>} : memref<16x2560xbf16, #tpu.memory_space<vmem>>, vector<16x256xbf16>,
    %34 = arith.truncf %31 : vector<16x2048xf32> to vector<16x2048xbf16>
    %c0_29 = arith.constant 0 : index
    %c256_30 = arith.constant 256 : index
    %35 = vector.load %arg12[%c0_29, %c256_30] : memref<16x2560xbf16, #tpu.memory_space<vmem>>, vector<16x2048xbf16>
    tpu.vector_store %arg12[%c0_29, %c256_30], %34 {strides = array<i32>} : memref<16x2560xbf16, #tpu.memory_space<vmem>>, vector<16x2048xbf16>,
    %c0_31 = arith.constant 0 : index
    %c2304 = arith.constant 2304 : index
    %36 = vector.load %arg12[%c0_31, %c2304] : memref<16x2560xbf16, #tpu.memory_space<vmem>>, vector<16x256xbf16>
    tpu.vector_store %arg12[%c0_31, %c2304], %32 {strides = array<i32>} : memref<16x2560xbf16, #tpu.memory_space<vmem>>, vector<16x256xbf16>,
    %c0_32 = arith.constant 0 : index
    %c127_33 = arith.constant 127 : index
    %37 = vector.load %arg12[%c0_32, %c127_33] : memref<16x2560xbf16, #tpu.memory_space<vmem>>, vector<16x2048xbf16>
    %c0_34 = arith.constant 0 : index
    %c128_35 = arith.constant 128 : index
    %38 = vector.load %arg12[%c0_34, %c128_35] : memref<16x2560xbf16, #tpu.memory_space<vmem>>, vector<16x2048xbf16>
    %c0_36 = arith.constant 0 : index
    %c129_37 = arith.constant 129 : index
    %39 = vector.load %arg12[%c0_36, %c129_37] : memref<16x2560xbf16, #tpu.memory_space<vmem>>, vector<16x2048xbf16>
    %c0_38 = arith.constant 0 : index
    %c255_39 = arith.constant 255 : index
    %40 = vector.load %arg12[%c0_38, %c255_39] : memref<16x2560xbf16, #tpu.memory_space<vmem>>, vector<16x2048xbf16>
    %c0_40 = arith.constant 0 : index
    %c256_41 = arith.constant 256 : index
    %41 = vector.load %arg12[%c0_40, %c256_41] : memref<16x2560xbf16, #tpu.memory_space<vmem>>, vector<16x2048xbf16>
    %c0_42 = arith.constant 0 : index
    %c257_43 = arith.constant 257 : index
    %42 = vector.load %arg12[%c0_42, %c257_43] : memref<16x2560xbf16, #tpu.memory_space<vmem>>, vector<16x2048xbf16>
    %c0_44 = arith.constant 0 : index
    %c383_45 = arith.constant 383 : index
    %43 = vector.load %arg12[%c0_44, %c383_45] : memref<16x2560xbf16, #tpu.memory_space<vmem>>, vector<16x2048xbf16>
    %c0_46 = arith.constant 0 : index
    %c384_47 = arith.constant 384 : index
    %44 = vector.load %arg12[%c0_46, %c384_47] : memref<16x2560xbf16, #tpu.memory_space<vmem>>, vector<16x2048xbf16>
    %c0_48 = arith.constant 0 : index
    %c385_49 = arith.constant 385 : index
    %45 = vector.load %arg12[%c0_48, %c385_49] : memref<16x2560xbf16, #tpu.memory_space<vmem>>, vector<16x2048xbf16>
    %46 = tpu.concatenate %37, %38, %39, %40, %41, %42, %43, %44, %45 in 0 : vector<16x2048xbf16>, vector<16x2048xbf16>, vector<16x2048xbf16>, vector<16x2048xbf16>, vector<16x2048xbf16>, vector<16x2048xbf16>, vector<16x2048xbf16>, vector<16x2048xbf16>, vector<16x2048xbf16> -> vector<144x2048xbf16>
    %c0_50 = arith.constant 0 : index
    %c0_51 = arith.constant 0 : index
    %47 = vector.load %arg6[%c0_50, %c0_51] : memref<16x144xbf16, #tpu.memory_space<vmem>>, vector<16x144xbf16>
    %cst_52 = arith.constant dense<0.000000e+00> : vector<16x2048xf32>
    %48 = tpu.matmul %47, %46, %cst_52 {dimension_numbers = #tpu.dot_dimension_numbers<[1], [0], [0], [1], [0, 0, 1, 1], [], []>} : vector<16x144xbf16>, vector<144x2048xbf16>, vector<16x2048xf32> -> vector<16x2048xf32>
    %c0_53 = arith.constant 0 : index
    %c0_54 = arith.constant 0 : index
    %49 = vector.load %arg7[%c0_53, %c0_54] : memref<16x1xf32, #tpu.memory_space<vmem>>, vector<16x1xf32>
    %50 = vector.broadcast %49 : vector<16x1xf32> to vector<16x2048xf32>
    %51 = arith.mulf %48, %50 : vector<16x2048xf32>
    %c0_55 = arith.constant 0 : index
    %c0_56 = arith.constant 0 : index
    %52 = vector.load %arg8[%c0_55, %c0_56] : memref<16x1xf32, #tpu.memory_space<vmem>>, vector<16x1xf32>
    %53 = vector.broadcast %52 : vector<16x1xf32> to vector<16x2048xf32>
    %54 = arith.addf %51, %53 : vector<16x2048xf32>
    %cst_57 = arith.constant 0.000000e+00 : f32
    %55 = vector.broadcast %cst_57 : f32 to vector<16x2048xf32>
    %56 = arith.maximumf %54, %55 : vector<16x2048xf32>
    %c0_58 = arith.constant 0 : index
    %c0_59 = arith.constant 0 : index
    %c256_60 = arith.constant 256 : index
    %57 = vector.load %arg2[%c0_58, %c0_59, %c256_60] : memref<1x16x2560xbf16, #tpu.memory_space<vmem>>, vector<1x16x2048xbf16>
    %58 = vector.shape_cast %57 : vector<1x16x2048xbf16> to vector<16x2048xbf16>
    %c0_61 = arith.constant 0 : index
    %c0_62 = arith.constant 0 : index
    %59 = vector.load %arg9[%c0_61, %c0_62] : memref<16x16xbf16, #tpu.memory_space<vmem>>, vector<16x16xbf16>
    %cst_63 = arith.constant dense<0.000000e+00> : vector<16x2048xf32>
    %60 = tpu.matmul %59, %58, %cst_63 {dimension_numbers = #tpu.dot_dimension_numbers<[1], [0], [0], [1], [0, 0, 1, 1], [], []>} : vector<16x16xbf16>, vector<16x2048xbf16>, vector<16x2048xf32> -> vector<16x2048xf32>
    %c0_64 = arith.constant 0 : index
    %c0_65 = arith.constant 0 : index
    %61 = vector.load %arg10[%c0_64, %c0_65] : memref<16x1xf32, #tpu.memory_space<vmem>>, vector<16x1xf32>
    %62 = vector.broadcast %61 : vector<16x1xf32> to vector<16x2048xf32>
    %63 = arith.addf %60, %62 : vector<16x2048xf32>
    %64 = arith.addf %56, %63 : vector<16x2048xf32>
    %65 = vector.broadcast %0 : vector<1x2048xf32> to vector<16x2048xf32>
    %66 = arith.mulf %64, %65 : vector<16x2048xf32>
    %cst_66 = arith.constant 0.000000e+00 : bf16
    %67 = vector.broadcast %cst_66 : bf16 to vector<16x256xbf16>
    %c0_67 = arith.constant 0 : index
    %c0_68 = arith.constant 0 : index
    %c0_69 = arith.constant 0 : index
    %68 = vector.load %arg11[%c0_67, %c0_68, %c0_69] : memref<1x16x2560xbf16, #tpu.memory_space<vmem>>, vector<1x16x256xbf16>
    %69 = vector.shape_cast %68 : vector<1x16x256xbf16> to vector<16x256xbf16>
    %70 = vector.shape_cast %67 : vector<16x256xbf16> to vector<1x16x256xbf16>
    tpu.vector_store %arg11[%c0_67, %c0_68, %c0_69], %70 {strides = array<i32>} : memref<1x16x2560xbf16, #tpu.memory_space<vmem>>, vector<1x16x256xbf16>,
    %71 = arith.truncf %66 : vector<16x2048xf32> to vector<16x2048xbf16>
    %c0_70 = arith.constant 0 : index
    %c0_71 = arith.constant 0 : index
    %c256_72 = arith.constant 256 : index
    %72 = vector.load %arg11[%c0_70, %c0_71, %c256_72] : memref<1x16x2560xbf16, #tpu.memory_space<vmem>>, vector<1x16x2048xbf16>
    %73 = vector.shape_cast %72 : vector<1x16x2048xbf16> to vector<16x2048xbf16>
    %74 = vector.shape_cast %71 : vector<16x2048xbf16> to vector<1x16x2048xbf16>
    tpu.vector_store %arg11[%c0_70, %c0_71, %c256_72], %74 {strides = array<i32>} : memref<1x16x2560xbf16, #tpu.memory_space<vmem>>, vector<1x16x2048xbf16>,
    %c0_73 = arith.constant 0 : index
    %c0_74 = arith.constant 0 : index
    %c2304_75 = arith.constant 2304 : index
    %75 = vector.load %arg11[%c0_73, %c0_74, %c2304_75] : memref<1x16x2560xbf16, #tpu.memory_space<vmem>>, vector<1x16x256xbf16>
    %76 = vector.shape_cast %75 : vector<1x16x256xbf16> to vector<16x256xbf16>
    %77 = vector.shape_cast %67 : vector<16x256xbf16> to vector<1x16x256xbf16>
    tpu.vector_store %arg11[%c0_73, %c0_74, %c2304_75], %77 {strides = array<i32>} : memref<1x16x2560xbf16, #tpu.memory_space<vmem>>, vector<1x16x256xbf16>,
    return
  }
  func.func @transform_0(%arg0: i32) -> (i32, i32) {
    %c0_i32 = arith.constant 0 : i32
    %c0_i32_0 = arith.constant 0 : i32
    %c0_i32_1 = arith.constant 0 : i32
    return %c0_i32, %c0_i32_0 : i32, i32
  }
  func.func @transform_1(%arg0: i32) -> (i32, i32, i32) {
    %c0_i32 = arith.constant 0 : i32
    %c0_i32_0 = arith.constant 0 : i32
    %c0_i32_1 = arith.constant 0 : i32
    return %arg0, %c0_i32, %c0_i32_0 : i32, i32, i32
  }
  func.func @transform_2(%arg0: i32) -> (i32, i32) {
    %c0_i32 = arith.constant 0 : i32
    %c0_i32_0 = arith.constant 0 : i32
    %c0_i32_1 = arith.constant 0 : i32
    return %c0_i32, %c0_i32_0 : i32, i32
  }
  func.func @transform_3(%arg0: i32) -> (i32, i32) {
    %c0_i32 = arith.constant 0 : i32
    %c0_i32_0 = arith.constant 0 : i32
    %c0_i32_1 = arith.constant 0 : i32
    return %c0_i32, %c0_i32_0 : i32, i32
  }
  func.func @transform_4(%arg0: i32) -> (i32, i32) {
    %c0_i32 = arith.constant 0 : i32
    %c0_i32_0 = arith.constant 0 : i32
    %c0_i32_1 = arith.constant 0 : i32
    return %c0_i32, %c0_i32_0 : i32, i32
  }
  func.func @transform_5(%arg0: i32) -> (i32, i32) {
    %c0_i32 = arith.constant 0 : i32
    %c0_i32_0 = arith.constant 0 : i32
    %c0_i32_1 = arith.constant 0 : i32
    return %c0_i32, %c0_i32_0 : i32, i32
  }
  func.func @transform_6(%arg0: i32) -> (i32, i32) {
    %c0_i32 = arith.constant 0 : i32
    %c0_i32_0 = arith.constant 0 : i32
    %c0_i32_1 = arith.constant 0 : i32
    return %c0_i32, %c0_i32_0 : i32, i32
  }
  func.func @transform_7(%arg0: i32) -> (i32, i32) {
    %c0_i32 = arith.constant 0 : i32
    %c0_i32_0 = arith.constant 0 : i32
    %c0_i32_1 = arith.constant 0 : i32
    return %c0_i32, %c0_i32_0 : i32, i32
  }
  func.func @transform_8(%arg0: i32) -> (i32, i32) {
    %c0_i32 = arith.constant 0 : i32
    %c0_i32_0 = arith.constant 0 : i32
    %c0_i32_1 = arith.constant 0 : i32
    return %c0_i32, %c0_i32_0 : i32, i32
  }
  func.func @transform_9(%arg0: i32) -> (i32, i32) {
    %c0_i32 = arith.constant 0 : i32
    %c0_i32_0 = arith.constant 0 : i32
    %c0_i32_1 = arith.constant 0 : i32
    return %c0_i32, %c0_i32_0 : i32, i32
  }
  func.func @transform_10(%arg0: i32) -> (i32, i32, i32) {
    %c0_i32 = arith.constant 0 : i32
    %c0_i32_0 = arith.constant 0 : i32
    %c0_i32_1 = arith.constant 0 : i32
    return %arg0, %c0_i32, %c0_i32_0 : i32, i32, i32
  }
}

module attributes {stable_mosaic.version = 11 : i64} {
  func.func @_conv_block_res_kernel(%arg0: i32, %arg1: memref<1x2048xf32, #tpu.memory_space<vmem>>, %arg2: memref<1x16x2560xbf16, #tpu.memory_space<vmem>>, %arg3: memref<16x144xbf16, #tpu.memory_space<vmem>>, %arg4: memref<16x1xf32, #tpu.memory_space<vmem>>, %arg5: memref<16x1xf32, #tpu.memory_space<vmem>>, %arg6: memref<16x144xbf16, #tpu.memory_space<vmem>>, %arg7: memref<16x1xf32, #tpu.memory_space<vmem>>, %arg8: memref<16x1xf32, #tpu.memory_space<vmem>>, %arg9: memref<1x16x2560xbf16, #tpu.memory_space<vmem>>, %arg10: memref<1x16x1024xf32, #tpu.memory_space<vmem>>, %arg11: memref<16x2560xbf16, #tpu.memory_space<vmem>>) attributes {dimension_semantics = [#tpu.dimension_semantics<parallel>], iteration_bounds = array<i64: 2>, scalar_prefetch = 0 : i64, scratch_operands = 1 : i64, tpu.core_type = #tpu.core_type<tc>, window_params = [{pipeline_mode = #tpu.pipeline_mode<synchronous>, transform_indices = @transform_0, window_bounds = array<i64: 1, 2048>}, {transform_indices = @transform_1, window_bounds = array<i64: 1, 16, 2560>}, {pipeline_mode = #tpu.pipeline_mode<synchronous>, transform_indices = @transform_2, window_bounds = array<i64: 16, 144>}, {pipeline_mode = #tpu.pipeline_mode<synchronous>, transform_indices = @transform_3, window_bounds = array<i64: 16, 1>}, {pipeline_mode = #tpu.pipeline_mode<synchronous>, transform_indices = @transform_4, window_bounds = array<i64: 16, 1>}, {pipeline_mode = #tpu.pipeline_mode<synchronous>, transform_indices = @transform_5, window_bounds = array<i64: 16, 144>}, {pipeline_mode = #tpu.pipeline_mode<synchronous>, transform_indices = @transform_6, window_bounds = array<i64: 16, 1>}, {pipeline_mode = #tpu.pipeline_mode<synchronous>, transform_indices = @transform_7, window_bounds = array<i64: 16, 1>}, {transform_indices = @transform_8, window_bounds = array<i64: 1, 16, 2560>}, {transform_indices = @transform_9, window_bounds = array<i64: 1, 16, 1024>}]} {
    %c0 = arith.constant 0 : index
    %c0_0 = arith.constant 0 : index
    %0 = vector.load %arg1[%c0, %c0_0] : memref<1x2048xf32, #tpu.memory_space<vmem>>, vector<1x2048xf32>
    %c0_1 = arith.constant 0 : index
    %c0_2 = arith.constant 0 : index
    %c127 = arith.constant 127 : index
    %1 = vector.load %arg2[%c0_1, %c0_2, %c127] : memref<1x16x2560xbf16, #tpu.memory_space<vmem>>, vector<1x16x2048xbf16>
    %2 = vector.shape_cast %1 : vector<1x16x2048xbf16> to vector<16x2048xbf16>
    %c0_3 = arith.constant 0 : index
    %c0_4 = arith.constant 0 : index
    %c128 = arith.constant 128 : index
    %3 = vector.load %arg2[%c0_3, %c0_4, %c128] : memref<1x16x2560xbf16, #tpu.memory_space<vmem>>, vector<1x16x2048xbf16>
    %4 = vector.shape_cast %3 : vector<1x16x2048xbf16> to vector<16x2048xbf16>
    %c0_5 = arith.constant 0 : index
    %c0_6 = arith.constant 0 : index
    %c129 = arith.constant 129 : index
    %5 = vector.load %arg2[%c0_5, %c0_6, %c129] : memref<1x16x2560xbf16, #tpu.memory_space<vmem>>, vector<1x16x2048xbf16>
    %6 = vector.shape_cast %5 : vector<1x16x2048xbf16> to vector<16x2048xbf16>
    %c0_7 = arith.constant 0 : index
    %c0_8 = arith.constant 0 : index
    %c255 = arith.constant 255 : index
    %7 = vector.load %arg2[%c0_7, %c0_8, %c255] : memref<1x16x2560xbf16, #tpu.memory_space<vmem>>, vector<1x16x2048xbf16>
    %8 = vector.shape_cast %7 : vector<1x16x2048xbf16> to vector<16x2048xbf16>
    %c0_9 = arith.constant 0 : index
    %c0_10 = arith.constant 0 : index
    %c256 = arith.constant 256 : index
    %9 = vector.load %arg2[%c0_9, %c0_10, %c256] : memref<1x16x2560xbf16, #tpu.memory_space<vmem>>, vector<1x16x2048xbf16>
    %10 = vector.shape_cast %9 : vector<1x16x2048xbf16> to vector<16x2048xbf16>
    %c0_11 = arith.constant 0 : index
    %c0_12 = arith.constant 0 : index
    %c257 = arith.constant 257 : index
    %11 = vector.load %arg2[%c0_11, %c0_12, %c257] : memref<1x16x2560xbf16, #tpu.memory_space<vmem>>, vector<1x16x2048xbf16>
    %12 = vector.shape_cast %11 : vector<1x16x2048xbf16> to vector<16x2048xbf16>
    %c0_13 = arith.constant 0 : index
    %c0_14 = arith.constant 0 : index
    %c383 = arith.constant 383 : index
    %13 = vector.load %arg2[%c0_13, %c0_14, %c383] : memref<1x16x2560xbf16, #tpu.memory_space<vmem>>, vector<1x16x2048xbf16>
    %14 = vector.shape_cast %13 : vector<1x16x2048xbf16> to vector<16x2048xbf16>
    %c0_15 = arith.constant 0 : index
    %c0_16 = arith.constant 0 : index
    %c384 = arith.constant 384 : index
    %15 = vector.load %arg2[%c0_15, %c0_16, %c384] : memref<1x16x2560xbf16, #tpu.memory_space<vmem>>, vector<1x16x2048xbf16>
    %16 = vector.shape_cast %15 : vector<1x16x2048xbf16> to vector<16x2048xbf16>
    %c0_17 = arith.constant 0 : index
    %c0_18 = arith.constant 0 : index
    %c385 = arith.constant 385 : index
    %17 = vector.load %arg2[%c0_17, %c0_18, %c385] : memref<1x16x2560xbf16, #tpu.memory_space<vmem>>, vector<1x16x2048xbf16>
    %18 = vector.shape_cast %17 : vector<1x16x2048xbf16> to vector<16x2048xbf16>
    %19 = tpu.concatenate %2, %4, %6, %8, %10, %12, %14, %16, %18 in 0 : vector<16x2048xbf16>, vector<16x2048xbf16>, vector<16x2048xbf16>, vector<16x2048xbf16>, vector<16x2048xbf16>, vector<16x2048xbf16>, vector<16x2048xbf16>, vector<16x2048xbf16>, vector<16x2048xbf16> -> vector<144x2048xbf16>
    %c0_19 = arith.constant 0 : index
    %c0_20 = arith.constant 0 : index
    %20 = vector.load %arg3[%c0_19, %c0_20] : memref<16x144xbf16, #tpu.memory_space<vmem>>, vector<16x144xbf16>
    %cst = arith.constant dense<0.000000e+00> : vector<16x2048xf32>
    %21 = tpu.matmul %20, %19, %cst {dimension_numbers = #tpu.dot_dimension_numbers<[1], [0], [0], [1], [0, 0, 1, 1], [], []>} : vector<16x144xbf16>, vector<144x2048xbf16>, vector<16x2048xf32> -> vector<16x2048xf32>
    %c0_21 = arith.constant 0 : index
    %c0_22 = arith.constant 0 : index
    %22 = vector.load %arg4[%c0_21, %c0_22] : memref<16x1xf32, #tpu.memory_space<vmem>>, vector<16x1xf32>
    %23 = vector.broadcast %22 : vector<16x1xf32> to vector<16x2048xf32>
    %24 = arith.mulf %21, %23 : vector<16x2048xf32>
    %c0_23 = arith.constant 0 : index
    %c0_24 = arith.constant 0 : index
    %25 = vector.load %arg5[%c0_23, %c0_24] : memref<16x1xf32, #tpu.memory_space<vmem>>, vector<16x1xf32>
    %26 = vector.broadcast %25 : vector<16x1xf32> to vector<16x2048xf32>
    %27 = arith.addf %24, %26 : vector<16x2048xf32>
    %cst_25 = arith.constant 0.000000e+00 : f32
    %28 = vector.broadcast %cst_25 : f32 to vector<16x2048xf32>
    %29 = arith.maximumf %27, %28 : vector<16x2048xf32>
    %30 = vector.broadcast %0 : vector<1x2048xf32> to vector<16x2048xf32>
    %31 = arith.mulf %29, %30 : vector<16x2048xf32>
    %cst_26 = arith.constant 0.000000e+00 : bf16
    %32 = vector.broadcast %cst_26 : bf16 to vector<16x256xbf16>
    %c0_27 = arith.constant 0 : index
    %c0_28 = arith.constant 0 : index
    %33 = vector.load %arg11[%c0_27, %c0_28] : memref<16x2560xbf16, #tpu.memory_space<vmem>>, vector<16x256xbf16>
    tpu.vector_store %arg11[%c0_27, %c0_28], %32 {strides = array<i32>} : memref<16x2560xbf16, #tpu.memory_space<vmem>>, vector<16x256xbf16>,
    %34 = arith.truncf %31 : vector<16x2048xf32> to vector<16x2048xbf16>
    %c0_29 = arith.constant 0 : index
    %c256_30 = arith.constant 256 : index
    %35 = vector.load %arg11[%c0_29, %c256_30] : memref<16x2560xbf16, #tpu.memory_space<vmem>>, vector<16x2048xbf16>
    tpu.vector_store %arg11[%c0_29, %c256_30], %34 {strides = array<i32>} : memref<16x2560xbf16, #tpu.memory_space<vmem>>, vector<16x2048xbf16>,
    %c0_31 = arith.constant 0 : index
    %c2304 = arith.constant 2304 : index
    %36 = vector.load %arg11[%c0_31, %c2304] : memref<16x2560xbf16, #tpu.memory_space<vmem>>, vector<16x256xbf16>
    tpu.vector_store %arg11[%c0_31, %c2304], %32 {strides = array<i32>} : memref<16x2560xbf16, #tpu.memory_space<vmem>>, vector<16x256xbf16>,
    %c0_32 = arith.constant 0 : index
    %c127_33 = arith.constant 127 : index
    %37 = vector.load %arg11[%c0_32, %c127_33] : memref<16x2560xbf16, #tpu.memory_space<vmem>>, vector<16x2048xbf16>
    %c0_34 = arith.constant 0 : index
    %c128_35 = arith.constant 128 : index
    %38 = vector.load %arg11[%c0_34, %c128_35] : memref<16x2560xbf16, #tpu.memory_space<vmem>>, vector<16x2048xbf16>
    %c0_36 = arith.constant 0 : index
    %c129_37 = arith.constant 129 : index
    %39 = vector.load %arg11[%c0_36, %c129_37] : memref<16x2560xbf16, #tpu.memory_space<vmem>>, vector<16x2048xbf16>
    %c0_38 = arith.constant 0 : index
    %c255_39 = arith.constant 255 : index
    %40 = vector.load %arg11[%c0_38, %c255_39] : memref<16x2560xbf16, #tpu.memory_space<vmem>>, vector<16x2048xbf16>
    %c0_40 = arith.constant 0 : index
    %c256_41 = arith.constant 256 : index
    %41 = vector.load %arg11[%c0_40, %c256_41] : memref<16x2560xbf16, #tpu.memory_space<vmem>>, vector<16x2048xbf16>
    %c0_42 = arith.constant 0 : index
    %c257_43 = arith.constant 257 : index
    %42 = vector.load %arg11[%c0_42, %c257_43] : memref<16x2560xbf16, #tpu.memory_space<vmem>>, vector<16x2048xbf16>
    %c0_44 = arith.constant 0 : index
    %c383_45 = arith.constant 383 : index
    %43 = vector.load %arg11[%c0_44, %c383_45] : memref<16x2560xbf16, #tpu.memory_space<vmem>>, vector<16x2048xbf16>
    %c0_46 = arith.constant 0 : index
    %c384_47 = arith.constant 384 : index
    %44 = vector.load %arg11[%c0_46, %c384_47] : memref<16x2560xbf16, #tpu.memory_space<vmem>>, vector<16x2048xbf16>
    %c0_48 = arith.constant 0 : index
    %c385_49 = arith.constant 385 : index
    %45 = vector.load %arg11[%c0_48, %c385_49] : memref<16x2560xbf16, #tpu.memory_space<vmem>>, vector<16x2048xbf16>
    %46 = tpu.concatenate %37, %38, %39, %40, %41, %42, %43, %44, %45 in 0 : vector<16x2048xbf16>, vector<16x2048xbf16>, vector<16x2048xbf16>, vector<16x2048xbf16>, vector<16x2048xbf16>, vector<16x2048xbf16>, vector<16x2048xbf16>, vector<16x2048xbf16>, vector<16x2048xbf16> -> vector<144x2048xbf16>
    %c0_50 = arith.constant 0 : index
    %c0_51 = arith.constant 0 : index
    %47 = vector.load %arg6[%c0_50, %c0_51] : memref<16x144xbf16, #tpu.memory_space<vmem>>, vector<16x144xbf16>
    %cst_52 = arith.constant dense<0.000000e+00> : vector<16x2048xf32>
    %48 = tpu.matmul %47, %46, %cst_52 {dimension_numbers = #tpu.dot_dimension_numbers<[1], [0], [0], [1], [0, 0, 1, 1], [], []>} : vector<16x144xbf16>, vector<144x2048xbf16>, vector<16x2048xf32> -> vector<16x2048xf32>
    %c0_53 = arith.constant 0 : index
    %c0_54 = arith.constant 0 : index
    %49 = vector.load %arg7[%c0_53, %c0_54] : memref<16x1xf32, #tpu.memory_space<vmem>>, vector<16x1xf32>
    %50 = vector.broadcast %49 : vector<16x1xf32> to vector<16x2048xf32>
    %51 = arith.mulf %48, %50 : vector<16x2048xf32>
    %c0_55 = arith.constant 0 : index
    %c0_56 = arith.constant 0 : index
    %52 = vector.load %arg8[%c0_55, %c0_56] : memref<16x1xf32, #tpu.memory_space<vmem>>, vector<16x1xf32>
    %53 = vector.broadcast %52 : vector<16x1xf32> to vector<16x2048xf32>
    %54 = arith.addf %51, %53 : vector<16x2048xf32>
    %cst_57 = arith.constant 0.000000e+00 : f32
    %55 = vector.broadcast %cst_57 : f32 to vector<16x2048xf32>
    %56 = arith.maximumf %54, %55 : vector<16x2048xf32>
    %c0_58 = arith.constant 0 : index
    %c0_59 = arith.constant 0 : index
    %c256_60 = arith.constant 256 : index
    %57 = vector.load %arg2[%c0_58, %c0_59, %c256_60] : memref<1x16x2560xbf16, #tpu.memory_space<vmem>>, vector<1x16x2048xbf16>
    %58 = vector.shape_cast %57 : vector<1x16x2048xbf16> to vector<16x2048xbf16>
    %59 = arith.extf %58 : vector<16x2048xbf16> to vector<16x2048xf32>
    %60 = arith.addf %56, %59 : vector<16x2048xf32>
    %61 = vector.broadcast %0 : vector<1x2048xf32> to vector<16x2048xf32>
    %62 = arith.mulf %60, %61 : vector<16x2048xf32>
    %cst_61 = arith.constant 0.000000e+00 : bf16
    %63 = vector.broadcast %cst_61 : bf16 to vector<16x256xbf16>
    %c0_62 = arith.constant 0 : index
    %c0_63 = arith.constant 0 : index
    %c0_64 = arith.constant 0 : index
    %64 = vector.load %arg9[%c0_62, %c0_63, %c0_64] : memref<1x16x2560xbf16, #tpu.memory_space<vmem>>, vector<1x16x256xbf16>
    %65 = vector.shape_cast %64 : vector<1x16x256xbf16> to vector<16x256xbf16>
    %66 = vector.shape_cast %63 : vector<16x256xbf16> to vector<1x16x256xbf16>
    tpu.vector_store %arg9[%c0_62, %c0_63, %c0_64], %66 {strides = array<i32>} : memref<1x16x2560xbf16, #tpu.memory_space<vmem>>, vector<1x16x256xbf16>,
    %67 = arith.truncf %62 : vector<16x2048xf32> to vector<16x2048xbf16>
    %c0_65 = arith.constant 0 : index
    %c0_66 = arith.constant 0 : index
    %c256_67 = arith.constant 256 : index
    %68 = vector.load %arg9[%c0_65, %c0_66, %c256_67] : memref<1x16x2560xbf16, #tpu.memory_space<vmem>>, vector<1x16x2048xbf16>
    %69 = vector.shape_cast %68 : vector<1x16x2048xbf16> to vector<16x2048xbf16>
    %70 = vector.shape_cast %67 : vector<16x2048xbf16> to vector<1x16x2048xbf16>
    tpu.vector_store %arg9[%c0_65, %c0_66, %c256_67], %70 {strides = array<i32>} : memref<1x16x2560xbf16, #tpu.memory_space<vmem>>, vector<1x16x2048xbf16>,
    %c0_68 = arith.constant 0 : index
    %c0_69 = arith.constant 0 : index
    %c2304_70 = arith.constant 2304 : index
    %71 = vector.load %arg9[%c0_68, %c0_69, %c2304_70] : memref<1x16x2560xbf16, #tpu.memory_space<vmem>>, vector<1x16x256xbf16>
    %72 = vector.shape_cast %71 : vector<1x16x256xbf16> to vector<16x256xbf16>
    %73 = vector.shape_cast %63 : vector<16x256xbf16> to vector<1x16x256xbf16>
    tpu.vector_store %arg9[%c0_68, %c0_69, %c2304_70], %73 {strides = array<i32>} : memref<1x16x2560xbf16, #tpu.memory_space<vmem>>, vector<1x16x256xbf16>,
    %c0_71 = arith.constant 0 : index
    %c0_72 = arith.constant 0 : index
    %c256_73 = arith.constant 256 : index
    %74 = vector.load %arg9[%c0_71, %c0_72, %c256_73] : memref<1x16x2560xbf16, #tpu.memory_space<vmem>>, vector<1x16x128xbf16>
    %75 = vector.shape_cast %74 : vector<1x16x128xbf16> to vector<16x128xbf16>
    %76 = arith.extf %75 : vector<16x128xbf16> to vector<16x128xf32>
    %c0_74 = arith.constant 0 : index
    %c0_75 = arith.constant 0 : index
    %c257_76 = arith.constant 257 : index
    %77 = vector.load %arg9[%c0_74, %c0_75, %c257_76] : memref<1x16x2560xbf16, #tpu.memory_space<vmem>>, vector<1x16x128xbf16>
    %78 = vector.shape_cast %77 : vector<1x16x128xbf16> to vector<16x128xbf16>
    %79 = arith.extf %78 : vector<16x128xbf16> to vector<16x128xf32>
    %80 = arith.addf %76, %79 : vector<16x128xf32>
    %c0_77 = arith.constant 0 : index
    %c0_78 = arith.constant 0 : index
    %c384_79 = arith.constant 384 : index
    %81 = vector.load %arg9[%c0_77, %c0_78, %c384_79] : memref<1x16x2560xbf16, #tpu.memory_space<vmem>>, vector<1x16x128xbf16>
    %82 = vector.shape_cast %81 : vector<1x16x128xbf16> to vector<16x128xbf16>
    %83 = arith.extf %82 : vector<16x128xbf16> to vector<16x128xf32>
    %84 = arith.addf %80, %83 : vector<16x128xf32>
    %c0_80 = arith.constant 0 : index
    %c0_81 = arith.constant 0 : index
    %c385_82 = arith.constant 385 : index
    %85 = vector.load %arg9[%c0_80, %c0_81, %c385_82] : memref<1x16x2560xbf16, #tpu.memory_space<vmem>>, vector<1x16x128xbf16>
    %86 = vector.shape_cast %85 : vector<1x16x128xbf16> to vector<16x128xbf16>
    %87 = arith.extf %86 : vector<16x128xbf16> to vector<16x128xf32>
    %88 = arith.addf %84, %87 : vector<16x128xf32>
    %cst_83 = arith.constant 2.500000e-01 : f32
    %89 = vector.broadcast %cst_83 : f32 to vector<16x128xf32>
    %90 = arith.mulf %88, %89 : vector<16x128xf32>
    %c0_84 = arith.constant 0 : index
    %c0_85 = arith.constant 0 : index
    %c512 = arith.constant 512 : index
    %91 = vector.load %arg9[%c0_84, %c0_85, %c512] : memref<1x16x2560xbf16, #tpu.memory_space<vmem>>, vector<1x16x128xbf16>
    %92 = vector.shape_cast %91 : vector<1x16x128xbf16> to vector<16x128xbf16>
    %93 = arith.extf %92 : vector<16x128xbf16> to vector<16x128xf32>
    %c0_86 = arith.constant 0 : index
    %c0_87 = arith.constant 0 : index
    %c513 = arith.constant 513 : index
    %94 = vector.load %arg9[%c0_86, %c0_87, %c513] : memref<1x16x2560xbf16, #tpu.memory_space<vmem>>, vector<1x16x128xbf16>
    %95 = vector.shape_cast %94 : vector<1x16x128xbf16> to vector<16x128xbf16>
    %96 = arith.extf %95 : vector<16x128xbf16> to vector<16x128xf32>
    %97 = arith.addf %93, %96 : vector<16x128xf32>
    %c0_88 = arith.constant 0 : index
    %c0_89 = arith.constant 0 : index
    %c640 = arith.constant 640 : index
    %98 = vector.load %arg9[%c0_88, %c0_89, %c640] : memref<1x16x2560xbf16, #tpu.memory_space<vmem>>, vector<1x16x128xbf16>
    %99 = vector.shape_cast %98 : vector<1x16x128xbf16> to vector<16x128xbf16>
    %100 = arith.extf %99 : vector<16x128xbf16> to vector<16x128xf32>
    %101 = arith.addf %97, %100 : vector<16x128xf32>
    %c0_90 = arith.constant 0 : index
    %c0_91 = arith.constant 0 : index
    %c641 = arith.constant 641 : index
    %102 = vector.load %arg9[%c0_90, %c0_91, %c641] : memref<1x16x2560xbf16, #tpu.memory_space<vmem>>, vector<1x16x128xbf16>
    %103 = vector.shape_cast %102 : vector<1x16x128xbf16> to vector<16x128xbf16>
    %104 = arith.extf %103 : vector<16x128xbf16> to vector<16x128xf32>
    %105 = arith.addf %101, %104 : vector<16x128xf32>
    %cst_92 = arith.constant 2.500000e-01 : f32
    %106 = vector.broadcast %cst_92 : f32 to vector<16x128xf32>
    %107 = arith.mulf %105, %106 : vector<16x128xf32>
    %c0_93 = arith.constant 0 : index
    %c0_94 = arith.constant 0 : index
    %c768 = arith.constant 768 : index
    %108 = vector.load %arg9[%c0_93, %c0_94, %c768] : memref<1x16x2560xbf16, #tpu.memory_space<vmem>>, vector<1x16x128xbf16>
    %109 = vector.shape_cast %108 : vector<1x16x128xbf16> to vector<16x128xbf16>
    %110 = arith.extf %109 : vector<16x128xbf16> to vector<16x128xf32>
    %c0_95 = arith.constant 0 : index
    %c0_96 = arith.constant 0 : index
    %c769 = arith.constant 769 : index
    %111 = vector.load %arg9[%c0_95, %c0_96, %c769] : memref<1x16x2560xbf16, #tpu.memory_space<vmem>>, vector<1x16x128xbf16>
    %112 = vector.shape_cast %111 : vector<1x16x128xbf16> to vector<16x128xbf16>
    %113 = arith.extf %112 : vector<16x128xbf16> to vector<16x128xf32>
    %114 = arith.addf %110, %113 : vector<16x128xf32>
    %c0_97 = arith.constant 0 : index
    %c0_98 = arith.constant 0 : index
    %c896 = arith.constant 896 : index
    %115 = vector.load %arg9[%c0_97, %c0_98, %c896] : memref<1x16x2560xbf16, #tpu.memory_space<vmem>>, vector<1x16x128xbf16>
    %116 = vector.shape_cast %115 : vector<1x16x128xbf16> to vector<16x128xbf16>
    %117 = arith.extf %116 : vector<16x128xbf16> to vector<16x128xf32>
    %118 = arith.addf %114, %117 : vector<16x128xf32>
    %c0_99 = arith.constant 0 : index
    %c0_100 = arith.constant 0 : index
    %c897 = arith.constant 897 : index
    %119 = vector.load %arg9[%c0_99, %c0_100, %c897] : memref<1x16x2560xbf16, #tpu.memory_space<vmem>>, vector<1x16x128xbf16>
    %120 = vector.shape_cast %119 : vector<1x16x128xbf16> to vector<16x128xbf16>
    %121 = arith.extf %120 : vector<16x128xbf16> to vector<16x128xf32>
    %122 = arith.addf %118, %121 : vector<16x128xf32>
    %cst_101 = arith.constant 2.500000e-01 : f32
    %123 = vector.broadcast %cst_101 : f32 to vector<16x128xf32>
    %124 = arith.mulf %122, %123 : vector<16x128xf32>
    %c0_102 = arith.constant 0 : index
    %c0_103 = arith.constant 0 : index
    %c1024 = arith.constant 1024 : index
    %125 = vector.load %arg9[%c0_102, %c0_103, %c1024] : memref<1x16x2560xbf16, #tpu.memory_space<vmem>>, vector<1x16x128xbf16>
    %126 = vector.shape_cast %125 : vector<1x16x128xbf16> to vector<16x128xbf16>
    %127 = arith.extf %126 : vector<16x128xbf16> to vector<16x128xf32>
    %c0_104 = arith.constant 0 : index
    %c0_105 = arith.constant 0 : index
    %c1025 = arith.constant 1025 : index
    %128 = vector.load %arg9[%c0_104, %c0_105, %c1025] : memref<1x16x2560xbf16, #tpu.memory_space<vmem>>, vector<1x16x128xbf16>
    %129 = vector.shape_cast %128 : vector<1x16x128xbf16> to vector<16x128xbf16>
    %130 = arith.extf %129 : vector<16x128xbf16> to vector<16x128xf32>
    %131 = arith.addf %127, %130 : vector<16x128xf32>
    %c0_106 = arith.constant 0 : index
    %c0_107 = arith.constant 0 : index
    %c1152 = arith.constant 1152 : index
    %132 = vector.load %arg9[%c0_106, %c0_107, %c1152] : memref<1x16x2560xbf16, #tpu.memory_space<vmem>>, vector<1x16x128xbf16>
    %133 = vector.shape_cast %132 : vector<1x16x128xbf16> to vector<16x128xbf16>
    %134 = arith.extf %133 : vector<16x128xbf16> to vector<16x128xf32>
    %135 = arith.addf %131, %134 : vector<16x128xf32>
    %c0_108 = arith.constant 0 : index
    %c0_109 = arith.constant 0 : index
    %c1153 = arith.constant 1153 : index
    %136 = vector.load %arg9[%c0_108, %c0_109, %c1153] : memref<1x16x2560xbf16, #tpu.memory_space<vmem>>, vector<1x16x128xbf16>
    %137 = vector.shape_cast %136 : vector<1x16x128xbf16> to vector<16x128xbf16>
    %138 = arith.extf %137 : vector<16x128xbf16> to vector<16x128xf32>
    %139 = arith.addf %135, %138 : vector<16x128xf32>
    %cst_110 = arith.constant 2.500000e-01 : f32
    %140 = vector.broadcast %cst_110 : f32 to vector<16x128xf32>
    %141 = arith.mulf %139, %140 : vector<16x128xf32>
    %c0_111 = arith.constant 0 : index
    %c0_112 = arith.constant 0 : index
    %c1280 = arith.constant 1280 : index
    %142 = vector.load %arg9[%c0_111, %c0_112, %c1280] : memref<1x16x2560xbf16, #tpu.memory_space<vmem>>, vector<1x16x128xbf16>
    %143 = vector.shape_cast %142 : vector<1x16x128xbf16> to vector<16x128xbf16>
    %144 = arith.extf %143 : vector<16x128xbf16> to vector<16x128xf32>
    %c0_113 = arith.constant 0 : index
    %c0_114 = arith.constant 0 : index
    %c1281 = arith.constant 1281 : index
    %145 = vector.load %arg9[%c0_113, %c0_114, %c1281] : memref<1x16x2560xbf16, #tpu.memory_space<vmem>>, vector<1x16x128xbf16>
    %146 = vector.shape_cast %145 : vector<1x16x128xbf16> to vector<16x128xbf16>
    %147 = arith.extf %146 : vector<16x128xbf16> to vector<16x128xf32>
    %148 = arith.addf %144, %147 : vector<16x128xf32>
    %c0_115 = arith.constant 0 : index
    %c0_116 = arith.constant 0 : index
    %c1408 = arith.constant 1408 : index
    %149 = vector.load %arg9[%c0_115, %c0_116, %c1408] : memref<1x16x2560xbf16, #tpu.memory_space<vmem>>, vector<1x16x128xbf16>
    %150 = vector.shape_cast %149 : vector<1x16x128xbf16> to vector<16x128xbf16>
    %151 = arith.extf %150 : vector<16x128xbf16> to vector<16x128xf32>
    %152 = arith.addf %148, %151 : vector<16x128xf32>
    %c0_117 = arith.constant 0 : index
    %c0_118 = arith.constant 0 : index
    %c1409 = arith.constant 1409 : index
    %153 = vector.load %arg9[%c0_117, %c0_118, %c1409] : memref<1x16x2560xbf16, #tpu.memory_space<vmem>>, vector<1x16x128xbf16>
    %154 = vector.shape_cast %153 : vector<1x16x128xbf16> to vector<16x128xbf16>
    %155 = arith.extf %154 : vector<16x128xbf16> to vector<16x128xf32>
    %156 = arith.addf %152, %155 : vector<16x128xf32>
    %cst_119 = arith.constant 2.500000e-01 : f32
    %157 = vector.broadcast %cst_119 : f32 to vector<16x128xf32>
    %158 = arith.mulf %156, %157 : vector<16x128xf32>
    %c0_120 = arith.constant 0 : index
    %c0_121 = arith.constant 0 : index
    %c1536 = arith.constant 1536 : index
    %159 = vector.load %arg9[%c0_120, %c0_121, %c1536] : memref<1x16x2560xbf16, #tpu.memory_space<vmem>>, vector<1x16x128xbf16>
    %160 = vector.shape_cast %159 : vector<1x16x128xbf16> to vector<16x128xbf16>
    %161 = arith.extf %160 : vector<16x128xbf16> to vector<16x128xf32>
    %c0_122 = arith.constant 0 : index
    %c0_123 = arith.constant 0 : index
    %c1537 = arith.constant 1537 : index
    %162 = vector.load %arg9[%c0_122, %c0_123, %c1537] : memref<1x16x2560xbf16, #tpu.memory_space<vmem>>, vector<1x16x128xbf16>
    %163 = vector.shape_cast %162 : vector<1x16x128xbf16> to vector<16x128xbf16>
    %164 = arith.extf %163 : vector<16x128xbf16> to vector<16x128xf32>
    %165 = arith.addf %161, %164 : vector<16x128xf32>
    %c0_124 = arith.constant 0 : index
    %c0_125 = arith.constant 0 : index
    %c1664 = arith.constant 1664 : index
    %166 = vector.load %arg9[%c0_124, %c0_125, %c1664] : memref<1x16x2560xbf16, #tpu.memory_space<vmem>>, vector<1x16x128xbf16>
    %167 = vector.shape_cast %166 : vector<1x16x128xbf16> to vector<16x128xbf16>
    %168 = arith.extf %167 : vector<16x128xbf16> to vector<16x128xf32>
    %169 = arith.addf %165, %168 : vector<16x128xf32>
    %c0_126 = arith.constant 0 : index
    %c0_127 = arith.constant 0 : index
    %c1665 = arith.constant 1665 : index
    %170 = vector.load %arg9[%c0_126, %c0_127, %c1665] : memref<1x16x2560xbf16, #tpu.memory_space<vmem>>, vector<1x16x128xbf16>
    %171 = vector.shape_cast %170 : vector<1x16x128xbf16> to vector<16x128xbf16>
    %172 = arith.extf %171 : vector<16x128xbf16> to vector<16x128xf32>
    %173 = arith.addf %169, %172 : vector<16x128xf32>
    %cst_128 = arith.constant 2.500000e-01 : f32
    %174 = vector.broadcast %cst_128 : f32 to vector<16x128xf32>
    %175 = arith.mulf %173, %174 : vector<16x128xf32>
    %c0_129 = arith.constant 0 : index
    %c0_130 = arith.constant 0 : index
    %c1792 = arith.constant 1792 : index
    %176 = vector.load %arg9[%c0_129, %c0_130, %c1792] : memref<1x16x2560xbf16, #tpu.memory_space<vmem>>, vector<1x16x128xbf16>
    %177 = vector.shape_cast %176 : vector<1x16x128xbf16> to vector<16x128xbf16>
    %178 = arith.extf %177 : vector<16x128xbf16> to vector<16x128xf32>
    %c0_131 = arith.constant 0 : index
    %c0_132 = arith.constant 0 : index
    %c1793 = arith.constant 1793 : index
    %179 = vector.load %arg9[%c0_131, %c0_132, %c1793] : memref<1x16x2560xbf16, #tpu.memory_space<vmem>>, vector<1x16x128xbf16>
    %180 = vector.shape_cast %179 : vector<1x16x128xbf16> to vector<16x128xbf16>
    %181 = arith.extf %180 : vector<16x128xbf16> to vector<16x128xf32>
    %182 = arith.addf %178, %181 : vector<16x128xf32>
    %c0_133 = arith.constant 0 : index
    %c0_134 = arith.constant 0 : index
    %c1920 = arith.constant 1920 : index
    %183 = vector.load %arg9[%c0_133, %c0_134, %c1920] : memref<1x16x2560xbf16, #tpu.memory_space<vmem>>, vector<1x16x128xbf16>
    %184 = vector.shape_cast %183 : vector<1x16x128xbf16> to vector<16x128xbf16>
    %185 = arith.extf %184 : vector<16x128xbf16> to vector<16x128xf32>
    %186 = arith.addf %182, %185 : vector<16x128xf32>
    %c0_135 = arith.constant 0 : index
    %c0_136 = arith.constant 0 : index
    %c1921 = arith.constant 1921 : index
    %187 = vector.load %arg9[%c0_135, %c0_136, %c1921] : memref<1x16x2560xbf16, #tpu.memory_space<vmem>>, vector<1x16x128xbf16>
    %188 = vector.shape_cast %187 : vector<1x16x128xbf16> to vector<16x128xbf16>
    %189 = arith.extf %188 : vector<16x128xbf16> to vector<16x128xf32>
    %190 = arith.addf %186, %189 : vector<16x128xf32>
    %cst_137 = arith.constant 2.500000e-01 : f32
    %191 = vector.broadcast %cst_137 : f32 to vector<16x128xf32>
    %192 = arith.mulf %190, %191 : vector<16x128xf32>
    %c0_138 = arith.constant 0 : index
    %c0_139 = arith.constant 0 : index
    %c2048 = arith.constant 2048 : index
    %193 = vector.load %arg9[%c0_138, %c0_139, %c2048] : memref<1x16x2560xbf16, #tpu.memory_space<vmem>>, vector<1x16x128xbf16>
    %194 = vector.shape_cast %193 : vector<1x16x128xbf16> to vector<16x128xbf16>
    %195 = arith.extf %194 : vector<16x128xbf16> to vector<16x128xf32>
    %c0_140 = arith.constant 0 : index
    %c0_141 = arith.constant 0 : index
    %c2049 = arith.constant 2049 : index
    %196 = vector.load %arg9[%c0_140, %c0_141, %c2049] : memref<1x16x2560xbf16, #tpu.memory_space<vmem>>, vector<1x16x128xbf16>
    %197 = vector.shape_cast %196 : vector<1x16x128xbf16> to vector<16x128xbf16>
    %198 = arith.extf %197 : vector<16x128xbf16> to vector<16x128xf32>
    %199 = arith.addf %195, %198 : vector<16x128xf32>
    %c0_142 = arith.constant 0 : index
    %c0_143 = arith.constant 0 : index
    %c2176 = arith.constant 2176 : index
    %200 = vector.load %arg9[%c0_142, %c0_143, %c2176] : memref<1x16x2560xbf16, #tpu.memory_space<vmem>>, vector<1x16x128xbf16>
    %201 = vector.shape_cast %200 : vector<1x16x128xbf16> to vector<16x128xbf16>
    %202 = arith.extf %201 : vector<16x128xbf16> to vector<16x128xf32>
    %203 = arith.addf %199, %202 : vector<16x128xf32>
    %c0_144 = arith.constant 0 : index
    %c0_145 = arith.constant 0 : index
    %c2177 = arith.constant 2177 : index
    %204 = vector.load %arg9[%c0_144, %c0_145, %c2177] : memref<1x16x2560xbf16, #tpu.memory_space<vmem>>, vector<1x16x128xbf16>
    %205 = vector.shape_cast %204 : vector<1x16x128xbf16> to vector<16x128xbf16>
    %206 = arith.extf %205 : vector<16x128xbf16> to vector<16x128xf32>
    %207 = arith.addf %203, %206 : vector<16x128xf32>
    %cst_146 = arith.constant 2.500000e-01 : f32
    %208 = vector.broadcast %cst_146 : f32 to vector<16x128xf32>
    %209 = arith.mulf %207, %208 : vector<16x128xf32>
    %210 = tpu.concatenate %90, %107, %124, %141, %158, %175, %192, %209 in 1 : vector<16x128xf32>, vector<16x128xf32>, vector<16x128xf32>, vector<16x128xf32>, vector<16x128xf32>, vector<16x128xf32>, vector<16x128xf32>, vector<16x128xf32> -> vector<16x1024xf32>
    %c0_147 = arith.constant 0 : index
    %c0_148 = arith.constant 0 : index
    %c0_149 = arith.constant 0 : index
    %211 = vector.load %arg10[%c0_147, %c0_148, %c0_149] : memref<1x16x1024xf32, #tpu.memory_space<vmem>>, vector<1x16x1024xf32>
    %212 = vector.shape_cast %211 : vector<1x16x1024xf32> to vector<16x1024xf32>
    %213 = vector.shape_cast %210 : vector<16x1024xf32> to vector<1x16x1024xf32>
    tpu.vector_store %arg10[%c0_147, %c0_148, %c0_149], %213 {strides = array<i32>} : memref<1x16x1024xf32, #tpu.memory_space<vmem>>, vector<1x16x1024xf32>,
    return
  }
  func.func @transform_0(%arg0: i32) -> (i32, i32) {
    %c0_i32 = arith.constant 0 : i32
    %c0_i32_0 = arith.constant 0 : i32
    %c0_i32_1 = arith.constant 0 : i32
    return %c0_i32, %c0_i32_0 : i32, i32
  }
  func.func @transform_1(%arg0: i32) -> (i32, i32, i32) {
    %c0_i32 = arith.constant 0 : i32
    %c0_i32_0 = arith.constant 0 : i32
    %c0_i32_1 = arith.constant 0 : i32
    return %arg0, %c0_i32, %c0_i32_0 : i32, i32, i32
  }
  func.func @transform_2(%arg0: i32) -> (i32, i32) {
    %c0_i32 = arith.constant 0 : i32
    %c0_i32_0 = arith.constant 0 : i32
    %c0_i32_1 = arith.constant 0 : i32
    return %c0_i32, %c0_i32_0 : i32, i32
  }
  func.func @transform_3(%arg0: i32) -> (i32, i32) {
    %c0_i32 = arith.constant 0 : i32
    %c0_i32_0 = arith.constant 0 : i32
    %c0_i32_1 = arith.constant 0 : i32
    return %c0_i32, %c0_i32_0 : i32, i32
  }
  func.func @transform_4(%arg0: i32) -> (i32, i32) {
    %c0_i32 = arith.constant 0 : i32
    %c0_i32_0 = arith.constant 0 : i32
    %c0_i32_1 = arith.constant 0 : i32
    return %c0_i32, %c0_i32_0 : i32, i32
  }
  func.func @transform_5(%arg0: i32) -> (i32, i32) {
    %c0_i32 = arith.constant 0 : i32
    %c0_i32_0 = arith.constant 0 : i32
    %c0_i32_1 = arith.constant 0 : i32
    return %c0_i32, %c0_i32_0 : i32, i32
  }
  func.func @transform_6(%arg0: i32) -> (i32, i32) {
    %c0_i32 = arith.constant 0 : i32
    %c0_i32_0 = arith.constant 0 : i32
    %c0_i32_1 = arith.constant 0 : i32
    return %c0_i32, %c0_i32_0 : i32, i32
  }
  func.func @transform_7(%arg0: i32) -> (i32, i32) {
    %c0_i32 = arith.constant 0 : i32
    %c0_i32_0 = arith.constant 0 : i32
    %c0_i32_1 = arith.constant 0 : i32
    return %c0_i32, %c0_i32_0 : i32, i32
  }
  func.func @transform_8(%arg0: i32) -> (i32, i32, i32) {
    %c0_i32 = arith.constant 0 : i32
    %c0_i32_0 = arith.constant 0 : i32
    %c0_i32_1 = arith.constant 0 : i32
    return %arg0, %c0_i32, %c0_i32_0 : i32, i32, i32
  }
  func.func @transform_9(%arg0: i32) -> (i32, i32, i32) {
    %c0_i32 = arith.constant 0 : i32
    %c0_i32_0 = arith.constant 0 : i32
    %c0_i32_1 = arith.constant 0 : i32
    return %arg0, %c0_i32, %c0_i32_0 : i32, i32, i32
  }
}

</mosaic_0001>

<bundles_post_ra>
// kernel: _lambda_.2
= control target key start
LH: loop header
LB: loop body
LE: loop exit
PB: predicated region body
PF: predicated region fallthrough
CT: control target
= control target key end

     0   :  { %s4991_s13 = smov 0   ;;  %s8465_s0 = inlined_call_operand.vmem [shape: f32[1,2048], index: 0, kind: input, shape index: {}]   ;;  %s8466_s1 = inlined_call_operand.vmem [shape: bf16[2,16,2560], index: 1, kind: input, shape index: {}]   ;;  %s8467_s2 = inlined_call_operand.vmem [shape: bf16[16,144], index: 2, kind: input, shape index: {}]   ;;  %s8468_s3 = inlined_call_operand.vmem [shape: f32[16,1], index: 3, kind: input, shape index: {}]   ;;  %s8469_s4 = inlined_call_operand.vmem [shape: f32[16,1], index: 4, kind: input, shape index: {}]   ;;  %s8470_s5 = inlined_call_operand.vmem [shape: bf16[16,144], index: 5, kind: input, shape index: {}]   ;;  %s8471_s6 = inlined_call_operand.vmem [shape: f32[16,1], index: 6, kind: input, shape index: {}]   ;;  %s8472_s7 = inlined_call_operand.vmem [shape: f32[16,1], index: 7, kind: input, shape index: {}]   ;;  %s8473_s8 = inlined_call_operand.vmem [shape: bf16[16,16], index: 8, kind: input, shape index: {}]   ;;  %s8474_s9 = inlined_call_operand.vmem [shape: f32[16,1], index: 9, kind: input, shape index: {}]   ;;  %s8475_s10 = inlined_call_operand.vmem [shape: bf16[2,16,2560], index: 10, kind: output, shape index: {}]  }
   0x1 LB: > { %s4186_s14 = sadd.s32 4294967295, %s4930_s13   ;;  %p4190_p0 = scmp.ge.s32.totalorder %s4930_s13, 1  ;;  %s4930_s13 = sphi %s4991_s13, %s20_s13  }
   0x2   : > { %p312_p1 = scmp.lt.s32.totalorder %s4930_s13, 3 }
   0x4   : > { %p313_p2 = pnand %p4190_p0, %p312_p1 }
   0x6   : > { %316 = sbr.rel (%p313_p2) target bundleno = 1810 (0x712), region = 60 }
   0xb   : > { %p350_p3 = scmp.lt.s32.totalorder %s4186_s14, 1  ;;  %s4932_s19 = smov 127   ;;  %vm588_vm0 = vcmask 1039360   ;;  %vm643_vm1 = vcmask 1031168   ;;  %vm1166_vm2 = vcmask 7168   ;;  %vm1405_vm3 = vcmask 130048  }
   0xc   : > { %s4933_s20 = smov 126   ;;  %s4934_s21 = smov 1  }
   0xd   : > { %s8920_s14 = smov (!%p350_p3, %s4186_s14), 1 }
   0xe   : > { %s4908_s15 = smul.u32 160, %s8920_s14 }
  0x10   : > { %s5007_s18 = scalar_lea.vmem %s8466_s1, %s4908_s15  ;;  %s6217_s28 = scalar_lea.vmem %s8475_s10, %s4908_s15 }
  0x11   : > { %v4279_v0 = vld [vmem:[%s5007_s18 + $0x14] sm:$0xf]  ;;  %v4802_v1 = vld [vmem:[%s5007_s18 + $0x60] sm:$0xf0]  ;;  %v4271_v2 = vld [vmem:[%s5007_s18 + $0xc] sm:$0xf] }
  0x12   : > { %v5012_v3 = vor.u32 %v4802_v1, %v4279_v0  ;;  %v4801_v4 = vld [vmem:[%s5007_s18 + $0x58] sm:$0xf0]  ;;  %v4263_v5 = vld [vmem:[%s5007_s18 + $0x4] sm:$0xf]  ;;  %v4800_v6 = vld [vmem:[%s5007_s18 + $0x50] sm:$0xf0] }
  0x13   : > { %v5017_v7 = vor.u32 %v4801_v4, %v4271_v2  ;;  %v5019_v8 = vor.u32 %v4800_v6, %v4263_v5  ;;  %v4794_v9 = vld [vmem:[%s5007_s18 + $0x18] sm:$0xf]  ;;  %v4281_v10 = vld [vmem:[%s5007_s18 + $0x64] sm:$0xf0]  ;;  %v4793_v11 = vld [vmem:[%s5007_s18 + $0x10] sm:$0xf] }
  0x14   : > { %8625 = vst [vmem:[#allocation3_spill] sm:$0xff] %v5012_v3  ;;  %564 = vrot.lane.b32.xlu2 %v5012_v3, %s4932_s19  ;;  %v4273_v12 = vld [vmem:[%s5007_s18 + $0x5c] sm:$0xf0]  ;;  %v4792_v13 = vld [vmem:[%s5007_s18 + $0x8] sm:$0xf]  ;;  %v5033_v15 = vor.u32 %v4794_v9, %v4281_v10 }
  0x15   : > { %8626 = vst [vmem:[#allocation4_spill] sm:$0xff] %v5017_v7  ;;  %560 = vrot.lane.b32.xlu1 %v5017_v7, %s4932_s19  ;;  %556 = vrot.lane.b32.xlu0 %v5019_v8, %s4932_s19  ;;  %v4265_v14 = vld [vmem:[%s5007_s18 + $0x54] sm:$0xf0]  ;;  %v5035_v16 = vor.u32 %v4793_v11, %v4273_v12  ;;  %v4295_v18 = vld [vmem:[%s5007_s18 + $0x24] sm:$0xf] }
  0x16   : > { %8627 = vst [vmem:[#allocation5_spill] sm:$0xff] %v5019_v8  ;;  %v5037_v17 = vor.u32 %v4792_v13, %v4265_v14  ;;  %v4804_v19 = vld [vmem:[%s5007_s18 + $0x70] sm:$0xf0]  ;;  %v4795_v20 = vld [vmem:[%s5007_s18 + $0x20] sm:$0xf] }
  0x17   : > { %8628 = vst [vmem:[#allocation6_spill] sm:$0xff] %v5033_v15  ;;  %v4289_v21 = vld [vmem:[%s5007_s18 + $0x6c] sm:$0xf0]  ;;  %v4287_v22 = vld [vmem:[%s5007_s18 + $0x1c] sm:$0xf]  ;;  %v5051_v24 = vor.u32 %v4804_v19, %v4295_v18 }
  0x18   : > { %8629 = vst [vmem:[#allocation7_spill] sm:$0xff] %v5035_v16  ;;  %v4803_v23 = vld [vmem:[%s5007_s18 + $0x68] sm:$0xf0]  ;;  %v5053_v25 = vor.u32 %v4795_v20, %v4289_v21  ;;  %v4797_v27 = vld [vmem:[%s5007_s18 + $0x30] sm:$0xf] }
  0x19   : > { %8630 = vst [vmem:[#allocation8_spill] sm:$0xff] %v5037_v17  ;;  %v5055_v26 = vor.u32 %v4803_v23, %v4287_v22  ;;  %v4305_v28 = vld [vmem:[%s5007_s18 + $0x7c] sm:$0xf0]  ;;  %v4303_v29 = vld [vmem:[%s5007_s18 + $0x2c] sm:$0xf] }
  0x1a   : > { %8631 = vst [vmem:[#allocation9_spill] sm:$0xff] %v5051_v24  ;;  %v4805_v30 = vld [vmem:[%s5007_s18 + $0x78] sm:$0xf0]  ;;  %v4796_v31 = vld [vmem:[%s5007_s18 + $0x28] sm:$0xf]  ;;  %v5069_v33 = vor.u32 %v4797_v27, %v4305_v28 }
  0x1b   : > { %8632 = vst [vmem:[#allocation10_spill] sm:$0xff] %v5053_v25  ;;  %v4297_v32 = vld [vmem:[%s5007_s18 + $0x74] sm:$0xf0]  ;;  %v5071_v34 = vor.u32 %v4805_v30, %v4303_v29  ;;  %v4319_v36 = vld [vmem:[%s5007_s18 + $0x3c] sm:$0xf] }
  0x1c   : > { %566 = vrot.lane.b32.xlu2 %v5033_v15, %s4932_s19  ;;  %8633 = vst [vmem:[#allocation11_spill] sm:$0xff] %v5055_v26  ;;  %v5073_v35 = vor.u32 %v4796_v31, %v4297_v32  ;;  %v4807_v37 = vld [vmem:[%s5007_s18 + $0x88] sm:$0xf0]  ;;  %v4798_v38 = vld [vmem:[%s5007_s18 + $0x38] sm:$0xf] }
  0x1d   : > { %562 = vrot.lane.b32.xlu1 %v5035_v16, %s4932_s19  ;;  %558 = vrot.lane.b32.xlu0 %v5037_v17, %s4932_s19  ;;  %8634 = vst [vmem:[#allocation12_spill] sm:$0xff] %v5069_v33  ;;  %v4313_v39 = vld [vmem:[%s5007_s18 + $0x84] sm:$0xf0]  ;;  %v4311_v40 = vld [vmem:[%s5007_s18 + $0x34] sm:$0xf]  ;;  %v5087_v42 = vor.u32 %v4807_v37, %v4319_v36 }
  0x1e   : > { %8635 = vst [vmem:[#allocation13_spill] sm:$0xff] %v5071_v34  ;;  %v4806_v41 = vld [vmem:[%s5007_s18 + $0x80] sm:$0xf0]  ;;  %v5089_v43 = vor.u32 %v4798_v38, %v4313_v39  ;;  %v4799_v45 = vld [vmem:[%s5007_s18 + $0x40] sm:$0xf] }
  0x1f   : > { %8636 = vst [vmem:[#allocation14_spill] sm:$0xff] %v5073_v35  ;;  %v5091_v44 = vor.u32 %v4806_v41, %v4311_v40  ;;  %v4321_v46 = vld [vmem:[%s5007_s18 + $0x8c] sm:$0xf0]  ;;  %v4327_v48 = vld [vmem:[%s5007_s18 + $0x44] sm:$0xf] }
  0x20   : > { %8637 = vst [vmem:[#allocation15_spill] sm:$0xff] %v5087_v42  ;;  %v5101_v47 = vor.u32 %v4799_v45, %v4321_v46  ;;  %v4808_v49 = vld [vmem:[%s5007_s18 + $0x90] sm:$0xf0]  ;;  %v4211_v51 = vld [vmem:[%s5007_s18 + $0x10] sm:$0xf] }
  0x21   : > { %8638 = vst [vmem:[#allocation16_spill] sm:$0xff] %v5089_v43  ;;  %v5135_v50 = vor.u32 %v4808_v49, %v4327_v48  ;;  %v4785_v52 = vld [vmem:[%s5007_s18 + $0x5c] sm:$0xf0]  ;;  %v4203_v53 = vld [vmem:[%s5007_s18 + $0x8] sm:$0xf] }
  0x22   : > { %8639 = vst [vmem:[#allocation17_spill] sm:$0xff] %v5091_v44  ;;  %v4784_v54 = vld [vmem:[%s5007_s18 + $0x54] sm:$0xf0]  ;;  %v4776_v55 = vld [vmem:[%s5007_s18 + $0xc] sm:$0xf]  ;;  %v5149_v57 = vor.u32 %v4785_v52, %v4211_v51 }
  0x23   : > { %8640 = vst [vmem:[#allocation18_spill] sm:$0xff] %v5101_v47  ;;  %v4205_v56 = vld [vmem:[%s5007_s18 + $0x58] sm:$0xf0]  ;;  %v5151_v58 = vor.u32 %v4784_v54, %v4203_v53  ;;  %v4221_v61 = vld [vmem:[%s5007_s18 + $0x68] sm:$0xf0] }
  0x24   : > { %572 = vrot.lane.b32.xlu2 %v5051_v24, %s4932_s19  ;;  %8641 = vst [vmem:[#allocation19_spill] sm:$0xff] %v5135_v50  ;;  %v5153_v59 = vor.u32 %v4776_v55, %v4205_v56  ;;  %v4778_v60 = vld [vmem:[%s5007_s18 + $0x1c] sm:$0xf]  ;;  %v4777_v62 = vld [vmem:[%s5007_s18 + $0x14] sm:$0xf] }
  0x25   : > { %570 = vrot.lane.b32.xlu1 %v5053_v25, %s4932_s19  ;;  %568 = vrot.lane.b32.xlu0 %v5055_v26, %s4932_s19  ;;  %v4213_v0 = vld [vmem:[%s5007_s18 + $0x60] sm:$0xf0]  ;;  %v4219_v1 = vld [vmem:[%s5007_s18 + $0x18] sm:$0xf]  ;;  %v5169_v4 = vor.u32 %v4778_v60, %v4221_v61 }
  0x26   : > { %v4786_v2 = vld [vmem:[%s5007_s18 + $0x64] sm:$0xf0]  ;;  %v5171_v5 = vor.u32 %v4777_v62, %v4213_v0  ;;  %v4788_v10 = vld [vmem:[%s5007_s18 + $0x74] sm:$0xf0]  ;;  %v4227_v11 = vld [vmem:[%s5007_s18 + $0x20] sm:$0xf] }
  0x27   : > { %v5173_v6 = vor.u32 %v4786_v2, %v4219_v1  ;;  %v4235_v9 = vld [vmem:[%s5007_s18 + $0x28] sm:$0xf]  ;;  %v4787_v13 = vld [vmem:[%s5007_s18 + $0x6c] sm:$0xf0]  ;;  %v4779_v14 = vld [vmem:[%s5007_s18 + $0x24] sm:$0xf] }
  0x28   : > { %v4229_v18 = vld [vmem:[%s5007_s18 + $0x70] sm:$0xf0]  ;;  %v5189_v19 = vor.u32 %v4788_v10, %v4235_v9  ;;  %v5191_v20 = vor.u32 %v4787_v13, %v4227_v11  ;;  %v4245_v23 = vld [vmem:[%s5007_s18 + $0x80] sm:$0xf0]  ;;  %v4780_v27 = vld [vmem:[%s5007_s18 + $0x2c] sm:$0xf] }
  0x29   : > { %v5193_v21 = vor.u32 %v4779_v14, %v4229_v18  ;;  %v4781_v22 = vld [vmem:[%s5007_s18 + $0x34] sm:$0xf]  ;;  %v4237_v29 = vld [vmem:[%s5007_s18 + $0x78] sm:$0xf0]  ;;  %v4243_v30 = vld [vmem:[%s5007_s18 + $0x30] sm:$0xf] }
  0x2a   : > { %v4789_v31 = vld [vmem:[%s5007_s18 + $0x7c] sm:$0xf0]  ;;  %v5209_v32 = vor.u32 %v4781_v22, %v4245_v23  ;;  %v5211_v36 = vor.u32 %v4780_v27, %v4237_v29  ;;  %v4810_v39 = vld [vmem:[%s5007_s18 + $0x8c] sm:$0xf0]  ;;  %v4251_v40 = vld [vmem:[%s5007_s18 + $0x38] sm:$0xf] }
  0x2b   : > { %v5213_v37 = vor.u32 %v4789_v31, %v4243_v30  ;;  %v4331_v38 = vld [vmem:[%s5007_s18 + $0x40] sm:$0xf]  ;;  %v4790_v45 = vld [vmem:[%s5007_s18 + $0x84] sm:$0xf0]  ;;  %v4782_v46 = vld [vmem:[%s5007_s18 + $0x3c] sm:$0xf] }
  0x2c   : > { %578 = vrot.lane.b32.xlu2 %v5069_v33, %s4932_s19  ;;  %v4253_v48 = vld [vmem:[%s5007_s18 + $0x88] sm:$0xf0]  ;;  %v5233_v52 = vor.u32 %v4810_v39, %v4331_v38  ;;  %v5235_v53 = vor.u32 %v4790_v45, %v4251_v40  ;;  %v4809_v56 = vld [vmem:[%s5007_s18 + $0x44] sm:$0xf]  ;;  %v4333_v60 = vld [vmem:[%s5007_s18 + $0x90] sm:$0xf0] }
  0x2d   : > { %576 = vrot.lane.b32.xlu1 %v5071_v34, %s4932_s19  ;;  %574 = vrot.lane.b32.xlu0 %v5073_v35, %s4932_s19  ;;  %v5237_v54 = vor.u32 %v4782_v46, %v4253_v48  ;;  %v5253_v0 = vor.u32 %v4809_v56, %v4333_v60  ;;  %v4339_v30 = vld [vmem:[%s5007_s18 + $0x48] sm:$0xf]  ;;  %v4811_v31 = vld [vmem:[%s5007_s18 + $0x94] sm:$0xf0] }
  0x2e   : > { %8642 = vst [vmem:[#allocation20_spill] sm:$0xff] %v5233_v52  ;;  %v5317_v45 = vor.u32 %v4811_v31, %v4339_v30  ;;  %v4343_v46 = vld [vmem:[%s5007_s18 + $0x44] sm:$0xf]  ;;  %v4351_v48 = vld [vmem:[%s5007_s18 + $0xc] sm:$0xf] }
  0x2f   : > { %8643 = vst [vmem:[#allocation21_spill] sm:$0xff] %v5253_v0  ;;  %v4822_v56 = vld [vmem:[%s5007_s18 + $0x58] sm:$0xf0]  ;;  %v4813_v30 = vld [vmem:[%s5007_s18 + $0x90] sm:$0xf0] }
  0x30   : > { %8644 = vst [vmem:[#allocation22_spill] sm:$0xff] %v5317_v45  ;;  %v4812_v31 = vld [vmem:[%s5007_s18 + $0x48] sm:$0xf] }
  0x34   : > { %584 = vrot.lane.b32.xlu2 %v5087_v42, %s4932_s19 }
  0x35   : > { %582 = vrot.lane.b32.xlu1 %v5089_v43, %s4932_s19  ;;  %580 = vrot.lane.b32.xlu0 %v5091_v44, %s4932_s19 }
  0x3c   : > { %611 = vrot.lane.b32.xlu2 %v5037_v17, %s4933_s20  ;;  %v4195_v17 = vld [vmem:[%s5007_s18] sm:$0xf] }
  0x3d   : > { %609 = vrot.lane.b32.xlu1 %v5019_v8, %s4933_s20  ;;  %586 = vrot.lane.b32.xlu0 %v5101_v47, %s4932_s19  ;;  %v4830_v8 = vld [vmem:[%s5007_s18 + $0x98] sm:$0xf0] }
  0x44   : > { %617 = vrot.lane.b32.xlu2 %v5012_v3, %s4933_s20 }
  0x45   : > { %615 = vrot.lane.b32.xlu1 %v5035_v16, %s4933_s20  ;;  %613 = vrot.lane.b32.xlu0 %v5017_v7, %s4933_s20  ;;  %v4827_v7 = vld [vmem:[%s5007_s18 + $0x80] sm:$0xf0] }
  0x4c   : > { %623 = vrot.lane.b32.xlu2 %v5053_v25, %s4933_s20  ;;  %v4377_v25 = vld [vmem:[%s5007_s18 + $0x74] sm:$0xf0] }
  0x4d   : > { %621 = vrot.lane.b32.xlu1 %v5055_v26, %s4933_s20  ;;  %619 = vrot.lane.b32.xlu0 %v5033_v15, %s4933_s20  ;;  %v4824_v26 = vld [vmem:[%s5007_s18 + $0x68] sm:$0xf0] }
  0x54   : > { %629 = vrot.lane.b32.xlu2 %v5071_v34, %s4933_s20 }
  0x55   : > { %627 = vrot.lane.b32.xlu1 %v5073_v35, %s4933_s20  ;;  %625 = vrot.lane.b32.xlu0 %v5051_v24, %s4933_s20  ;;  %v4353_v24 = vld [vmem:[%s5007_s18 + $0x5c] sm:$0xf0] }
  0x5c   : > { %635 = vrot.lane.b32.xlu2 %v5089_v43, %s4933_s20  ;;  %v4361_v43 = vld [vmem:[%s5007_s18 + $0x64] sm:$0xf0] }
  0x5d   : > { %633 = vrot.lane.b32.xlu1 %v5091_v44, %s4933_s20  ;;  %631 = vrot.lane.b32.xlu0 %v5069_v33, %s4933_s20  ;;  %v4815_v33 = vld [vmem:[%s5007_s18 + $0x18] sm:$0xf] }
  0x64   : > { %641 = vrot.lane.b32.xlu2 %v5135_v50, %s4933_s20  ;;  %v4344_v50 = vor.u32 %v4813_v30, %v4343_v46 }
  0x65   : > { %639 = vrot.lane.b32.xlu1 %v5101_v47, %s4933_s20  ;;  %637 = vrot.lane.b32.xlu0 %v5087_v42, %s4933_s20 }
  0x6c   : > { %672 = vrot.lane.b32.xlu2 %v5149_v57, %s4932_s19 }
  0x6d   : > { %668 = vrot.lane.b32.xlu0 %v5151_v58, %s4932_s19  ;;  %670 = vrot.lane.b32.xlu1 %v5153_v59, %s4932_s19 }
  0x6e   : > { %v5164_v63 = vpop.permute.xlu2 %564 }
  0x74   : > { %678 = vrot.lane.b32.xlu2 %v5169_v4, %s4932_s19 }
  0x75   : > { %674 = vrot.lane.b32.xlu0 %v5171_v5, %s4932_s19  ;;  %676 = vrot.lane.b32.xlu1 %v5173_v6, %s4932_s19 }
  0x76   : > { %v5184_v12 = vpop.permute.xlu2 %566 }
  0x7c   : > { %684 = vrot.lane.b32.xlu2 %v5189_v19, %s4932_s19 }
  0x7d   : > { %680 = vrot.lane.b32.xlu0 %v5191_v20, %s4932_s19  ;;  %682 = vrot.lane.b32.xlu1 %v5193_v21, %s4932_s19 }
  0x7e   : > { %v5204_v28 = vpop.permute.xlu2 %572 }
  0x84   : > { %690 = vrot.lane.b32.xlu2 %v5209_v32, %s4932_s19 }
  0x85   : > { %686 = vrot.lane.b32.xlu0 %v5211_v36, %s4932_s19  ;;  %688 = vrot.lane.b32.xlu1 %v5213_v37, %s4932_s19 }
  0x86   : > { %v5224_v41 = vpop.permute.xlu2 %578 }
  0x87   : > { %v5229_v49 = vpop.permute.xlu1 %560  ;;  %v5231_v51 = vpop.permute.xlu0 %556 }
  0x8c   : > { %696 = vrot.lane.b32.xlu2 %v5233_v52, %s4932_s19 }
  0x8d   : > { %692 = vrot.lane.b32.xlu0 %v5235_v53, %s4932_s19  ;;  %694 = vrot.lane.b32.xlu1 %v5237_v54, %s4932_s19 }
  0x8e   : > { %v5245_v55 = vpop.permute.xlu2 %584 }
  0x8f   : > { %v5249_v61 = vpop.permute.xlu1 %562  ;;  %v5251_v62 = vpop.permute.xlu0 %558 }
  0x94   : > { %722 = vrot.lane.b32.xlu2 %v5153_v59, %s4933_s20 }
  0x95   : > { %698 = vrot.lane.b32.xlu0 %v5253_v0, %s4932_s19  ;;  %720 = vrot.lane.b32.xlu1 %v5151_v58, %s4933_s20 }
  0x96   : > { %v5261_v1 = vpop.permute.xlu2 %611 }
  0x97   : > { %v5263_v2 = vpop.permute.xlu1 %570  ;;  %v5265_v9 = vpop.permute.xlu0 %568 }
  0x9c   : > { %728 = vrot.lane.b32.xlu2 %v5173_v6, %s4933_s20 }
  0x9d   : > { %724 = vrot.lane.b32.xlu0 %v5149_v57, %s4933_s20  ;;  %726 = vrot.lane.b32.xlu1 %v5171_v5, %s4933_s20 }
  0x9e   : > { %v5273_v10 = vpop.permute.xlu2 %617 }
  0x9f   : > { %v5275_v11 = vpop.permute.xlu1 %576  ;;  %v5277_v13 = vpop.permute.xlu0 %574 }
  0xa4   : > { %734 = vrot.lane.b32.xlu2 %v5193_v21, %s4933_s20 }
  0xa5   : > { %730 = vrot.lane.b32.xlu0 %v5169_v4, %s4933_s20  ;;  %732 = vrot.lane.b32.xlu1 %v5191_v20, %s4933_s20 }
  0xa6   : > { %v5285_v14 = vpop.permute.xlu2 %623 }
  0xa7   : > { %v5287_v18 = vpop.permute.xlu1 %582  ;;  %v5289_v22 = vpop.permute.xlu0 %580 }
  0xac   : > { %740 = vrot.lane.b32.xlu2 %v5213_v37, %s4933_s20 }
  0xad   : > { %736 = vrot.lane.b32.xlu0 %v5189_v19, %s4933_s20  ;;  %738 = vrot.lane.b32.xlu1 %v5211_v36, %s4933_s20 }
  0xae   : > { %v5297_v23 = vpop.permute.xlu2 %629 }
  0xaf   : > { %v5299_v27 = vpop.permute.xlu1 %609  ;;  %v5301_v29 = vpop.permute.xlu0 %586 }
  0xb4   : > { %746 = vrot.lane.b32.xlu2 %v5237_v54, %s4933_s20 }
  0xb5   : > { %742 = vrot.lane.b32.xlu0 %v5209_v32, %s4933_s20  ;;  %744 = vrot.lane.b32.xlu1 %v5235_v53, %s4933_s20 }
  0xb6   : > { %v5311_v38 = vpop.permute.xlu2 %635 }
  0xb7   : > { %v5313_v39 = vpop.permute.xlu1 %615  ;;  %v5315_v40 = vpop.permute.xlu0 %613 }
  0xbc   : > { %752 = vrot.lane.b32.xlu2 %v5317_v45, %s4933_s20  ;;  %v4345_v45 = vld [vmem:[%s5007_s18 + $0x94] sm:$0xf0] }
  0xbd   : > { %748 = vrot.lane.b32.xlu0 %v5233_v52, %s4933_s20  ;;  %750 = vrot.lane.b32.xlu1 %v5253_v0, %s4933_s20  ;;  %v4352_v52 = vor.u32 %v4822_v56, %v4351_v48  ;;  %v4348_v44 = vor.u32 %v4812_v31, %v4345_v45  ;;  %v4814_v0 = vld [vmem:[%s5007_s18 + $0x10] sm:$0xf]  ;;  %v4359_v48 = vld [vmem:[%s5007_s18 + $0x14] sm:$0xf]  ;;  %v4364_v56 = vor.u32 %v4815_v33, %v4361_v43 }
  0xbe   : > { %v5328_v60 = vpop.permute.xlu2 %641  ;;  %v4823_v45 = vld [vmem:[%s5007_s18 + $0x60] sm:$0xf0]  ;;  %v4816_v33 = vld [vmem:[%s5007_s18 + $0x20] sm:$0xf] }
  0xbf   : > { %8645 = vst [vmem:[#allocation23_spill] sm:$0xff] %v5328_v60  ;;  %v5333_v47 = vpop.permute.xlu1 %621  ;;  %v5335_v42 = vpop.permute.xlu0 %619  ;;  %v4360_v30 = vor.u32 %v4823_v45, %v4359_v48  ;;  %v4375_v31 = vld [vmem:[%s5007_s18 + $0x24] sm:$0xf]  ;;  %v4783_v60 = vld [vmem:[%s5007_s18 + $0x4c] sm:$0xf0] }
  0xc4   : > { %853 = vrot.lane.b32.xlu2 %v4352_v52, %s4933_s20 }
  0xc5   : > { %778 = vrot.lane.b32.xlu0 %v4344_v50, %s4932_s19  ;;  %780 = vrot.lane.b32.xlu1 %v4348_v44, %s4932_s19  ;;  %v4356_v50 = vor.u32 %v4814_v0, %v4353_v24  ;;  %v4367_v44 = vld [vmem:[%s5007_s18 + $0x1c] sm:$0xf]  ;;  %v4369_v24 = vld [vmem:[%s5007_s18 + $0x6c] sm:$0xf0] }
  0xc6   : > { %v5343_v35 = vpop.permute.xlu2 %672  ;;  %v4368_v45 = vor.u32 %v4824_v26, %v4367_v44  ;;  %v4826_v26 = vld [vmem:[%s5007_s18 + $0x78] sm:$0xf0] }
  0xc7   : > { %8646 = vst [vmem:[#allocation24_spill] sm:$0xff] %v5343_v35  ;;  %v5348_v46 = vpop.permute.xlu1 %627  ;;  %v5350_v52 = vpop.permute.xlu0 %625  ;;  %v4825_v35 = vld [vmem:[%s5007_s18 + $0x70] sm:$0xf0] }
  0xc8   : > { %v4376_v48 = vor.u32 %v4825_v35, %v4375_v31  ;;  %v4383_v35 = vld [vmem:[%s5007_s18 + $0x2c] sm:$0xf] }
  0xcc   : > { %859 = vrot.lane.b32.xlu2 %v4364_v56, %s4933_s20  ;;  %v4372_v56 = vor.u32 %v4816_v33, %v4369_v24 }
  0xcd   : > { %855 = vrot.lane.b32.xlu0 %v4356_v50, %s4933_s20  ;;  %857 = vrot.lane.b32.xlu1 %v4360_v30, %s4933_s20  ;;  %v4817_v50 = vld [vmem:[%s5007_s18 + $0x28] sm:$0xf]  ;;  %v4818_v30 = vld [vmem:[%s5007_s18 + $0x30] sm:$0xf] }
  0xce   : > { %v5358_v34 = vpop.permute.xlu2 %678  ;;  %v4380_v24 = vor.u32 %v4817_v50, %v4377_v25  ;;  %v4393_v25 = vld [vmem:[%s5007_s18 + $0x84] sm:$0xf0] }
  0xcf   : > { %8647 = vst [vmem:[#allocation25_spill] sm:$0xff] %v5358_v34  ;;  %v5363_v43 = vpop.permute.xlu1 %633  ;;  %v5365_v0 = vpop.permute.xlu0 %631  ;;  %v4385_v34 = vld [vmem:[%s5007_s18 + $0x7c] sm:$0xf0] }
  0xd0   : > { %v4388_v33 = vor.u32 %v4818_v30, %v4385_v34  ;;  %v4819_v34 = vld [vmem:[%s5007_s18 + $0x38] sm:$0xf] }
  0xd4   : > { %865 = vrot.lane.b32.xlu2 %v4376_v48, %s4933_s20  ;;  %v4384_v48 = vor.u32 %v4826_v26, %v4383_v35 }
  0xd5   : > { %861 = vrot.lane.b32.xlu0 %v4368_v45, %s4933_s20  ;;  %863 = vrot.lane.b32.xlu1 %v4372_v56, %s4933_s20  ;;  %v4391_v45 = vld [vmem:[%s5007_s18 + $0x34] sm:$0xf]  ;;  %v4399_v56 = vld [vmem:[%s5007_s18 + $0x3c] sm:$0xf] }
  0xd6   : > { %v5373_v15 = vpop.permute.xlu2 %684  ;;  %v4392_v26 = vor.u32 %v4827_v7, %v4391_v45  ;;  %v4829_v7 = vld [vmem:[%s5007_s18 + $0x90] sm:$0xf0] }
  0xd7   : > { %8648 = vst [vmem:[#allocation26_spill] sm:$0xff] %v5373_v15  ;;  %v5378_v44 = vpop.permute.xlu1 %639  ;;  %v5380_v31 = vpop.permute.xlu0 %637  ;;  %v4828_v15 = vld [vmem:[%s5007_s18 + $0x88] sm:$0xf0] }
  0xd8   : > { %v4400_v35 = vor.u32 %v4828_v15, %v4399_v56  ;;  %v4407_v15 = vld [vmem:[%s5007_s18 + $0x44] sm:$0xf] }
  0xdc   : > { %871 = vrot.lane.b32.xlu2 %v4388_v33, %s4933_s20  ;;  %v4396_v33 = vor.u32 %v4819_v34, %v4393_v25 }
  0xdd   : > { %867 = vrot.lane.b32.xlu0 %v4380_v24, %s4933_s20  ;;  %869 = vrot.lane.b32.xlu1 %v4384_v48, %s4933_s20  ;;  %v4820_v24 = vld [vmem:[%s5007_s18 + $0x40] sm:$0xf]  ;;  %v4821_v48 = vld [vmem:[%s5007_s18 + $0x48] sm:$0xf] }
  0xde   : > { %v5388_v16 = vpop.permute.xlu2 %690 }
  0xdf   : > { %8649 = vst [vmem:[#allocation27_spill] sm:$0xff] %v5388_v16  ;;  %v5393_v50 = vpop.permute.xlu0 %668  ;;  %v5395_v30 = vpop.permute.xlu1 %670  ;;  %v4409_v16 = vld [vmem:[%s5007_s18 + $0x94] sm:$0xf0] }
  0xe0   : > { %8650 = vst [vmem:[#allocation28_spill] sm:$0xff] %v5393_v50  ;;  %v4401_v50 = vld [vmem:[%s5007_s18 + $0x8c] sm:$0xf0]  ;;  %v4412_v34 = vor.u32 %v4821_v48, %v4409_v16 }
  0xe1   : > { %8651 = vst [vmem:[#allocation29_spill] sm:$0xff] %v5395_v30  ;;  %v4404_v25 = vor.u32 %v4820_v24, %v4401_v50  ;;  %v4196_v24 = vor.u32 %v4783_v60, %v4195_v17 }
  0xe4   : > { %877 = vrot.lane.b32.xlu2 %v4400_v35, %s4933_s20  ;;  %v4408_v35 = vor.u32 %v4829_v7, %v4407_v15 }
  0xe5   : > { %873 = vrot.lane.b32.xlu0 %v4392_v26, %s4933_s20  ;;  %875 = vrot.lane.b32.xlu1 %v4396_v33, %s4933_s20  ;;  %v4415_v26 = vld [vmem:[%s5007_s18 + $0x4c] sm:$0xf]  ;;  %v4775_v33 = vld [vmem:[%s5007_s18 + $0x4] sm:$0xf] }
  0xe6   : > { %v5403_v3 = vpop.permute.xlu2 %696  ;;  %v4416_v50 = vor.u32 %v4830_v8, %v4415_v26  ;;  %v589_v26 = vsel %vm588_vm0, %v5231_v51, %v5251_v62 }
  0xe7   : > { %8652 = vst [vmem:[#allocation30_spill] sm:$0xff] %v5403_v3  ;;  %v5408_v45 = vpop.permute.xlu0 %674  ;;  %v5410_v56 = vpop.permute.xlu1 %676  ;;  %v4197_v3 = vld [vmem:[%s5007_s18 + $0x50] sm:$0xf0] }
  0xe8   : > { %8653 = vst [vmem:[#allocation31_spill] sm:$0xff] %v5408_v45  ;;  %v4200_v16 = vor.u32 %v4775_v33, %v4197_v3 }
  0xe9   : > { %8654 = vst [vmem:[#allocation32_spill] sm:$0xff] %v5410_v56 }
  0xec   : > { %883 = vrot.lane.b32.xlu2 %v4412_v34, %s4933_s20 }
  0xed   : > { %879 = vrot.lane.b32.xlu0 %v4404_v25, %s4933_s20  ;;  %881 = vrot.lane.b32.xlu1 %v4408_v35, %s4933_s20  ;;  %v590_v35 = vsel %vm588_vm0, %v5251_v62, %v5229_v49  ;;  %v591_v62 = vsel %vm588_vm0, %v5229_v49, %v5249_v61 }
  0xee   : > { %v5418_v30 = vpop.permute.xlu2 %722 }
  0xef   : > { %v5423_v45 = vpop.permute.xlu0 %680  ;;  %v5425_v56 = vpop.permute.xlu1 %682 }
  0xf4   : > { %916 = vrot.lane.b32.xlu2 %v4200_v16, %s4934_s21  ;;  %v593_v16 = vsel %vm588_vm0, %v5164_v63, %v5184_v12 }
  0xf5   : > { %885 = vrot.lane.b32.xlu0 %v4416_v50, %s4933_s20  ;;  %914 = vrot.lane.b32.xlu1 %v4196_v24, %s4934_s21 }
  0xf6   : > { %v5430_v48 = vpop.permute.xlu2 %728 }
  0xf7   : > { %v5432_v15 = vpop.permute.xlu0 %686  ;;  %v5434_v7 = vpop.permute.xlu1 %688 }
  0xfc   : > { %922 = vrot.lane.b32.xlu2 %v5149_v57, %s4934_s21 }
  0xfd   : > { %918 = vrot.lane.b32.xlu0 %v5151_v58, %s4934_s21  ;;  %920 = vrot.lane.b32.xlu1 %v5153_v59, %s4934_s21 }
  0xfe   : > { %v5442_v3 = vpop.permute.xlu2 %734 }
  0xff   : > { %v5444_v8 = vpop.permute.xlu0 %692  ;;  %v5446_v17 = vpop.permute.xlu1 %694 }
 0x104   : > { %928 = vrot.lane.b32.xlu2 %v5169_v4, %s4934_s21 }
 0x105   : > { %924 = vrot.lane.b32.xlu0 %v5171_v5, %s4934_s21  ;;  %926 = vrot.lane.b32.xlu1 %v5173_v6, %s4934_s21 }
 0x106   : > { %v5454_v57 = vpop.permute.xlu2 %740 }
 0x107   : > { %v5456_v58 = vpop.permute.xlu0 %698  ;;  %v5458_v59 = vpop.permute.xlu1 %720 }
 0x10c   : > { %934 = vrot.lane.b32.xlu2 %v5189_v19, %s4934_s21  ;;  %v4259_v19 = vld [vmem:[%s5007_s18 + $0x40] sm:$0xf] }
 0x10d   : > { %930 = vrot.lane.b32.xlu0 %v5191_v20, %s4934_s21  ;;  %932 = vrot.lane.b32.xlu1 %v5193_v21, %s4934_s21  ;;  %v4791_v20 = vld [vmem:[%s5007_s18 + $0x8c] sm:$0xf0] }
 0x10e   : > { %v5466_v4 = vpop.permute.xlu2 %746  ;;  %v4260_v25 = vor.u32 %v4791_v20, %v4259_v19  ;;  %v596_v20 = vsel %vm588_vm0, %v5263_v2, %v5204_v28 }
 0x10f   : > { %v5468_v5 = vpop.permute.xlu0 %724  ;;  %v5470_v6 = vpop.permute.xlu1 %726 }
 0x114   : > { %940 = vrot.lane.b32.xlu2 %v5209_v32, %s4934_s21 }
 0x115   : > { %936 = vrot.lane.b32.xlu0 %v5211_v36, %s4934_s21  ;;  %938 = vrot.lane.b32.xlu1 %v5213_v37, %s4934_s21 }
 0x116   : > { %v5480_v60 = vpop.permute.xlu2 %752 }
 0x117   : > { %v5482_v21 = vpop.permute.xlu0 %730  ;;  %v5484_v34 = vpop.permute.xlu1 %732 }
 0x11c   : > { %946 = vrot.lane.b32.xlu2 %v4260_v25, %s4934_s21 }
 0x11d   : > { %942 = vrot.lane.b32.xlu0 %v5235_v53, %s4934_s21  ;;  %944 = vrot.lane.b32.xlu1 %v5237_v54, %s4934_s21 }
 0x11e   : > { %v5491_v32 = vpop.permute.xlu2 %853 }
 0x11f   : > { %v5493_v36 = vpop.permute.xlu0 %736  ;;  %v5495_v37 = vpop.permute.xlu1 %738 }
 0x124   : > { %952 = vrot.lane.b32.xlu2 %v590_v35, %s4934_s21 }
 0x125   : > { %948 = vrot.lane.b32.xlu0 %v5231_v51, %s4934_s21  ;;  %950 = vrot.lane.b32.xlu1 %v589_v26, %s4934_s21  ;;  %v592_v51 = vsel %vm588_vm0, %v5249_v61, %v5164_v63  ;;  %v594_v63 = vsel %vm588_vm0, %v5184_v12, %v5265_v9  ;;  %v595_v61 = vsel %vm588_vm0, %v5265_v9, %v5263_v2 }
 0x126   : > { %v5507_v53 = vpop.permute.xlu2 %859  ;;  %v599_v12 = vsel %vm588_vm0, %v5275_v11, %v5224_v41  ;;  %v597_v2 = vsel %vm588_vm0, %v5204_v28, %v5277_v13  ;;  %v598_v9 = vsel %vm588_vm0, %v5277_v13, %v5275_v11  ;;  %v602_v28 = vsel %vm588_vm0, %v5287_v18, %v5245_v55 }
 0x127   : > { %v5509_v54 = vpop.permute.xlu0 %742  ;;  %v5511_v33 = vpop.permute.xlu1 %744  ;;  %v600_v11 = vsel %vm588_vm0, %v5224_v41, %v5289_v22  ;;  %v601_v13 = vsel %vm588_vm0, %v5289_v22, %v5287_v18  ;;  %v603_v41 = vsel %vm588_vm0, %v5245_v55, %v5301_v29  ;;  %v644_v55 = vsel %vm643_vm1, %v5299_v27, %v5261_v1 }
 0x12c   : > { %958 = vrot.lane.b32.xlu2 %v593_v16, %s4934_s21 }
 0x12d   : > { %954 = vrot.lane.b32.xlu0 %v591_v62, %s4934_s21  ;;  %956 = vrot.lane.b32.xlu1 %v592_v51, %s4934_s21 }
 0x12e   : > { %v5525_v50 = vpop.permute.xlu2 %865 }
 0x12f   : > { %v5527_v24 = vpop.permute.xlu0 %748  ;;  %v5529_v19 = vpop.permute.xlu1 %750 }
 0x134   : > { %964 = vrot.lane.b32.xlu2 %v596_v20, %s4934_s21 }
 0x135   : > { %960 = vrot.lane.b32.xlu0 %v594_v63, %s4934_s21  ;;  %962 = vrot.lane.b32.xlu1 %v595_v61, %s4934_s21 }
 0x136   : > { %v5543_v25 = vpop.permute.xlu2 %871 }
 0x137   : > { %v5545_v35 = vpop.permute.xlu0 %778  ;;  %v5547_v26 = vpop.permute.xlu1 %780 }
 0x13c   : > { %970 = vrot.lane.b32.xlu2 %v599_v12, %s4934_s21 }
 0x13d   : > { %966 = vrot.lane.b32.xlu0 %v597_v2, %s4934_s21  ;;  %968 = vrot.lane.b32.xlu1 %v598_v9, %s4934_s21  ;;  %v646_v2 = vsel %vm643_vm1, %v5315_v40, %v5313_v39  ;;  %v645_v9 = vsel %vm643_vm1, %v5261_v1, %v5315_v40  ;;  %v647_v1 = vsel %vm643_vm1, %v5313_v39, %v5273_v10 }
 0x13e   : > { %v5561_v16 = vpop.permute.xlu2 %877  ;;  %v648_v40 = vsel %vm643_vm1, %v5273_v10, %v5335_v42  ;;  %v652_v39 = vsel %vm643_vm1, %v5350_v52, %v5348_v46  ;;  %v651_v10 = vsel %vm643_vm1, %v5285_v14, %v5350_v52  ;;  %v654_v52 = vsel %vm643_vm1, %v5297_v23, %v5365_v0 }
 0x13f   : > { %v5563_v62 = vpop.permute.xlu0 %855  ;;  %v5565_v51 = vpop.permute.xlu1 %857 }
 0x144   : > { %976 = vrot.lane.b32.xlu2 %v602_v28, %s4934_s21 }
 0x145   : > { %972 = vrot.lane.b32.xlu0 %v600_v11, %s4934_s21  ;;  %974 = vrot.lane.b32.xlu1 %v601_v13, %s4934_s21 }
 0x146   : > { %v5579_v20 = vpop.permute.xlu2 %883 }
 0x147   : > { %v5581_v63 = vpop.permute.xlu0 %861  ;;  %v5583_v61 = vpop.permute.xlu1 %863 }
 0x14c   : > { %982 = vrot.lane.b32.xlu2 %v5299_v27, %s4934_s21  ;;  %v649_v27 = vsel %vm643_vm1, %v5335_v42, %v5333_v47  ;;  %v650_v42 = vsel %vm643_vm1, %v5333_v47, %v5285_v14  ;;  %v655_v47 = vsel %vm643_vm1, %v5365_v0, %v5363_v43  ;;  %v653_v14 = vsel %vm643_vm1, %v5348_v46, %v5297_v23 }
 0x14d   : > { %978 = vrot.lane.b32.xlu0 %v603_v41, %s4934_s21  ;;  %980 = vrot.lane.b32.xlu1 %v5301_v29, %s4934_s21  ;;  %v658_v46 = vsel %vm643_vm1, %v5380_v31, %v5378_v44  ;;  %v656_v23 = vsel %vm643_vm1, %v5363_v43, %v5311_v38  ;;  %v657_v0 = vsel %vm643_vm1, %v5311_v38, %v5380_v31  ;;  %v8665_v38 = vld [vmem:[#allocation5_spill] sm:$0xff] }
 0x14e   : > { %v5593_v18 = vpop.permute.xlu2 %916 }
 0x14f   : > { %v5595_v22 = vpop.permute.xlu0 %867  ;;  %v5597_v12 = vpop.permute.xlu1 %869 }
 0x154   : > { %988 = vrot.lane.b32.xlu2 %v646_v2, %s4934_s21 }
 0x155   : > { %984 = vrot.lane.b32.xlu0 %v644_v55, %s4934_s21  ;;  %986 = vrot.lane.b32.xlu1 %v645_v9, %s4934_s21 }
 0x156   : > { %v5611_v28 = vpop.permute.xlu2 %922 }
 0x157   : > { %8655 = vst [vmem:[#allocation33_spill] sm:$0xff] %v5611_v28  ;;  %v5613_v11 = vpop.permute.xlu0 %873  ;;  %v5615_v13 = vpop.permute.xlu1 %875 }
 0x15c   : > { %994 = vrot.lane.b32.xlu2 %v649_v27, %s4934_s21 }
 0x15d   : > { %990 = vrot.lane.b32.xlu0 %v647_v1, %s4934_s21  ;;  %992 = vrot.lane.b32.xlu1 %v648_v40, %s4934_s21 }
 0x15e   : > { %v5629_v41 = vpop.permute.xlu2 %928 }
 0x15f   : > { %v5631_v2 = vpop.permute.xlu0 %879  ;;  %v5633_v55 = vpop.permute.xlu1 %881 }
 0x164   : > { %1000 = vrot.lane.b32.xlu2 %v652_v39, %s4934_s21 }
 0x165   : > { %996 = vrot.lane.b32.xlu0 %v650_v42, %s4934_s21  ;;  %998 = vrot.lane.b32.xlu1 %v651_v10, %s4934_s21 }
 0x166   : > { %v5647_v9 = vpop.permute.xlu2 %934 }
 0x167   : > { %8656 = vst [vmem:[#allocation34_spill] sm:$0xff] %v5647_v9  ;;  %v5649_v27 = vpop.permute.xlu0 %885  ;;  %v5651_v1 = vpop.permute.xlu1 %914 }
 0x168   : > { %8657 = vst [vmem:[#allocation35_spill] sm:$0xff] %v5651_v1 }
 0x16c   : > { %1006 = vrot.lane.b32.xlu2 %v655_v47, %s4934_s21 }
 0x16d   : > { %1002 = vrot.lane.b32.xlu0 %v653_v14, %s4934_s21  ;;  %1004 = vrot.lane.b32.xlu1 %v654_v52, %s4934_s21  ;;  %v8663_v52 = vld [vmem:[#allocation23_spill] sm:$0xff] }
 0x16e   : > { %v5665_v40 = vpop.permute.xlu2 %940  ;;  %v659_v43 = vsel %vm643_vm1, %v5378_v44, %v8663_v52  ;;  %v8670_v44 = vld [vmem:[#allocation7_spill] sm:$0xff] }
 0x16f   : > { %8658 = vst [vmem:[#allocation36_spill] sm:$0xff] %v5665_v40  ;;  %v5667_v39 = vpop.permute.xlu0 %918  ;;  %v5669_v42 = vpop.permute.xlu1 %920  ;;  %v8664_v40 = vld [vmem:[#allocation8_spill] sm:$0xff] }
 0x170   : > { %8659 = vst [vmem:[#allocation37_spill] sm:$0xff] %v5669_v42 }
 0x174   : > { %1012 = vrot.lane.b32.xlu2 %v658_v46, %s4934_s21 }
 0x175   : > { %1008 = vrot.lane.b32.xlu0 %v656_v23, %s4934_s21  ;;  %1010 = vrot.lane.b32.xlu1 %v657_v0, %s4934_s21  ;;  %v8668_v0 = vld [vmem:[#allocation3_spill] sm:$0xff] }
 0x176   : > { %v5683_v10 = vpop.permute.xlu2 %946 }
 0x177   : > { %8660 = vst [vmem:[#allocation38_spill] sm:$0xff] %v5683_v10  ;;  %v5685_v47 = vpop.permute.xlu0 %924  ;;  %v5687_v14 = vpop.permute.xlu1 %926  ;;  %v8669_v10 = vld [vmem:[#allocation4_spill] sm:$0xff] }
 0x178   : > { %8661 = vst [vmem:[#allocation39_spill] sm:$0xff] %v5685_v47  ;;  %v8698_v47 = vld [vmem:[#allocation29_spill] sm:$0xff] }
 0x179   : > { %8662 = vst [vmem:[#allocation40_spill] sm:$0xff] %v5687_v14  ;;  %v8704_v14 = vld [vmem:[#allocation31_spill] sm:$0xff] }
 0x17c   : > { %1018 = vrot.lane.b32.xlu2 %v8664_v40, %s4934_s21 }
 0x17d   : > { %1014 = vrot.lane.b32.xlu0 %v659_v43, %s4934_s21  ;;  %1016 = vrot.lane.b32.xlu1 %v8665_v38, %s4934_s21  ;;  %v8674_v38 = vld [vmem:[#allocation10_spill] sm:$0xff] }
 0x17e   : > { %v5697_v31 = vpop.permute.xlu2 %952 }
 0x17f   : > { %v5699_v46 = vpop.permute.xlu0 %930  ;;  %v5701_v23 = vpop.permute.xlu1 %932 }
 0x180   : > { %8666 = vst [vmem:[#allocation23_spill] sm:$0xff] %v5699_v46  ;;  %v8680_v46 = vld [vmem:[#allocation13_spill] sm:$0xff] }
 0x181   : > { %8667 = vst [vmem:[#allocation8_spill] sm:$0xff] %v5701_v23  ;;  %v8675_v23 = vld [vmem:[#allocation6_spill] sm:$0xff] }
 0x184   : > { %1024 = vrot.lane.b32.xlu2 %v8668_v0, %s4934_s21  ;;  %v8676_v0 = vld [vmem:[#allocation11_spill] sm:$0xff] }
 0x185   : > { %1020 = vrot.lane.b32.xlu0 %v8669_v10, %s4934_s21  ;;  %1022 = vrot.lane.b32.xlu1 %v8670_v44, %s4934_s21 }
 0x186   : > { %v5709_v40 = vpop.permute.xlu2 %958 }
 0x187   : > { %8671 = vst [vmem:[#allocation5_spill] sm:$0xff] %v5709_v40  ;;  %v5711_v52 = vpop.permute.xlu0 %936  ;;  %v5713_v43 = vpop.permute.xlu1 %938 }
 0x188   : > { %8672 = vst [vmem:[#allocation3_spill] sm:$0xff] %v5711_v52 }
 0x189   : > { %8673 = vst [vmem:[#allocation4_spill] sm:$0xff] %v5713_v43  ;;  %v8681_v43 = vld [vmem:[#allocation9_spill] sm:$0xff] }
 0x18c   : > { %1030 = vrot.lane.b32.xlu2 %v8674_v38, %s4934_s21  ;;  %v8682_v38 = vld [vmem:[#allocation14_spill] sm:$0xff] }
 0x18d   : > { %1026 = vrot.lane.b32.xlu0 %v8675_v23, %s4934_s21  ;;  %1028 = vrot.lane.b32.xlu1 %v8676_v0, %s4934_s21 }
 0x18e   : > { %v5721_v9 = vpop.permute.xlu2 %964 }
 0x18f   : > { %8677 = vst [vmem:[#allocation7_spill] sm:$0xff] %v5721_v9  ;;  %v5723_v10 = vpop.permute.xlu0 %942  ;;  %v5725_v44 = vpop.permute.xlu1 %944  ;;  %v8685_v9 = vld [vmem:[#allocation16_spill] sm:$0xff] }
 0x190   : > { %8678 = vst [vmem:[#allocation10_spill] sm:$0xff] %v5723_v10  ;;  %v8686_v10 = vld [vmem:[#allocation12_spill] sm:$0xff] }
 0x191   : > { %8679 = vst [vmem:[#allocation6_spill] sm:$0xff] %v5725_v44 }
 0x194   : > { %1036 = vrot.lane.b32.xlu2 %v8680_v46, %s4934_s21  ;;  %v8687_v46 = vld [vmem:[#allocation17_spill] sm:$0xff] }
 0x195   : > { %1032 = vrot.lane.b32.xlu0 %v8681_v43, %s4934_s21  ;;  %1034 = vrot.lane.b32.xlu1 %v8682_v38, %s4934_s21 }
 0x196   : > { %v5733_v52 = vpop.permute.xlu2 %970 }
 0x197   : > { %8683 = vst [vmem:[#allocation11_spill] sm:$0xff] %v5733_v52  ;;  %v5735_v23 = vpop.permute.xlu0 %948  ;;  %v5737_v0 = vpop.permute.xlu1 %950 }
 0x198   : > { %8684 = vst [vmem:[#allocation13_spill] sm:$0xff] %v5735_v23 }
 0x19c   : > { %1042 = vrot.lane.b32.xlu2 %v8685_v9, %s4934_s21  ;;  %v8692_v9 = vld [vmem:[#allocation19_spill] sm:$0xff] }
 0x19d   : > { %1038 = vrot.lane.b32.xlu0 %v8686_v10, %s4934_s21  ;;  %1040 = vrot.lane.b32.xlu1 %v8687_v46, %s4934_s21  ;;  %v8693_v10 = vld [vmem:[#allocation15_spill] sm:$0xff]  ;;  %v8694_v46 = vld [vmem:[#allocation18_spill] sm:$0xff] }
 0x19e   : > { %v5745_v44 = vpop.permute.xlu2 %976 }
 0x19f   : > { %8688 = vst [vmem:[#allocation9_spill] sm:$0xff] %v5745_v44  ;;  %v5747_v43 = vpop.permute.xlu0 %954  ;;  %v5749_v38 = vpop.permute.xlu1 %956  ;;  %v5766_v44 = vsel %vm1166_vm2, %v5669_v42, %v5611_v28  ;;  %v8702_v28 = vld [vmem:[#allocation25_spill] sm:$0xff] }
 0x1a0   : > { %8689 = vst [vmem:[#allocation14_spill] sm:$0xff] %v5747_v43  ;;  %v5754_v52 = vsel %vm1166_vm2, %v5747_v43, %v5749_v38  ;;  %v8699_v43 = vld [vmem:[#allocation28_spill] sm:$0xff] }
 0x1a1   : > { %8690 = vst [vmem:[#allocation16_spill] sm:$0xff] %v5749_v38  ;;  %1437 = vmatpush.bf16.msra.mxu2 %v5754_v52  ;;  %v8703_v38 = vld [vmem:[#allocation32_spill] sm:$0xff] }
 0x1a2   : > { %8691 = vst [vmem:[#allocation12_spill] sm:$0xff] %v5754_v52  ;;  %v704_v40 = vsel %vm588_vm0, %v8703_v38, %v8702_v28 }
 0x1a3   : > { %8695 = vst [vmem:[#allocation17_spill] sm:$0xff] %v5766_v44 }
 0x1a4   : > { %1048 = vrot.lane.b32.xlu2 %v8692_v9, %s4934_s21  ;;  %v8697_v9 = vld [vmem:[#allocation24_spill] sm:$0xff] }
 0x1a5   : > { %1044 = vrot.lane.b32.xlu0 %v8693_v10, %s4934_s21  ;;  %1046 = vrot.lane.b32.xlu1 %v8694_v46, %s4934_s21  ;;  %v701_v10 = vsel %vm588_vm0, %v8698_v47, %v8697_v9  ;;  %v700_v46 = vsel %vm588_vm0, %v8699_v43, %v8698_v47  ;;  %v702_v47 = vsel %vm588_vm0, %v8697_v9, %v8704_v14 }
 0x1a6   : > { %1438 = vmatpush.bf16.msra.mxu2 %v5766_v44  ;;  %v5769_v1 = vpop.permute.xlu2 %982 }
 0x1a7   : > { %8696 = vst [vmem:[#allocation19_spill] sm:$0xff] %v5769_v1  ;;  %v5771_v23 = vpop.permute.xlu0 %960  ;;  %v5773_v52 = vpop.permute.xlu1 %962 }
 0x1ac   : > { %1054 = vrot.lane.b32.xlu2 %v701_v10, %s4934_s21 }
 0x1ad   : > { %1050 = vrot.lane.b32.xlu0 %v8699_v43, %s4934_s21  ;;  %1052 = vrot.lane.b32.xlu1 %v700_v46, %s4934_s21  ;;  %v703_v43 = vsel %vm588_vm0, %v8704_v14, %v8703_v38  ;;  %v705_v14 = vsel %vm588_vm0, %v8702_v28, %v5423_v45 }
 0x1ae   : > { %v5785_v44 = vpop.permute.xlu2 %988 }
 0x1af   : > { %8700 = vst [vmem:[#allocation15_spill] sm:$0xff] %v5785_v44  ;;  %v5787_v1 = vpop.permute.xlu0 %966  ;;  %v5789_v42 = vpop.permute.xlu1 %968  ;;  %v8706_v44 = vld [vmem:[#allocation26_spill] sm:$0xff] }
 0x1b0   : > { %8701 = vst [vmem:[#allocation18_spill] sm:$0xff] %v5787_v1  ;;  %v707_v9 = vsel %vm588_vm0, %v5425_v56, %v8706_v44 }
 0x1b4   : > { %1060 = vrot.lane.b32.xlu2 %v704_v40, %s4934_s21  ;;  %v706_v40 = vsel %vm588_vm0, %v5423_v45, %v5425_v56  ;;  %v708_v45 = vsel %vm588_vm0, %v8706_v44, %v5432_v15  ;;  %v709_v56 = vsel %vm588_vm0, %v5432_v15, %v5434_v7 }
 0x1b5   : > { %1056 = vrot.lane.b32.xlu0 %v702_v47, %s4934_s21  ;;  %1058 = vrot.lane.b32.xlu1 %v703_v43, %s4934_s21 }
 0x1b6   : > { %v5803_v10 = vpop.permute.xlu2 %994 }
 0x1b7   : > { %v5805_v46 = vpop.permute.xlu0 %972  ;;  %v5807_v1 = vpop.permute.xlu1 %974 }
 0x1b8   : > { %8705 = vst [vmem:[#allocation24_spill] sm:$0xff] %v5807_v1  ;;  %v8708_v1 = vld [vmem:[#allocation27_spill] sm:$0xff] }
 0x1b9   : > { %v710_v28 = vsel %vm588_vm0, %v5434_v7, %v8708_v1  ;;  %v711_v15 = vsel %vm588_vm0, %v8708_v1, %v5444_v8  ;;  %v712_v7 = vsel %vm588_vm0, %v5444_v8, %v5446_v17 }
 0x1bc   : > { %1066 = vrot.lane.b32.xlu2 %v707_v9, %s4934_s21 }
 0x1bd   : > { %1062 = vrot.lane.b32.xlu0 %v705_v14, %s4934_s21  ;;  %1064 = vrot.lane.b32.xlu1 %v706_v40, %s4934_s21 }
 0x1be   : > { %v5821_v38 = vpop.permute.xlu2 %1000 }
 0x1bf   : > { %v5823_v47 = vpop.permute.xlu0 %978  ;;  %v5825_v43 = vpop.permute.xlu1 %980 }
 0x1c0   : > { %8707 = vst [vmem:[#allocation29_spill] sm:$0xff] %v5825_v43  ;;  %v8710_v43 = vld [vmem:[#allocation30_spill] sm:$0xff] }
 0x1c1   : > { %v713_v44 = vsel %vm588_vm0, %v5446_v17, %v8710_v43  ;;  %v714_v1 = vsel %vm588_vm0, %v8710_v43, %v5456_v58  ;;  %v754_v43 = vsel %vm643_vm1, %v5458_v59, %v5418_v30 }
 0x1c4   : > { %1072 = vrot.lane.b32.xlu2 %v710_v28, %s4934_s21 }
 0x1c5   : > { %1068 = vrot.lane.b32.xlu0 %v708_v45, %s4934_s21  ;;  %1070 = vrot.lane.b32.xlu1 %v709_v56, %s4934_s21 }
 0x1c6   : > { %v5839_v9 = vpop.permute.xlu2 %1006 }
 0x1c7   : > { %8709 = vst [vmem:[#allocation28_spill] sm:$0xff] %v5839_v9  ;;  %v5841_v14 = vpop.permute.xlu0 %984  ;;  %v5843_v40 = vpop.permute.xlu1 %986 }
 0x1cc   : > { %1078 = vrot.lane.b32.xlu2 %v713_v44, %s4934_s21 }
 0x1cd   : > { %1074 = vrot.lane.b32.xlu0 %v711_v15, %s4934_s21  ;;  %1076 = vrot.lane.b32.xlu1 %v712_v7, %s4934_s21  ;;  %v756_v15 = vsel %vm643_vm1, %v5468_v5, %v5470_v6  ;;  %v755_v7 = vsel %vm643_vm1, %v5418_v30, %v5468_v5  ;;  %v757_v30 = vsel %vm643_vm1, %v5470_v6, %v5430_v48 }
 0x1ce   : > { %v5857_v28 = vpop.permute.xlu2 %1012  ;;  %v758_v5 = vsel %vm643_vm1, %v5430_v48, %v5482_v21  ;;  %v762_v6 = vsel %vm643_vm1, %v5493_v36, %v5495_v37  ;;  %v760_v48 = vsel %vm643_vm1, %v5484_v34, %v5442_v3 }
 0x1cf   : > { %8711 = vst [vmem:[#allocation25_spill] sm:$0xff] %v5857_v28  ;;  %v5859_v45 = vpop.permute.xlu0 %990  ;;  %v5861_v56 = vpop.permute.xlu1 %992 }
 0x1d4   : > { %1084 = vrot.lane.b32.xlu2 %v5458_v59, %s4934_s21  ;;  %v759_v59 = vsel %vm643_vm1, %v5482_v21, %v5484_v34  ;;  %v761_v21 = vsel %vm643_vm1, %v5442_v3, %v5493_v36  ;;  %v765_v34 = vsel %vm643_vm1, %v5509_v54, %v5511_v33  ;;  %v763_v3 = vsel %vm643_vm1, %v5495_v37, %v5454_v57 }
 0x1d5   : > { %1080 = vrot.lane.b32.xlu0 %v714_v1, %s4934_s21  ;;  %1082 = vrot.lane.b32.xlu1 %v5456_v58, %s4934_s21  ;;  %v764_v36 = vsel %vm643_vm1, %v5454_v57, %v5509_v54  ;;  %v768_v37 = vsel %vm643_vm1, %v5527_v24, %v5529_v19  ;;  %v766_v57 = vsel %vm643_vm1, %v5511_v33, %v5466_v4 }
 0x1d6   : > { %v5871_v8 = vpop.permute.xlu2 %1018  ;;  %v767_v54 = vsel %vm643_vm1, %v5466_v4, %v5527_v24  ;;  %v769_v33 = vsel %vm643_vm1, %v5529_v19, %v5480_v60  ;;  %v8721_v4 = vld [vmem:[#allocation20_spill] sm:$0xff]  ;;  %v8722_v60 = vld [vmem:[#allocation22_spill] sm:$0xff] }
 0x1d7   : > { %v5873_v17 = vpop.permute.xlu0 %996  ;;  %v5875_v44 = vpop.permute.xlu1 %998 }
 0x1dc   : > { %1090 = vrot.lane.b32.xlu2 %v756_v15, %s4934_s21 }
 0x1dd   : > { %1086 = vrot.lane.b32.xlu0 %v754_v43, %s4934_s21  ;;  %1088 = vrot.lane.b32.xlu1 %v755_v7, %s4934_s21 }
 0x1de   : > { %v5889_v58 = vpop.permute.xlu2 %1024 }
 0x1df   : > { %v5891_v1 = vpop.permute.xlu0 %1002  ;;  %v5893_v28 = vpop.permute.xlu1 %1004 }
 0x1e0   : > { %8712 = vst [vmem:[#allocation32_spill] sm:$0xff] %v5891_v1 }
 0x1e1   : > { %8713 = vst [vmem:[#allocation31_spill] sm:$0xff] %v5893_v28  ;;  %v6141_v28 = vsel %vm1166_vm2, %v5771_v23, %v5773_v52 }
 0x1e2   : > { %8735 = vst [vmem:[#allocation53_spill] sm:$0xff] %v6141_v28 }
 0x1e4   : > { %1096 = vrot.lane.b32.xlu2 %v759_v59, %s4934_s21 }
 0x1e5   : > { %1092 = vrot.lane.b32.xlu0 %v757_v30, %s4934_s21  ;;  %1094 = vrot.lane.b32.xlu1 %v758_v5, %s4934_s21 }
 0x1e6   : > { %v5907_v15 = vpop.permute.xlu2 %1030 }
 0x1e7   : > { %v5909_v43 = vpop.permute.xlu0 %1008  ;;  %v5911_v7 = vpop.permute.xlu1 %1010 }
 0x1e8   : > { %8714 = vst [vmem:[#allocation26_spill] sm:$0xff] %v5909_v43 }
 0x1e9   : > { %8715 = vst [vmem:[#allocation27_spill] sm:$0xff] %v5911_v7 }
 0x1ec   : > { %1102 = vrot.lane.b32.xlu2 %v762_v6, %s4934_s21 }
 0x1ed   : > { %1098 = vrot.lane.b32.xlu0 %v760_v48, %s4934_s21  ;;  %1100 = vrot.lane.b32.xlu1 %v761_v21, %s4934_s21 }
 0x1ee   : > { %v5925_v59 = vpop.permute.xlu2 %1036 }
 0x1ef   : > { %8716 = vst [vmem:[#allocation30_spill] sm:$0xff] %v5925_v59  ;;  %v5927_v30 = vpop.permute.xlu0 %1014  ;;  %v5929_v5 = vpop.permute.xlu1 %1016 }
 0x1f0   : > { %8717 = vst [vmem:[#allocation41_spill] sm:$0xff] %v5927_v30  ;;  %v8720_v30 = vld [vmem:[#allocation21_spill] sm:$0xff] }
 0x1f4   : > { %1108 = vrot.lane.b32.xlu2 %v765_v34, %s4934_s21 }
 0x1f5   : > { %1104 = vrot.lane.b32.xlu0 %v763_v3, %s4934_s21  ;;  %1106 = vrot.lane.b32.xlu1 %v764_v36, %s4934_s21 }
 0x1f6   : > { %v5943_v6 = vpop.permute.xlu2 %1042 }
 0x1f7   : > { %8718 = vst [vmem:[#allocation42_spill] sm:$0xff] %v5943_v6  ;;  %v5945_v48 = vpop.permute.xlu0 %1020  ;;  %v5947_v21 = vpop.permute.xlu1 %1022 }
 0x1fc   : > { %1114 = vrot.lane.b32.xlu2 %v768_v37, %s4934_s21 }
 0x1fd   : > { %1110 = vrot.lane.b32.xlu0 %v766_v57, %s4934_s21  ;;  %1112 = vrot.lane.b32.xlu1 %v767_v54, %s4934_s21  ;;  %v782_v54 = vsel %vm588_vm0, %v5301_v29, %v5545_v35 }
 0x1fe   : > { %v5961_v34 = vpop.permute.xlu2 %1048 }
 0x1ff   : > { %8719 = vst [vmem:[#allocation43_spill] sm:$0xff] %v5961_v34  ;;  %v5963_v3 = vpop.permute.xlu0 %1026  ;;  %v5965_v36 = vpop.permute.xlu1 %1028 }
 0x204   : > { %1120 = vrot.lane.b32.xlu2 %v8720_v30, %s4934_s21 }
 0x205   : > { %1116 = vrot.lane.b32.xlu0 %v769_v33, %s4934_s21  ;;  %1118 = vrot.lane.b32.xlu1 %v8721_v4, %s4934_s21  ;;  %v783_v4 = vsel %vm588_vm0, %v5545_v35, %v5547_v26  ;;  %v887_v35 = vsel %vm643_vm1, %v5491_v32, %v5563_v62 }
 0x206   : > { %v5975_v24 = vpop.permute.xlu2 %1054 }
 0x207   : > { %v5977_v37 = vpop.permute.xlu0 %1032  ;;  %v5979_v57 = vpop.permute.xlu1 %1034 }
 0x20c   : > { %1126 = vrot.lane.b32.xlu2 %v782_v54, %s4934_s21 }
 0x20d   : > { %1122 = vrot.lane.b32.xlu0 %v8722_v60, %s4934_s21  ;;  %1124 = vrot.lane.b32.xlu1 %v5229_v49, %s4934_s21  ;;  %v889_v60 = vsel %vm643_vm1, %v5565_v51, %v5507_v53 }
 0x20e   : > { %v5989_v19 = vpop.permute.xlu2 %1060 }
 0x20f   : > { %v5991_v30 = vpop.permute.xlu0 %1038  ;;  %v5993_v33 = vpop.permute.xlu1 %1040 }
 0x210   : > { %8723 = vst [vmem:[#allocation21_spill] sm:$0xff] %v5991_v30 }
 0x211   : > { %8724 = vst [vmem:[#allocation20_spill] sm:$0xff] %v5993_v33  ;;  %v4832_v33 = vld [vmem:[%s8467_s2 + $0x4] sm:$0xf0] }
 0x214   : > { %1132 = vrot.lane.b32.xlu2 %v5491_v32, %s4934_s21  ;;  %v892_v32 = vsel %vm643_vm1, %v5583_v61, %v5525_v50 }
 0x215   : > { %1128 = vrot.lane.b32.xlu0 %v783_v4, %s4934_s21  ;;  %1130 = vrot.lane.b32.xlu1 %v5547_v26, %s4934_s21  ;;  %v888_v4 = vsel %vm643_vm1, %v5563_v62, %v5565_v51  ;;  %v890_v62 = vsel %vm643_vm1, %v5507_v53, %v5581_v63  ;;  %v891_v51 = vsel %vm643_vm1, %v5581_v63, %v5583_v61 }
 0x216   : > { %v6003_v29 = vpop.permute.xlu2 %1066  ;;  %v895_v53 = vsel %vm643_vm1, %v5597_v12, %v5543_v25  ;;  %v893_v63 = vsel %vm643_vm1, %v5525_v50, %v5595_v22  ;;  %v894_v61 = vsel %vm643_vm1, %v5595_v22, %v5597_v12  ;;  %v896_v50 = vsel %vm643_vm1, %v5543_v25, %v5613_v11 }
 0x217   : > { %v6005_v49 = vpop.permute.xlu0 %1044  ;;  %v6007_v54 = vpop.permute.xlu1 %1046  ;;  %v897_v22 = vsel %vm643_vm1, %v5613_v11, %v5615_v13  ;;  %v899_v25 = vsel %vm643_vm1, %v5561_v16, %v5631_v2  ;;  %v900_v11 = vsel %vm643_vm1, %v5631_v2, %v5633_v55 }
 0x218   : > { %8725 = vst [vmem:[#allocation22_spill] sm:$0xff] %v6005_v49 }
 0x219   : > { %8726 = vst [vmem:[#allocation44_spill] sm:$0xff] %v6007_v54 }
 0x21c   : > { %1138 = vrot.lane.b32.xlu2 %v889_v60, %s4934_s21 }
 0x21d   : > { %1134 = vrot.lane.b32.xlu0 %v887_v35, %s4934_s21  ;;  %1136 = vrot.lane.b32.xlu1 %v888_v4, %s4934_s21 }
 0x21e   : > { %v6025_v54 = vpop.permute.xlu2 %1072 }
 0x21f   : > { %v6021_v26 = vpop.permute.xlu0 %1050  ;;  %v6023_v34 = vpop.permute.xlu1 %1052  ;;  %8727 = vst [vmem:[#allocation45_spill] sm:$0xff] %v6025_v54 }
 0x224   : > { %1144 = vrot.lane.b32.xlu2 %v892_v32, %s4934_s21 }
 0x225   : > { %1140 = vrot.lane.b32.xlu0 %v890_v62, %s4934_s21  ;;  %1142 = vrot.lane.b32.xlu1 %v891_v51, %s4934_s21  ;;  %v898_v51 = vsel %vm643_vm1, %v5615_v13, %v5561_v16  ;;  %v902_v16 = vsel %vm643_vm1, %v5579_v20, %v5649_v27 }
 0x226   : > { %v6043_v4 = vpop.permute.xlu2 %1078 }
 0x227   : > { %v6039_v60 = vpop.permute.xlu0 %1056  ;;  %v6041_v35 = vpop.permute.xlu1 %1058  ;;  %8728 = vst [vmem:[#allocation46_spill] sm:$0xff] %v6043_v4 }
 0x228   : > { %v1235_v6 = vsel %vm1166_vm2, %v6041_v35, %v5989_v19 }
 0x22c   : > { %1150 = vrot.lane.b32.xlu2 %v895_v53, %s4934_s21 }
 0x22d   : > { %1146 = vrot.lane.b32.xlu0 %v893_v63, %s4934_s21  ;;  %1148 = vrot.lane.b32.xlu1 %v894_v61, %s4934_s21  ;;  %v901_v63 = vsel %vm643_vm1, %v5633_v55, %v5579_v20  ;;  %v1232_v20 = vsel %vm1166_vm2, %v6023_v34, %v5975_v24 }
 0x22e   : > { %v6064_v7 = vpop.permute.xlu2 %1084 }
 0x22f   : > { %v6057_v32 = vpop.permute.xlu0 %1062  ;;  %v6059_v62 = vpop.permute.xlu1 %1064 }
 0x234   : > { %1156 = vrot.lane.b32.xlu2 %v898_v51, %s4934_s21 }
 0x235   : > { %1152 = vrot.lane.b32.xlu0 %v896_v50, %s4934_s21  ;;  %1154 = vrot.lane.b32.xlu1 %v897_v22, %s4934_s21 }
 0x236   : > { %v6091_v13 = vpop.permute.xlu2 %1090 }
 0x237   : > { %v6075_v12 = vpop.permute.xlu0 %1068  ;;  %v6077_v53 = vpop.permute.xlu1 %1070 }
 0x238   : > { %8729 = vst [vmem:[#allocation47_spill] sm:$0xff] %v6077_v53  ;;  %v8750_v53 = vld [vmem:[#allocation14_spill] sm:$0xff] }
 0x23c   : > { %1162 = vrot.lane.b32.xlu2 %v901_v63, %s4934_s21 }
 0x23d   : > { %1158 = vrot.lane.b32.xlu0 %v899_v25, %s4934_s21  ;;  %1160 = vrot.lane.b32.xlu1 %v900_v11, %s4934_s21 }
 0x23e   : > { %v6105_v55 = vpop.permute.xlu2 %1096 }
 0x23f   : > { %v6093_v61 = vpop.permute.xlu0 %1074  ;;  %v6095_v51 = vpop.permute.xlu1 %1076 }
 0x240   : > { %8730 = vst [vmem:[#allocation48_spill] sm:$0xff] %v6093_v61 }
 0x241   : > { %8731 = vst [vmem:[#allocation49_spill] sm:$0xff] %v6095_v51 }
 0x245   : > { %1164 = vrot.lane.b32.xlu0 %v902_v16, %s4934_s21 }
 0x246   : > { %v6111_v11 = vpop.permute.xlu2 %1102 }
 0x247   : > { %v6101_v50 = vpop.permute.xlu0 %1080  ;;  %v6103_v2 = vpop.permute.xlu1 %1082 }
 0x248   : > { %8732 = vst [vmem:[#allocation50_spill] sm:$0xff] %v6101_v50 }
 0x249   : > { %8733 = vst [vmem:[#allocation51_spill] sm:$0xff] %v6103_v2  ;;  %v1216_v2 = vsel %vm1166_vm2, %v5871_v8, %v5945_v48 }
 0x24e   : > { %v6123_v50 = vpop.permute.xlu2 %1108 }
 0x24f   : > { %v1087_v22 = vpop.permute.xlu0 %1086  ;;  %v6107_v63 = vpop.permute.xlu1 %1088  ;;  %8734 = vst [vmem:[#allocation52_spill] sm:$0xff] %v6123_v50 }
 0x250   : > { %v1248_v25 = vsel %vm1166_vm2, %v1087_v22, %v6107_v63 }
 0x251   : > { %1439 = vmatpush.bf16.msra.mxu2 %v1248_v25  ;;  %v1200_v25 = vsel %vm1166_vm2, %v5841_v14, %v5843_v40 }
 0x255   : > { %1440 = vmatpush.bf16.msra.mxu2 %v1232_v20  ;;  %v1184_v20 = vsel %vm1166_vm2, %v5737_v0, %v5697_v31 }
 0x257   : > { %v6116_v27 = vpop.permute.xlu0 %1092  ;;  %v6118_v16 = vpop.permute.xlu1 %1094 }
 0x259   : > { %1441 = vmatpush.bf16.msra.mxu2 %v1216_v2  ;;  %v1168_v2 = vsel %vm1166_vm2, %v5593_v18, %v5667_v39 }
 0x25d   : > { %1442 = vmatpush.bf16.msra.mxu2 %v1200_v25  ;;  %v6143_v25 = vpop.permute.xlu2 %1114 }
 0x25e   : > { %8736 = vst [vmem:[#allocation54_spill] sm:$0xff] %v6143_v25 }
 0x25f   : > { %v6128_v49 = vpop.permute.xlu0 %1098  ;;  %v6130_v4 = vpop.permute.xlu1 %1100 }
 0x261   : > { %1443 = vmatpush.bf16.msra.mxu2 %v1184_v20  ;;  %v8739_v20 = vld [vmem:[#allocation40_spill] sm:$0xff] }
 0x262   : > { %v6153_v9 = vsel %vm1166_vm2, %v8739_v20, %v5629_v41 }
 0x263   : > { %8740 = vst [vmem:[#allocation40_spill] sm:$0xff] %v6153_v9 }
 0x265   : > { %1444 = vmatpush.bf16.msra.mxu2 %v1168_v2  ;;  %v1251_v2 = vsel %vm1166_vm2, %v6116_v27, %v6118_v16  ;;  %v6163_v1 = vpop.permute.xlu2 %1120 }
 0x266   : > { %8743 = vst [vmem:[#allocation59_spill] sm:$0xff] %v6163_v1 }
 0x267   : > { %v6146_v30 = vpop.permute.xlu0 %1104  ;;  %v6148_v54 = vpop.permute.xlu1 %1106 }
 0x268   : > { %8737 = vst [vmem:[#allocation55_spill] sm:$0xff] %v6146_v30 }
 0x269   : > { %1521 = vmatpush.bf16.msrb.mxu2 %v6141_v28  ;;  %8738 = vst [vmem:[#allocation56_spill] sm:$0xff] %v6148_v54  ;;  %v4419_v54 = vld [vmem:[%s8467_s2] sm:$0xf]  ;;  %v8752_v28 = vld [vmem:[#allocation33_spill] sm:$0xff] }
 0x26a   : > { %v6174_v59 = vor.u32 %v4832_v33, %v4419_v54  ;;  %v8747_v33 = vld [vmem:[#allocation5_spill] sm:$0xff] }
 0x26c   : > { %1445 = vmatmul.bf16.vlgmr.msra.gmra.mxu2 %v6174_v59 }
 0x26d   : > { %1522 = vmatpush.bf16.msrb.mxu2 %v6153_v9  ;;  %v1203_v9 = vsel %vm1166_vm2, %v5859_v45, %v5861_v56  ;;  %v6187_v61 = vpop.permute.xlu2 %1126 }
 0x26e   : > { %8746 = vst [vmem:[#allocation62_spill] sm:$0xff] %v6187_v61 }
 0x26f   : > { %v6159_v43 = vpop.permute.xlu0 %1110  ;;  %v6161_v25 = vpop.permute.xlu1 %1112 }
 0x270   : > { %8741 = vst [vmem:[#allocation57_spill] sm:$0xff] %v6159_v43 }
 0x271   : > { %1523 = vmatpush.bf16.msrb.mxu2 %v1251_v2  ;;  %8742 = vst [vmem:[#allocation58_spill] sm:$0xff] %v6161_v25  ;;  %v1219_v2 = vsel %vm1166_vm2, %v5889_v58, %v5963_v3 }
 0x275   : > { %1524 = vmatpush.bf16.msrb.mxu2 %v1235_v6  ;;  %v8748_v6 = vld [vmem:[#allocation16_spill] sm:$0xff]  ;;  %v1133_v61 = vpop.permute.xlu2 %1132 }
 0x276   : > { %v1187_v54 = vsel %vm1166_vm2, %v8748_v6, %v8747_v33 }
 0x277   : > { %v6180_v1 = vpop.permute.xlu0 %1116  ;;  %v6182_v25 = vpop.permute.xlu1 %1118 }
 0x278   : > { %8744 = vst [vmem:[#allocation60_spill] sm:$0xff] %v6180_v1 }
 0x279   : > { %1525 = vmatpush.bf16.msrb.mxu2 %v1219_v2  ;;  %8745 = vst [vmem:[#allocation61_spill] sm:$0xff] %v6182_v25  ;;  %v8751_v25 = vld [vmem:[#allocation39_spill] sm:$0xff] }
 0x27a   : > { %v1171_v50 = vsel %vm1166_vm2, %v8752_v28, %v8751_v25  ;;  %v1231_v28 = vsel %vm1166_vm2, %v6021_v26, %v6023_v34 }
 0x27d   : > { %1526 = vmatpush.bf16.msrb.mxu2 %v1203_v9  ;;  %v8753_v9 = vld [vmem:[#allocation37_spill] sm:$0xff] }
 0x27e   : > { %v6202_v43 = vsel %vm1166_vm2, %v5667_v39, %v8753_v9  ;;  %v1857_v39 = vld [vmem:[%s8468_s3] sm:$0xff]  ;;  %v4421_v9 = vld [vmem:[%s8467_s2 + $0x8] sm:$0xf0] }
 0x27f   : > { %v6192_v51 = vpop.permute.xlu0 %1122  ;;  %v1125_v2 = vpop.permute.xlu1 %1124 }
 0x280   : > { %8749 = vst [vmem:[#allocation5_spill] sm:$0xff] %v6192_v51  ;;  %v1266_v1 = vsel %vm1166_vm2, %v1125_v2, %v8750_v53  ;;  %v4831_v2 = vld [vmem:[%s8467_s2 + $0x4] sm:$0xf] }
 0x281   : > { %1527 = vmatpush.bf16.msrb.mxu2 %v1187_v54  ;;  %1409 = vmatpush.bf16.msra.mxu0 %v1266_v1  ;;  %v1247_v1 = vsel %vm1166_vm2, %v6064_v7, %v1087_v22  ;;  %v4935_v7 = vmov 0   ;;  %v1139_v22 = vpop.permute.xlu2 %1138  ;;  %v6244_v30 = vor.u32 %v4831_v2, %v4421_v9 }
 0x282   : > { %4921 = vset.pattern.permute.xlu1 %v4935_v7  ;;  %4095 = vst [vmem:[%s6217_s28] sm:$0xff] %v4935_v7  ;;  %4923 = vset.pattern.permute.xlu0 %v4935_v7 }
 0x283   : > { %4096 = vst [vmem:[%s6217_s28 + $0x50] sm:$0xff] %v4935_v7  ;;  %1861 = vperm.xlu1 %4921, %v1857_v39   ;;  %4922 = vset.pattern.permute.xlu2 %v4935_v7  ;;  %v1901_v39 = vld [vmem:[%s8469_s4] sm:$0xff] }
 0x284   : > { %4129 = vst [vmem:[%s6217_s28 + $0x48] sm:$0xff] %v4935_v7  ;;  %1905 = vperm.xlu0 %4923, %v1901_v39  }
 0x285   : > { %1528 = vmatpush.bf16.msrb.mxu2 %v1171_v50  ;;  %1410 = vmatpush.bf16.msra.mxu0 %v6202_v43  ;;  %4130 = vst [vmem:[%s6217_s28 + $0x98] sm:$0xff] %v4935_v7 }
 0x286   : > { %2043 = vst [vmem:[#allocation2] sm:$0xff] %v4935_v7 }
 0x287   : > { %v6206_v6 = vpop.permute.xlu0 %1128  ;;  %v6208_v51 = vpop.permute.xlu1 %1130  ;;  %2044 = vst [vmem:[#allocation2 + $0x50] sm:$0xff] %v4935_v7 }
 0x288   : > { %1529 = vmatmul.bf16.vlgmr.msrb.gmra.mxu2 %v6174_v59  ;;  %8754 = vst [vmem:[#allocation16_spill] sm:$0xff] %v6206_v6 }
 0x289   : > { %8755 = vst [vmem:[#allocation14_spill] sm:$0xff] %v6208_v51  ;;  %1411 = vmatpush.bf16.msra.mxu0 %v1247_v1  ;;  %v1215_v1 = vsel %vm1166_vm2, %v5929_v5, %v5871_v8  ;;  %v8756_v8 = vld [vmem:[#allocation19_spill] sm:$0xff] }
 0x28a   : > { %2077 = vst [vmem:[#allocation2 + $0x48] sm:$0xff] %v4935_v7  ;;  %v1199_v5 = vsel %vm1166_vm2, %v8756_v8, %v5841_v14  ;;  %v1255_v8 = vsel %vm1166_vm2, %v6130_v4, %v6111_v11 }
 0x28b   : > { %2078 = vst [vmem:[#allocation2 + $0x98] sm:$0xff] %v4935_v7  ;;  %v6268_v7 = vsel %vm1166_vm2, %v8751_v25, %v8739_v20  ;;  %v1233_v25 = vsel %vm1166_vm2, %v5975_v24, %v6039_v60  ;;  %v1145_v20 = vpop.permute.xlu2 %1144  ;;  %v1234_v24 = vsel %vm1166_vm2, %v6039_v60, %v6041_v35  ;;  %v8762_v35 = vld [vmem:[#allocation15_spill] sm:$0xff] }
 0x28d   : > { %1412 = vmatpush.bf16.msra.mxu0 %v1231_v28 }
 0x28f   : > { %v1135_v34 = vpop.permute.xlu0 %1134  ;;  %v1137_v26 = vpop.permute.xlu1 %1136 }
 0x290   : > { %v1270_v28 = vsel %vm1166_vm2, %v1133_v61, %v1135_v34  ;;  %v1271_v51 = vsel %vm1166_vm2, %v1135_v34, %v1137_v26  ;;  %v1272_v6 = vsel %vm1166_vm2, %v1137_v26, %v1139_v22  ;;  %v1902_v61 = vld [vmem:[%s8469_s4 + $0x8] sm:$0xff]  ;;  %v8761_v34 = vld [vmem:[#allocation23_spill] sm:$0xff]  ;;  %v1201_v26 = vsel %vm1166_vm2, %v5843_v40, %v8762_v35 }
 0x291   : > { %1413 = vmatpush.bf16.msra.mxu0 %v1215_v1  ;;  %1430 = vmatpush.bf16.msra.mxu1 %v1270_v28  ;;  %v6310_v60 = vsel %vm1166_vm2, %v5629_v41, %v8761_v34  ;;  %v8763_v41 = vld [vmem:[#allocation3_spill] sm:$0xff]  ;;  %v8764_v1 = vld [vmem:[#allocation34_spill] sm:$0xff]  ;;  %v1185_v40 = vsel %vm1166_vm2, %v5697_v31, %v8750_v53  ;;  %v1239_v31 = vsel %vm1166_vm2, %v6003_v29, %v6075_v12 }
 0x292   : > { %1458 = vmatpush.bf16.msra.mxu3 %v1271_v51  ;;  %v6259_v51 = vsel %vm1166_vm2, %v8747_v33, %v5771_v23  ;;  %1910 = vperm.xlu1 %4921, %v1902_v61   ;;  %v1249_v23 = vsel %vm1166_vm2, %v6107_v63, %v6091_v13  ;;  %v6326_v39 = vsel %vm1166_vm2, %v8764_v1, %v8763_v41 }
 0x294   : > { %4425 = vmatmul.msk.bf16.vlgmr.msra.gmra.mxu1 %vm1405_vm3, %v6244_v30 }
 0x295   : > { %1465 = vmatpush.bf16.msrb.mxu1 %v1187_v54  ;;  %4426 = vmatmul.msk.bf16.vlgmr.msra.gmra.mxu3 %vm1405_vm3, %v6244_v30  ;;  %v8757_v54 = vld [vmem:[#allocation13_spill] sm:$0xff] }
 0x296   : > { %1486 = vmatpush.bf16.msrb.mxu3 %v1272_v6  ;;  %1414 = vmatpush.bf16.msra.mxu0 %v1199_v5  ;;  %v1183_v6 = vsel %vm1166_vm2, %v8757_v54, %v5737_v0  ;;  %v1250_v0 = vsel %vm1166_vm2, %v6091_v13, %v6116_v27  ;;  %v1217_v27 = vsel %vm1166_vm2, %v5945_v48, %v5947_v21  ;;  %v1858_v5 = vld [vmem:[%s8468_s3 + $0x8] sm:$0xff]  ;;  %v8766_v54 = vld [vmem:[#allocation17_spill] sm:$0xff] }
 0x297   : > { %v1141_v14 = vpop.permute.xlu0 %1140  ;;  %v1218_v48 = vsel %vm1166_vm2, %v5947_v21, %v5889_v58  ;;  %v1143_v28 = vpop.permute.xlu1 %1142  ;;  %v1252_v58 = vsel %vm1166_vm2, %v6118_v16, %v6105_v55  ;;  %v1202_v21 = vsel %vm1166_vm2, %v8762_v35, %v5859_v45  ;;  %1866 = vperm.xlu2 %4922, %v1858_v5   ;;  %v1236_v45 = vsel %vm1166_vm2, %v5989_v19, %v6057_v32  ;;  %v8765_v16 = vld [vmem:[#allocation12_spill] sm:$0xff]  ;;  %v8773_v35 = vld [vmem:[#allocation55_spill] sm:$0xff] }
 0x298   : > { %v1273_v63 = vsel %vm1166_vm2, %v1139_v22, %v1141_v14  ;;  %v8760_v22 = vld [vmem:[#allocation11_spill] sm:$0xff]  ;;  %v1274_v53 = vsel %vm1166_vm2, %v1141_v14, %v1143_v28  ;;  %v1220_v19 = vsel %vm1166_vm2, %v5963_v3, %v5965_v36  ;;  %v8767_v14 = vld [vmem:[#allocation18_spill] sm:$0xff]  ;;  %v1204_v3 = vsel %vm1166_vm2, %v5861_v56, %v5803_v10 }
 0x299   : > { %1466 = vmatpush.bf16.msrb.mxu1 %v1171_v50  ;;  %v8758_v50 = vld [vmem:[#allocation35_spill] sm:$0xff] }
 0x29a   : > { %1493 = vmatpush.bf16.msra.mxu3 %v6259_v51  ;;  %1415 = vmatpush.bf16.msra.mxu0 %v1183_v6  ;;  %v1167_v33 = vsel %vm1166_vm2, %v8758_v50, %v5593_v18  ;;  %v8759_v18 = vld [vmem:[#allocation7_spill] sm:$0xff]  ;;  %v8768_v50 = vld [vmem:[#allocation8_spill] sm:$0xff] }
 0x29b   : > { %v6290_v9 = vsel %vm1166_vm2, %v5773_v52, %v8759_v18  ;;  %v6304_v52 = vsel %vm1166_vm2, %v5789_v42, %v8760_v22  ;;  %v1191_v6 = vsel %vm1166_vm2, %v8759_v18, %v8767_v14  ;;  %v8769_v18 = vld [vmem:[#allocation9_spill] sm:$0xff] }
 0x29d   : > { %1467 = vmatpush.bf16.msrb.mxu1 %v1249_v23  ;;  %v1223_v23 = vsel %vm1166_vm2, %v5977_v37, %v5979_v57 }
 0x29e   : > { %1494 = vmatpush.bf16.msra.mxu3 %v6268_v7  ;;  %1416 = vmatpush.bf16.msra.mxu0 %v1167_v33  ;;  %v1175_v33 = vsel %vm1166_vm2, %v8761_v34, %v8768_v50  ;;  %v8772_v34 = vld [vmem:[#allocation10_spill] sm:$0xff] }
 0x29f   : > { %v6284_v2 = vpop.permute.xlu0 %1146  ;;  %v6360_v61 = vpop.permute.xlu1 %1148 }
 0x2a0   : > { %v1276_v13 = vsel %vm1166_vm2, %v1145_v20, %v6284_v2 }
 0x2a1   : > { %1468 = vmatpush.bf16.msrb.mxu1 %v1233_v25  ;;  %1417 = vmatmul.bf16.vlgmr.msra.gmra.mxu0 %v6174_v59  ;;  %v1253_v25 = vsel %vm1166_vm2, %v6105_v55, %v6128_v49 }
 0x2a2   : > { %1495 = vmatpush.bf16.msra.mxu3 %v1250_v0  ;;  %1514 = vmatpush.bf16.msrb.mxu0 %v1273_v63  ;;  %v1207_v0 = vsel %vm1166_vm2, %v5875_v44, %v5821_v38 }
 0x2a3   : > { %1598 = vmatpush.bf16.msra.mxu2 %v1276_v13  ;;  %v6416_v13 = vsel %vm1166_vm2, %v8769_v18, %v5823_v47 }
 0x2a5   : > { %1469 = vmatpush.bf16.msrb.mxu1 %v1217_v27  ;;  %4427 = vmatmul.msk.bf16.vlgmr.msrb.gmra.mxu3 %vm1405_vm3, %v6244_v30  ;;  %v1176_v27 = vsel %vm1166_vm2, %v8768_v50, %v8764_v1  ;;  %v8774_v1 = vld [vmem:[#allocation57_spill] sm:$0xff] }
 0x2a6   : > { %1549 = vmatpush.bf16.msra.mxu0 %v6290_v9  ;;  %1496 = vmatpush.bf16.msra.mxu3 %v1234_v24  ;;  %v8770_v24 = vld [vmem:[#allocation4_spill] sm:$0xff] }
 0x2a7   : > { %1633 = vmatpush.bf16.msrb.mxu2 %v6304_v52  ;;  %v6383_v56 = vpop.permute.xlu0 %1152  ;;  %v6385_v63 = vpop.permute.xlu1 %1154 }
 0x2a8   : > { %4431 = vmatmul.msk.bf16.vlgmr.msra.gmra.mxu2 %vm1405_vm3, %v6244_v30  ;;  %v1280_v55 = vsel %vm1166_vm2, %v6383_v56, %v6385_v63 }
 0x2a9   : > { %1470 = vmatpush.bf16.msrb.mxu1 %v1201_v26  ;;  %v1256_v26 = vsel %vm1166_vm2, %v6111_v11, %v8773_v35  ;;  %v1238_v11 = vsel %vm1166_vm2, %v6059_v62, %v6003_v29 }
 0x2aa   : > { %1550 = vmatpush.bf16.msra.mxu0 %v6310_v60  ;;  %1497 = vmatpush.bf16.msra.mxu3 %v1218_v48 }
 0x2ab   : > { %1634 = vmatpush.bf16.msrb.mxu2 %v6326_v39 }
 0x2ad   : > { %1471 = vmatpush.bf16.msrb.mxu1 %v1185_v40  ;;  %v8777_v40 = vld [vmem:[#allocation47_spill] sm:$0xff] }
 0x2ae   : > { %1551 = vmatpush.bf16.msra.mxu0 %v1252_v58  ;;  %1498 = vmatpush.bf16.msra.mxu3 %v1202_v21  ;;  %v1151_v58 = vpop.permute.xlu2 %1150  ;;  %v8776_v21 = vld [vmem:[#allocation53_spill] sm:$0xff] }
 0x2af   : > { %1635 = vmatpush.bf16.msrb.mxu2 %v1255_v8  ;;  %v1240_v8 = vsel %vm1166_vm2, %v6075_v12, %v8777_v40  ;;  %v8781_v12 = vld [vmem:[#allocation30_spill] sm:$0xff] }
 0x2b0   : > { %v1224_v29 = vsel %vm1166_vm2, %v5979_v57, %v8781_v12  ;;  %v8785_v57 = vld [vmem:[#allocation32_spill] sm:$0xff] }
 0x2b1   : > { %1472 = vmatpush.bf16.msrb.mxu1 %v6202_v43  ;;  %4428 = vmatmul.msk.bf16.vlgmr.msrb.gmra.mxu0 %vm1405_vm3, %v6244_v30  ;;  %v1275_v43 = vsel %vm1166_vm2, %v1143_v28, %v1145_v20  ;;  %v1277_v20 = vsel %vm1166_vm2, %v6284_v2, %v6360_v61  ;;  %v1221_v2 = vsel %vm1166_vm2, %v5965_v36, %v5907_v15 }
 0x2b2   : > { %1552 = vmatpush.bf16.msra.mxu0 %v1236_v45  ;;  %1499 = vmatpush.bf16.msra.mxu3 %v8765_v16  ;;  %v1205_v36 = vsel %vm1166_vm2, %v5803_v10, %v5873_v17  ;;  %v8775_v10 = vld [vmem:[#allocation52_spill] sm:$0xff]  ;;  %v1278_v16 = vsel %vm1166_vm2, %v6360_v61, %v1151_v58 }
 0x2b3   : > { %1636 = vmatpush.bf16.msrb.mxu2 %v1239_v31  ;;  %v1259_v28 = vsel %vm1166_vm2, %v8775_v10, %v8774_v1  ;;  %v8780_v45 = vld [vmem:[#allocation40_spill] sm:$0xff] }
 0x2b4   : > { %1473 = vmatmul.bf16.vlgmr.msrb.gmra.mxu1 %v6174_v59  ;;  %v8782_v31 = vld [vmem:[#allocation24_spill] sm:$0xff] }
 0x2b5   : > { %1542 = vmatpush.bf16.msra.mxu1 %v1274_v53  ;;  %v1195_v53 = vsel %vm1166_vm2, %v5805_v46, %v8782_v31 }
 0x2b6   : > { %1553 = vmatpush.bf16.msra.mxu0 %v1220_v19  ;;  %1500 = vmatpush.bf16.msra.mxu3 %v8766_v54  ;;  %v8783_v19 = vld [vmem:[#allocation42_spill] sm:$0xff]  ;;  %v1208_v54 = vsel %vm1166_vm2, %v5821_v38, %v8785_v57  ;;  %v8789_v38 = vld [vmem:[#allocation56_spill] sm:$0xff] }
 0x2b7   : > { %1637 = vmatpush.bf16.msrb.mxu2 %v1223_v23  ;;  %v8788_v23 = vld [vmem:[#allocation28_spill] sm:$0xff]  ;;  %v1257_v50 = vsel %vm1166_vm2, %v8773_v35, %v8789_v38  ;;  %v8795_v35 = vld [vmem:[#allocation58_spill] sm:$0xff] }
 0x2b9   : > { %1570 = vmatpush.bf16.msrb.mxu1 %v1275_v43  ;;  %1501 = vmatmul.bf16.vlgmr.msra.gmra.mxu3 %v6174_v59  ;;  %v8784_v43 = vld [vmem:[#allocation20_spill] sm:$0xff] }
 0x2ba   : > { %1577 = vmatpush.bf16.msrb.mxu3 %v1191_v6  ;;  %1554 = vmatpush.bf16.msra.mxu0 %v1204_v3  ;;  %v1227_v61 = vsel %vm1166_vm2, %v8784_v43, %v8783_v19 }
 0x2bb   : > { %1638 = vmatpush.bf16.msrb.mxu2 %v1207_v0  ;;  %v8790_v0 = vld [vmem:[#allocation45_spill] sm:$0xff] }
 0x2be   : > { %1578 = vmatpush.bf16.msrb.mxu3 %v1175_v33  ;;  %1555 = vmatpush.bf16.msra.mxu0 %v6259_v51  ;;  %v1237_v51 = vsel %vm1166_vm2, %v6057_v32, %v6059_v62  ;;  %v1192_v32 = vsel %vm1166_vm2, %v8767_v14, %v5789_v42  ;;  %v6422_v42 = vsel %vm1166_vm2, %v8763_v41, %v8770_v24 }
 0x2bf   : > { %1639 = vmatpush.bf16.msrb.mxu2 %v1191_v6  ;;  %v1254_v41 = vsel %vm1166_vm2, %v6128_v49, %v6130_v4  ;;  %v8778_v49 = vld [vmem:[#allocation49_spill] sm:$0xff]  ;;  %v8779_v4 = vld [vmem:[#allocation48_spill] sm:$0xff]  ;;  %v1222_v62 = vsel %vm1166_vm2, %v5907_v15, %v5977_v37  ;;  %v1157_v15 = vpop.permute.xlu2 %1156  ;;  %v1206_v37 = vsel %vm1166_vm2, %v5873_v17, %v5875_v44  ;;  %v8787_v6 = vld [vmem:[#allocation26_spill] sm:$0xff]  ;;  %v6494_v17 = vpop.permute.xlu1 %1160 }
 0x2c0   : > { %v1243_v5 = vsel %vm1166_vm2, %v8779_v4, %v8778_v49  ;;  %v1211_v3 = vsel %vm1166_vm2, %v8788_v23, %v8787_v6  ;;  %v1281_v44 = vsel %vm1166_vm2, %v6385_v63, %v1157_v15 }
 0x2c2   : > { %1579 = vmatpush.bf16.msrb.mxu3 %v1253_v25  ;;  %1556 = vmatpush.bf16.msra.mxu0 %v6268_v7  ;;  %v6401_v7 = vsel %vm1166_vm2, %v8760_v22, %v5805_v46  ;;  %v8771_v22 = vld [vmem:[#allocation6_spill] sm:$0xff]  ;;  %v8786_v46 = vld [vmem:[#allocation36_spill] sm:$0xff] }
 0x2c3   : > { %1640 = vmatpush.bf16.msrb.mxu2 %v1175_v33  ;;  %v6434_v48 = vsel %vm1166_vm2, %v8772_v34, %v8771_v22  ;;  %v1179_v14 = vsel %vm1166_vm2, %v8770_v24, %v8786_v46  ;;  %v1279_v33 = vsel %vm1166_vm2, %v1151_v58, %v6383_v56  ;;  %v8791_v56 = vld [vmem:[#allocation62_spill] sm:$0xff]  ;;  %v8794_v24 = vld [vmem:[#allocation31_spill] sm:$0xff] }
 0x2c4   : > { %4429 = vmatmul.msk.bf16.vlgmr.msra.gmra.mxu1 %vm1405_vm3, %v6244_v30  ;;  %v1267_v63 = vsel %vm1166_vm2, %v5823_v47, %v8791_v56 }
 0x2c5   : > { %1557 = vmatmul.bf16.vlgmr.msra.gmra.mxu0 %v6174_v59  ;;  %1605 = vmatpush.bf16.msra.mxu1 %v1192_v32 }
 0x2c6   : > { %1626 = vmatpush.bf16.msrb.mxu0 %v1277_v20  ;;  %1580 = vmatpush.bf16.msrb.mxu3 %v1237_v51  ;;  %v8792_v51 = vld [vmem:[#allocation21_spill] sm:$0xff] }
 0x2c7   : > { %1710 = vmatpush.bf16.msra.mxu2 %v1280_v55  ;;  %v1163_v25 = vpop.permute.xlu2 %1162  ;;  %v1225_v55 = vsel %vm1166_vm2, %v8781_v12, %v8792_v51 }
 0x2c8   : > { %1641 = vmatmul.bf16.vlgmr.msrb.gmra.mxu2 %v6174_v59  ;;  %v1284_v20 = vsel %vm1166_vm2, %v6494_v17, %v1163_v25 }
 0x2c9   : > { %1606 = vmatpush.bf16.msra.mxu1 %v1176_v27 }
 0x2ca   : > { %1661 = vmatpush.bf16.msra.mxu0 %v6401_v7  ;;  %1581 = vmatpush.bf16.msrb.mxu3 %v1221_v2  ;;  %v8793_v2 = vld [vmem:[#allocation61_spill] sm:$0xff] }
 0x2cb   : > { %1745 = vmatpush.bf16.msrb.mxu2 %v6416_v13 }
 0x2cd   : > { %1607 = vmatpush.bf16.msra.mxu1 %v1254_v41  ;;  %v1242_v41 = vsel %vm1166_vm2, %v8790_v0, %v8779_v4  ;;  %v8800_v4 = vld [vmem:[#allocation59_spill] sm:$0xff] }
 0x2ce   : > { %1662 = vmatpush.bf16.msra.mxu0 %v6422_v42  ;;  %1582 = vmatpush.bf16.msrb.mxu3 %v1205_v36  ;;  %v1258_v36 = vsel %vm1166_vm2, %v8789_v38, %v8775_v10  ;;  %v4858_v38 = vld [vmem:[#allocation2 + $0x50] sm:$0xf0] }
 0x2cf   : > { %1746 = vmatpush.bf16.msrb.mxu2 %v6434_v48 }
 0x2d1   : > { %1608 = vmatpush.bf16.msra.mxu1 %v1238_v11  ;;  %v8799_v11 = vld [vmem:[#allocation27_spill] sm:$0xff] }
 0x2d2   : > { %1663 = vmatpush.bf16.msra.mxu0 %v1256_v26  ;;  %1583 = vmatpush.bf16.msrb.mxu3 %v8776_v21  ;;  %v1159_v26 = vpop.permute.xlu0 %1158  ;;  %v8798_v21 = vld [vmem:[#allocation16_spill] sm:$0xff] }
 0x2d3   : > { %1747 = vmatpush.bf16.msrb.mxu2 %v1259_v28  ;;  %v8796_v28 = vld [vmem:[#allocation46_spill] sm:$0xff]  ;;  %v1282_v10 = vsel %vm1166_vm2, %v1157_v15, %v1159_v26 }
 0x2d4   : > { %4430 = vmatmul.msk.bf16.vlgmr.msrb.gmra.mxu1 %vm1405_vm3, %v6244_v30  ;;  %v1244_v58 = vsel %vm1166_vm2, %v8778_v49, %v8796_v28  ;;  %v1212_v49 = vsel %vm1166_vm2, %v8787_v6, %v8799_v11 }
 0x2d5   : > { %4432 = vmatmul.msk.bf16.vlgmr.msrb.gmra.mxu0 %vm1405_vm3, %v6244_v30  ;;  %1609 = vmatpush.bf16.msra.mxu1 %v1222_v62 }
 0x2d6   : > { %1664 = vmatpush.bf16.msra.mxu0 %v1240_v8  ;;  %1584 = vmatpush.bf16.msrb.mxu3 %v8780_v45  ;;  %v1210_v8 = vsel %vm1166_vm2, %v8794_v24, %v8788_v23  ;;  %v8801_v45 = vld [vmem:[#allocation54_spill] sm:$0xff]  ;;  %v8809_v23 = vld [vmem:[#allocation43_spill] sm:$0xff] }
 0x2d7   : > { %1748 = vmatpush.bf16.msrb.mxu2 %v1243_v5  ;;  %v1264_v5 = vsel %vm1166_vm2, %v8793_v2, %v8800_v4 }
 0x2d8   : > { %4435 = vmatmul.msk.bf16.vlgmr.msra.gmra.mxu2 %vm1405_vm3, %v6244_v30 }
 0x2d9   : > { %1585 = vmatmul.bf16.vlgmr.msrb.gmra.mxu3 %v6174_v59  ;;  %1610 = vmatpush.bf16.msra.mxu1 %v1206_v37  ;;  %v8807_v37 = vld [vmem:[#allocation60_spill] sm:$0xff] }
 0x2da   : > { %1654 = vmatpush.bf16.msra.mxu3 %v1278_v16  ;;  %1665 = vmatpush.bf16.msra.mxu0 %v1224_v29  ;;  %v1261_v16 = vsel %vm1166_vm2, %v8795_v35, %v8801_v45  ;;  %v1165_v12 = vpop.permute.xlu0 %1164  ;;  %v1283_v29 = vsel %vm1166_vm2, %v1159_v26, %v6494_v17 }
 0x2db   : > { %1749 = vmatpush.bf16.msrb.mxu2 %v1227_v61  ;;  %v1285_v62 = vsel %vm1166_vm2, %v1163_v25, %v1165_v12  ;;  %v8805_v61 = vld [vmem:[#allocation5_spill] sm:$0xff] }
 0x2dd   : > { %1611 = vmatpush.bf16.msra.mxu1 %v6290_v9  ;;  %v1241_v9 = vsel %vm1166_vm2, %v8777_v40, %v8790_v0  ;;  %v1268_v40 = vsel %vm1166_vm2, %v8791_v56, %v8798_v21  ;;  %v8811_v0 = vld [vmem:[#allocation29_spill] sm:$0xff] }
 0x2de   : > { %1689 = vmatpush.bf16.msrb.mxu3 %v1195_v53  ;;  %1666 = vmatpush.bf16.msra.mxu0 %v1208_v54  ;;  %v8806_v54 = vld [vmem:[#allocation25_spill] sm:$0xff] }
 0x2df   : > { %1750 = vmatpush.bf16.msrb.mxu2 %v1211_v3  ;;  %v1213_v15 = vsel %vm1166_vm2, %v8799_v11, %v8806_v54 }
 0x2e1   : > { %1612 = vmatpush.bf16.msra.mxu1 %v6310_v60  ;;  %v1196_v60 = vsel %vm1166_vm2, %v8782_v31, %v8769_v18  ;;  %v1263_v18 = vsel %vm1166_vm2, %v8771_v22, %v8793_v2  ;;  %v8802_v31 = vld [vmem:[#allocation50_spill] sm:$0xff] }
 0x2e2   : > { %1690 = vmatpush.bf16.msrb.mxu3 %v1179_v14  ;;  %1667 = vmatpush.bf16.msra.mxu0 %v1192_v32  ;;  %v1180_v32 = vsel %vm1166_vm2, %v8786_v46, %v8772_v34  ;;  %v1260_v34 = vsel %vm1166_vm2, %v8774_v1, %v8795_v35  ;;  %v8797_v1 = vld [vmem:[#allocation22_spill] sm:$0xff]  ;;  %v1262_v46 = vsel %vm1166_vm2, %v8801_v45, %v8807_v37 }
 0x2e3   : > { %1751 = vmatpush.bf16.msrb.mxu2 %v1195_v53  ;;  %v8803_v53 = vld [vmem:[#allocation14_spill] sm:$0xff] }
 0x2e4   : > { %1613 = vmatmul.bf16.vlgmr.msra.gmra.mxu1 %v6174_v59 }
 0x2e5   : > { %1682 = vmatpush.bf16.msrb.mxu1 %v1279_v33 }
 0x2e6   : > { %1691 = vmatpush.bf16.msrb.mxu3 %v1257_v50  ;;  %1668 = vmatpush.bf16.msra.mxu0 %v1176_v27  ;;  %v1209_v27 = vsel %vm1166_vm2, %v8785_v57, %v8794_v24  ;;  %v1265_v57 = vsel %vm1166_vm2, %v8800_v4, %v8805_v61 }
 0x2e7   : > { %1752 = vmatpush.bf16.msrb.mxu2 %v1179_v14  ;;  %v8808_v14 = vld [vmem:[#allocation51_spill] sm:$0xff] }
 0x2e8   : > { %v1246_v6 = vsel %vm1166_vm2, %v8802_v31, %v8808_v14 }
 0x2e9   : > { %1669 = vmatmul.bf16.vlgmr.msra.gmra.mxu0 %v6174_v59  ;;  %4433 = vmatmul.msk.bf16.vlgmr.msra.gmra.mxu3 %vm1405_vm3, %v6244_v30 }
 0x2ea   : > { %1738 = vmatpush.bf16.msrb.mxu0 %v1281_v44  ;;  %1692 = vmatpush.bf16.msrb.mxu3 %v1241_v9  ;;  %v8810_v44 = vld [vmem:[#allocation41_spill] sm:$0xff]  ;;  %v1198_v9 = vsel %vm1166_vm2, %v5823_v47, %v8811_v0 }
 0x2eb   : > { %1822 = vmatpush.bf16.msra.mxu2 %v1284_v20  ;;  %1717 = vmatpush.bf16.msra.mxu1 %v1196_v60 }
 0x2ec   : > { %1753 = vmatmul.bf16.vlgmr.msrb.gmra.mxu2 %v6174_v59 }
 0x2ee   : > { %1773 = vmatpush.bf16.msra.mxu0 %v1267_v63  ;;  %1693 = vmatpush.bf16.msrb.mxu3 %v1225_v55 }
 0x2ef   : > { %1718 = vmatpush.bf16.msra.mxu1 %v1180_v32  ;;  %v1446_v50 = vpop.f32.mrf.mxu2 }
 0x2f2   : > { %1774 = vmatpush.bf16.msra.mxu0 %v1263_v18  ;;  %1694 = vmatpush.bf16.msrb.mxu3 %v1209_v27  ;;  %v6636_v27 = vpop.permute.xlu2 %1866 }
 0x2f3   : > { %1719 = vmatpush.bf16.msra.mxu1 %v1258_v36 }
 0x2f4   : > { %4434 = vmatmul.msk.bf16.vlgmr.msrb.gmra.mxu1 %vm1405_vm3, %v6244_v30 }
 0x2f6   : > { %1775 = vmatpush.bf16.msra.mxu0 %v1260_v34  ;;  %1695 = vmatpush.bf16.msrb.mxu3 %v6304_v52  ;;  %v1226_v52 = vsel %vm1166_vm2, %v8792_v51, %v8784_v43  ;;  %v6624_v20 = vpop.permute.xlu0 %1905  ;;  %v8812_v51 = vld [vmem:[#allocation38_spill] sm:$0xff] }
 0x2f7   : > { %1720 = vmatpush.bf16.msra.mxu1 %v1242_v41  ;;  %v1182_v55 = vsel %vm1166_vm2, %v8771_v22, %v8812_v51  ;;  %v1448_v18 = vpop.f32.mrf.mxu2 }
 0x2f9   : > { %4436 = vmatmul.msk.bf16.vlgmr.msrb.gmra.mxu0 %vm1405_vm3, %v6244_v30 }
 0x2fa   : > { %1776 = vmatpush.bf16.msra.mxu0 %v1244_v58  ;;  %1696 = vmatpush.bf16.msrb.mxu3 %v6326_v39  ;;  %v1228_v39 = vsel %vm1166_vm2, %v8783_v19, %v8797_v1  ;;  %v1269_v19 = vsel %vm1166_vm2, %v8798_v21, %v8803_v53 }
 0x2fb   : > { %1721 = vmatpush.bf16.msra.mxu1 %v1226_v52 }
 0x2fc   : > { %4439 = vmatmul.msk.bf16.vlgmr.msra.gmra.mxu2 %vm1405_vm3, %v6244_v30 }
 0x2fd   : > { %1697 = vmatmul.bf16.vlgmr.msrb.gmra.mxu3 %v6174_v59 }
 0x2fe   : > { %1766 = vmatpush.bf16.msra.mxu3 %v1282_v10  ;;  %1777 = vmatpush.bf16.msra.mxu0 %v1228_v39 }
 0x2ff   : > { %1722 = vmatpush.bf16.msra.mxu1 %v1210_v8 }
 0x302   : > { %1801 = vmatpush.bf16.msrb.mxu3 %v1268_v40  ;;  %1778 = vmatpush.bf16.msra.mxu0 %v1212_v49 }
 0x303   : > { %1723 = vmatpush.bf16.msra.mxu1 %v6401_v7  ;;  %v1245_v7 = vsel %vm1166_vm2, %v8796_v28, %v8802_v31 }
 0x306   : > { %1802 = vmatpush.bf16.msrb.mxu3 %v1264_v5  ;;  %1779 = vmatpush.bf16.msra.mxu0 %v1196_v60 }
 0x307   : > { %1724 = vmatpush.bf16.msra.mxu1 %v6422_v42  ;;  %v8804_v42 = vld [vmem:[#allocation44_spill] sm:$0xff] }
 0x308   : > { %v1229_v43 = vsel %vm1166_vm2, %v8797_v1, %v8804_v42  ;;  %v1230_v3 = vsel %vm1166_vm2, %v8804_v42, %v8809_v23 }
 0x30a   : > { %1803 = vmatpush.bf16.msrb.mxu3 %v1261_v16  ;;  %1780 = vmatpush.bf16.msra.mxu0 %v1180_v32  ;;  %v6633_v32 = vld [vmem:[%s8465_s0] sm:$0xff] }
 0x30b   : > { %1794 = vmatpush.bf16.msrb.mxu1 %v1283_v29  ;;  %v6639_v36 = vperm.slane %v6633_v32, 1  ;;  %v6644_v26 = vperm.slane %v6633_v32, 0  ;;  %v1530_v31 = vpop.f32.mrf.mxu2 }
 0x30c   : > { %1725 = vmatmul.bf16.vlgmr.msra.gmra.mxu1 %v6174_v59 }
 0x30d   : > { %4437 = vmatmul.msk.bf16.vlgmr.msra.gmra.mxu3 %vm1405_vm3, %v6244_v30  ;;  %1781 = vmatmul.bf16.vlgmr.msra.gmra.mxu0 %v6174_v59  ;;  %8813 = vst [vmem:[#allocation39_spill] sm:$0xff] %v6639_v36 }
 0x30e   : > { %1804 = vmatpush.bf16.msrb.mxu3 %v1245_v7  ;;  %1850 = vmatpush.bf16.msrb.mxu0 %v1285_v62  ;;  %8814 = vst [vmem:[#allocation33_spill] sm:$0xff] %v6644_v26 }
 0x30f   : > { %1829 = vmatpush.bf16.msra.mxu1 %v1269_v19 }
 0x311   : > { %v1432_v60 = vpop.f32.mrf.mxu1 }
 0x312   : > { %1805 = vmatpush.bf16.msrb.mxu3 %v1229_v43 }
 0x313   : > { %1830 = vmatpush.bf16.msra.mxu1 %v1265_v57 }
 0x316   : > { %1806 = vmatpush.bf16.msrb.mxu3 %v1213_v15 }
 0x317   : > { %1831 = vmatpush.bf16.msra.mxu1 %v1262_v46 }
 0x318   : > { %v1460_v33 = vpop.f32.mrf.mxu3 }
 0x319   : > { %v1461_v25 = vadd.f32 %v1460_v33, %v1446_v50  ;;  %v1434_v1 = vpop.f32.mrf.mxu1 }
 0x31a   : > { %1807 = vmatpush.bf16.msrb.mxu3 %v6416_v13  ;;  %v4511_v13 = vld [vmem:[#allocation2 + $0x4] sm:$0xf] }
 0x31b   : > { %1832 = vmatpush.bf16.msra.mxu1 %v1246_v6  ;;  %v6612_v17 = vor.u32 %v4858_v38, %v4511_v13 }
 0x31c   : > { %4438 = vmatmul.msk.bf16.vlgmr.msrb.gmra.mxu1 %vm1405_vm3, %v6244_v30 }
 0x31d   : > { %4440 = vmatmul.msk.bf16.vlgmr.msrb.gmra.mxu0 %vm1405_vm3, %v6244_v30  ;;  %2272 = vrot.lane.b32.xlu2 %v6612_v17, %s4932_s19  ;;  %v6622_v30 = vpop.permute.xlu1 %1861 }
 0x31e   : > { %1808 = vmatpush.bf16.msrb.mxu3 %v6434_v48  ;;  %v1214_v48 = vsel %vm1166_vm2, %v8806_v54, %v8810_v44  ;;  %v1870_v56 = vmul.f32 %v6622_v30, %v1461_v25  ;;  %v1418_v63 = vpop.f32.mrf.mxu0  ;;  %v6665_v44 = vperm.slane %v6633_v32, 2 }
 0x31f   : > { %1833 = vmatpush.bf16.msra.mxu1 %v1230_v3  ;;  %v1433_v2 = vadd.f32 %v1432_v60, %v1418_v63  ;;  %v1532_v3 = vpop.f32.mrf.mxu2 }
 0x320   : > { %v1914_v47 = vadd.f32 %v6624_v20, %v1870_v56  ;;  %v1462_v24 = vpop.f32.mrf.mxu3  ;;  %8815 = vst [vmem:[#allocation37_spill] sm:$0xff] %v6665_v44 }
 0x321   : > { %1809 = vmatmul.bf16.vlgmr.msrb.gmra.mxu3 %v6174_v59  ;;  %v1869_v35 = vmul.f32 %v6622_v30, %v1433_v2  ;;  %v1463_v22 = vadd.f32 %v1462_v24, %v1448_v18 }
 0x322   : > { %v1946_v34 = vmax.f32 %v1914_v47, 0.0 }
 0x323   : > { %1834 = vmatpush.bf16.msra.mxu1 %v1214_v48  ;;  %v1913_v41 = vadd.f32 %v6624_v20, %v1869_v35  ;;  %v1886_v58 = vmul.f32 %v6636_v27, %v1463_v22 }
 0x324   : > { %v2012_v52 = vmul.f32 %v6639_v36, %v1946_v34 }
 0x325   : > { %v6647_v28 = vpop.permute.xlu1 %1910  ;;  %v1945_v10 = vmax.f32 %v1913_v41, 0.0 }
 0x326   : > { %v1420_v39 = vpop.f32.mrf.mxu0  ;;  %v1930_v40 = vadd.f32 %v6647_v28, %v1886_v58 }
 0x327   : > { %1835 = vmatpush.bf16.msra.mxu1 %v1198_v9  ;;  %v1435_v21 = vadd.f32 %v1434_v1, %v1420_v39  ;;  %v6674_v9 = vperm.slane %v6633_v32, 3 }
 0x328   : > { %v1488_v11 = vpop.f32.mrf.mxu3  ;;  %v1962_v5 = vmax.f32 %v1930_v40, 0.0 }
 0x329   : > { %v1885_v8 = vmul.f32 %v6636_v27, %v1435_v21  ;;  %8816 = vst [vmem:[#allocation19_spill] sm:$0xff] %v6674_v9 }
 0x32a   : > { %v2028_v62 = vmul.f32 %v6639_v36, %v1962_v5  ;;  %v4593_v36 = vld [vmem:[#allocation2 + $0x94] sm:$0xf0] }
 0x32b   : > { %1836 = vmatpush.bf16.msra.mxu1 %v1182_v55  ;;  %v1929_v4 = vadd.f32 %v6647_v28, %v1885_v8  ;;  %v1600_v18 = vpop.f32.mrf.mxu2 }
 0x32d   : > { %v1961_v45 = vmax.f32 %v1929_v4, 0.0 }
 0x32e   : > { %1837 = vmatmul.bf16.vlgmr.msra.gmra.mxu1 %v6174_v59  ;;  %v2011_v59 = vmul.f32 %v6644_v26, %v1945_v10  ;;  %v1516_v16 = vpop.f32.mrf.mxu0 }
 0x32f   : > { %v2027_v29 = vmul.f32 %v6644_v26, %v1961_v45 }
 0x330   : > { %v2045_v49 = vpack.c.bf16 %v2012_v52, %v2011_v59  ;;  %v1490_v7 = vpop.f32.mrf.mxu3 }
 0x331   : > { %v1474_v12 = vpop.f32.mrf.mxu1  ;;  %v2053_v53 = vpack.c.bf16 %v2028_v62, %v2027_v29 }
 0x332   : > { %2061 = vst [vmem:[#allocation2 + $0x8] sm:$0xff] %v2045_v49  ;;  %v1489_v19 = vadd.f32 %v1488_v11, %v1474_v12  ;;  %v6687_v12 = vperm.slane %v6633_v32, 4 }
 0x333   : > { %2069 = vst [vmem:[#allocation2 + $0x58] sm:$0xff] %v2053_v53  ;;  %v1602_v59 = vpop.f32.mrf.mxu2 }
 0x334   : > { %v1871_v42 = vmul.f32 %v6622_v30, %v1489_v19  ;;  %8817 = vst [vmem:[#allocation13_spill] sm:$0xff] %v6687_v12 }
 0x336   : > { %v1518_v43 = vpop.f32.mrf.mxu0  ;;  %v1915_v15 = vadd.f32 %v6624_v20, %v1871_v42 }
 0x338   : > { %v1947_v48 = vmax.f32 %v1915_v15, 0.0 }
 0x339   : > { %v1476_v61 = vpop.f32.mrf.mxu1  ;;  %v4519_v54 = vld [vmem:[#allocation2 + $0xc] sm:$0xf]  ;;  %v4850_v6 = vld [vmem:[#allocation2 + $0x8] sm:$0xf] }
 0x33a   : > { %v1491_v37 = vadd.f32 %v1490_v7, %v1476_v61  ;;  %v4859_v14 = vld [vmem:[#allocation2 + $0x58] sm:$0xf0]  ;;  %v4513_v23 = vld [vmem:[#allocation2 + $0x54] sm:$0xf0]  ;;  %v2013_v51 = vmul.f32 %v6665_v44, %v1947_v48 }
 0x33b   : > { %v6659_v13 = vor.u32 %v4859_v14, %v4519_v54  ;;  %v6661_v38 = vor.u32 %v4850_v6, %v4513_v23 }
 0x33c   : > { %v1502_v57 = vpop.f32.mrf.mxu3  ;;  %v1887_v33 = vmul.f32 %v6636_v27, %v1491_v37 }
 0x33d   : > { %v1517_v46 = vadd.f32 %v1516_v16, %v1502_v57  ;;  %2276 = vrot.lane.b32.xlu2 %v6659_v13, %s4932_s19  ;;  %2274 = vrot.lane.b32.xlu1 %v6661_v38, %s4932_s19 }
 0x33e   : > { %v1931_v55 = vadd.f32 %v6647_v28, %v1887_v33 }
 0x33f   : > { %v1872_v50 = vmul.f32 %v6622_v30, %v1517_v46 }
 0x340   : > { %v1963_v34 = vmax.f32 %v1931_v55, 0.0 }
 0x341   : > { %v1916_v0 = vadd.f32 %v6624_v20, %v1872_v50  ;;  %v1544_v60 = vpop.f32.mrf.mxu1 }
 0x342   : > { %v1558_v25 = vpop.f32.mrf.mxu0  ;;  %v1545_v58 = vadd.f32 %v1544_v60, %v1530_v31  ;;  %v2029_v1 = vmul.f32 %v6665_v44, %v1963_v34  ;;  %v6692_v31 = vperm.slane %v6633_v32, 5  ;;  %v4870_v44 = vld [vmem:[#allocation2 + $0x48] sm:$0xf] }
 0x343   : > { %v1948_v56 = vmax.f32 %v1916_v0, 0.0 }
 0x344   : > { %v1504_v63 = vpop.f32.mrf.mxu3  ;;  %v1873_v21 = vmul.f32 %v6622_v30, %v1545_v58  ;;  %8818 = vst [vmem:[#allocation35_spill] sm:$0xff] %v6692_v31 }
 0x345   : > { %v2014_v47 = vmul.f32 %v6674_v9, %v1948_v56  ;;  %v1519_v2 = vadd.f32 %v1518_v43, %v1504_v63 }
 0x346   : > { %v1917_v11 = vadd.f32 %v6624_v20, %v1873_v21 }
 0x347   : > { %v2046_v24 = vpack.c.bf16 %v2014_v47, %v2013_v51  ;;  %v1888_v35 = vmul.f32 %v6636_v27, %v1519_v2 }
 0x348   : > { %v1949_v16 = vmax.f32 %v1917_v11, 0.0 }
 0x349   : > { %2062 = vst [vmem:[#allocation2 + $0x10] sm:$0xff] %v2046_v24  ;;  %v1932_v22 = vadd.f32 %v6647_v28, %v1888_v35  ;;  %v1546_v10 = vpop.f32.mrf.mxu1 }
 0x34a   : > { %v1560_v41 = vpop.f32.mrf.mxu0  ;;  %v1547_v4 = vadd.f32 %v1546_v10, %v1532_v3  ;;  %v2015_v37 = vmul.f32 %v6687_v12, %v1949_v16 }
 0x34b   : > { %v1964_v52 = vmax.f32 %v1932_v22, 0.0  ;;  %v1642_v15 = vpop.f32.mrf.mxu2 }
 0x34c   : > { %v1889_v29 = vmul.f32 %v6636_v27, %v1547_v4 }
 0x34d   : > { %v2030_v39 = vmul.f32 %v6674_v9, %v1964_v52 }
 0x34e   : > { %v1933_v23 = vadd.f32 %v6647_v28, %v1889_v29 }
 0x34f   : > { %v2054_v40 = vpack.c.bf16 %v2030_v39, %v2029_v1  ;;  %v6718_v39 = vperm.slane %v6633_v32, 7 }
 0x350   : > { %v4851_v7 = vld [vmem:[#allocation2 + $0x10] sm:$0xf]  ;;  %v4527_v19 = vld [vmem:[#allocation2 + $0x14] sm:$0xf] }
 0x351   : > { %2070 = vst [vmem:[#allocation2 + $0x60] sm:$0xff] %v2054_v40  ;;  %v1572_v49 = vpop.f32.mrf.mxu1 }
 0x352   : > { %v1628_v8 = vpop.f32.mrf.mxu0  ;;  %v1573_v5 = vadd.f32 %v1572_v49, %v1558_v25  ;;  %v1965_v25 = vmax.f32 %v1933_v23, 0.0  ;;  %8820 = vst [vmem:[#allocation11_spill] sm:$0xff] %v6718_v39  ;;  %v6738_v23 = vld [vmem:[%s8465_s0 + $0x8] sm:$0xff] }
 0x353   : > { %v1644_v35 = vpop.f32.mrf.mxu2 }
 0x354   : > { %v1874_v45 = vmul.f32 %v6622_v30, %v1573_v5  ;;  %v2031_v47 = vmul.f32 %v6687_v12, %v1965_v25 }
 0x356   : > { %v1918_v62 = vadd.f32 %v6624_v20, %v1874_v45 }
 0x358   : > { %v4521_v53 = vld [vmem:[#allocation2 + $0x5c] sm:$0xf0]  ;;  %v4860_v42 = vld [vmem:[#allocation2 + $0x60] sm:$0xf0]  ;;  %v1950_v43 = vmax.f32 %v1918_v62, 0.0 }
 0x359   : > { %v6694_v57 = vor.u32 %v4851_v7, %v4521_v53  ;;  %v6696_v54 = vor.u32 %v4860_v42, %v4527_v19  ;;  %v1574_v14 = vpop.f32.mrf.mxu1 }
 0x35a   : > { %v1630_v6 = vpop.f32.mrf.mxu0  ;;  %v2016_v3 = vmul.f32 %v6692_v31, %v1950_v43  ;;  %v1575_v50 = vadd.f32 %v1574_v14, %v1560_v41  ;;  %v6712_v41 = vperm.slane %v6633_v32, 6 }
 0x35b   : > { %2278 = vrot.lane.b32.xlu0 %v6694_v57, %s4932_s19  ;;  %2280 = vrot.lane.b32.xlu1 %v6696_v54, %s4932_s19  ;;  %v1712_v7 = vpop.f32.mrf.mxu2 }
 0x35c   : > { %v1586_v61 = vpop.f32.mrf.mxu3  ;;  %v2047_v48 = vpack.c.bf16 %v2016_v3, %v2015_v37  ;;  %v1890_v0 = vmul.f32 %v6636_v27, %v1575_v50  ;;  %8819 = vst [vmem:[#allocation7_spill] sm:$0xff] %v6712_v41 }
 0x35d   : > { %v1601_v46 = vadd.f32 %v1600_v18, %v1586_v61 }
 0x35e   : > { %2063 = vst [vmem:[#allocation2 + $0x18] sm:$0xff] %v2047_v48  ;;  %v1934_v60 = vadd.f32 %v6647_v28, %v1890_v0 }
 0x35f   : > { %v1875_v33 = vmul.f32 %v6622_v30, %v1601_v46 }
 0x360   : > { %v1966_v63 = vmax.f32 %v1934_v60, 0.0  ;;  %v6743_v60 = vperm.slane %v6738_v23, 0 }
 0x361   : > { %v1919_v56 = vadd.f32 %v6624_v20, %v1875_v33  ;;  %v1614_v55 = vpop.f32.mrf.mxu1 }
 0x362   : > { %v2032_v2 = vmul.f32 %v6692_v31, %v1966_v63  ;;  %v1629_v24 = vadd.f32 %v1628_v8, %v1614_v55  ;;  %8821 = vst [vmem:[#allocation23_spill] sm:$0xff] %v6743_v60 }
 0x363   : > { %v1951_v22 = vmax.f32 %v1919_v56, 0.0 }
 0x364   : > { %v1588_v51 = vpop.f32.mrf.mxu3  ;;  %v2055_v58 = vpack.c.bf16 %v2032_v2, %v2031_v47  ;;  %v1876_v10 = vmul.f32 %v6622_v30, %v1629_v24  ;;  %v6749_v47 = vperm.slane %v6738_v23, 1  ;;  %v1714_v2 = vpop.f32.mrf.mxu2 }
 0x365   : > { %v1603_v18 = vadd.f32 %v1602_v59, %v1588_v51  ;;  %v2017_v21 = vmul.f32 %v6712_v41, %v1951_v22  ;;  %v4535_v62 = vld [vmem:[#allocation2 + $0x1c] sm:$0xf]  ;;  %v4852_v53 = vld [vmem:[#allocation2 + $0x18] sm:$0xf] }
 0x366   : > { %v1670_v34 = vpop.f32.mrf.mxu0  ;;  %2071 = vst [vmem:[#allocation2 + $0x68] sm:$0xff] %v2055_v58  ;;  %v1920_v1 = vadd.f32 %v6624_v20, %v1876_v10 }
 0x367   : > { %v1891_v52 = vmul.f32 %v6636_v27, %v1603_v18  ;;  %8822 = vst [vmem:[#allocation15_spill] sm:$0xff] %v6749_v47 }
 0x368   : > { %v1952_v40 = vmax.f32 %v1920_v1, 0.0 }
 0x369   : > { %v1616_v11 = vpop.f32.mrf.mxu1  ;;  %v1935_v49 = vadd.f32 %v6647_v28, %v1891_v52 }
 0x36a   : > { %v2018_v4 = vmul.f32 %v6718_v39, %v1952_v40  ;;  %v1631_v5 = vadd.f32 %v1630_v6, %v1616_v11 }
 0x36b   : > { %v1967_v43 = vmax.f32 %v1935_v49, 0.0 }
 0x36c   : > { %v1656_v59 = vpop.f32.mrf.mxu3  ;;  %v2048_v45 = vpack.c.bf16 %v2018_v4, %v2017_v21  ;;  %v1892_v29 = vmul.f32 %v6636_v27, %v1631_v5 }
 0x36d   : > { %v1657_v8 = vadd.f32 %v1656_v59, %v1642_v15  ;;  %v4861_v32 = vld [vmem:[#allocation2 + $0x68] sm:$0xf0]  ;;  %v4529_v19 = vld [vmem:[#allocation2 + $0x64] sm:$0xf0]  ;;  %v2033_v48 = vmul.f32 %v6712_v41, %v1967_v43 }
 0x36e   : > { %v1672_v42 = vpop.f32.mrf.mxu0  ;;  %2064 = vst [vmem:[#allocation2 + $0x20] sm:$0xff] %v2048_v45  ;;  %v1936_v61 = vadd.f32 %v6647_v28, %v1892_v29  ;;  %v6726_v15 = vor.u32 %v4861_v32, %v4535_v62  ;;  %v6728_v37 = vor.u32 %v4852_v53, %v4529_v19 }
 0x36f   : > { %v1877_v16 = vmul.f32 %v6622_v30, %v1657_v8  ;;  %v1754_v32 = vpop.f32.mrf.mxu2 }
 0x370   : > { %v1968_v14 = vmax.f32 %v1936_v61, 0.0  ;;  %2284 = vrot.lane.b32.xlu0 %v6726_v15, %s4932_s19  ;;  %2282 = vrot.lane.b32.xlu2 %v6728_v37, %s4932_s19 }
 0x371   : > { %v1921_v46 = vadd.f32 %v6624_v20, %v1877_v16  ;;  %v1684_v50 = vpop.f32.mrf.mxu1 }
 0x372   : > { %v2034_v33 = vmul.f32 %v6718_v39, %v1968_v14  ;;  %v1685_v0 = vadd.f32 %v1684_v50, %v1670_v34 }
 0x373   : > { %v1953_v25 = vmax.f32 %v1921_v46, 0.0 }
 0x374   : > { %v1658_v6 = vpop.f32.mrf.mxu3  ;;  %v2056_v56 = vpack.c.bf16 %v2034_v33, %v2033_v48  ;;  %v1878_v63 = vmul.f32 %v6622_v30, %v1685_v0  ;;  %v6771_v33 = vperm.slane %v6738_v23, 2 }
 0x375   : > { %v1659_v3 = vadd.f32 %v1658_v6, %v1644_v35  ;;  %v2019_v24 = vmul.f32 %v6743_v60, %v1953_v25  ;;  %v4543_v59 = vld [vmem:[#allocation2 + $0x24] sm:$0xf]  ;;  %v4853_v8 = vld [vmem:[#allocation2 + $0x20] sm:$0xf]  ;;  %v6775_v25 = vperm.slane %v6738_v23, 3 }
 0x376   : > { %2072 = vst [vmem:[#allocation2 + $0x70] sm:$0xff] %v2056_v56  ;;  %v1922_v55 = vadd.f32 %v6624_v20, %v1878_v63  ;;  %v1740_v18 = vpop.f32.mrf.mxu0 }
 0x377   : > { %v1893_v51 = vmul.f32 %v6636_v27, %v1659_v3  ;;  %8823 = vst [vmem:[#allocation3_spill] sm:$0xff] %v6771_v33 }
 0x378   : > { %v1954_v35 = vmax.f32 %v1922_v55, 0.0  ;;  %8824 = vst [vmem:[#allocation34_spill] sm:$0xff] %v6775_v25 }
 0x379   : > { %v1937_v22 = vadd.f32 %v6647_v28, %v1893_v51  ;;  %v1686_v58 = vpop.f32.mrf.mxu1 }
 0x37a   : > { %v2020_v10 = vmul.f32 %v6749_v47, %v1954_v35  ;;  %v1687_v1 = vadd.f32 %v1686_v58, %v1672_v42 }
 0x37b   : > { %v1969_v11 = vmax.f32 %v1937_v22, 0.0  ;;  %v1756_v22 = vpop.f32.mrf.mxu2 }
 0x37c   : > { %v2049_v21 = vpack.c.bf16 %v2020_v10, %v2019_v24  ;;  %v1894_v40 = vmul.f32 %v6636_v27, %v1687_v1 }
 0x37d   : > { %v4862_v49 = vld [vmem:[#allocation2 + $0x70] sm:$0xf0]  ;;  %v4537_v4 = vld [vmem:[#allocation2 + $0x6c] sm:$0xf0]  ;;  %v2035_v43 = vmul.f32 %v6743_v60, %v1969_v11 }
 0x37e   : > { %2065 = vst [vmem:[#allocation2 + $0x28] sm:$0xff] %v2049_v21  ;;  %v1938_v45 = vadd.f32 %v6647_v28, %v1894_v40  ;;  %v6757_v16 = vor.u32 %v4862_v49, %v4543_v59  ;;  %v6759_v29 = vor.u32 %v4853_v8, %v4537_v4  ;;  %v1742_v42 = vpop.f32.mrf.mxu0 }
 0x380   : > { %v1698_v34 = vpop.f32.mrf.mxu3  ;;  %v1970_v62 = vmax.f32 %v1938_v45, 0.0  ;;  %2288 = vrot.lane.b32.xlu2 %v6757_v16, %s4932_s19  ;;  %2286 = vrot.lane.b32.xlu1 %v6759_v29, %s4932_s19 }
 0x381   : > { %v1713_v52 = vadd.f32 %v1712_v7, %v1698_v34 }
 0x382   : > { %v2036_v46 = vmul.f32 %v6749_v47, %v1970_v62  ;;  %v4869_v47 = vld [vmem:[#allocation2 + $0x94] sm:$0xf0] }
 0x383   : > { %v1879_v5 = vmul.f32 %v6622_v30, %v1713_v52 }
 0x384   : > { %v2057_v6 = vpack.c.bf16 %v2036_v46, %v2035_v43 }
 0x385   : > { %v1923_v61 = vadd.f32 %v6624_v20, %v1879_v5  ;;  %v4854_v52 = vld [vmem:[#allocation2 + $0x28] sm:$0xf]  ;;  %v4551_v1 = vld [vmem:[#allocation2 + $0x2c] sm:$0xf] }
 0x386   : > { %2073 = vst [vmem:[#allocation2 + $0x78] sm:$0xff] %v2057_v6  ;;  %v1824_v6 = vpop.f32.mrf.mxu2 }
 0x387   : > { %v1955_v48 = vmax.f32 %v1923_v61, 0.0 }
 0x388   : > { %v1700_v7 = vpop.f32.mrf.mxu3 }
 0x389   : > { %v1715_v53 = vadd.f32 %v1714_v2, %v1700_v7  ;;  %v1726_v19 = vpop.f32.mrf.mxu1  ;;  %v2021_v2 = vmul.f32 %v6771_v33, %v1955_v48 }
 0x38a   : > { %v1741_v14 = vadd.f32 %v1740_v18, %v1726_v19  ;;  %v1782_v34 = vpop.f32.mrf.mxu0 }
 0x38b   : > { %v1895_v50 = vmul.f32 %v6636_v27, %v1715_v53 }
 0x38c   : > { %v1880_v3 = vmul.f32 %v6622_v30, %v1741_v14 }
 0x38d   : > { %v1939_v51 = vadd.f32 %v6647_v28, %v1895_v50  ;;  %v4545_v40 = vld [vmem:[#allocation2 + $0x74] sm:$0xf0]  ;;  %v4863_v59 = vld [vmem:[#allocation2 + $0x78] sm:$0xf0]  ;;  %v6797_v50 = vperm.slane %v6738_v23, 4 }
 0x38e   : > { %v1924_v0 = vadd.f32 %v6624_v20, %v1880_v3  ;;  %v6783_v49 = vor.u32 %v4854_v52, %v4545_v40  ;;  %v6785_v4 = vor.u32 %v4863_v59, %v4551_v1 }
 0x38f   : > { %v1971_v21 = vmax.f32 %v1939_v51, 0.0  ;;  %8826 = vst [vmem:[#allocation17_spill] sm:$0xff] %v6797_v50 }
 0x390   : > { %v1956_v56 = vmax.f32 %v1924_v0, 0.0  ;;  %v1768_v63 = vpop.f32.mrf.mxu3  ;;  %8825 = vst [vmem:[#allocation12_spill] sm:$0xff] %v6785_v4  ;;  %2290 = vrot.lane.b32.xlu0 %v6783_v49, %s4932_s19  ;;  %2292 = vrot.lane.b32.xlu1 %v6785_v4, %s4932_s19  ;;  %v6801_v0 = vperm.slane %v6738_v23, 5 }
 0x391   : > { %v1728_v55 = vpop.f32.mrf.mxu1  ;;  %v1769_v24 = vadd.f32 %v1768_v63, %v1754_v32  ;;  %v2037_v32 = vmul.f32 %v6771_v33, %v1971_v21  ;;  %v4587_v33 = vld [vmem:[#allocation2 + $0x48] sm:$0xf] }
 0x392   : > { %v2022_v18 = vmul.f32 %v6775_v25, %v1956_v56  ;;  %v1743_v35 = vadd.f32 %v1742_v42, %v1728_v55  ;;  %v1784_v14 = vpop.f32.mrf.mxu0  ;;  %8827 = vst [vmem:[#allocation18_spill] sm:$0xff] %v6801_v0  ;;  %v7020_v31 = vor.u32 %v4869_v47, %v4587_v33  ;;  %v4599_v47 = vld [vmem:[#allocation2 + $0xc] sm:$0xf]  ;;  %v4596_v33 = vor.u32 %v4870_v44, %v4593_v36 }
 0x393   : > { %v1881_v8 = vmul.f32 %v6622_v30, %v1769_v24 }
 0x394   : > { %v2050_v58 = vpack.c.bf16 %v2022_v18, %v2021_v2  ;;  %v1896_v10 = vmul.f32 %v6636_v27, %v1743_v35  ;;  %8847 = vst [vmem:[#allocation26_spill] sm:$0xff] %v7020_v31 }
 0x395   : > { %v1925_v53 = vadd.f32 %v6624_v20, %v1881_v8 }
 0x396   : > { %2066 = vst [vmem:[#allocation2 + $0x30] sm:$0xff] %v2050_v58  ;;  %v1940_v11 = vadd.f32 %v6647_v28, %v1896_v10 }
 0x397   : > { %v1957_v3 = vmax.f32 %v1925_v53, 0.0 }
 0x398   : > { %v1972_v5 = vmax.f32 %v1940_v11, 0.0  ;;  %v1770_v45 = vpop.f32.mrf.mxu3 }
 0x399   : > { %v1771_v62 = vadd.f32 %v1770_v45, %v1756_v22  ;;  %v1796_v7 = vpop.f32.mrf.mxu1  ;;  %v2023_v2 = vmul.f32 %v6797_v50, %v1957_v3  ;;  %v1826_v45 = vpop.f32.mrf.mxu2 }
 0x39a   : > { %v2038_v19 = vmul.f32 %v6775_v25, %v1972_v5  ;;  %v1797_v42 = vadd.f32 %v1796_v7, %v1782_v34  ;;  %v1852_v5 = vpop.f32.mrf.mxu0 }
 0x39b   : > { %v1897_v46 = vmul.f32 %v6636_v27, %v1771_v62 }
 0x39c   : > { %v2058_v43 = vpack.c.bf16 %v2038_v19, %v2037_v32  ;;  %v1882_v61 = vmul.f32 %v6622_v30, %v1797_v42 }
 0x39d   : > { %v1941_v63 = vadd.f32 %v6647_v28, %v1897_v46  ;;  %v4559_v58 = vld [vmem:[#allocation2 + $0x34] sm:$0xf]  ;;  %v4855_v10 = vld [vmem:[#allocation2 + $0x30] sm:$0xf] }
 0x39e   : > { %2074 = vst [vmem:[#allocation2 + $0x80] sm:$0xff] %v2058_v43  ;;  %v1926_v48 = vadd.f32 %v6624_v20, %v1882_v61 }
 0x39f   : > { %v1973_v52 = vmax.f32 %v1941_v63, 0.0  ;;  %v6827_v63 = vperm.slane %v6738_v23, 7 }
 0x3a0   : > { %v1958_v56 = vmax.f32 %v1926_v48, 0.0 }
 0x3a1   : > { %v1798_v55 = vpop.f32.mrf.mxu1  ;;  %v2039_v7 = vmul.f32 %v6797_v50, %v1973_v52  ;;  %8831 = vst [vmem:[#allocation6_spill] sm:$0xff] %v6827_v63 }
 0x3a2   : > { %v2024_v18 = vmul.f32 %v6801_v0, %v1958_v56  ;;  %v1799_v35 = vadd.f32 %v1798_v55, %v1784_v14  ;;  %v1854_v55 = vpop.f32.mrf.mxu0 }
 0x3a4   : > { %v1810_v51 = vpop.f32.mrf.mxu3  ;;  %v2051_v34 = vpack.c.bf16 %v2024_v18, %v2023_v2  ;;  %v1898_v22 = vmul.f32 %v6636_v27, %v1799_v35 }
 0x3a5   : > { %v1825_v24 = vadd.f32 %v1824_v6, %v1810_v51  ;;  %v4864_v1 = vld [vmem:[#allocation2 + $0x80] sm:$0xf0]  ;;  %v4553_v21 = vld [vmem:[#allocation2 + $0x7c] sm:$0xf0]  ;;  %v6822_v6 = vperm.slane %v6738_v23, 6 }
 0x3a6   : > { %2067 = vst [vmem:[#allocation2 + $0x38] sm:$0xff] %v2051_v34  ;;  %v1942_v59 = vadd.f32 %v6647_v28, %v1898_v22  ;;  %v6809_v8 = vor.u32 %v4864_v1, %v4559_v58  ;;  %v6811_v11 = vor.u32 %v4855_v10, %v4553_v21 }
 0x3a7   : > { %v1883_v40 = vmul.f32 %v6622_v30, %v1825_v24  ;;  %8830 = vst [vmem:[#allocation4_spill] sm:$0xff] %v6822_v6 }
 0x3a8   : > { %8828 = vst [vmem:[#allocation8_spill] sm:$0xff] %v6809_v8  ;;  %v1974_v62 = vmax.f32 %v1942_v59, 0.0  ;;  %2296 = vrot.lane.b32.xlu0 %v6809_v8, %s4932_s19  ;;  %2294 = vrot.lane.b32.xlu2 %v6811_v11, %s4932_s19 }
 0x3a9   : > { %8829 = vst [vmem:[#allocation9_spill] sm:$0xff] %v6811_v11  ;;  %v1927_v19 = vadd.f32 %v6624_v20, %v1883_v40 }
 0x3aa   : > { %v2040_v42 = vmul.f32 %v6801_v0, %v1974_v62 }
 0x3ab   : > { %v1838_v53 = vpop.f32.mrf.mxu1  ;;  %v1959_v3 = vmax.f32 %v1927_v19, 0.0 }
 0x3ac   : > { %v1812_v32 = vpop.f32.mrf.mxu3  ;;  %v1853_v61 = vadd.f32 %v1852_v5, %v1838_v53  ;;  %v2059_v46 = vpack.c.bf16 %v2040_v42, %v2039_v7  ;;  %v6876_v42 = vpop.permute.xlu2 %2272 }
 0x3ad   : > { %v1827_v43 = vadd.f32 %v1826_v45, %v1812_v32  ;;  %v2025_v18 = vmul.f32 %v6822_v6, %v1959_v3  ;;  %v4567_v58 = vld [vmem:[#allocation2 + $0x3c] sm:$0xf]  ;;  %v4856_v52 = vld [vmem:[#allocation2 + $0x38] sm:$0xf]  ;;  %v4834_v3 = vld [vmem:[#allocation2 + $0xc] sm:$0xf] }
 0x3ae   : > { %v1884_v14 = vmul.f32 %v6622_v30, %v1853_v61  ;;  %2075 = vst [vmem:[#allocation2 + $0x88] sm:$0xff] %v2059_v46  ;;  %v4453_v61 = vld [vmem:[#allocation2 + $0x58] sm:$0xf0]  ;;  %v4459_v46 = vld [vmem:[#allocation2 + $0x10] sm:$0xf] }
 0x3af   : > { %v1899_v48 = vmul.f32 %v6636_v27, %v1827_v43  ;;  %v4843_v43 = vld [vmem:[#allocation2 + $0x5c] sm:$0xf0] }
 0x3b0   : > { %v1928_v56 = vadd.f32 %v6624_v20, %v1884_v14  ;;  %v6884_v14 = vor.u32 %v4843_v43, %v4459_v46  ;;  %v4839_v43 = vld [vmem:[#allocation2 + $0x34] sm:$0xf] }
 0x3b1   : > { %v1943_v24 = vadd.f32 %v6647_v28, %v1899_v48  ;;  %v6886_v48 = vor.u32 %v4834_v3, %v4453_v61  ;;  %v4475_v61 = vld [vmem:[#allocation2 + $0x20] sm:$0xf] }
 0x3b2   : > { %v1960_v51 = vmax.f32 %v1928_v56, 0.0 }
 0x3b3   : > { %v1840_v2 = vpop.f32.mrf.mxu1  ;;  %v1975_v1 = vmax.f32 %v1943_v24, 0.0  ;;  %v4451_v24 = vld [vmem:[#allocation2 + $0x8] sm:$0xf] }
 0x3b4   : > { %v2026_v30 = vmul.f32 %v6827_v63, %v1960_v51  ;;  %v1855_v35 = vadd.f32 %v1854_v55, %v1840_v2  ;;  %v6894_v56 = vpop.permute.xlu2 %2276  ;;  %v4469_v51 = vld [vmem:[#allocation2 + $0x68] sm:$0xf0]  ;;  %v4842_v55 = vld [vmem:[#allocation2 + $0x54] sm:$0xf0]  ;;  %v4844_v2 = vld [vmem:[#allocation2 + $0x64] sm:$0xf0] }
 0x3b5   : > { %v4865_v10 = vld [vmem:[#allocation2 + $0x88] sm:$0xf0]  ;;  %v4561_v20 = vld [vmem:[#allocation2 + $0x84] sm:$0xf0] }
 0x3b6   : > { %v2052_v34 = vpack.c.bf16 %v2026_v30, %v2025_v18  ;;  %v1900_v22 = vmul.f32 %v6636_v27, %v1855_v35  ;;  %v6834_v21 = vor.u32 %v4865_v10, %v4567_v58  ;;  %v6836_v40 = vor.u32 %v4856_v52, %v4561_v20  ;;  %v4836_v18 = vld [vmem:[#allocation2 + $0x1c] sm:$0xf]  ;;  %v4846_v10 = vld [vmem:[#allocation2 + $0x74] sm:$0xf0]  ;;  %v4461_v52 = vld [vmem:[#allocation2 + $0x60] sm:$0xf0] }
 0x3b7   : > { %v2041_v27 = vmul.f32 %v6822_v6, %v1975_v1  ;;  %v6896_v30 = vor.u32 %v4836_v18, %v4469_v51  ;;  %v6898_v35 = vor.u32 %v4842_v55, %v4451_v24  ;;  %v4477_v20 = vld [vmem:[#allocation2 + $0x70] sm:$0xf0]  ;;  %v4483_v1 = vld [vmem:[#allocation2 + $0x28] sm:$0xf]  ;;  %v4491_v51 = vld [vmem:[#allocation2 + $0x30] sm:$0xf] }
 0x3b8   : > { %2068 = vst [vmem:[#allocation2 + $0x40] sm:$0xff] %v2052_v34  ;;  %v1944_v23 = vadd.f32 %v6647_v28, %v1900_v22  ;;  %2300 = vrot.lane.b32.xlu2 %v6834_v21, %s4932_s19  ;;  %2298 = vrot.lane.b32.xlu1 %v6836_v40, %s4932_s19  ;;  %v4467_v34 = vld [vmem:[#allocation2 + $0x18] sm:$0xf] }
 0x3b9   : > { %8832 = vst [vmem:[#allocation10_spill] sm:$0xff] %v6834_v21  ;;  %v6900_v22 = vor.u32 %v4844_v2, %v4467_v34  ;;  %v6936_v2 = vpop.permute.xlu1 %2274  ;;  %v4485_v34 = vld [vmem:[#allocation2 + $0x78] sm:$0xf0] }
 0x3ba   : > { %8833 = vst [vmem:[#allocation55_spill] sm:$0xff] %v6836_v40  ;;  %v1976_v59 = vmax.f32 %v1944_v23, 0.0  ;;  %v4835_v23 = vld [vmem:[#allocation2 + $0x14] sm:$0xf] }
 0x3bc   : > { %v2042_v5 = vmul.f32 %v6827_v63, %v1976_v59  ;;  %v6910_v59 = vor.u32 %v4846_v10, %v4483_v1  ;;  %v4501_v10 = vld [vmem:[#allocation2 + $0x88] sm:$0xf0] }
 0x3be   : > { %v2060_v45 = vpack.c.bf16 %v2042_v5, %v2041_v27  ;;  %v6912_v27 = vor.u32 %v4835_v23, %v4461_v52  ;;  %v4837_v5 = vld [vmem:[#allocation2 + $0x24] sm:$0xf] }
 0x3bf   : > { %v4857_v28 = vld [vmem:[#allocation2 + $0x40] sm:$0xf]  ;;  %v4575_v53 = vld [vmem:[#allocation2 + $0x44] sm:$0xf] }
 0x3c0   : > { %2076 = vst [vmem:[#allocation2 + $0x90] sm:$0xff] %v2060_v45  ;;  %2326 = vrot.lane.b32.xlu2 %v6661_v38, %s4933_s20  ;;  %2324 = vrot.lane.b32.xlu1 %v6612_v17, %s4933_s20  ;;  %v6914_v45 = vor.u32 %v4837_v5, %v4477_v20  ;;  %v4579_v52 = vld [vmem:[#allocation2 + $0x40] sm:$0xf]  ;;  %v4838_v20 = vld [vmem:[#allocation2 + $0x2c] sm:$0xf] }
 0x3c1   : > { %v6942_v23 = vor.u32 %v4838_v20, %v4485_v34  ;;  %v4840_v5 = vld [vmem:[#allocation2 + $0x3c] sm:$0xf]  ;;  %v4867_v20 = vld [vmem:[#allocation2 + $0x44] sm:$0xf] }
 0x3c7   : > { %v4569_v62 = vld [vmem:[#allocation2 + $0x8c] sm:$0xf0]  ;;  %v4866_v32 = vld [vmem:[#allocation2 + $0x90] sm:$0xf0] }
 0x3c8   : > { %v6848_v7 = vor.u32 %v4857_v28, %v4569_v62  ;;  %2332 = vrot.lane.b32.xlu2 %v6696_v54, %s4933_s20  ;;  %2330 = vrot.lane.b32.xlu1 %v6694_v57, %s4933_s20  ;;  %v6874_v19 = vor.u32 %v4866_v32, %v4575_v53  ;;  %v4493_v62 = vld [vmem:[#allocation2 + $0x80] sm:$0xf0]  ;;  %v4845_v32 = vld [vmem:[#allocation2 + $0x6c] sm:$0xf0]  ;;  %v4847_v53 = vld [vmem:[#allocation2 + $0x7c] sm:$0xf0] }
 0x3c9   : > { %v6924_v46 = vor.u32 %v4839_v43, %v4493_v62  ;;  %v6926_v3 = vor.u32 %v4845_v32, %v4475_v61  ;;  %v6928_v55 = vor.u32 %v4847_v53, %v4491_v51  ;;  %v4868_v24 = vld [vmem:[#allocation2 + $0x8c] sm:$0xf0]  ;;  %v6944_v62 = vor.u32 %v4840_v5, %v4501_v10  ;;  %v4848_v43 = vld [vmem:[#allocation2 + $0x84] sm:$0xf0]  ;;  %v4499_v61 = vld [vmem:[#allocation2 + $0x38] sm:$0xf] }
 0x3ca   : > { %8834 = vst [vmem:[#allocation57_spill] sm:$0xff] %v6848_v7  ;;  %2302 = vrot.lane.b32.xlu0 %v6848_v7, %s4932_s19  ;;  %v6908_v58 = vpop.permute.xlu2 %2282  ;;  %v6940_v1 = vor.u32 %v4868_v24, %v4579_v52  ;;  %v6956_v51 = vor.u32 %v4848_v43, %v4499_v61  ;;  %v4581_v52 = vld [vmem:[#allocation2 + $0x90] sm:$0xf0] }
 0x3cb   : > { %8835 = vst [vmem:[#allocation52_spill] sm:$0xff] %v6874_v19  ;;  %v6970_v5 = vor.u32 %v4867_v20, %v4581_v52 }
 0x3cc   : > { %8836 = vst [vmem:[#allocation53_spill] sm:$0xff] %v6924_v46 }
 0x3cd   : > { %8837 = vst [vmem:[#allocation47_spill] sm:$0xff] %v6928_v55  ;;  %v6952_v32 = vpop.permute.xlu1 %2280  ;;  %v6962_v24 = vpop.permute.xlu0 %2278 }
 0x3ce   : > { %8838 = vst [vmem:[#allocation49_spill] sm:$0xff] %v6940_v1 }
 0x3cf   : > { %8839 = vst [vmem:[#allocation48_spill] sm:$0xff] %v6944_v62 }
 0x3d0   : > { %2338 = vrot.lane.b32.xlu2 %v6759_v29, %s4933_s20  ;;  %2336 = vrot.lane.b32.xlu1 %v6726_v15, %s4933_s20  ;;  %8841 = vst [vmem:[#allocation30_spill] sm:$0xff] %v6956_v51 }
 0x3d1   : > { %8842 = vst [vmem:[#allocation24_spill] sm:$0xff] %v6970_v5 }
 0x3d2   : > { %2328 = vrot.lane.b32.xlu0 %v6659_v13, %s4933_s20 }
 0x3d8   : > { %2344 = vrot.lane.b32.xlu2 %v6785_v4, %s4933_s20  ;;  %2342 = vrot.lane.b32.xlu1 %v6783_v49, %s4933_s20  ;;  %v4617_v4 = vld [vmem:[#allocation2 + $0x6c] sm:$0xf0] }
 0x3da   : > { %2334 = vrot.lane.b32.xlu0 %v6728_v37, %s4933_s20  ;;  %v6922_v28 = vpop.permute.xlu2 %2288 }
 0x3e0   : > { %2350 = vrot.lane.b32.xlu2 %v6836_v40, %s4933_s20  ;;  %2348 = vrot.lane.b32.xlu1 %v6809_v8, %s4933_s20  ;;  %v4591_v8 = vld [vmem:[#allocation2 + $0x44] sm:$0xf]  ;;  %v4873_v40 = vld [vmem:[#allocation2 + $0x18] sm:$0xf] }
 0x3e2   : > { %2340 = vrot.lane.b32.xlu0 %v6757_v16, %s4933_s20  ;;  %v6976_v43 = vpop.permute.xlu0 %2284 }
 0x3e8   : > { %2356 = vrot.lane.b32.xlu2 %v6874_v19, %s4933_s20  ;;  %2354 = vrot.lane.b32.xlu1 %v6848_v7, %s4933_s20  ;;  %v4880_v19 = vld [vmem:[#allocation2 + $0x58] sm:$0xf0] }
 0x3e9   : > { %v4600_v7 = vor.u32 %v4880_v19, %v4599_v47  ;;  %v4607_v19 = vld [vmem:[#allocation2 + $0x14] sm:$0xf] }
 0x3ea   : > { %2346 = vrot.lane.b32.xlu0 %v6811_v11, %s4933_s20  ;;  %v4609_v11 = vld [vmem:[#allocation2 + $0x64] sm:$0xf0] }
 0x3eb   : > { %v4612_v44 = vor.u32 %v4873_v40, %v4609_v11 }
 0x3f0   : > { %2386 = vrot.lane.b32.xlu2 %v6884_v14, %s4932_s19  ;;  %2384 = vrot.lane.b32.xlu1 %v6886_v48, %s4932_s19 }
 0x3f2   : > { %2352 = vrot.lane.b32.xlu0 %v6834_v21, %s4933_s20  ;;  %v6966_v34 = vpop.permute.xlu1 %2286  ;;  %v4871_v21 = vld [vmem:[#allocation2 + $0x90] sm:$0xf0] }
 0x3f3   : > { %v4592_v36 = vor.u32 %v4871_v21, %v4591_v8  ;;  %v4623_v8 = vld [vmem:[#allocation2 + $0x24] sm:$0xf] }
 0x3f8   : > { %2392 = vrot.lane.b32.xlu2 %v6896_v30, %s4932_s19  ;;  %2390 = vrot.lane.b32.xlu1 %v6900_v22, %s4932_s19 }
 0x3fa   : > { %2382 = vrot.lane.b32.xlu0 %v6898_v35, %s4932_s19 }
 0x400   : > { %2398 = vrot.lane.b32.xlu2 %v6910_v59, %s4932_s19  ;;  %2396 = vrot.lane.b32.xlu1 %v6914_v45, %s4932_s19 }
 0x402   : > { %2388 = vrot.lane.b32.xlu0 %v6912_v27, %s4932_s19  ;;  %v6938_v18 = vpop.permute.xlu2 %2294  ;;  %v6980_v61 = vpop.permute.xlu1 %2292 }
 0x403   : > { %v6988_v52 = vpop.permute.xlu0 %2290 }
 0x408   : > { %2404 = vrot.lane.b32.xlu2 %v6924_v46, %s4932_s19  ;;  %2402 = vrot.lane.b32.xlu1 %v6928_v55, %s4932_s19 }
 0x40a   : > { %2394 = vrot.lane.b32.xlu0 %v6926_v3, %s4932_s19 }
 0x410   : > { %2410 = vrot.lane.b32.xlu2 %v6940_v1, %s4932_s19  ;;  %2408 = vrot.lane.b32.xlu1 %v6944_v62, %s4932_s19 }
 0x412   : > { %2400 = vrot.lane.b32.xlu0 %v6942_v23, %s4932_s19  ;;  %v6954_v53 = vpop.permute.xlu2 %2300 }
 0x413   : > { %8840 = vst [vmem:[#allocation40_spill] sm:$0xff] %v6954_v53  ;;  %v4615_v53 = vld [vmem:[#allocation2 + $0x1c] sm:$0xf] }
 0x418   : > { %2436 = vrot.lane.b32.xlu2 %v6886_v48, %s4933_s20  ;;  %2434 = vrot.lane.b32.xlu1 %v6898_v35, %s4933_s20 }
 0x41a   : > { %2406 = vrot.lane.b32.xlu0 %v6956_v51, %s4932_s19  ;;  %v6968_v10 = vpop.permute.xlu2 %2326  ;;  %v7000_v0 = vpop.permute.xlu0 %2296 }
 0x420   : > { %2442 = vrot.lane.b32.xlu2 %v6900_v22, %s4933_s20  ;;  %2440 = vrot.lane.b32.xlu1 %v6912_v27, %s4933_s20 }
 0x422   : > { %2412 = vrot.lane.b32.xlu0 %v6970_v5, %s4932_s19  ;;  %v6982_v63 = vpop.permute.xlu2 %2332 }
 0x428   : > { %2448 = vrot.lane.b32.xlu2 %v6914_v45, %s4933_s20  ;;  %2446 = vrot.lane.b32.xlu1 %v6926_v3, %s4933_s20 }
 0x42a   : > { %2438 = vrot.lane.b32.xlu0 %v6884_v14, %s4933_s20  ;;  %v6992_v20 = vpop.permute.xlu1 %2298  ;;  %v6994_v6 = vpop.permute.xlu2 %2338 }
 0x42b   : > { %8843 = vst [vmem:[#allocation42_spill] sm:$0xff] %v6992_v20  ;;  %v4887_v20 = vld [vmem:[#allocation2 + $0x90] sm:$0xf0] }
 0x430   : > { %2454 = vrot.lane.b32.xlu2 %v6928_v55, %s4933_s20  ;;  %2452 = vrot.lane.b32.xlu1 %v6942_v23, %s4933_s20 }
 0x432   : > { %2444 = vrot.lane.b32.xlu0 %v6896_v30, %s4933_s20  ;;  %v7004_v50 = vpop.permute.xlu1 %2324  ;;  %v7006_v25 = vpop.permute.xlu2 %2344 }
 0x433   : > { %8844 = vst [vmem:[#allocation20_spill] sm:$0xff] %v7006_v25  ;;  %v4883_v25 = vld [vmem:[#allocation2 + $0x70] sm:$0xf0] }
 0x434   : > { %v4624_v21 = vor.u32 %v4883_v25, %v4623_v8 }
 0x438   : > { %2460 = vrot.lane.b32.xlu2 %v6944_v62, %s4933_s20  ;;  %2458 = vrot.lane.b32.xlu1 %v6956_v51, %s4933_s20  ;;  %v4601_v62 = vld [vmem:[#allocation2 + $0x5c] sm:$0xf0]  ;;  %v4884_v51 = vld [vmem:[#allocation2 + $0x78] sm:$0xf0] }
 0x43a   : > { %2450 = vrot.lane.b32.xlu0 %v6910_v59, %s4933_s20  ;;  %v7016_v39 = vpop.permute.xlu2 %2350  ;;  %v7018_v41 = vpop.permute.xlu1 %2330 }
 0x43b   : > { %8846 = vst [vmem:[#allocation36_spill] sm:$0xff] %v7016_v39  ;;  %v4881_v39 = vld [vmem:[#allocation2 + $0x60] sm:$0xf0] }
 0x43c   : > { %v7014_v60 = vpop.permute.xlu0 %2302  ;;  %v4608_v47 = vor.u32 %v4881_v39, %v4607_v19  ;;  %v4874_v39 = vld [vmem:[#allocation2 + $0x20] sm:$0xf] }
 0x43d   : > { %8845 = vst [vmem:[#allocation32_spill] sm:$0xff] %v7014_v60  ;;  %v4620_v40 = vor.u32 %v4874_v39, %v4617_v4  ;;  %v4631_v4 = vld [vmem:[#allocation2 + $0x2c] sm:$0xf]  ;;  %v4875_v60 = vld [vmem:[#allocation2 + $0x28] sm:$0xf] }
 0x43e   : > { %v4632_v8 = vor.u32 %v4884_v51, %v4631_v4  ;;  %v4877_v51 = vld [vmem:[#allocation2 + $0x38] sm:$0xf] }
 0x440   : > { %2466 = vrot.lane.b32.xlu2 %v7020_v31, %s4933_s20  ;;  %2464 = vrot.lane.b32.xlu1 %v6970_v5, %s4933_s20 }
 0x442   : > { %2456 = vrot.lane.b32.xlu0 %v6924_v46, %s4933_s20  ;;  %v7030_v9 = vpop.permute.xlu2 %2356  ;;  %v7032_v26 = vpop.permute.xlu1 %2336  ;;  %v4872_v46 = vld [vmem:[#allocation2 + $0x10] sm:$0xf] }
 0x443   : > { %8848 = vst [vmem:[#allocation28_spill] sm:$0xff] %v7030_v9  ;;  %v4604_v11 = vor.u32 %v4872_v46, %v4601_v62  ;;  %v4876_v46 = vld [vmem:[#allocation2 + $0x30] sm:$0xf] }
 0x444   : > { %v7028_v12 = vpop.permute.xlu0 %2328 }
 0x448   : > { %2567 = vrot.lane.b32.xlu2 %v4600_v7, %s4933_s20  ;;  %2494 = vrot.lane.b32.xlu1 %v4596_v33, %s4932_s19 }
 0x44a   : > { %2462 = vrot.lane.b32.xlu0 %v6940_v1, %s4933_s20  ;;  %v7040_v5 = vpop.permute.xlu2 %2386  ;;  %v7042_v9 = vpop.permute.xlu1 %2342 }
 0x44c   : > { %v7038_v31 = vpop.permute.xlu0 %2334 }
 0x450   : > { %2573 = vrot.lane.b32.xlu2 %v4612_v44, %s4933_s20  ;;  %2571 = vrot.lane.b32.xlu1 %v4608_v47, %s4933_s20  ;;  %v4882_v47 = vld [vmem:[#allocation2 + $0x68] sm:$0xf0] }
 0x451   : > { %v4616_v25 = vor.u32 %v4882_v47, %v4615_v53  ;;  %v4647_v53 = vld [vmem:[#allocation2 + $0x3c] sm:$0xf] }
 0x452   : > { %2492 = vrot.lane.b32.xlu0 %v4592_v36, %s4932_s19  ;;  %v7049_v33 = vpop.permute.xlu2 %2392  ;;  %v7051_v1 = vpop.permute.xlu1 %2348 }
 0x453   : > { %8850 = vst [vmem:[#allocation45_spill] sm:$0xff] %v7051_v1  ;;  %v4633_v1 = vld [vmem:[#allocation2 + $0x7c] sm:$0xf0] }
 0x454   : > { %v7047_v7 = vpop.permute.xlu0 %2340  ;;  %v4636_v62 = vor.u32 %v4876_v46, %v4633_v1 }
 0x455   : > { %8849 = vst [vmem:[#allocation56_spill] sm:$0xff] %v7047_v7 }
 0x458   : > { %2579 = vrot.lane.b32.xlu2 %v4624_v21, %s4933_s20  ;;  %2577 = vrot.lane.b32.xlu1 %v4620_v40, %s4933_s20  ;;  %v4625_v40 = vld [vmem:[#allocation2 + $0x74] sm:$0xf0] }
 0x459   : > { %v4628_v1 = vor.u32 %v4875_v60, %v4625_v40  ;;  %v4639_v60 = vld [vmem:[#allocation2 + $0x34] sm:$0xf]  ;;  %v4655_v40 = vld [vmem:[#allocation2 + $0x44] sm:$0xf] }
 0x45a   : > { %2569 = vrot.lane.b32.xlu0 %v4604_v11, %s4933_s20  ;;  %v7058_v44 = vpop.permute.xlu2 %2398  ;;  %v7060_v19 = vpop.permute.xlu1 %2354 }
 0x45b   : > { %8852 = vst [vmem:[#allocation21_spill] sm:$0xff] %v7060_v19  ;;  %v4886_v19 = vld [vmem:[#allocation2 + $0x88] sm:$0xf0] }
 0x45c   : > { %v7056_v36 = vpop.permute.xlu0 %2346  ;;  %v4648_v47 = vor.u32 %v4886_v19, %v4647_v53 }
 0x45d   : > { %8851 = vst [vmem:[#allocation62_spill] sm:$0xff] %v7056_v36  ;;  %v4641_v36 = vld [vmem:[#allocation2 + $0x84] sm:$0xf0] }
 0x45e   : > { %v4644_v46 = vor.u32 %v4877_v51, %v4641_v36  ;;  %v4656_v36 = vor.u32 %v4887_v20, %v4655_v40  ;;  %v4841_v51 = vld [vmem:[#allocation2 + $0x4c] sm:$0xf0]  ;;  %v2306_v20 = vsel %vm588_vm0, %v6894_v56, %v6962_v24 }
 0x460   : > { %2585 = vrot.lane.b32.xlu2 %v4636_v62, %s4933_s20  ;;  %2583 = vrot.lane.b32.xlu1 %v4632_v8, %s4933_s20  ;;  %v4657_v62 = vld [vmem:[#allocation2 + $0x94] sm:$0xf0] }
 0x462   : > { %2575 = vrot.lane.b32.xlu0 %v4616_v25, %s4933_s20  ;;  %v7067_v21 = vpop.permute.xlu2 %2404  ;;  %v7069_v39 = vpop.permute.xlu1 %2384  ;;  %v4879_v25 = vld [vmem:[#allocation2 + $0x48] sm:$0xf] }
 0x463   : > { %8854 = vst [vmem:[#allocation31_spill] sm:$0xff] %v7067_v21  ;;  %v4885_v21 = vld [vmem:[#allocation2 + $0x80] sm:$0xf0]  ;;  %v4660_v55 = vor.u32 %v4879_v25, %v4657_v62  ;;  %v4878_v25 = vld [vmem:[#allocation2 + $0x40] sm:$0xf] }
 0x464   : > { %v7065_v11 = vpop.permute.xlu0 %2352  ;;  %v4640_v19 = vor.u32 %v4885_v21, %v4639_v60  ;;  %v4888_v21 = vld [vmem:[#allocation2 + $0x98] sm:$0xf0] }
 0x465   : > { %8853 = vst [vmem:[#allocation61_spill] sm:$0xff] %v7065_v11 }
 0x468   : > { %2591 = vrot.lane.b32.xlu2 %v4648_v47, %s4933_s20  ;;  %2589 = vrot.lane.b32.xlu1 %v4644_v46, %s4933_s20  ;;  %v4443_v47 = vld [vmem:[#allocation2] sm:$0xf] }
 0x469   : > { %v4444_v62 = vor.u32 %v4841_v51, %v4443_v47 }
 0x46a   : > { %2581 = vrot.lane.b32.xlu0 %v4628_v1, %s4933_s20  ;;  %v7074_v8 = vpop.permute.xlu2 %2410  ;;  %v7076_v11 = vpop.permute.xlu1 %2390 }
 0x46b   : > { %8855 = vst [vmem:[#allocation58_spill] sm:$0xff] %v7074_v8  ;;  %v4649_v8 = vld [vmem:[#allocation2 + $0x8c] sm:$0xf0] }
 0x46c   : > { %v2383_v4 = vpop.permute.xlu0 %2382  ;;  %v4652_v7 = vor.u32 %v4878_v25, %v4649_v8 }
 0x470   : > { %2597 = vrot.lane.b32.xlu2 %v4660_v55, %s4933_s20  ;;  %2595 = vrot.lane.b32.xlu1 %v4656_v36, %s4933_s20  ;;  %v4663_v55 = vld [vmem:[#allocation2 + $0x4c] sm:$0xf] }
 0x471   : > { %v4664_v36 = vor.u32 %v4888_v21, %v4663_v55  ;;  %v2307_v21 = vsel %vm588_vm0, %v6962_v24, %v6952_v32 }
 0x472   : > { %2587 = vrot.lane.b32.xlu0 %v4640_v19, %s4933_s20  ;;  %v2437_v1 = vpop.permute.xlu2 %2436  ;;  %v7083_v46 = vpop.permute.xlu1 %2396 }
 0x474   : > { %v7081_v53 = vpop.permute.xlu0 %2388 }
 0x478   : > { %2668 = vrot.lane.b32.xlu2 %v2306_v20, %s4934_s21  ;;  %2628 = vrot.lane.b32.xlu1 %v4444_v62, %s4934_s21 }
 0x47a   : > { %2593 = vrot.lane.b32.xlu0 %v4652_v7, %s4933_s20  ;;  %v7093_v19 = vpop.permute.xlu2 %2442  ;;  %v7095_v40 = vpop.permute.xlu1 %2402 }
 0x47c   : > { %v7091_v60 = vpop.permute.xlu0 %2394 }
 0x480   : > { %2634 = vrot.lane.b32.xlu2 %v6886_v48, %s4934_s21  ;;  %2632 = vrot.lane.b32.xlu1 %v6898_v35, %s4934_s21 }
 0x482   : > { %2599 = vrot.lane.b32.xlu0 %v4664_v36, %s4933_s20  ;;  %v7104_v8 = vpop.permute.xlu2 %2448  ;;  %v7106_v47 = vpop.permute.xlu1 %2408  ;;  %v2414_v36 = vsel %vm588_vm0, %v2383_v4, %v7069_v39 }
 0x483   : > { %8856 = vst [vmem:[#allocation46_spill] sm:$0xff] %v7106_v47 }
 0x484   : > { %v7102_v7 = vpop.permute.xlu0 %2400 }
 0x488   : > { %2764 = vrot.lane.b32.xlu2 %v2383_v4, %s4934_s21 }
 0x48a   : > { %2838 = vrot.lane.b32.xlu0 %v6894_v56, %s4934_s21  ;;  %v7113_v25 = vpop.permute.xlu2 %2454  ;;  %v2435_v62 = vpop.permute.xlu1 %2434 }
 0x48b   : > { %v2468_v48 = vsel %vm643_vm1, %v2435_v62, %v2437_v1 }
 0x48c   : > { %v7111_v51 = vpop.permute.xlu0 %2406  ;;  %2800 = vrot.lane.b32.xlu1 %v2468_v48, %s4934_s21 }
 0x48d   : > { %8857 = vst [vmem:[#allocation22_spill] sm:$0xff] %v7111_v51 }
 0x490   : > { %2732 = vrot.lane.b32.xlu2 %v6661_v38, %s4934_s21 }
 0x492   : > { %2798 = vrot.lane.b32.xlu0 %v2435_v62, %s4934_s21  ;;  %v7122_v20 = vpop.permute.xlu2 %2460  ;;  %v2441_v55 = vpop.permute.xlu1 %2440 }
 0x493   : > { %8859 = vst [vmem:[#allocation27_spill] sm:$0xff] %v7122_v20 }
 0x494   : > { %v7120_v35 = vpop.permute.xlu0 %2412  ;;  %2730 = vrot.lane.b32.xlu1 %v6612_v17, %s4934_s21  ;;  %v2358_v17 = vsel %vm643_vm1, %v7004_v50, %v6968_v10 }
 0x495   : > { %8858 = vst [vmem:[#allocation16_spill] sm:$0xff] %v7120_v35 }
 0x498   : > { %2670 = vrot.lane.b32.xlu2 %v2307_v21, %s4934_s21 }
 0x49a   : > { %2766 = vrot.lane.b32.xlu0 %v2414_v36, %s4934_s21  ;;  %v7133_v62 = vpop.permute.xlu2 %2466  ;;  %v7135_v48 = vpop.permute.xlu1 %2446  ;;  %v2304_v36 = vsel %vm588_vm0, %v6876_v42, %v6936_v2 }
 0x49b   : > { %8860 = vst [vmem:[#allocation59_spill] sm:$0xff] %v7133_v62 }
 0x49c   : > { %v2439_v38 = vpop.permute.xlu0 %2438  ;;  %2698 = vrot.lane.b32.xlu1 %v2358_v17, %s4934_s21  ;;  %v2308_v17 = vsel %vm588_vm0, %v6952_v32, %v6908_v58  ;;  %v2415_v32 = vsel %vm588_vm0, %v7069_v39, %v7040_v5 }
 0x49d   : > { %v2469_v47 = vsel %vm643_vm1, %v2437_v1, %v2439_v38  ;;  %v2310_v1 = vsel %vm588_vm0, %v6976_v43, %v6966_v34 }
 0x4a0   : > { %2636 = vrot.lane.b32.xlu2 %v6884_v14, %s4934_s21  ;;  %v4445_v14 = vld [vmem:[#allocation2 + $0x50] sm:$0xf0] }
 0x4a2   : > { %2696 = vrot.lane.b32.xlu0 %v7004_v50, %s4934_s21  ;;  %v7147_v4 = vpop.permute.xlu2 %2567  ;;  %v7149_v21 = vpop.permute.xlu1 %2452  ;;  %v4833_v50 = vld [vmem:[#allocation2 + $0x4] sm:$0xf] }
 0x4a4   : > { %v7145_v24 = vpop.permute.xlu0 %2444  ;;  %2664 = vrot.lane.b32.xlu1 %v2304_v36, %s4934_s21  ;;  %v4448_v36 = vor.u32 %v4833_v50, %v4445_v14 }
 0x4a8   : > { %2672 = vrot.lane.b32.xlu2 %v2308_v17, %s4934_s21 }
 0x4aa   : > { %2662 = vrot.lane.b32.xlu0 %v6876_v42, %s4934_s21  ;;  %v7163_v35 = vpop.permute.xlu2 %2573  ;;  %v7165_v51 = vpop.permute.xlu1 %2458 }
 0x4ac   : > { %v7161_v62 = vpop.permute.xlu0 %2450  ;;  %2802 = vrot.lane.b32.xlu1 %v2469_v47, %s4934_s21  ;;  %v2309_v47 = vsel %vm588_vm0, %v6908_v58, %v6976_v43 }
 0x4b0   : > { %2768 = vrot.lane.b32.xlu2 %v2415_v32, %s4934_s21  ;;  %v2470_v32 = vsel %vm643_vm1, %v2439_v38, %v2441_v55 }
 0x4b2   : > { %2630 = vrot.lane.b32.xlu0 %v4448_v36, %s4934_s21  ;;  %v2580_v17 = vpop.permute.xlu2 %2579  ;;  %v7176_v20 = vpop.permute.xlu1 %2464  ;;  %v2471_v36 = vsel %vm643_vm1, %v2441_v55, %v7093_v19  ;;  %v2359_v55 = vsel %vm643_vm1, %v6968_v10, %v7028_v12 }
 0x4b3   : > { %8861 = vst [vmem:[#allocation54_spill] sm:$0xff] %v7176_v20 }
 0x4b4   : > { %v7174_v42 = vpop.permute.xlu0 %2456  ;;  %2676 = vrot.lane.b32.xlu1 %v2310_v1, %s4934_s21 }
 0x4b8   : > { %2642 = vrot.lane.b32.xlu2 %v6896_v30, %s4934_s21 }
 0x4ba   : > { %2674 = vrot.lane.b32.xlu0 %v2309_v47, %s4934_s21  ;;  %v2586_v50 = vpop.permute.xlu2 %2585  ;;  %v7190_v14 = vpop.permute.xlu1 %2494 }
 0x4bb   : > { %8863 = vst [vmem:[#allocation14_spill] sm:$0xff] %v7190_v14 }
 0x4bc   : > { %v7188_v39 = vpop.permute.xlu0 %2462  ;;  %2640 = vrot.lane.b32.xlu1 %v6900_v22, %s4934_s21  ;;  %v2416_v22 = vsel %vm588_vm0, %v7040_v5, %v7081_v53  ;;  %v2472_v5 = vsel %vm643_vm1, %v7093_v19, %v7145_v24  ;;  %v2418_v19 = vsel %vm588_vm0, %v7076_v11, %v7049_v33 }
 0x4bd   : > { %8862 = vst [vmem:[#allocation50_spill] sm:$0xff] %v7188_v39 }
 0x4c0   : > { %2806 = vrot.lane.b32.xlu2 %v2471_v36, %s4934_s21 }
 0x4c2   : > { %2638 = vrot.lane.b32.xlu0 %v6912_v27, %s4934_s21  ;;  %v2592_v43 = vpop.permute.xlu2 %2591  ;;  %v2572_v30 = vpop.permute.xlu1 %2571 }
 0x4c4   : > { %v7199_v58 = vpop.permute.xlu0 %2492  ;;  %2804 = vrot.lane.b32.xlu1 %v2470_v32, %s4934_s21 }
 0x4c5   : > { %8864 = vst [vmem:[#allocation44_spill] sm:$0xff] %v7199_v58 }
 0x4c8   : > { %2770 = vrot.lane.b32.xlu2 %v2416_v22, %s4934_s21 }
 0x4ca   : > { %2734 = vrot.lane.b32.xlu0 %v6659_v13, %s4934_s21  ;;  %v2598_v1 = vpop.permute.xlu2 %2597  ;;  %v2578_v47 = vpop.permute.xlu1 %2577 }
 0x4cb   : > { %v7210_v36 = vsel %vm643_vm1, %v2578_v47, %v2580_v17 }
 0x4cc   : > { %v2570_v27 = vpop.permute.xlu0 %2569  ;;  %2700 = vrot.lane.b32.xlu1 %v2359_v55, %s4934_s21  ;;  %v2603_v55 = vsel %vm643_vm1, %v2572_v30, %v7163_v35 }
 0x4d0   : > { %2846 = vrot.lane.b32.xlu2 %v7147_v4, %s4934_s21 }
 0x4d2   : > { %2808 = vrot.lane.b32.xlu0 %v2472_v5, %s4934_s21  ;;  %v7224_v38 = vpop.permute.xlu2 %2668  ;;  %v2584_v10 = vpop.permute.xlu1 %2583  ;;  %v2417_v5 = vsel %vm588_vm0, %v7081_v53, %v7076_v11  ;;  %v2601_v11 = vsel %vm643_vm1, %v7147_v4, %v2570_v27  ;;  %v2305_v4 = vsel %vm588_vm0, %v6936_v2, %v6894_v56  ;;  %v2360_v56 = vsel %vm643_vm1, %v7028_v12, %v7018_v41 }
 0x4d3   : > { %v7231_v22 = vsel %vm643_vm1, %v2584_v10, %v2586_v50  ;;  %v2311_v12 = vsel %vm588_vm0, %v6966_v34, %v6922_v28 }
 0x4d4   : > { %v7222_v13 = vpop.permute.xlu0 %2575  ;;  %8865 = vst [vmem:[#allocation5_spill] sm:$0xff] %v7231_v22  ;;  %2774 = vrot.lane.b32.xlu1 %v2418_v19, %s4934_s21  ;;  %v2602_v22 = vsel %vm643_vm1, %v2570_v27, %v2572_v30 }
 0x4d5   : > { %v7228_v32 = vsel %vm643_vm1, %v7222_v13, %v2578_v47 }
 0x4d8   : > { %2852 = vrot.lane.b32.xlu2 %v2603_v55, %s4934_s21 }
 0x4da   : > { %2772 = vrot.lane.b32.xlu0 %v2417_v5, %s4934_s21  ;;  %v2635_v20 = vpop.permute.xlu2 %2634  ;;  %v2590_v19 = vpop.permute.xlu1 %2589 }
 0x4db   : > { %v7251_v39 = vsel %vm643_vm1, %v2590_v19, %v2592_v43 }
 0x4dc   : > { %v2582_v47 = vpop.permute.xlu0 %2581  ;;  %2850 = vrot.lane.b32.xlu1 %v2602_v22, %s4934_s21 }
 0x4dd   : > { %v7245_v14 = vsel %vm643_vm1, %v2580_v17, %v2582_v47  ;;  %v7248_v58 = vsel %vm643_vm1, %v2582_v47, %v2584_v10 }
 0x4e0   : > { %2738 = vrot.lane.b32.xlu2 %v6696_v54, %s4934_s21  ;;  %v2361_v54 = vsel %vm643_vm1, %v7018_v41, %v6982_v63 }
 0x4e2   : > { %2848 = vrot.lane.b32.xlu0 %v2601_v11, %s4934_s21  ;;  %v2765_v17 = vpop.permute.xlu2 %2764  ;;  %v2596_v5 = vpop.permute.xlu1 %2595 }
 0x4e3   : > { %v7267_v30 = vsel %vm643_vm1, %v2596_v5, %v2598_v1 }
 0x4e4   : > { %v2588_v53 = vpop.permute.xlu0 %2587  ;;  %2736 = vrot.lane.b32.xlu1 %v6694_v57, %s4934_s21 }
 0x4e5   : > { %v7261_v10 = vsel %vm643_vm1, %v2586_v50, %v2588_v53  ;;  %v7264_v55 = vsel %vm643_vm1, %v2588_v53, %v2590_v19 }
 0x4e8   : > { %2704 = vrot.lane.b32.xlu2 %v2361_v54, %s4934_s21 }
 0x4ea   : > { %2666 = vrot.lane.b32.xlu0 %v2305_v4, %s4934_s21  ;;  %v7279_v27 = vpop.permute.xlu2 %2732  ;;  %v7290_v2 = vpop.permute.xlu1 %2628  ;;  %v2604_v4 = vsel %vm643_vm1, %v7163_v35, %v7222_v13 }
 0x4ec   : > { %v2594_v50 = vpop.permute.xlu0 %2593  ;;  %2702 = vrot.lane.b32.xlu1 %v2360_v56, %s4934_s21 }
 0x4ed   : > { %v7282_v22 = vsel %vm643_vm1, %v2592_v43, %v2594_v50  ;;  %v7285_v57 = vsel %vm643_vm1, %v2594_v50, %v2596_v5  ;;  %v2473_v50 = vsel %vm643_vm1, %v7145_v24, %v7135_v48  ;;  %v2419_v24 = vsel %vm588_vm0, %v7049_v33, %v7091_v60 }
 0x4f0   : > { %2644 = vrot.lane.b32.xlu2 %v6926_v3, %s4934_s21  ;;  %v2313_v3 = vsel %vm588_vm0, %v6988_v52, %v6980_v61 }
 0x4f2   : > { %2740 = vrot.lane.b32.xlu0 %v6728_v37, %s4934_s21  ;;  %v2671_v43 = vpop.permute.xlu2 %2670  ;;  %v7309_v41 = vpop.permute.xlu1 %2632  ;;  %v2362_v37 = vsel %vm643_vm1, %v6982_v63, %v7038_v31  ;;  %v2312_v63 = vsel %vm588_vm0, %v6922_v28, %v6988_v52 }
 0x4f3   : > { %v7302_v11 = vsel %vm1166_vm2, %v7224_v38, %v2671_v43  ;;  %v7342_v28 = vsel %vm1166_vm2, %v7309_v41, %v2635_v20 }
 0x4f4   : > { %v2600_v47 = vpop.permute.xlu0 %2599  ;;  %3149 = vmatpush.bf16.msra.mxu0 %v7302_v11  ;;  %2678 = vrot.lane.b32.xlu1 %v2311_v12, %s4934_s21 }
 0x4f5   : > { %v7298_v19 = vsel %vm643_vm1, %v2598_v1, %v2600_v47  ;;  %v2314_v47 = vsel %vm588_vm0, %v6980_v61, %v6938_v18  ;;  %v2475_v61 = vsel %vm643_vm1, %v7104_v8, %v7161_v62 }
 0x4f8   : > { %2682 = vrot.lane.b32.xlu2 %v2313_v3, %s4934_s21 }
 0x4fa   : > { %2706 = vrot.lane.b32.xlu0 %v2362_v37, %s4934_s21  ;;  %v7319_v34 = vpop.permute.xlu2 %2636 }
 0x4fb   : > { %v7325_v5 = vsel %vm1166_vm2, %v2635_v20, %v7319_v34 }
 0x4fc   : > { %v2839_v1 = vpop.permute.xlu0 %2838  ;;  %3150 = vmatpush.bf16.msra.mxu0 %v7325_v5  ;;  %2680 = vrot.lane.b32.xlu1 %v2312_v63, %s4934_s21 }
 0x4fd   : > { %v2979_v53 = vsel %vm1166_vm2, %v2839_v1, %v7224_v38  ;;  %v2474_v1 = vsel %vm643_vm1, %v7135_v48, %v7104_v8  ;;  %v2363_v48 = vsel %vm643_vm1, %v7038_v31, %v7032_v26 }
 0x4fe   : > { %3121 = vmatpush.bf16.msrb.mxu2 %v2979_v53  ;;  %v2801_v54 = vpop.permute.xlu1 %2800  ;;  %v2420_v53 = vsel %vm588_vm0, %v7091_v60, %v7083_v46 }
 0x500   : > { %2854 = vrot.lane.b32.xlu2 %v2604_v4, %s4934_s21 }
 0x502   : > { %2810 = vrot.lane.b32.xlu0 %v2473_v50, %s4934_s21  ;;  %3122 = vmatpush.bf16.msrb.mxu2 %v7342_v28  ;;  %v7345_v56 = vpop.permute.xlu2 %2672 }
 0x503   : > { %v7349_v35 = vsel %vm1166_vm2, %v2671_v43, %v7345_v56 }
 0x504   : > { %v2799_v52 = vpop.permute.xlu0 %2798  ;;  %2776 = vrot.lane.b32.xlu1 %v2419_v24, %s4934_s21  ;;  %v2421_v24 = vsel %vm588_vm0, %v7083_v46, %v7058_v44 }
 0x505   : > { %v2960_v13 = vsel %vm1166_vm2, %v2799_v52, %v2801_v54 }
 0x506   : > { %3123 = vmatpush.bf16.msrb.mxu2 %v2960_v13  ;;  %v2731_v20 = vpop.permute.xlu1 %2730 }
 0x508   : > { %2650 = vrot.lane.b32.xlu2 %v6942_v23, %s4934_s21  ;;  %v2928_v23 = vsel %vm1166_vm2, %v2731_v20, %v7279_v27 }
 0x50a   : > { %2684 = vrot.lane.b32.xlu0 %v2314_v47, %s4934_s21  ;;  %v7362_v12 = vpop.permute.xlu2 %2768 }
 0x50c   : > { %v2767_v43 = vpop.permute.xlu0 %2766  ;;  %2648 = vrot.lane.b32.xlu1 %v6910_v59, %s4934_s21 }
 0x50d   : > { %v2944_v37 = vsel %vm1166_vm2, %v2765_v17, %v2767_v43 }
 0x50e   : > { %3124 = vmatpush.bf16.msrb.mxu2 %v2944_v37  ;;  %v7367_v33 = vpop.permute.xlu1 %2698 }
 0x510   : > { %2814 = vrot.lane.b32.xlu2 %v2475_v61, %s4934_s21 }
 0x512   : > { %2646 = vrot.lane.b32.xlu0 %v6914_v45, %s4934_s21  ;;  %3125 = vmatpush.bf16.msrb.mxu2 %v2928_v23  ;;  %v7377_v3 = vpop.permute.xlu2 %2642 }
 0x514   : > { %v2697_v17 = vpop.permute.xlu0 %2696  ;;  %2812 = vrot.lane.b32.xlu1 %v2474_v1, %s4934_s21  ;;  %v8867_v1 = vld [vmem:[#allocation42_spill] sm:$0xff] }
 0x515   : > { %v2912_v59 = vsel %vm1166_vm2, %v2697_v17, %v7367_v33 }
 0x516   : > { %3126 = vmatpush.bf16.msrb.mxu2 %v2912_v59  ;;  %v7385_v45 = vpop.permute.xlu1 %2664 }
 0x518   : > { %2778 = vrot.lane.b32.xlu2 %v2420_v53, %s4934_s21 }
 0x51a   : > { %2742 = vrot.lane.b32.xlu0 %v6726_v15, %s4934_s21  ;;  %v7393_v4 = vpop.permute.xlu2 %2806  ;;  %v2476_v15 = vsel %vm643_vm1, %v7161_v62, %v7149_v21  ;;  %v2422_v62 = vsel %vm588_vm0, %v7058_v44, %v7102_v7  ;;  %v4890_v44 = vld [vmem:[%s8470_s5 + $0x4] sm:$0xf0] }
 0x51c   : > { %v2663_v63 = vpop.permute.xlu0 %2662  ;;  %2708 = vrot.lane.b32.xlu1 %v2363_v48, %s4934_s21  ;;  %v2423_v48 = vsel %vm588_vm0, %v7102_v7, %v7095_v40 }
 0x51d   : > { %v2896_v8 = vsel %vm1166_vm2, %v2663_v63, %v7385_v45 }
 0x51e   : > { %3127 = vmatpush.bf16.msrb.mxu2 %v2896_v8  ;;  %v7401_v50 = vpop.permute.xlu1 %2802 }
 0x51f   : > { %v2961_v60 = vsel %vm1166_vm2, %v2801_v54, %v7401_v50 }
 0x520   : > { %2856 = vrot.lane.b32.xlu2 %v7228_v32, %s4934_s21  ;;  %3151 = vmatpush.bf16.msra.mxu0 %v2961_v60  ;;  %v2945_v32 = vsel %vm1166_vm2, %v2767_v43, %v7362_v12  ;;  %v2364_v43 = vsel %vm643_vm1, %v7032_v26, %v6994_v6 }
 0x522   : > { %2816 = vrot.lane.b32.xlu0 %v2476_v15, %s4934_s21  ;;  %v7413_v31 = vpop.permute.xlu2 %2770 }
 0x524   : > { %v7411_v52 = vpop.permute.xlu0 %2630  ;;  %2782 = vrot.lane.b32.xlu1 %v2422_v62, %s4934_s21  ;;  %3152 = vmatpush.bf16.msra.mxu0 %v2945_v32  ;;  %v8870_v62 = vld [vmem:[#allocation40_spill] sm:$0xff] }
 0x525   : > { %v2880_v13 = vsel %vm1166_vm2, %v7290_v2, %v7411_v52 }
 0x526   : > { %3128 = vmatpush.bf16.msrb.mxu2 %v2880_v13  ;;  %v7424_v54 = vpop.permute.xlu1 %2676  ;;  %v8869_v13 = vld [vmem:[#allocation32_spill] sm:$0xff] }
 0x528   : > { %2744 = vrot.lane.b32.xlu2 %v6759_v29, %s4934_s21  ;;  %v4667_v29 = vld [vmem:[%s8470_s5] sm:$0xf] }
 0x529   : > { %v7452_v37 = vor.u32 %v4890_v44, %v4667_v29  ;;  %v4889_v29 = vld [vmem:[%s8470_s5 + $0x4] sm:$0xf]  ;;  %v4669_v44 = vld [vmem:[%s8470_s5 + $0x8] sm:$0xf0] }
 0x52a   : > { %2780 = vrot.lane.b32.xlu0 %v2421_v24, %s4934_s21  ;;  %v2847_v20 = vpop.permute.xlu2 %2846  ;;  %v2317_v24 = vsel %vm588_vm0, %v8867_v1, %v8870_v62 }
 0x52b   : > { %3129 = vmatmul.bf16.vlgmr.msrb.gmra.mxu2 %v7452_v37 }
 0x52c   : > { %v2675_v2 = vpop.permute.xlu0 %2674  ;;  %2860 = vrot.lane.b32.xlu1 %v7245_v14, %s4934_s21 }
 0x52e   : > { %v7434_v47 = vpop.permute.xlu1 %2640 }
 0x530   : > { %2710 = vrot.lane.b32.xlu2 %v2364_v43, %s4934_s21  ;;  %v8871_v43 = vld [vmem:[#allocation30_spill] sm:$0xff] }
 0x532   : > { %2858 = vrot.lane.b32.xlu0 %v7210_v36, %s4934_s21  ;;  %v7450_v14 = vpop.permute.xlu2 %2852  ;;  %v2315_v36 = vsel %vm588_vm0, %v6938_v18, %v7000_v0 }
 0x534   : > { %v7448_v46 = vpop.permute.xlu0 %2638  ;;  %2748 = vrot.lane.b32.xlu1 %v6783_v49, %s4934_s21  ;;  %v8866_v49 = vld [vmem:[#allocation56_spill] sm:$0xff] }
 0x535   : > { %v2366_v59 = vsel %vm643_vm1, %v8866_v49, %v7042_v9  ;;  %v2365_v53 = vsel %vm643_vm1, %v6994_v6, %v8866_v49 }
 0x536   : > { %v7457_v26 = vpop.permute.xlu1 %2804 }
 0x538   : > { %2686 = vrot.lane.b32.xlu2 %v2315_v36, %s4934_s21  ;;  %v7527_v36 = vsel %vm1166_vm2, %v2675_v2, %v7424_v54 }
 0x53a   : > { %2746 = vrot.lane.b32.xlu0 %v6757_v16, %s4934_s21  ;;  %v7467_v23 = vpop.permute.xlu2 %2738  ;;  %v2316_v16 = vsel %vm588_vm0, %v7000_v0, %v8867_v1  ;;  %v2477_v0 = vsel %vm643_vm1, %v7149_v21, %v7113_v25  ;;  %v2318_v21 = vsel %vm588_vm0, %v8870_v62, %v8869_v13  ;;  %v2963_v62 = vsel %vm1166_vm2, %v7457_v26, %v7393_v4 }
 0x53c   : > { %v7465_v61 = vpop.permute.xlu0 %2734  ;;  %2714 = vrot.lane.b32.xlu1 %v2366_v59, %s4934_s21 }
 0x53d   : > { %v2929_v17 = vsel %vm1166_vm2, %v7279_v27, %v7465_v61 }
 0x53e   : > { %3153 = vmatpush.bf16.msra.mxu0 %v2929_v17  ;;  %v7476_v18 = vpop.permute.xlu1 %2700 }
 0x53f   : > { %v2913_v27 = vsel %vm1166_vm2, %v7367_v33, %v7476_v18  ;;  %v8868_v33 = vld [vmem:[#allocation47_spill] sm:$0xff] }
 0x540   : > { %2688 = vrot.lane.b32.xlu2 %v2316_v16, %s4934_s21  ;;  %v7534_v16 = vor.u32 %v4889_v29, %v4669_v44  ;;  %v8877_v44 = vld [vmem:[#allocation46_spill] sm:$0xff] }
 0x542   : > { %2712 = vrot.lane.b32.xlu0 %v2365_v53, %s4934_s21  ;;  %3154 = vmatpush.bf16.msra.mxu0 %v2913_v27  ;;  %v7491_v8 = vpop.permute.xlu2 %2704  ;;  %v7538_v53 = vsel %vm1166_vm2, %v7345_v56, %v2675_v2  ;;  %v8872_v27 = vld [vmem:[#allocation53_spill] sm:$0xff]  ;;  %v2478_v56 = vsel %vm643_vm1, %v7113_v25, %v7174_v42  ;;  %v7563_v2 = vsel %vm1166_vm2, %v7319_v34, %v7448_v46 }
 0x543   : > { %v7569_v25 = vsel %vm1166_vm2, %v7448_v46, %v7434_v47  ;;  %v8873_v46 = vld [vmem:[#allocation12_spill] sm:$0xff] }
 0x544   : > { %v7489_v63 = vpop.permute.xlu0 %2808  ;;  %2818 = vrot.lane.b32.xlu1 %v2477_v0, %s4934_s21  ;;  %v7546_v0 = vsel %vm1166_vm2, %v7434_v47, %v7377_v3  ;;  %v2962_v47 = vsel %vm1166_vm2, %v7401_v50, %v7457_v26  ;;  %v8875_v50 = vld [vmem:[#allocation48_spill] sm:$0xff] }
 0x546   : > { %v7497_v6 = vpop.permute.xlu1 %2774 }
 0x548   : > { %2784 = vrot.lane.b32.xlu2 %v2423_v48, %s4934_s21  ;;  %v2964_v48 = vsel %vm1166_vm2, %v7393_v4, %v7489_v63  ;;  %v2946_v4 = vsel %vm1166_vm2, %v7362_v12, %v7413_v31  ;;  %v8876_v12 = vld [vmem:[#allocation27_spill] sm:$0xff] }
 0x54a   : > { %2652 = vrot.lane.b32.xlu0 %v8868_v33, %s4934_s21  ;;  %v7505_v60 = vpop.permute.xlu2 %2644 }
 0x54c   : > { %v2773_v15 = vpop.permute.xlu0 %2772  ;;  %2692 = vrot.lane.b32.xlu1 %v2318_v21, %s4934_s21 }
 0x54d   : > { %v2948_v21 = vsel %vm1166_vm2, %v2773_v15, %v7497_v6 }
 0x54e   : > { %v2851_v32 = vpop.permute.xlu1 %2850 }
 0x54f   : > { %v2985_v7 = vsel %vm1166_vm2, %v2851_v32, %v7450_v14 }
 0x550   : > { %2656 = vrot.lane.b32.xlu2 %v8871_v43, %s4934_s21  ;;  %3198 = vmatpush.bf16.msra.mxu2 %v2985_v7  ;;  %v2881_v7 = vsel %vm1166_vm2, %v7411_v52, %v7309_v41  ;;  %v2480_v52 = vsel %vm643_vm1, %v7165_v51, %v8876_v12 }
 0x552   : > { %2690 = vrot.lane.b32.xlu0 %v2317_v24, %s4934_s21  ;;  %v7530_v49 = vpop.permute.xlu2 %2682 }
 0x553   : > { %4675 = vmatmul.msk.bf16.vlgmr.msra.gmra.mxu2 %vm1405_vm3, %v7534_v16 }
 0x554   : > { %3233 = vmatpush.bf16.msrb.mxu2 %v7527_v36  ;;  %v2849_v17 = vpop.permute.xlu0 %2848  ;;  %2654 = vrot.lane.b32.xlu1 %v8872_v27, %s4934_s21 }
 0x555   : > { %v2983_v59 = vsel %vm1166_vm2, %v2847_v20, %v2849_v17  ;;  %v2984_v1 = vsel %vm1166_vm2, %v2849_v17, %v2851_v32  ;;  %v8878_v17 = vld [vmem:[#allocation22_spill] sm:$0xff] }
 0x556   : > { %3170 = vmatpush.bf16.msrb.mxu1 %v2984_v1  ;;  %3142 = vmatpush.bf16.msra.mxu3 %v2983_v59  ;;  %v2737_v20 = vpop.permute.xlu1 %2736  ;;  %v2426_v59 = vsel %vm588_vm0, %v8878_v17, %v8877_v44  ;;  %v2479_v1 = vsel %vm643_vm1, %v7174_v42, %v7165_v51 }
 0x558   : > { %3234 = vmatpush.bf16.msrb.mxu2 %v7546_v0  ;;  %2820 = vrot.lane.b32.xlu2 %v2478_v56, %s4934_s21 }
 0x559   : > { %4673 = vmatmul.msk.bf16.vlgmr.msra.gmra.mxu3 %vm1405_vm3, %v7534_v16  ;;  %4674 = vmatmul.msk.bf16.vlgmr.msrb.gmra.mxu1 %vm1405_vm3, %v7534_v16 }
 0x55a   : > { %3177 = vmatpush.bf16.msrb.mxu3 %v7349_v35  ;;  %3205 = vmatpush.bf16.msra.mxu1 %v7538_v53  ;;  %v7577_v34 = vpop.permute.xlu2 %2854 }
 0x55b   : > { %2862 = vrot.lane.b32.xlu0 %v7248_v58, %s4934_s21  ;;  %v2986_v26 = vsel %vm1166_vm2, %v7450_v14, %v7577_v34  ;;  %v2930_v14 = vsel %vm1166_vm2, %v7465_v61, %v2737_v20 }
 0x55c   : > { %3235 = vmatpush.bf16.msrb.mxu2 %v2964_v48  ;;  %v2667_v58 = vpop.permute.xlu0 %2666  ;;  %2750 = vrot.lane.b32.xlu1 %v8873_v46, %s4934_s21  ;;  %v8884_v46 = vld [vmem:[#allocation45_spill] sm:$0xff] }
 0x55d   : > { %v2897_v33 = vsel %vm1166_vm2, %v7385_v45, %v2667_v58  ;;  %v8874_v45 = vld [vmem:[#allocation20_spill] sm:$0xff]  ;;  %v2898_v48 = vsel %vm1166_vm2, %v2667_v58, %v7224_v38 }
 0x55e   : > { %3178 = vmatpush.bf16.msrb.mxu3 %v7563_v2  ;;  %3206 = vmatpush.bf16.msra.mxu1 %v7569_v25  ;;  %v2703_v32 = vpop.permute.xlu1 %2702  ;;  %v2367_v24 = vsel %vm643_vm1, %v7042_v9, %v8874_v45  ;;  %v2947_v9 = vsel %vm1166_vm2, %v7413_v31, %v2773_v15  ;;  %v2931_v31 = vsel %vm1166_vm2, %v2737_v20, %v7467_v23  ;;  %v8882_v58 = vld [vmem:[#allocation8_spill] sm:$0xff] }
 0x55f   : > { %3155 = vmatpush.bf16.msra.mxu0 %v2897_v33  ;;  %v2915_v27 = vsel %vm1166_vm2, %v2703_v32, %v7491_v8 }
 0x560   : > { %3236 = vmatpush.bf16.msrb.mxu2 %v2948_v21  ;;  %2716 = vrot.lane.b32.xlu2 %v2367_v24, %s4934_s21 }
 0x562   : > { %3179 = vmatpush.bf16.msrb.mxu3 %v2962_v47  ;;  %3207 = vmatpush.bf16.msra.mxu1 %v2963_v62  ;;  %v7610_v29 = vpop.permute.xlu2 %2650  ;;  %v8883_v47 = vld [vmem:[#allocation36_spill] sm:$0xff] }
 0x563   : > { %2658 = vrot.lane.b32.xlu0 %v8875_v50, %s4934_s21  ;;  %3156 = vmatpush.bf16.msra.mxu0 %v2881_v7  ;;  %v2370_v62 = vsel %vm643_vm1, %v8884_v46, %v8883_v47  ;;  %v8886_v50 = vld [vmem:[#allocation62_spill] sm:$0xff] }
 0x564   : > { %v7608_v43 = vpop.permute.xlu0 %2740  ;;  %2824 = vrot.lane.b32.xlu1 %v2480_v52, %s4934_s21  ;;  %v2369_v7 = vsel %vm643_vm1, %v8886_v50, %v8884_v46 }
 0x565   : > { %v2932_v41 = vsel %vm1166_vm2, %v7467_v23, %v7608_v43  ;;  %v2914_v23 = vsel %vm1166_vm2, %v7476_v18, %v2703_v32  ;;  %v7654_v18 = vsel %vm1166_vm2, %v7377_v3, %v7505_v60 }
 0x566   : > { %3180 = vmatpush.bf16.msrb.mxu3 %v2946_v4  ;;  %3208 = vmatpush.bf16.msra.mxu1 %v2947_v9  ;;  %v2679_v15 = vpop.permute.xlu1 %2678 }
 0x567   : > { %3226 = vmatpush.bf16.msrb.mxu0 %v2986_v26  ;;  %3237 = vmatpush.bf16.msrb.mxu2 %v2932_v41  ;;  %v7632_v61 = vsel %vm1166_vm2, %v7424_v54, %v2679_v15  ;;  %v8879_v54 = vld [vmem:[#allocation31_spill] sm:$0xff]  ;;  %v8887_v26 = vld [vmem:[#allocation50_spill] sm:$0xff] }
 0x568   : > { %3157 = vmatmul.bf16.vlgmr.msra.gmra.mxu0 %v7452_v37  ;;  %2790 = vrot.lane.b32.xlu2 %v2426_v59, %s4934_s21  ;;  %v2425_v56 = vsel %vm588_vm0, %v8879_v54, %v8878_v17  ;;  %v2424_v33 = vsel %vm588_vm0, %v7095_v40, %v8879_v54  ;;  %v2481_v9 = vsel %vm643_vm1, %v8876_v12, %v8887_v26  ;;  %v8889_v17 = vld [vmem:[#allocation44_spill] sm:$0xff] }
 0x569   : > { %v2496_v59 = vsel %vm588_vm0, %v8869_v13, %v8889_v17 }
 0x56a   : > { %3181 = vmatpush.bf16.msrb.mxu3 %v2930_v14  ;;  %3209 = vmatpush.bf16.msra.mxu1 %v2931_v31  ;;  %v7643_v51 = vpop.permute.xlu2 %2814 }
 0x56b   : > { %2822 = vrot.lane.b32.xlu0 %v2479_v1, %s4934_s21  ;;  %3261 = vmatpush.bf16.msra.mxu0 %v7632_v61 }
 0x56c   : > { %v7641_v20 = vpop.permute.xlu0 %2706  ;;  %2788 = vrot.lane.b32.xlu1 %v2425_v56, %s4934_s21  ;;  %v8891_v56 = vld [vmem:[#allocation14_spill] sm:$0xff] }
 0x56d   : > { %v2916_v42 = vsel %vm1166_vm2, %v7491_v8, %v7641_v20 }
 0x56e   : > { %3182 = vmatpush.bf16.msrb.mxu3 %v2914_v23  ;;  %3210 = vmatpush.bf16.msra.mxu1 %v2915_v27  ;;  %v7661_v8 = vpop.permute.xlu1 %2680 }
 0x56f   : > { %3238 = vmatpush.bf16.msrb.mxu2 %v2916_v42  ;;  %3262 = vmatpush.bf16.msra.mxu0 %v7654_v18  ;;  %v8890_v42 = vld [vmem:[#allocation58_spill] sm:$0xff] }
 0x570   : > { %2868 = vrot.lane.b32.xlu2 %v7264_v55, %s4934_s21  ;;  %v8880_v55 = vld [vmem:[#allocation55_spill] sm:$0xff]  ;;  %v2427_v54 = vsel %vm588_vm0, %v8877_v44, %v8890_v42 }
 0x572   : > { %3183 = vmatpush.bf16.msrb.mxu3 %v2898_v48  ;;  %3211 = vmatpush.bf16.msra.mxu1 %v7302_v11  ;;  %v7672_v3 = vpop.permute.xlu2 %2778  ;;  %v2497_v48 = vsel %vm588_vm0, %v8889_v17, %v8891_v56  ;;  %v8900_v17 = vld [vmem:[#allocation59_spill] sm:$0xff] }
 0x573   : > { %2786 = vrot.lane.b32.xlu0 %v2424_v33, %s4934_s21  ;;  %3239 = vmatpush.bf16.msrb.mxu2 %v7349_v35  ;;  %v8892_v33 = vld [vmem:[#allocation54_spill] sm:$0xff] }
 0x574   : > { %v2811_v38 = vpop.permute.xlu0 %2810  ;;  %2866 = vrot.lane.b32.xlu1 %v7261_v10, %s4934_s21 }
 0x575   : > { %v2965_v11 = vsel %vm1166_vm2, %v7489_v63, %v2811_v38 }
 0x576   : > { %3184 = vmatpush.bf16.msrb.mxu3 %v7342_v28  ;;  %3212 = vmatpush.bf16.msra.mxu1 %v7325_v5  ;;  %v2777_v40 = vpop.permute.xlu1 %2776  ;;  %v8881_v5 = vld [vmem:[#allocation5_spill] sm:$0xff] }
 0x577   : > { %3263 = vmatpush.bf16.msra.mxu0 %v2965_v11  ;;  %3240 = vmatpush.bf16.msrb.mxu2 %v7563_v2  ;;  %v2949_v28 = vsel %vm1166_vm2, %v7497_v6, %v2777_v40  ;;  %v7699_v2 = vsel %vm1166_vm2, %v2679_v15, %v7661_v8  ;;  %v2950_v12 = vsel %vm1166_vm2, %v2777_v40, %v7672_v3  ;;  %v8893_v40 = vld [vmem:[#allocation10_spill] sm:$0xff] }
 0x578   : > { %4676 = vmatmul.msk.bf16.vlgmr.msrb.gmra.mxu0 %vm1405_vm3, %v7534_v16  ;;  %2756 = vrot.lane.b32.xlu2 %v8880_v55, %s4934_s21 }
 0x579   : > { %3185 = vmatmul.bf16.vlgmr.msrb.gmra.mxu3 %v7452_v37  ;;  %3213 = vmatmul.bf16.vlgmr.msra.gmra.mxu1 %v7452_v37 }
 0x57a   : > { %3241 = vmatmul.bf16.vlgmr.msrb.gmra.mxu2 %v7452_v37  ;;  %v7692_v35 = vpop.permute.xlu2 %2856 }
 0x57b   : > { %2864 = vrot.lane.b32.xlu0 %v8881_v5, %s4934_s21  ;;  %3264 = vmatpush.bf16.msra.mxu0 %v2949_v28  ;;  %v2987_v63 = vsel %vm1166_vm2, %v7577_v34, %v7692_v35  ;;  %v8885_v34 = vld [vmem:[#allocation9_spill] sm:$0xff] }
 0x57c   : > { %v7690_v10 = vpop.permute.xlu0 %2684  ;;  %3254 = vmatpush.bf16.msra.mxu3 %v2987_v63  ;;  %2754 = vrot.lane.b32.xlu1 %v8882_v58, %s4934_s21  ;;  %v8895_v58 = vld [vmem:[#allocation16_spill] sm:$0xff] }
 0x57d   : > { %v7816_v46 = vsel %vm1166_vm2, %v7530_v49, %v7690_v10 }
 0x57e   : > { %v7704_v6 = vpop.permute.xlu1 %2648 }
 0x580   : > { %3289 = vmatpush.bf16.msrb.mxu3 %v7699_v2  ;;  %2722 = vrot.lane.b32.xlu2 %v2370_v62, %s4934_s21 }
 0x582   : > { %v7714_v32 = vpop.permute.xlu2 %2744 }
 0x583   : > { %2752 = vrot.lane.b32.xlu0 %v8885_v34, %s4934_s21 }
 0x584   : > { %v7712_v21 = vpop.permute.xlu0 %2646  ;;  %2720 = vrot.lane.b32.xlu1 %v2369_v7, %s4934_s21 }
 0x585   : > { %v7719_v24 = vsel %vm1166_vm2, %v7505_v60, %v7712_v21  ;;  %v2368_v60 = vsel %vm643_vm1, %v8874_v45, %v8886_v50  ;;  %v8888_v45 = vld [vmem:[#allocation49_spill] sm:$0xff]  ;;  %v7836_v34 = vsel %vm1166_vm2, %v7712_v21, %v7704_v6  ;;  %v7842_v50 = vsel %vm1166_vm2, %v7704_v6, %v7610_v29 }
 0x586   : > { %3290 = vmatpush.bf16.msrb.mxu3 %v7719_v24  ;;  %v7728_v4 = vpop.permute.xlu1 %2812 }
 0x587   : > { %v2966_v41 = vsel %vm1166_vm2, %v2811_v38, %v7728_v4  ;;  %v2482_v38 = vsel %vm643_vm1, %v8887_v26, %v8892_v33  ;;  %v2967_v26 = vsel %vm1166_vm2, %v7728_v4, %v7643_v51 }
 0x588   : > { %2826 = vrot.lane.b32.xlu2 %v2481_v9, %s4934_s21  ;;  %v8898_v9 = vld [vmem:[#allocation26_spill] sm:$0xff] }
 0x589   : > { %4677 = vmatmul.msk.bf16.vlgmr.msra.gmra.mxu3 %vm1405_vm3, %v7534_v16 }
 0x58a   : > { %3291 = vmatpush.bf16.msrb.mxu3 %v2966_v41  ;;  %v7740_v14 = vpop.permute.xlu2 %2710 }
 0x58b   : > { %2718 = vrot.lane.b32.xlu0 %v2368_v60, %s4934_s21 }
 0x58c   : > { %v2743_v52 = vpop.permute.xlu0 %2742  ;;  %2832 = vrot.lane.b32.xlu1 %v8888_v45, %s4934_s21 }
 0x58d   : > { %v2933_v31 = vsel %vm1166_vm2, %v7608_v43, %v2743_v52  ;;  %v2934_v1 = vsel %vm1166_vm2, %v2743_v52, %v7714_v32  ;;  %v8899_v52 = vld [vmem:[#allocation21_spill] sm:$0xff] }
 0x58e   : > { %3265 = vmatpush.bf16.msra.mxu0 %v2933_v31  ;;  %3292 = vmatpush.bf16.msrb.mxu3 %v2950_v12  ;;  %v2709_v15 = vpop.permute.xlu1 %2708 }
 0x58f   : > { %v2917_v43 = vsel %vm1166_vm2, %v7641_v20, %v2709_v15 }
 0x590   : > { %2870 = vrot.lane.b32.xlu2 %v7251_v39, %s4934_s21  ;;  %v2918_v39 = vsel %vm1166_vm2, %v2709_v15, %v7740_v14 }
 0x592   : > { %3266 = vmatpush.bf16.msra.mxu0 %v2917_v43  ;;  %3293 = vmatpush.bf16.msrb.mxu3 %v2934_v1  ;;  %v7760_v27 = vpop.permute.xlu2 %2686 }
 0x593   : > { %2840 = vrot.lane.b32.xlu0 %v2496_v59, %s4934_s21 }
 0x594   : > { %v7758_v23 = vpop.permute.xlu0 %2816  ;;  %2792 = vrot.lane.b32.xlu1 %v2427_v54, %s4934_s21  ;;  %v3569_v54 = vld [vmem:[%s8471_s6] sm:$0xff] }
 0x595   : > { %v2968_v21 = vsel %vm1166_vm2, %v7643_v51, %v7758_v23 }
 0x596   : > { %3267 = vmatpush.bf16.msra.mxu0 %v7538_v53  ;;  %3294 = vmatpush.bf16.msrb.mxu3 %v2918_v39  ;;  %v7769_v20 = vpop.permute.xlu1 %2782 }
 0x598   : > { %2828 = vrot.lane.b32.xlu2 %v2482_v38, %s4934_s21  ;;  %v3707_v38 = vld [vmem:[%s8474_s9] sm:$0xff] }
 0x59a   : > { %3268 = vmatpush.bf16.msra.mxu0 %v7569_v25  ;;  %3295 = vmatpush.bf16.msrb.mxu3 %v7527_v36  ;;  %v7781_v44 = vpop.permute.xlu2 %2688  ;;  %v8894_v25 = vld [vmem:[#allocation24_spill] sm:$0xff] }
 0x59b   : > { %2842 = vrot.lane.b32.xlu0 %v2497_v48, %s4934_s21  ;;  %v7786_v11 = vsel %vm1166_vm2, %v7760_v27, %v7781_v44  ;;  %v7928_v48 = vsel %vm1166_vm2, %v7690_v10, %v7760_v27 }
 0x59c   : > { %v2781_v53 = vpop.permute.xlu0 %2780  ;;  %2758 = vrot.lane.b32.xlu1 %v8893_v40, %s4934_s21 }
 0x59d   : > { %3269 = vmatmul.bf16.vlgmr.msra.gmra.mxu0 %v7452_v37  ;;  %v2951_v4 = vsel %vm1166_vm2, %v7672_v3, %v2781_v53 }
 0x59e   : > { %3296 = vmatpush.bf16.msrb.mxu3 %v7546_v0  ;;  %v7792_v55 = vpop.permute.xlu1 %2860  ;;  %v7808_v0 = vsel %vm1166_vm2, %v7661_v8, %v7530_v49  ;;  %v8896_v8 = vld [vmem:[#allocation61_spill] sm:$0xff] }
 0x59f   : > { %v2371_v62 = vsel %vm643_vm1, %v8883_v47, %v8896_v8  ;;  %v8897_v49 = vld [vmem:[#allocation57_spill] sm:$0xff]  ;;  %v2372_v31 = vsel %vm643_vm1, %v8896_v8, %v8899_v52 }
 0x5a0   : > { %2872 = vrot.lane.b32.xlu2 %v7282_v22, %s4934_s21  ;;  %v2428_v22 = vsel %vm588_vm0, %v8890_v42, %v8895_v58 }
 0x5a1   : > { %3297 = vmatmul.bf16.vlgmr.msrb.gmra.mxu3 %v7452_v37 }
 0x5a2   : > { %v7799_v5 = vpop.permute.xlu2 %2784 }
 0x5a3   : > { %2834 = vrot.lane.b32.xlu0 %v8894_v25, %s4934_s21  ;;  %v3614_v25 = vld [vmem:[%s8472_s7 + $0x8] sm:$0xff] }
 0x5a4   : > { %v2859_v36 = vpop.permute.xlu0 %2858  ;;  %2794 = vrot.lane.b32.xlu1 %v2428_v22, %s4934_s21 }
 0x5a5   : > { %v2988_v28 = vsel %vm1166_vm2, %v7692_v35, %v2859_v36  ;;  %v2989_v63 = vsel %vm1166_vm2, %v2859_v36, %v7792_v55 }
 0x5a6   : > { %3282 = vmatpush.bf16.msrb.mxu1 %v2988_v28  ;;  %3310 = vmatpush.bf16.msra.mxu2 %v2989_v63  ;;  %v7821_v35 = vpop.permute.xlu1 %2748  ;;  %v2953_v63 = vsel %vm1166_vm2, %v7769_v20, %v7799_v5 }
 0x5a8   : > { %2760 = vrot.lane.b32.xlu2 %v8897_v49, %s4934_s21 }
 0x5a9   : > { %4678 = vmatmul.msk.bf16.vlgmr.msrb.gmra.mxu1 %vm1405_vm3, %v7534_v16  ;;  %4679 = vmatmul.msk.bf16.vlgmr.msra.gmra.mxu2 %vm1405_vm3, %v7534_v16 }
 0x5aa   : > { %3317 = vmatpush.bf16.msra.mxu1 %v7808_v0  ;;  %3345 = vmatpush.bf16.msrb.mxu2 %v7816_v46  ;;  %v7845_v7 = vpop.permute.xlu2 %2656 }
 0x5ab   : > { %2724 = vrot.lane.b32.xlu0 %v2371_v62, %s4934_s21 }
 0x5ac   : > { %v2747_v47 = vpop.permute.xlu0 %2746  ;;  %2876 = vrot.lane.b32.xlu1 %v7267_v30, %s4934_s21  ;;  %v2952_v30 = vsel %vm1166_vm2, %v2781_v53, %v7769_v20 }
 0x5ad   : > { %v2935_v51 = vsel %vm1166_vm2, %v7714_v32, %v2747_v47 }
 0x5ae   : > { %3318 = vmatpush.bf16.msra.mxu1 %v7836_v34  ;;  %3346 = vmatpush.bf16.msrb.mxu2 %v7842_v50  ;;  %v7855_v6 = vpop.permute.xlu1 %2714  ;;  %v3130_v8 = vpop.f32.mrf.mxu2 }
 0x5b0   : > { %2836 = vrot.lane.b32.xlu2 %v8898_v9, %s4934_s21 }
 0x5b2   : > { %3319 = vmatpush.bf16.msra.mxu1 %v2967_v26  ;;  %3347 = vmatpush.bf16.msrb.mxu2 %v2968_v21  ;;  %v7865_v41 = vpop.permute.xlu2 %2820 }
 0x5b3   : > { %2874 = vrot.lane.b32.xlu0 %v7285_v57, %s4934_s21  ;;  %v2936_v57 = vsel %vm1166_vm2, %v2747_v47, %v7821_v35  ;;  %v3708_v47 = vld [vmem:[%s8474_s9 + $0x8] sm:$0xff] }
 0x5b4   : > { %v2713_v60 = vpop.permute.xlu0 %2712  ;;  %2844 = vrot.lane.b32.xlu1 %v8891_v56, %s4934_s21  ;;  %v4849_v56 = vld [vmem:[#allocation2 + $0x8c] sm:$0xf0] }
 0x5b5   : > { %v2919_v32 = vsel %vm1166_vm2, %v7740_v14, %v2713_v60  ;;  %v2920_v12 = vsel %vm1166_vm2, %v2713_v60, %v7855_v6  ;;  %v2483_v14 = vsel %vm643_vm1, %v8892_v33, %v8900_v17  ;;  %v4507_v33 = vld [vmem:[#allocation2 + $0x40] sm:$0xf] }
 0x5b6   : > { %3320 = vmatpush.bf16.msra.mxu1 %v2951_v4  ;;  %3348 = vmatpush.bf16.msrb.mxu2 %v2952_v30  ;;  %v7873_v3 = vpop.permute.xlu1 %2818  ;;  %v4508_v53 = vor.u32 %v4849_v56, %v4507_v33 }
 0x5b7   : > { %v2969_v36 = vsel %vm1166_vm2, %v7758_v23, %v7873_v3 }
 0x5b8   : > { %2878 = vrot.lane.b32.xlu2 %v7298_v19, %s4934_s21 }
 0x5ba   : > { %3321 = vmatpush.bf16.msra.mxu1 %v2935_v51  ;;  %3349 = vmatpush.bf16.msrb.mxu2 %v2936_v57  ;;  %v7887_v15 = vpop.permute.xlu2 %2716  ;;  %v7981_v51 = vpop.f32.mrf.mxu2 }
 0x5bb   : > { %2726 = vrot.lane.b32.xlu0 %v2372_v31, %s4934_s21  ;;  %v2921_v20 = vsel %vm1166_vm2, %v7855_v6, %v7887_v15 }
 0x5bc   : > { %v7885_v45 = vpop.permute.xlu0 %2652  ;;  %2796 = vrot.lane.b32.xlu1 %v8895_v58, %s4934_s21 }
 0x5bd   : > { %v7942_v10 = vsel %vm1166_vm2, %v7610_v29, %v7885_v45  ;;  %v3613_v29 = vld [vmem:[%s8472_s7] sm:$0xff] }
 0x5be   : > { %3322 = vmatpush.bf16.msra.mxu1 %v2919_v32  ;;  %3350 = vmatpush.bf16.msrb.mxu2 %v2920_v12  ;;  %v7893_v19 = vpop.permute.xlu1 %2692 }
 0x5c0   : > { %2694 = vrot.lane.b32.xlu2 %v8869_v13, %s4934_s21  ;;  %v3570_v13 = vld [vmem:[%s8471_s6 + $0x8] sm:$0xff] }
 0x5c2   : > { %3323 = vmatpush.bf16.msra.mxu1 %v7632_v61  ;;  %3351 = vmatpush.bf16.msrb.mxu2 %v7699_v2  ;;  %v7905_v61 = vpop.permute.xlu2 %2790  ;;  %v8901_v2 = vld [vmem:[#allocation28_spill] sm:$0xff] }
 0x5c3   : > { %2830 = vrot.lane.b32.xlu0 %v2483_v14, %s4934_s21  ;;  %v2373_v43 = vsel %vm643_vm1, %v8899_v52, %v8901_v2 }
 0x5c4   : > { %v7903_v59 = vpop.permute.xlu0 %2690  ;;  %2728 = vrot.lane.b32.xlu1 %v2373_v43, %s4934_s21 }
 0x5c5   : > { %v7987_v52 = vsel %vm1166_vm2, %v7903_v59, %v7893_v19 }
 0x5c6   : > { %3324 = vmatpush.bf16.msra.mxu1 %v7654_v18  ;;  %3352 = vmatpush.bf16.msrb.mxu2 %v7719_v24  ;;  %v7916_v18 = vpop.permute.xlu1 %2654  ;;  %v8902_v24 = vld [vmem:[#allocation52_spill] sm:$0xff] }
 0x5c8   : > { %3578 = vperm.xlu2 %4922, %v3570_v13  }
 0x5c9   : > { %3325 = vmatmul.bf16.vlgmr.msra.gmra.mxu1 %v7452_v37  ;;  %3353 = vmatmul.bf16.vlgmr.msrb.gmra.mxu2 %v7452_v37 }
 0x5ca   : > { %v2869_v42 = vpop.permute.xlu2 %2868 }
 0x5cb   : > { %2762 = vrot.lane.b32.xlu0 %v8902_v24, %s4934_s21  ;;  %v8027_v24 = vsel %vm1166_vm2, %v7916_v18, %v7845_v7 }
 0x5cc   : > { %3573 = vperm.xlu1 %4921, %v3569_v54  }
 0x5cd   : > { %v2863_v1 = vpop.permute.xlu0 %2862 }
 0x5ce   : > { %v2990_v39 = vsel %vm1166_vm2, %v7792_v55, %v2863_v1  ;;  %v7934_v40 = vpop.permute.xlu1 %2750 }
 0x5cf   : > { %3338 = vmatpush.bf16.msrb.mxu0 %v2990_v39  ;;  %v2937_v23 = vsel %vm1166_vm2, %v7821_v35, %v7934_v40 }
 0x5d0   : > { %3711 = vperm.xlu2 %4922, %v3707_v38  }
 0x5d2   : > { %4680 = vmatmul.msk.bf16.vlgmr.msrb.gmra.mxu0 %vm1405_vm3, %v7534_v16  ;;  %v7947_v55 = vpop.permute.xlu2 %2756 }
 0x5d3   : > { %3373 = vmatpush.bf16.msra.mxu0 %v7928_v48  ;;  %2660 = vrot.lane.b32.xlu0 %v4508_v53, %s4934_s21 }
 0x5d4   : > { %3622 = vperm.xlu1 %4921, %v3614_v25  }
 0x5d5   : > { %v7945_v27 = vpop.permute.xlu0 %2658 }
 0x5d6   : > { %v7958_v28 = vpop.permute.xlu1 %2824  ;;  %v3172_v30 = vpop.f32.mrf.mxu1  ;;  %v8006_v2 = vsel %vm1166_vm2, %v7845_v7, %v7945_v27 }
 0x5d7   : > { %3374 = vmatpush.bf16.msra.mxu0 %v7942_v10 }
 0x5da   : > { %v7963_v22 = vpop.permute.xlu2 %2722 }
 0x5db   : > { %3375 = vmatpush.bf16.msra.mxu0 %v2969_v36  ;;  %3617 = vperm.xlu0 %4923, %v3613_v29  }
 0x5dc   : > { %v3144_v62 = vpop.f32.mrf.mxu3 }
 0x5dd   : > { %v2823_v58 = vpop.permute.xlu0 %2822  ;;  %v7968_v49 = vadd.f32 %v3144_v62, %v3130_v8 }
 0x5de   : > { %v2789_v26 = vpop.permute.xlu1 %2788  ;;  %v3174_v14 = vpop.f32.mrf.mxu1  ;;  %v2971_v33 = vsel %vm1166_vm2, %v7865_v41, %v2823_v58 }
 0x5df   : > { %3376 = vmatpush.bf16.msra.mxu0 %v2953_v63  ;;  %v2956_v7 = vsel %vm1166_vm2, %v2789_v26, %v7905_v61 }
 0x5e2   : > { %v7976_v9 = vpop.permute.xlu2 %2826 }
 0x5e3   : > { %3377 = vmatpush.bf16.msra.mxu0 %v2937_v23  ;;  %3716 = vperm.xlu0 %4923, %v3708_v47  }
 0x5e5   : > { %v2787_v21 = vpop.permute.xlu0 %2786  ;;  %v3158_v4 = vpop.f32.mrf.mxu0 }
 0x5e6   : > { %v7979_v35 = vadd.f32 %v3172_v30, %v3158_v4  ;;  %v2867_v60 = vpop.permute.xlu1 %2866  ;;  %v2954_v53 = vsel %vm1166_vm2, %v7799_v5, %v2787_v21 }
 0x5e7   : > { %3378 = vmatpush.bf16.msra.mxu0 %v2921_v20  ;;  %v2993_v57 = vsel %vm1166_vm2, %v2867_v60, %v2869_v42 }
 0x5e8   : > { %3422 = vmatpush.bf16.msra.mxu2 %v2993_v57 }
 0x5ea   : > { %v7991_v31 = vpop.permute.xlu2 %2870 }
 0x5eb   : > { %3379 = vmatpush.bf16.msra.mxu0 %v7808_v0  ;;  %v2994_v12 = vsel %vm1166_vm2, %v2869_v42, %v7991_v31  ;;  %4683 = vmatmul.msk.bf16.vlgmr.msra.gmra.mxu2 %vm1405_vm3, %v7534_v16  ;;  %v3200_v42 = vpop.f32.mrf.mxu2 }
 0x5ec   : > { %3457 = vmatpush.bf16.msrb.mxu2 %v7987_v52 }
 0x5ed   : > { %v2865_v6 = vpop.permute.xlu0 %2864  ;;  %v3160_v17 = vpop.f32.mrf.mxu0 }
 0x5ee   : > { %v2991_v0 = vsel %vm1166_vm2, %v2863_v1, %v2865_v6  ;;  %v2992_v32 = vsel %vm1166_vm2, %v2865_v6, %v2867_v60  ;;  %v8008_v43 = vadd.f32 %v3174_v14, %v3160_v17  ;;  %v2755_v13 = vpop.permute.xlu1 %2754  ;;  %v2972_v1 = vsel %vm1166_vm2, %v2823_v58, %v7958_v28 }
 0x5ef   : > { %3380 = vmatpush.bf16.msra.mxu0 %v7836_v34  ;;  %3366 = vmatpush.bf16.msra.mxu3 %v2991_v0  ;;  %v8000_v34 = vsel %vm1166_vm2, %v7781_v44, %v7903_v59  ;;  %v8015_v44 = vpop.f32.mrf.mxu3  ;;  %v2892_v59 = vsel %vm1166_vm2, %v7885_v45, %v7916_v18  ;;  %v2970_v45 = vsel %vm1166_vm2, %v7873_v3, %v7865_v41 }
 0x5f0   : > { %3394 = vmatpush.bf16.msrb.mxu1 %v2992_v32  ;;  %3458 = vmatpush.bf16.msrb.mxu2 %v8006_v2  ;;  %v2955_v3 = vsel %vm1166_vm2, %v2787_v21, %v2789_v26  ;;  %v2940_v25 = vsel %vm1166_vm2, %v2755_v13, %v7947_v55  ;;  %v2973_v14 = vsel %vm1166_vm2, %v7958_v28, %v7976_v9 }
 0x5f2   : > { %4681 = vmatmul.msk.bf16.vlgmr.msra.gmra.mxu3 %vm1405_vm3, %v7534_v16  ;;  %3381 = vmatmul.bf16.vlgmr.msra.gmra.mxu0 %v7452_v37  ;;  %v8046_v29 = vpop.permute.xlu2 %2828 }
 0x5f3   : > { %3450 = vmatpush.bf16.msrb.mxu0 %v2994_v12  ;;  %3401 = vmatpush.bf16.msrb.mxu3 %v7786_v11  ;;  %v3202_v58 = vpop.f32.mrf.mxu2 }
 0x5f4   : > { %3429 = vmatpush.bf16.msra.mxu1 %v8000_v34  ;;  %3459 = vmatpush.bf16.msrb.mxu2 %v2972_v1 }
 0x5f5   : > { %4682 = vmatmul.msk.bf16.vlgmr.msrb.gmra.mxu1 %vm1405_vm3, %v7534_v16  ;;  %v2753_v54 = vpop.permute.xlu0 %2752  ;;  %v3228_v56 = vpop.f32.mrf.mxu0 }
 0x5f6   : > { %v3214_v39 = vpop.f32.mrf.mxu1  ;;  %v2721_v38 = vpop.permute.xlu1 %2720  ;;  %v2938_v8 = vsel %vm1166_vm2, %v7934_v40, %v2753_v54  ;;  %v2939_v5 = vsel %vm1166_vm2, %v2753_v54, %v2755_v13 }
 0x5f7   : > { %3402 = vmatpush.bf16.msrb.mxu3 %v2892_v59  ;;  %v8039_v18 = vadd.f32 %v3228_v56, %v3214_v39  ;;  %v2924_v62 = vsel %vm1166_vm2, %v2721_v38, %v7963_v22 }
 0x5f8   : > { %3430 = vmatpush.bf16.msra.mxu1 %v8027_v24  ;;  %3460 = vmatpush.bf16.msrb.mxu2 %v2956_v7 }
 0x5fa   : > { %v2873_v6 = vpop.permute.xlu2 %2872 }
 0x5fb   : > { %3403 = vmatpush.bf16.msrb.mxu3 %v2970_v45 }
 0x5fc   : > { %3431 = vmatpush.bf16.msra.mxu1 %v2971_v33  ;;  %v3186_v36 = vpop.f32.mrf.mxu3  ;;  %3461 = vmatpush.bf16.msrb.mxu2 %v2940_v25 }
 0x5fd   : > { %v2719_v41 = vpop.permute.xlu0 %2718  ;;  %v8048_v63 = vadd.f32 %v3200_v42, %v3186_v36  ;;  %v3230_v47 = vpop.f32.mrf.mxu0 }
 0x5fe   : > { %v3216_v23 = vpop.f32.mrf.mxu1  ;;  %v2833_v20 = vpop.permute.xlu1 %2832  ;;  %v2922_v21 = vsel %vm1166_vm2, %v7887_v15, %v2719_v41  ;;  %v2923_v40 = vsel %vm1166_vm2, %v2719_v41, %v2721_v38 }
 0x5ff   : > { %3404 = vmatpush.bf16.msrb.mxu3 %v2954_v53  ;;  %v8055_v26 = vadd.f32 %v3230_v47, %v3216_v23  ;;  %v3242_v0 = vpop.f32.mrf.mxu2  ;;  %v2976_v32 = vsel %vm1166_vm2, %v7945_v27, %v2833_v20  ;;  %v4695_v53 = vld [vmem:[%s5007_s18 + $0x8] sm:$0xf]  ;;  %v4900_v23 = vld [vmem:[%s5007_s18 + $0x5c] sm:$0xf0]  ;;  %v4892_v47 = vld [vmem:[%s5007_s18 + $0x14] sm:$0xf] }
 0x600   : > { %3432 = vmatpush.bf16.msra.mxu1 %v2955_v3  ;;  %3462 = vmatpush.bf16.msrb.mxu2 %v2924_v62  ;;  %v4899_v3 = vld [vmem:[%s5007_s18 + $0x54] sm:$0xf0] }
 0x601   : > { %v4696_v25 = vor.u32 %v4899_v3, %v4695_v53 }
 0x602   : > { %4684 = vmatmul.msk.bf16.vlgmr.msrb.gmra.mxu0 %vm1405_vm3, %v7534_v16 }
 0x603   : > { %3405 = vmatpush.bf16.msrb.mxu3 %v2938_v8 }
 0x604   : > { %3433 = vmatpush.bf16.msra.mxu1 %v2939_v5  ;;  %v3188_v4 = vpop.f32.mrf.mxu3  ;;  %3463 = vmatpush.bf16.msrb.mxu2 %v7786_v11  ;;  %v2995_v11 = vsel %vm1166_vm2, %v7991_v31, %v2873_v6 }
 0x605   : > { %v2841_v30 = vpop.permute.xlu0 %2840  ;;  %v8063_v60 = vadd.f32 %v3202_v58, %v3188_v4 }
 0x606   : > { %v2980_v57 = vsel %vm1166_vm2, %v7893_v19, %v2841_v30  ;;  %v2793_v15 = vpop.permute.xlu1 %2792 }
 0x607   : > { %3406 = vmatpush.bf16.msrb.mxu3 %v2922_v21  ;;  %3485 = vmatpush.bf16.msra.mxu0 %v2980_v57  ;;  %v3244_v13 = vpop.f32.mrf.mxu2 }
 0x608   : > { %3434 = vmatpush.bf16.msra.mxu1 %v2923_v40  ;;  %3464 = vmatpush.bf16.msrb.mxu2 %v2892_v59 }
 0x60b   : > { %3407 = vmatpush.bf16.msrb.mxu3 %v7816_v46  ;;  %3486 = vmatpush.bf16.msra.mxu0 %v2976_v32 }
 0x60c   : > { %3435 = vmatpush.bf16.msra.mxu1 %v7928_v48  ;;  %3465 = vmatmul.bf16.vlgmr.msrb.gmra.mxu2 %v7452_v37  ;;  %v3256_v12 = vpop.f32.mrf.mxu3 }
 0x60d   : > { %v2843_v46 = vpop.permute.xlu0 %2842  ;;  %v8076_v17 = vadd.f32 %v3256_v12, %v3242_v0 }
 0x60e   : > { %v2981_v48 = vsel %vm1166_vm2, %v2841_v30, %v2843_v46  ;;  %v2759_v31 = vpop.permute.xlu1 %2758 }
 0x60f   : > { %3408 = vmatpush.bf16.msrb.mxu3 %v7842_v50  ;;  %3487 = vmatpush.bf16.msra.mxu0 %v2973_v14  ;;  %v8084_v50 = vpop.permute.xlu2 %2760  ;;  %v2941_v28 = vsel %vm1166_vm2, %v7947_v55, %v2759_v31  ;;  %v4697_v14 = vld [vmem:[%s5007_s18 + $0x58] sm:$0xf0] }
 0x610   : > { %3436 = vmatpush.bf16.msra.mxu1 %v7942_v10  ;;  %v2957_v10 = vsel %vm1166_vm2, %v7905_v61, %v2793_v15  ;;  %v2974_v61 = vsel %vm1166_vm2, %v7976_v9, %v8046_v29  ;;  %v2942_v9 = vsel %vm1166_vm2, %v2759_v31, %v8084_v50 }
 0x612   : > { %3409 = vmatmul.bf16.vlgmr.msrb.gmra.mxu3 %v7452_v37 }
 0x613   : > { %3478 = vmatpush.bf16.msra.mxu3 %v2995_v11  ;;  %3437 = vmatmul.bf16.vlgmr.msra.gmra.mxu1 %v7452_v37 }
 0x614   : > { %3488 = vmatpush.bf16.msra.mxu0 %v2957_v10  ;;  %v3258_v59 = vpop.f32.mrf.mxu3 }
 0x615   : > { %v2835_v1 = vpop.permute.xlu0 %2834  ;;  %v8088_v42 = vadd.f32 %v3258_v59, %v3244_v13 }
 0x616   : > { %v2977_v54 = vsel %vm1166_vm2, %v2833_v20, %v2835_v1  ;;  %v8093_v45 = vpop.permute.xlu1 %2794  ;;  %v4705_v20 = vld [vmem:[%s5007_s18 + $0x60] sm:$0xf0] }
 0x617   : > { %3513 = vmatpush.bf16.msrb.mxu3 %v2981_v48  ;;  %v2837_v39 = vpop.permute.xlu2 %2836  ;;  %v2958_v55 = vsel %vm1166_vm2, %v2793_v15, %v8093_v45  ;;  %v4708_v4 = vor.u32 %v4892_v47, %v4705_v20  ;;  %v4891_v48 = vld [vmem:[%s5007_s18 + $0xc] sm:$0xf]  ;;  %v4737_v47 = vld [vmem:[%s5007_s18 + $0x80] sm:$0xf0] }
 0x618   : > { %3489 = vmatpush.bf16.msra.mxu0 %v2941_v28  ;;  %v2978_v12 = vsel %vm1166_vm2, %v2835_v1, %v2837_v39  ;;  %v4700_v13 = vor.u32 %v4891_v48, %v4697_v14  ;;  %v4713_v39 = vld [vmem:[%s5007_s18 + $0x68] sm:$0xf0]  ;;  %v4751_v14 = vld [vmem:[%s5007_s18 + $0x40] sm:$0xf] }
 0x619   : > { %v4745_v48 = vld [vmem:[%s5007_s18 + $0x88] sm:$0xf0] }
 0x61a   : > { %v3270_v38 = vpop.f32.mrf.mxu0 }
 0x61b   : > { %3514 = vmatpush.bf16.msrb.mxu3 %v2977_v54 }
 0x61d   : > { %v2725_v56 = vpop.permute.xlu0 %2724 }
 0x61e   : > { %v2925_v33 = vsel %vm1166_vm2, %v7963_v22, %v2725_v56  ;;  %v2877_v7 = vpop.permute.xlu1 %2876 }
 0x61f   : > { %3515 = vmatpush.bf16.msrb.mxu3 %v2974_v61  ;;  %3490 = vmatpush.bf16.msra.mxu0 %v2925_v33  ;;  %v2879_v36 = vpop.permute.xlu2 %2878  ;;  %v8141_v61 = vld [vmem:[%s8473_s8] sm:$0xff] }
 0x620   : > { %v2998_v8 = vsel %vm1166_vm2, %v2877_v7, %v2879_v36  ;;  %v4901_v36 = vld [vmem:[%s5007_s18 + $0x64] sm:$0xf0] }
 0x622   : > { %4685 = vmatmul.msk.bf16.vlgmr.msra.gmra.mxu3 %vm1405_vm3, %v7534_v16  ;;  %v3272_v57 = vpop.f32.mrf.mxu0 }
 0x623   : > { %3516 = vmatpush.bf16.msrb.mxu3 %v2958_v55  ;;  %3491 = vmatpush.bf16.msra.mxu0 %v8000_v34  ;;  %v4703_v34 = vld [vmem:[%s5007_s18 + $0x10] sm:$0xf] }
 0x624   : > { %v3298_v21 = vpop.f32.mrf.mxu3  ;;  %v4704_v40 = vor.u32 %v4900_v23, %v4703_v34  ;;  %v4902_v55 = vld [vmem:[%s5007_s18 + $0x6c] sm:$0xf0]  ;;  %v4904_v34 = vld [vmem:[%s5007_s18 + $0x7c] sm:$0xf0]  ;;  %v4896_v23 = vld [vmem:[%s5007_s18 + $0x34] sm:$0xf] }
 0x625   : > { %v2875_v22 = vpop.permute.xlu0 %2874 }
 0x626   : > { %v2996_v41 = vsel %vm1166_vm2, %v2873_v6, %v2875_v22  ;;  %v2997_v58 = vsel %vm1166_vm2, %v2875_v22, %v2877_v7  ;;  %v3284_v5 = vpop.f32.mrf.mxu1  ;;  %v2845_v30 = vpop.permute.xlu1 %2844  ;;  %v4894_v7 = vld [vmem:[%s5007_s18 + $0x24] sm:$0xf] }
 0x627   : > { %3517 = vmatpush.bf16.msrb.mxu3 %v2942_v9  ;;  %3492 = vmatpush.bf16.msra.mxu0 %v8027_v24  ;;  %v8114_v62 = vadd.f32 %v3284_v5, %v3270_v38  ;;  %v2982_v24 = vsel %vm1166_vm2, %v2843_v46, %v2845_v30  ;;  %v4721_v38 = vld [vmem:[%s5007_s18 + $0x70] sm:$0xf0]  ;;  %v2695_v22 = vpop.permute.xlu2 %2694 }
 0x628   : > { %3506 = vmatpush.bf16.msrb.mxu1 %v2996_v41  ;;  %3534 = vmatpush.bf16.msra.mxu2 %v2997_v58  ;;  %v4724_v3 = vor.u32 %v4894_v7, %v4721_v38  ;;  %v4895_v41 = vld [vmem:[%s5007_s18 + $0x2c] sm:$0xf]  ;;  %v4729_v58 = vld [vmem:[%s5007_s18 + $0x78] sm:$0xf0]  ;;  %v2911_v5 = vsel %vm1166_vm2, %v7893_v19, %v2695_v22 }
 0x62a   : > { %3493 = vmatmul.bf16.vlgmr.msra.gmra.mxu0 %v7452_v37 }
 0x62b   : > { %3562 = vmatpush.bf16.msrb.mxu0 %v2998_v8  ;;  %4686 = vmatmul.msk.bf16.vlgmr.msrb.gmra.mxu1 %vm1405_vm3, %v7534_v16  ;;  %v4735_v8 = vld [vmem:[%s5007_s18 + $0x30] sm:$0xf] }
 0x62c   : > { %3814 = vmatpush.bf16.msrb.mxu2 %v4696_v25  ;;  %3541 = vmatpush.bf16.msra.mxu1 %v2982_v24  ;;  %v3312_v0 = vpop.f32.mrf.mxu2  ;;  %v3300_v31 = vpop.f32.mrf.mxu3  ;;  %v4711_v25 = vld [vmem:[%s5007_s18 + $0x18] sm:$0xf]  ;;  %v4727_v24 = vld [vmem:[%s5007_s18 + $0x28] sm:$0xf] }
 0x62d   : > { %4687 = vmatmul.msk.bf16.vlgmr.msra.gmra.mxu2 %vm1405_vm3, %v7534_v16  ;;  %v2727_v6 = vpop.permute.xlu0 %2726  ;;  %v8125_v15 = vadd.f32 %v3312_v0, %v3298_v21  ;;  %v4712_v20 = vor.u32 %v4901_v36, %v4711_v25  ;;  %v4732_v21 = vor.u32 %v4895_v41, %v4729_v58 }
 0x62e   : > { %v2926_v32 = vsel %vm1166_vm2, %v2725_v56, %v2727_v6  ;;  %v3286_v11 = vpop.f32.mrf.mxu1  ;;  %v2797_v10 = vpop.permute.xlu1 %2796  ;;  %v4719_v56 = vld [vmem:[%s5007_s18 + $0x20] sm:$0xf] }
 0x62f   : > { %3842 = vmatpush.bf16.msra.mxu0 %v4704_v40  ;;  %3518 = vmatpush.bf16.msrb.mxu3 %v2926_v32  ;;  %v8129_v46 = vadd.f32 %v3286_v11, %v3272_v57  ;;  %v4720_v53 = vor.u32 %v4902_v55, %v4719_v56  ;;  %v4736_v40 = vor.u32 %v4904_v34, %v4735_v8  ;;  %v4903_v57 = vld [vmem:[%s5007_s18 + $0x74] sm:$0xf0] }
 0x630   : > { %3856 = vmatpush.bf16.msra.mxu2 %v4708_v4  ;;  %3542 = vmatpush.bf16.msra.mxu1 %v2978_v12  ;;  %v4740_v4 = vor.u32 %v4896_v23, %v4737_v47  ;;  %v4897_v12 = vld [vmem:[%s5007_s18 + $0x3c] sm:$0xf] }
 0x633   : > { %3519 = vmatpush.bf16.msrb.mxu3 %v7987_v52  ;;  %v4893_v52 = vld [vmem:[%s5007_s18 + $0x1c] sm:$0xf] }
 0x634   : > { %v3314_v28 = vpop.f32.mrf.mxu2  ;;  %v4716_v33 = vor.u32 %v4893_v52, %v4713_v39  ;;  %v4905_v39 = vld [vmem:[%s5007_s18 + $0x84] sm:$0xf0] }
 0x635   : > { %v2831_v59 = vpop.permute.xlu0 %2830  ;;  %v8134_v54 = vadd.f32 %v3314_v28, %v3300_v31  ;;  %v4753_v28 = vld [vmem:[%s5007_s18 + $0x90] sm:$0xf0] }
 0x636   : > { %v2975_v1 = vsel %vm1166_vm2, %v8046_v29, %v2831_v59  ;;  %v2729_v9 = vpop.permute.xlu1 %2728  ;;  %v4898_v59 = vld [vmem:[%s5007_s18 + $0x44] sm:$0xf] }
 0x637   : > { %3520 = vmatpush.bf16.msrb.mxu3 %v8006_v2  ;;  %3543 = vmatpush.bf16.msra.mxu1 %v2975_v1  ;;  %v2959_v2 = vsel %vm1166_vm2, %v8093_v45, %v2797_v10  ;;  %v2927_v45 = vsel %vm1166_vm2, %v2727_v6, %v2729_v9  ;;  %v4728_v6 = vor.u32 %v4903_v57, %v4727_v24 }
 0x638   : > { %v4748_v10 = vor.u32 %v4897_v12, %v4745_v48  ;;  %v4756_v52 = vor.u32 %v4898_v59, %v4753_v28  ;;  %v8255_v48 = vpop.permute.xlu2 %3578 }
 0x63a   : > { %3521 = vmatmul.bf16.vlgmr.msrb.gmra.mxu3 %v7452_v37  ;;  %4688 = vmatmul.msk.bf16.vlgmr.msrb.gmra.mxu0 %vm1405_vm3, %v7534_v16 }
 0x63b   : > { %3828 = vmatpush.bf16.msra.mxu3 %v4700_v13  ;;  %3544 = vmatpush.bf16.msra.mxu1 %v2959_v2  ;;  %v4906_v13 = vld [vmem:[%s5007_s18 + $0x8c] sm:$0xf0] }
 0x63c   : > { %3898 = vmatpush.bf16.msrb.mxu0 %v4720_v53  ;;  %v4752_v1 = vor.u32 %v4906_v13, %v4751_v14 }
 0x63d   : > { %4757 = vmatmul.msk.bf16.vlgmr.msrb.gmra.mxu2 %vm1405_vm3, %v8141_v61  ;;  %v2763_v29 = vpop.permute.xlu0 %2762 }
 0x63e   : > { %3912 = vmatpush.bf16.msrb.mxu2 %v4724_v3  ;;  %v2943_v16 = vsel %vm1166_vm2, %v8084_v50, %v2763_v29 }
 0x63f   : > { %3884 = vmatpush.bf16.msrb.mxu3 %v4716_v33  ;;  %3545 = vmatpush.bf16.msra.mxu1 %v2943_v16 }
 0x643   : > { %3546 = vmatpush.bf16.msra.mxu1 %v2927_v45 }
 0x645   : > { %v2661_v50 = vpop.permute.xlu0 %2660 }
 0x646   : > { %v2895_v19 = vsel %vm1166_vm2, %v7945_v27, %v2661_v50  ;;  %v3326_v30 = vpop.f32.mrf.mxu1 }
 0x647   : > { %3547 = vmatpush.bf16.msra.mxu1 %v2911_v5 }
 0x64a   : > { %4758 = vmatmul.msk.bf16.vlgmr.msra.gmra.mxu3 %vm1405_vm3, %v8141_v61  ;;  %4759 = vmatmul.msk.bf16.vlgmr.msra.gmra.mxu0 %vm1405_vm3, %v8141_v61 }
 0x64b   : > { %3548 = vmatpush.bf16.msra.mxu1 %v2895_v19  ;;  %3940 = vmatpush.bf16.msra.mxu3 %v4732_v21 }
 0x64c   : > { %3954 = vmatpush.bf16.msra.mxu0 %v4736_v40  ;;  %v3354_v38 = vpop.f32.mrf.mxu2 }
 0x64d   : > { %4760 = vmatmul.msk.bf16.vlgmr.msra.gmra.mxu2 %vm1405_vm3, %v8141_v61  ;;  %v8263_v59 = vpop.permute.xlu0 %3617 }
 0x64e   : > { %3968 = vmatpush.bf16.msra.mxu2 %v4740_v4  ;;  %3549 = vmatmul.bf16.vlgmr.msra.gmra.mxu1 %v7452_v37  ;;  %v3328_v32 = vpop.f32.mrf.mxu1  ;;  %v4743_v37 = vld [vmem:[%s5007_s18 + $0x38] sm:$0xf] }
 0x64f   : > { %3870 = vmatpush.bf16.msrb.mxu1 %v4712_v20  ;;  %v3340_v27 = vpop.f32.mrf.mxu0  ;;  %v4744_v56 = vor.u32 %v4905_v39, %v4743_v37 }
 0x650   : > { %v8181_v0 = vadd.f32 %v3340_v27, %v3326_v30 }
 0x653   : > { %3926 = vmatpush.bf16.msra.mxu1 %v4728_v6 }
 0x654   : > { %v3356_v9 = vpop.f32.mrf.mxu2 }
 0x657   : > { %v3342_v11 = vpop.f32.mrf.mxu0 }
 0x658   : > { %v8186_v31 = vadd.f32 %v3342_v11, %v3328_v32 }
 0x65a   : > { %4762 = vmatmul.msk.bf16.vlgmr.msrb.gmra.mxu3 %vm1405_vm3, %v8141_v61  ;;  %4763 = vmatmul.msk.bf16.vlgmr.msrb.gmra.mxu0 %vm1405_vm3, %v8141_v61 }
 0x65b   : > { %3996 = vmatpush.bf16.msrb.mxu3 %v4748_v10  ;;  %4010 = vmatpush.bf16.msrb.mxu0 %v4752_v1  ;;  %v8259_v10 = vpop.permute.xlu1 %3573 }
 0x65c   : > { %v3581_v1 = vmul.f32 %v8259_v10, %v7968_v49  ;;  %v3583_v37 = vmul.f32 %v8259_v10, %v8048_v63  ;;  %v3147_v49 = vadd.f32 %v8015_v44, %v7981_v51 }
 0x65d   : > { %4764 = vmatmul.msk.bf16.vlgmr.msrb.gmra.mxu2 %vm1405_vm3, %v8141_v61 }
 0x65e   : > { %4024 = vmatpush.bf16.msrb.mxu2 %v4756_v52  ;;  %4761 = vmatmul.msk.bf16.vlgmr.msrb.gmra.mxu1 %vm1405_vm3, %v8141_v61 }
 0x65f   : > { %3982 = vmatpush.bf16.msrb.mxu1 %v4744_v56  ;;  %v3625_v56 = vadd.f32 %v8263_v59, %v3581_v1 }
 0x66a   : > { %4766 = vmatmul.msk.bf16.vlgmr.msra.gmra.mxu3 %vm1405_vm3, %v8141_v61  ;;  %4767 = vmatmul.msk.bf16.vlgmr.msra.gmra.mxu0 %vm1405_vm3, %v8141_v61 }
 0x66d   : > { %4768 = vmatmul.msk.bf16.vlgmr.msra.gmra.mxu2 %vm1405_vm3, %v8141_v61 }
 0x66e   : > { %4765 = vmatmul.msk.bf16.vlgmr.msra.gmra.mxu1 %vm1405_vm3, %v8141_v61  ;;  %v3424_v25 = vpop.f32.mrf.mxu2 }
 0x66f   : > { %v3382_v33 = vpop.f32.mrf.mxu0 }
 0x672   : > { %v3396_v55 = vpop.f32.mrf.mxu1 }
 0x673   : > { %v8209_v7 = vadd.f32 %v3396_v55, %v3382_v33  ;;  %v3582_v33 = vmul.f32 %v8259_v10, %v7979_v35  ;;  %v8274_v55 = vpop.permute.xlu2 %3711 }
 0x675   : > { %v3368_v53 = vpop.f32.mrf.mxu3  ;;  %v3626_v63 = vadd.f32 %v8263_v59, %v3582_v33  ;;  %v8297_v33 = vpop.permute.xlu0 %3716 }
 0x676   : > { %v8211_v3 = vadd.f32 %v3368_v53, %v3354_v38  ;;  %v3426_v41 = vpop.f32.mrf.mxu2  ;;  %v3627_v38 = vadd.f32 %v8263_v59, %v3583_v37  ;;  %v3584_v53 = vmul.f32 %v8259_v10, %v8039_v18  ;;  %v3597_v18 = vmul.f32 %v8255_v48, %v3147_v49 }
 0x677   : > { %v3384_v2 = vpop.f32.mrf.mxu0  ;;  %v3600_v49 = vmul.f32 %v8255_v48, %v8055_v26 }
 0x678   : > { %v3628_v35 = vadd.f32 %v8263_v59, %v3584_v53 }
 0x67a   : > { %v3398_v29 = vpop.f32.mrf.mxu1  ;;  %4770 = vmatmul.msk.bf16.vlgmr.msrb.gmra.mxu3 %vm1405_vm3, %v8141_v61  ;;  %4771 = vmatmul.msk.bf16.vlgmr.msrb.gmra.mxu0 %vm1405_vm3, %v8141_v61 }
 0x67b   : > { %v8213_v16 = vadd.f32 %v3398_v29, %v3384_v2 }
 0x67d   : > { %4772 = vmatmul.msk.bf16.vlgmr.msrb.gmra.mxu2 %vm1405_vm3, %v8141_v61  ;;  %v3370_v45 = vpop.f32.mrf.mxu3 }
 0x67e   : > { %v8221_v22 = vadd.f32 %v3370_v45, %v3356_v9  ;;  %4769 = vmatmul.msk.bf16.vlgmr.msrb.gmra.mxu1 %vm1405_vm3, %v8141_v61  ;;  %v3657_v45 = vmax.f32 %v3625_v56, 0.0  ;;  %v3598_v56 = vmul.f32 %v8255_v48, %v8008_v43  ;;  %v8906_v43 = vld [vmem:[#allocation19_spill] sm:$0xff] }
 0x67f   : > { %v8227_v8 = vpop.f32.mrf.mxu0 }
 0x687   : > { %v8231_v47 = vpop.f32.mrf.mxu0 }
 0x68f   : > { %v3466_v23 = vpop.f32.mrf.mxu2 }
 0x690   : > { %v8235_v40 = vpop.f32.mrf.mxu1 }
 0x695   : > { %v3410_v36 = vpop.f32.mrf.mxu3 }
 0x696   : > { %v8225_v58 = vadd.f32 %v3424_v25, %v3410_v36  ;;  %v8287_v25 = vpop.permute.xlu1 %3622  ;;  %v3659_v36 = vmax.f32 %v3627_v38, 0.0 }
 0x697   : > { %v3468_v21 = vpop.f32.mrf.mxu2  ;;  %v3641_v37 = vadd.f32 %v8287_v25, %v3597_v18  ;;  %v3644_v26 = vadd.f32 %v8287_v25, %v3600_v49  ;;  %v3588_v49 = vmul.f32 %v8259_v10, %v8181_v0 }
 0x698   : > { %v8245_v57 = vpop.f32.mrf.mxu1 }
 0x69d   : > { %v3412_v5 = vpop.f32.mrf.mxu3 }
 0x69e   : > { %v8229_v34 = vadd.f32 %v3426_v41, %v3412_v5 }
 0x6a5   : > { %v3480_v50 = vpop.f32.mrf.mxu3 }
 0x6a6   : > { %v8233_v20 = vadd.f32 %v3480_v50, %v3466_v23  ;;  %v3658_v23 = vmax.f32 %v3626_v63, 0.0 }
 0x6a7   : > { %v8237_v61 = vpop.f32.mrf.mxu0 }
 0x6a8   : > { %v8251_v32 = vpop.f32.mrf.mxu1 }
 0x6ad   : > { %v3482_v4 = vpop.f32.mrf.mxu3 }
 0x6ae   : > { %v8239_v19 = vadd.f32 %v3482_v4, %v3468_v21  ;;  %v3660_v21 = vmax.f32 %v3628_v35, 0.0 }
 0x6af   : > { %v8243_v24 = vpop.f32.mrf.mxu0 }
 0x6b0   : > { %v8241_v30 = vpop.f32.mrf.mxu2  ;;  %v8261_v13 = vpop.f32.mrf.mxu1 }
 0x6b7   : > { %v8249_v27 = vpop.f32.mrf.mxu0 }
 0x6b8   : > { %v8247_v6 = vpop.f32.mrf.mxu2 }
 0x6bd   : > { %v8253_v11 = vpop.f32.mrf.mxu3 }
 0x6bf   : > { %v8257_v14 = vpop.f32.mrf.mxu0 }
 0x6c0   : > { %v3816_v12 = vpop.f32.mrf.mxu2 }
 0x6c1   : > { %v3817_v2 = vadd.f32 %v3816_v12, %v8274_v55  ;;  %v3599_v12 = vmul.f32 %v8255_v48, %v8063_v60 }
 0x6c3   : > { %v4031_v5 = vadd.f32 %v3817_v2, %v3657_v45  ;;  %v3643_v53 = vadd.f32 %v8287_v25, %v3599_v12  ;;  %v8903_v2 = vld [vmem:[#allocation33_spill] sm:$0xff]  ;;  %v3642_v45 = vadd.f32 %v8287_v25, %v3598_v56  ;;  %v3587_v12 = vmul.f32 %v8259_v10, %v8125_v15 }
 0x6c5   : > { %v8265_v28 = vpop.f32.mrf.mxu3  ;;  %v4063_v63 = vmul.f32 %v4031_v5, %v8903_v2 }
 0x6c7   : > { %v3844_v39 = vpop.f32.mrf.mxu0 }
 0x6c8   : > { %v3818_v52 = vpop.f32.mrf.mxu2  ;;  %v3845_v29 = vadd.f32 %v3844_v39, %v8274_v55 }
 0x6c9   : > { %v3819_v60 = vadd.f32 %v3818_v52, %v8297_v33 }
 0x6ca   : > { %v4033_v50 = vadd.f32 %v3845_v29, %v3659_v36  ;;  %v8904_v29 = vld [vmem:[#allocation39_spill] sm:$0xff]  ;;  %v8905_v36 = vld [vmem:[#allocation37_spill] sm:$0xff] }
 0x6cb   : > { %v8284_v9 = vpop.f32.mrf.mxu1 }
 0x6cd   : > { %v3830_v41 = vpop.f32.mrf.mxu3 }
 0x6ce   : > { %v3831_v51 = vadd.f32 %v3830_v41, %v8274_v55  ;;  %v4065_v41 = vmul.f32 %v4033_v50, %v8905_v36  ;;  %v3674_v50 = vmax.f32 %v3642_v45, 0.0 }
 0x6cf   : > { %v3846_v1 = vpop.f32.mrf.mxu0 }
 0x6d0   : > { %v3858_v44 = vpop.f32.mrf.mxu2  ;;  %v4032_v39 = vadd.f32 %v3831_v51, %v3658_v23  ;;  %v3847_v23 = vadd.f32 %v3846_v1, %v8297_v33  ;;  %v3585_v1 = vmul.f32 %v8259_v10, %v8076_v17 }
 0x6d1   : > { %v3859_v4 = vadd.f32 %v3858_v44, %v8274_v55  ;;  %v3673_v44 = vmax.f32 %v3641_v37, 0.0 }
 0x6d2   : > { %v4064_v35 = vmul.f32 %v4032_v39, %v8904_v29  ;;  %v3629_v15 = vadd.f32 %v8263_v59, %v3585_v1 }
 0x6d3   : > { %v4034_v38 = vadd.f32 %v3859_v4, %v3660_v21  ;;  %v8309_v51 = vpop.f32.mrf.mxu1  ;;  %v3675_v4 = vmax.f32 %v3643_v53, 0.0  ;;  %v4047_v39 = vadd.f32 %v3819_v60, %v3673_v44  ;;  %v3586_v60 = vmul.f32 %v8259_v10, %v8114_v62 }
 0x6d4   : > { %v4097_v5 = vpack.c.bf16 %v4064_v35, %v4063_v63  ;;  %v3676_v63 = vmax.f32 %v3644_v26, 0.0 }
 0x6d5   : > { %v4066_v18 = vmul.f32 %v4034_v38, %v8906_v43  ;;  %v3832_v52 = vpop.f32.mrf.mxu3  ;;  %v4049_v37 = vadd.f32 %v3847_v23, %v3675_v4  ;;  %v4079_v17 = vmul.f32 %v4047_v39, %v8903_v2  ;;  %v3630_v0 = vadd.f32 %v8263_v59, %v3586_v60 }
 0x6d6   : > { %4113 = vst [vmem:[%s6217_s28 + $0x8] sm:$0xff] %v4097_v5  ;;  %v3833_v56 = vadd.f32 %v3832_v52, %v8297_v33  ;;  %v3632_v23 = vadd.f32 %v8263_v59, %v3588_v49  ;;  %v3661_v52 = vmax.f32 %v3629_v15, 0.0  ;;  %v3602_v2 = vmul.f32 %v8255_v48, %v8129_v46 }
 0x6d7   : > { %v4098_v21 = vpack.c.bf16 %v4066_v18, %v4065_v41  ;;  %v3900_v35 = vpop.f32.mrf.mxu0  ;;  %v3631_v18 = vadd.f32 %v8263_v59, %v3587_v12  ;;  %v4081_v26 = vmul.f32 %v4049_v37, %v8905_v36  ;;  %v3603_v36 = vmul.f32 %v8255_v48, %v8134_v54 }
 0x6d8   : > { %v3860_v38 = vpop.f32.mrf.mxu2  ;;  %v4048_v41 = vadd.f32 %v3833_v56, %v3674_v50  ;;  %v3601_v56 = vmul.f32 %v8255_v48, %v8088_v42  ;;  %v3604_v37 = vmul.f32 %v8255_v48, %v8186_v31  ;;  %v3646_v60 = vadd.f32 %v8287_v25, %v3602_v2  ;;  %v8908_v31 = vld [vmem:[#allocation35_spill] sm:$0xff] }
 0x6d9   : > { %4114 = vst [vmem:[%s6217_s28 + $0x10] sm:$0xff] %v4098_v21  ;;  %v3861_v53 = vadd.f32 %v3860_v38, %v8297_v33  ;;  %v3901_v21 = vadd.f32 %v3900_v35, %v8274_v55  ;;  %v3663_v39 = vmax.f32 %v3631_v18, 0.0  ;;  %v3662_v38 = vmax.f32 %v3630_v0, 0.0  ;;  %v8907_v18 = vld [vmem:[#allocation13_spill] sm:$0xff] }
 0x6da   : > { %v4080_v44 = vmul.f32 %v4048_v41, %v8904_v29  ;;  %v3645_v42 = vadd.f32 %v8287_v25, %v3601_v56  ;;  %v3647_v54 = vadd.f32 %v8287_v25, %v3603_v36  ;;  %v3648_v0 = vadd.f32 %v8287_v25, %v3604_v37 }
 0x6db   : > { %v4050_v45 = vadd.f32 %v3861_v53, %v3676_v63  ;;  %v3872_v4 = vpop.f32.mrf.mxu1  ;;  %v4037_v46 = vadd.f32 %v3901_v21, %v3663_v39  ;;  %v3664_v63 = vmax.f32 %v3632_v23, 0.0  ;;  %v8909_v23 = vld [vmem:[#allocation7_spill] sm:$0xff]  ;;  %v3591_v2 = vmul.f32 %v8259_v10, %v8225_v58 }
 0x6dc   : > { %v4105_v62 = vpack.c.bf16 %v4080_v44, %v4079_v17  ;;  %v3873_v12 = vadd.f32 %v3872_v4, %v8274_v55  ;;  %v3679_v39 = vmax.f32 %v3647_v54, 0.0  ;;  %v3590_v36 = vmul.f32 %v8259_v10, %v8209_v7 }
 0x6dd   : > { %v4082_v5 = vmul.f32 %v4050_v45, %v8906_v43  ;;  %v3886_v50 = vpop.f32.mrf.mxu3  ;;  %v3453_v45 = vadd.f32 %v8227_v8, %v8235_v40  ;;  %v3677_v8 = vmax.f32 %v3645_v42, 0.0  ;;  %v3680_v37 = vmax.f32 %v3648_v0, 0.0 }
 0x6de   : > { %4121 = vst [vmem:[%s6217_s28 + $0x58] sm:$0xff] %v4105_v62  ;;  %v4035_v43 = vadd.f32 %v3873_v12, %v3661_v52  ;;  %v3887_v1 = vadd.f32 %v3886_v50, %v8274_v55  ;;  %v3589_v52 = vmul.f32 %v8259_v10, %v8211_v3  ;;  %v3678_v50 = vmax.f32 %v3646_v60, 0.0 }
 0x6df   : > { %v4106_v29 = vpack.c.bf16 %v4082_v5, %v4081_v26  ;;  %v3902_v35 = vpop.f32.mrf.mxu0  ;;  %v4069_v26 = vmul.f32 %v4037_v46, %v8909_v23  ;;  %v8910_v5 = vld [vmem:[#allocation11_spill] sm:$0xff]  ;;  %v3634_v7 = vadd.f32 %v8263_v59, %v3590_v36  ;;  %v3455_v60 = vadd.f32 %v8231_v47, %v8245_v57 }
 0x6e0   : > { %v3914_v49 = vpop.f32.mrf.mxu2  ;;  %v4036_v41 = vadd.f32 %v3887_v1, %v3662_v38  ;;  %v4067_v17 = vmul.f32 %v4035_v43, %v8907_v18  ;;  %v3903_v4 = vadd.f32 %v3902_v35, %v8297_v33  ;;  %v3592_v43 = vmul.f32 %v8259_v10, %v3453_v45 }
 0x6e1   : > { %4122 = vst [vmem:[%s6217_s28 + $0x60] sm:$0xff] %v4106_v29  ;;  %v3915_v53 = vadd.f32 %v3914_v49, %v8274_v55  ;;  %v3635_v35 = vadd.f32 %v8263_v59, %v3591_v2  ;;  %v3537_v36 = vadd.f32 %v8241_v30, %v8253_v11  ;;  %v3593_v11 = vmul.f32 %v8259_v10, %v8233_v20 }
 0x6e2   : > { %v4068_v44 = vmul.f32 %v4036_v41, %v8908_v31  ;;  %v4053_v49 = vadd.f32 %v3903_v4, %v3679_v39  ;;  %v3636_v42 = vadd.f32 %v8263_v59, %v3592_v43 }
 0x6e3   : > { %v4038_v15 = vadd.f32 %v3915_v53, %v3664_v63  ;;  %v3874_v62 = vpop.f32.mrf.mxu1  ;;  %v3633_v63 = vadd.f32 %v8263_v59, %v3589_v52  ;;  %v3667_v47 = vmax.f32 %v3635_v35, 0.0  ;;  %v3666_v52 = vmax.f32 %v3634_v7, 0.0  ;;  %v8914_v35 = vld [vmem:[#allocation34_spill] sm:$0xff] }
 0x6e4   : > { %v4099_v12 = vpack.c.bf16 %v4068_v44, %v4067_v17  ;;  %v3875_v40 = vadd.f32 %v3874_v62, %v8297_v33  ;;  %v4085_v45 = vmul.f32 %v4053_v49, %v8909_v23  ;;  %v3606_v23 = vmul.f32 %v8255_v48, %v8213_v16 }
 0x6e5   : > { %v4070_v21 = vmul.f32 %v4038_v15, %v8910_v5  ;;  %v3888_v56 = vpop.f32.mrf.mxu3  ;;  %v3665_v4 = vmax.f32 %v3633_v63, 0.0  ;;  %v3668_v2 = vmax.f32 %v3636_v42, 0.0  ;;  %v3509_v16 = vadd.f32 %v8251_v32, %v8237_v61  ;;  %v8913_v63 = vld [vmem:[#allocation3_spill] sm:$0xff] }
 0x6e6   : > { %4115 = vst [vmem:[%s6217_s28 + $0x18] sm:$0xff] %v4099_v12  ;;  %v4051_v38 = vadd.f32 %v3875_v40, %v3677_v8  ;;  %v3889_v3 = vadd.f32 %v3888_v56, %v8297_v33  ;;  %v3595_v42 = vmul.f32 %v8259_v10, %v3537_v36 }
 0x6e7   : > { %v4100_v29 = vpack.c.bf16 %v4070_v21, %v4069_v26  ;;  %v3956_v58 = vpop.f32.mrf.mxu0  ;;  %v3605_v26 = vmul.f32 %v8255_v48, %v8221_v22  ;;  %v3608_v22 = vmul.f32 %v8255_v48, %v3455_v60  ;;  %v3594_v7 = vmul.f32 %v8259_v10, %v3509_v16 }
 0x6e8   : > { %v3916_v1 = vpop.f32.mrf.mxu2  ;;  %v4052_v53 = vadd.f32 %v3889_v3, %v3678_v50  ;;  %v4083_v15 = vmul.f32 %v4051_v38, %v8907_v18  ;;  %v3957_v44 = vadd.f32 %v3956_v58, %v8274_v55  ;;  %v3650_v38 = vadd.f32 %v8287_v25, %v3606_v23 }
 0x6e9   : > { %4116 = vst [vmem:[%s6217_s28 + $0x20] sm:$0xff] %v4100_v29  ;;  %v3917_v46 = vadd.f32 %v3916_v1, %v8297_v33  ;;  %v3649_v39 = vadd.f32 %v8287_v25, %v3605_v26  ;;  %v3565_v3 = vadd.f32 %v8249_v27, %v8284_v9  ;;  %v8911_v1 = vld [vmem:[#allocation23_spill] sm:$0xff]  ;;  %v3652_v58 = vadd.f32 %v8287_v25, %v3608_v22 }
 0x6ea   : > { %v4084_v54 = vmul.f32 %v4052_v53, %v8908_v31  ;;  %v3607_v31 = vmul.f32 %v8255_v48, %v8229_v34  ;;  %v4041_v40 = vadd.f32 %v3957_v44, %v3667_v47  ;;  %v3682_v44 = vmax.f32 %v3650_v38, 0.0 }
 0x6eb   : > { %v4054_v41 = vadd.f32 %v3917_v46, %v3680_v37  ;;  %v3928_v0 = vpop.f32.mrf.mxu1  ;;  %v8912_v37 = vld [vmem:[#allocation15_spill] sm:$0xff]  ;;  %v3681_v27 = vmax.f32 %v3649_v39, 0.0  ;;  %v3638_v47 = vadd.f32 %v8263_v59, %v3594_v7  ;;  %v3567_v22 = vadd.f32 %v8257_v14, %v8309_v51 }
 0x6ec   : > { %v4107_v21 = vpack.c.bf16 %v4084_v54, %v4083_v15  ;;  %v3929_v18 = vadd.f32 %v3928_v0, %v8274_v55  ;;  %v3651_v56 = vadd.f32 %v8287_v25, %v3607_v31  ;;  %v4073_v53 = vmul.f32 %v4041_v40, %v8913_v63 }
 0x6ed   : > { %v4086_v17 = vmul.f32 %v4054_v41, %v8910_v5  ;;  %v3942_v57 = vpop.f32.mrf.mxu3  ;;  %v3637_v31 = vadd.f32 %v8263_v59, %v3593_v11  ;;  %v3670_v16 = vmax.f32 %v3638_v47, 0.0  ;;  %v3612_v38 = vmul.f32 %v8255_v48, %v3567_v22  ;;  %v8917_v11 = vld [vmem:[#allocation4_spill] sm:$0xff] }
 0x6ee   : > { %4123 = vst [vmem:[%s6217_s28 + $0x68] sm:$0xff] %v4107_v21  ;;  %v4039_v5 = vadd.f32 %v3929_v18, %v3665_v4  ;;  %v3943_v12 = vadd.f32 %v3942_v57, %v8274_v55  ;;  %v3683_v54 = vmax.f32 %v3651_v56, 0.0  ;;  %v3684_v21 = vmax.f32 %v3652_v58, 0.0 }
 0x6ef   : > { %v4108_v62 = vpack.c.bf16 %v4086_v17, %v4085_v45  ;;  %v3958_v34 = vpop.f32.mrf.mxu0  ;;  %v3596_v45 = vmul.f32 %v8259_v10, %v3565_v3  ;;  %v3639_v57 = vadd.f32 %v8263_v59, %v3595_v42  ;;  %v3539_v10 = vadd.f32 %v8247_v6, %v8265_v28 }
 0x6f0   : > { %v3970_v8 = vpop.f32.mrf.mxu2  ;;  %v4040_v50 = vadd.f32 %v3943_v12, %v3666_v52  ;;  %v4071_v49 = vmul.f32 %v4039_v5, %v8911_v1  ;;  %v3959_v32 = vadd.f32 %v3958_v34, %v8297_v33  ;;  %v3511_v5 = vadd.f32 %v8261_v13, %v8243_v24 }
 0x6f1   : > { %4124 = vst [vmem:[%s6217_s28 + $0x70] sm:$0xff] %v4108_v62  ;;  %v3971_v29 = vadd.f32 %v3970_v8, %v8274_v55  ;;  %v3640_v52 = vadd.f32 %v8263_v59, %v3596_v45  ;;  %v3609_v24 = vmul.f32 %v8255_v48, %v8239_v19  ;;  %v3669_v59 = vmax.f32 %v3637_v31, 0.0 }
 0x6f2   : > { %v4072_v46 = vmul.f32 %v4040_v50, %v8912_v37  ;;  %v4057_v20 = vadd.f32 %v3959_v32, %v3683_v54  ;;  %v3611_v34 = vmul.f32 %v8255_v48, %v3539_v10  ;;  %v3671_v50 = vmax.f32 %v3639_v57, 0.0  ;;  %v8916_v32 = vld [vmem:[#allocation18_spill] sm:$0xff] }
 0x6f3   : > { %v4042_v43 = vadd.f32 %v3971_v29, %v3668_v2  ;;  %v3930_v30 = vpop.f32.mrf.mxu1  ;;  %v3610_v51 = vmul.f32 %v8255_v48, %v3511_v5  ;;  %v3672_v3 = vmax.f32 %v3640_v52, 0.0  ;;  %v3656_v48 = vadd.f32 %v8287_v25, %v3612_v38 }
 0x6f4   : > { %v4101_v41 = vpack.c.bf16 %v4072_v46, %v4071_v49  ;;  %v3931_v9 = vadd.f32 %v3930_v30, %v8297_v33  ;;  %v4089_v40 = vmul.f32 %v4057_v20, %v8913_v63  ;;  %v3653_v49 = vadd.f32 %v8287_v25, %v3609_v24 }
 0x6f5   : > { %v4074_v61 = vmul.f32 %v4042_v43, %v8914_v35  ;;  %v3944_v60 = vpop.f32.mrf.mxu3  ;;  %v3655_v58 = vadd.f32 %v8287_v25, %v3611_v34 }
 0x6f6   : > { %4117 = vst [vmem:[%s6217_s28 + $0x28] sm:$0xff] %v4101_v41  ;;  %v4055_v17 = vadd.f32 %v3931_v9, %v3681_v27  ;;  %v3945_v0 = vadd.f32 %v3944_v60, %v8297_v33 }
 0x6f7   : > { %v4102_v15 = vpack.c.bf16 %v4074_v61, %v4073_v53  ;;  %v4012_v18 = vpop.f32.mrf.mxu0  ;;  %v3654_v53 = vadd.f32 %v8287_v25, %v3610_v51  ;;  %v3687_v45 = vmax.f32 %v3655_v58, 0.0 }
 0x6f8   : > { %v3972_v26 = vpop.f32.mrf.mxu2  ;;  %v4056_v62 = vadd.f32 %v3945_v0, %v3682_v44  ;;  %v4087_v12 = vmul.f32 %v4055_v17, %v8911_v1  ;;  %v4013_v6 = vadd.f32 %v4012_v18, %v8274_v55 }
 0x6f9   : > { %4118 = vst [vmem:[%s6217_s28 + $0x30] sm:$0xff] %v4102_v15  ;;  %v3973_v4 = vadd.f32 %v3972_v26, %v8297_v33  ;;  %v3685_v15 = vmax.f32 %v3653_v49, 0.0  ;;  %v3686_v0 = vmax.f32 %v3654_v53, 0.0 }
 0x6fa   : > { %v4088_v8 = vmul.f32 %v4056_v62, %v8912_v37  ;;  %v4045_v19 = vadd.f32 %v4013_v6, %v3671_v50 }
 0x6fb   : > { %v4058_v23 = vadd.f32 %v3973_v4, %v3684_v21  ;;  %v3984_v28 = vpop.f32.mrf.mxu1  ;;  %v3688_v21 = vmax.f32 %v3656_v48, 0.0 }
 0x6fc   : > { %v4109_v13 = vpack.c.bf16 %v4088_v8, %v4087_v12  ;;  %v3985_v29 = vadd.f32 %v3984_v28, %v8274_v55  ;;  %v4077_v41 = vmul.f32 %v4045_v19, %v8917_v11 }
 0x6fd   : > { %v4090_v2 = vmul.f32 %v4058_v23, %v8914_v35  ;;  %v3998_v14 = vpop.f32.mrf.mxu3  ;;  %v8915_v35 = vld [vmem:[#allocation17_spill] sm:$0xff] }
 0x6fe   : > { %4125 = vst [vmem:[%s6217_s28 + $0x78] sm:$0xff] %v4109_v13  ;;  %v4043_v56 = vadd.f32 %v3985_v29, %v3669_v59  ;;  %v3999_v36 = vadd.f32 %v3998_v14, %v8274_v55 }
 0x6ff   : > { %v4110_v39 = vpack.c.bf16 %v4090_v2, %v4089_v40  ;;  %v4014_v46 = vpop.f32.mrf.mxu0 }
 0x700   : > { %v4026_v43 = vpop.f32.mrf.mxu2  ;;  %v4044_v37 = vadd.f32 %v3999_v36, %v3670_v16  ;;  %v4075_v61 = vmul.f32 %v4043_v56, %v8915_v35  ;;  %v4015_v9 = vadd.f32 %v4014_v46, %v8297_v33 }
 0x701   : > { %4126 = vst [vmem:[%s6217_s28 + $0x80] sm:$0xff] %v4110_v39  ;;  %v4027_v1 = vadd.f32 %v4026_v43, %v8274_v55  ;;  %v8918_v55 = vld [vmem:[#allocation6_spill] sm:$0xff] }
 0x702   : > { %v4076_v30 = vmul.f32 %v4044_v37, %v8916_v32  ;;  %v4061_v20 = vadd.f32 %v4015_v9, %v3687_v45 }
 0x703   : > { %v4046_v63 = vadd.f32 %v4027_v1, %v3672_v3  ;;  %v3986_v7 = vpop.f32.mrf.mxu1 }
 0x704   : > { %v4103_v42 = vpack.c.bf16 %v4076_v30, %v4075_v61  ;;  %v3987_v54 = vadd.f32 %v3986_v7, %v8297_v33  ;;  %v4093_v57 = vmul.f32 %v4061_v20, %v8917_v11 }
 0x705   : > { %v4078_v27 = vmul.f32 %v4046_v63, %v8918_v55  ;;  %v4000_v17 = vpop.f32.mrf.mxu3 }
 0x706   : > { %4119 = vst [vmem:[%s6217_s28 + $0x38] sm:$0xff] %v4103_v42  ;;  %v4059_v44 = vadd.f32 %v3987_v54, %v3685_v15  ;;  %v4001_v25 = vadd.f32 %v4000_v17, %v8297_v33 }
 0x707   : > { %v4104_v60 = vpack.c.bf16 %v4078_v27, %v4077_v41 }
 0x708   : > { %v4028_v26 = vpop.f32.mrf.mxu2  ;;  %v4060_v18 = vadd.f32 %v4001_v25, %v3686_v0  ;;  %v4091_v62 = vmul.f32 %v4059_v44, %v8915_v35 }
 0x709   : > { %4120 = vst [vmem:[%s6217_s28 + $0x40] sm:$0xff] %v4104_v60  ;;  %v4029_v4 = vadd.f32 %v4028_v26, %v8297_v33 }
 0x70a   : > { %v4092_v47 = vmul.f32 %v4060_v18, %v8916_v32 }
 0x70b   : > { %v4062_v31 = vadd.f32 %v4029_v4, %v3688_v21 }
 0x70c   : > { %v4111_v23 = vpack.c.bf16 %v4092_v47, %v4091_v62 }
 0x70d   : > { %v4094_v10 = vmul.f32 %v4062_v31, %v8918_v55 }
 0x70e   : > { %4127 = vst [vmem:[%s6217_s28 + $0x88] sm:$0xff] %v4111_v23 }
 0x70f   : > { %v4112_v5 = vpack.c.bf16 %v4094_v10, %v4093_v57 }
 0x711   : > { %4128 = vst [vmem:[%s6217_s28 + $0x90] sm:$0xff] %v4112_v5 }
 0x712 PF: > { %s20_s13 = sadd.s32 1, %s4930_s13  }
 0x713   : > { %p17_p4 = scmp.ge.s32.totalorder %s20_s13, 4  }
 0x715   :  { %19 = sbr.rel (!%p17_p4) target bundleno = 1 (0x1), region = 90 }

// kernel: _lambda_.3
= control target key start
LH: loop header
LB: loop body
LE: loop exit
PB: predicated region body
PF: predicated region fallthrough
CT: control target
= control target key end

     0   :  { %s5270_s30 = smov 0   ;;  %s8726_s0 = inlined_call_operand.vmem [shape: f32[1,2048], index: 0, kind: input, shape index: {}]   ;;  %s8727_s1 = inlined_call_operand.vmem [shape: bf16[2,16,2560], index: 1, kind: input, shape index: {}]   ;;  %s8728_s2 = inlined_call_operand.vmem [shape: bf16[16,144], index: 2, kind: input, shape index: {}]   ;;  %s8729_s3 = inlined_call_operand.vmem [shape: f32[16,1], index: 3, kind: input, shape index: {}]   ;;  %s8730_s4 = inlined_call_operand.vmem [shape: f32[16,1], index: 4, kind: input, shape index: {}]   ;;  %s8731_s5 = inlined_call_operand.vmem [shape: bf16[16,144], index: 5, kind: input, shape index: {}]   ;;  %s8732_s6 = inlined_call_operand.vmem [shape: f32[16,1], index: 6, kind: input, shape index: {}]   ;;  %s8733_s7 = inlined_call_operand.vmem [shape: f32[16,1], index: 7, kind: input, shape index: {}]   ;;  %s8734_s8 = inlined_call_operand.vmem [shape: bf16[2,16,2560], index: 8, kind: output, shape index: {0}]   ;;  %s8735_s9 = inlined_call_operand.vmem [shape: f32[2,16,1024], index: 9, kind: output, shape index: {1}]  }
   0x1 LB: > { %s4408_s10 = sadd.s32 4294967295, %s5214_s30   ;;  %p4412_p0 = scmp.ge.s32.totalorder %s5214_s30, 1  ;;  %s5214_s30 = sphi %s5270_s30, %s20_s30  }
   0x2   : > { %p290_p1 = scmp.lt.s32.totalorder %s5214_s30, 3 }
   0x4   : > { %p291_p2 = pnand %p4412_p0, %p290_p1 }
   0x6   : > { %294 = sbr.rel (%p291_p2) target bundleno = 1916 (0x77c), region = 52 }
   0xb   : > { %p331_p3 = scmp.lt.s32.totalorder %s4408_s10, 1  ;;  %s5216_s15 = smov 127   ;;  %vm574_vm0 = vcmask 1039360   ;;  %vm629_vm1 = vcmask 1031168   ;;  %vm1152_vm2 = vcmask 7168   ;;  %vm1391_vm3 = vcmask 130048  }
   0xc   : > { %s5217_s16 = smov 126   ;;  %s5218_s17 = smov 1  }
   0xd   : > { %s9233_s10 = smov (!%p331_p3, %s4408_s10), 1 }
   0xe   : > { %s5032_s11 = smul.u32 160, %s9233_s10 }
  0x10   : > { %s5286_s14 = scalar_lea.vmem %s8727_s1, %s5032_s11  ;;  %s6522_s28 = scalar_lea.vmem %s8734_s8, %s5032_s11 }
  0x11   : > { %v4503_v0 = vld [vmem:[%s5286_s14 + $0x14] sm:$0xf]  ;;  %v4943_v1 = vld [vmem:[%s5286_s14 + $0x60] sm:$0xf0]  ;;  %v4495_v2 = vld [vmem:[%s5286_s14 + $0xc] sm:$0xf] }
  0x12   : > { %v5291_v3 = vor.u32 %v4943_v1, %v4503_v0  ;;  %v4942_v4 = vld [vmem:[%s5286_s14 + $0x58] sm:$0xf0]  ;;  %v4487_v5 = vld [vmem:[%s5286_s14 + $0x4] sm:$0xf]  ;;  %v4941_v6 = vld [vmem:[%s5286_s14 + $0x50] sm:$0xf0] }
  0x13   : > { %v5296_v7 = vor.u32 %v4942_v4, %v4495_v2  ;;  %v5298_v8 = vor.u32 %v4941_v6, %v4487_v5  ;;  %v4935_v9 = vld [vmem:[%s5286_s14 + $0x18] sm:$0xf]  ;;  %v4505_v10 = vld [vmem:[%s5286_s14 + $0x64] sm:$0xf0]  ;;  %v4934_v11 = vld [vmem:[%s5286_s14 + $0x10] sm:$0xf] }
  0x14   : > { %8899 = vst [vmem:[#allocation3_spill] sm:$0xff] %v5291_v3  ;;  %550 = vrot.lane.b32.xlu2 %v5291_v3, %s5216_s15  ;;  %v4497_v12 = vld [vmem:[%s5286_s14 + $0x5c] sm:$0xf0]  ;;  %v4933_v13 = vld [vmem:[%s5286_s14 + $0x8] sm:$0xf]  ;;  %v5312_v15 = vor.u32 %v4935_v9, %v4505_v10 }
  0x15   : > { %8900 = vst [vmem:[#allocation4_spill] sm:$0xff] %v5296_v7  ;;  %546 = vrot.lane.b32.xlu1 %v5296_v7, %s5216_s15  ;;  %542 = vrot.lane.b32.xlu0 %v5298_v8, %s5216_s15  ;;  %v4489_v14 = vld [vmem:[%s5286_s14 + $0x54] sm:$0xf0]  ;;  %v5314_v16 = vor.u32 %v4934_v11, %v4497_v12  ;;  %v4519_v18 = vld [vmem:[%s5286_s14 + $0x24] sm:$0xf] }
  0x16   : > { %8901 = vst [vmem:[#allocation5_spill] sm:$0xff] %v5298_v8  ;;  %v5316_v17 = vor.u32 %v4933_v13, %v4489_v14  ;;  %v4945_v19 = vld [vmem:[%s5286_s14 + $0x70] sm:$0xf0]  ;;  %v4936_v20 = vld [vmem:[%s5286_s14 + $0x20] sm:$0xf] }
  0x17   : > { %8902 = vst [vmem:[#allocation6_spill] sm:$0xff] %v5312_v15  ;;  %v4513_v21 = vld [vmem:[%s5286_s14 + $0x6c] sm:$0xf0]  ;;  %v4511_v22 = vld [vmem:[%s5286_s14 + $0x1c] sm:$0xf]  ;;  %v5330_v24 = vor.u32 %v4945_v19, %v4519_v18 }
  0x18   : > { %8903 = vst [vmem:[#allocation7_spill] sm:$0xff] %v5314_v16  ;;  %v4944_v23 = vld [vmem:[%s5286_s14 + $0x68] sm:$0xf0]  ;;  %v5332_v25 = vor.u32 %v4936_v20, %v4513_v21  ;;  %v4938_v27 = vld [vmem:[%s5286_s14 + $0x30] sm:$0xf] }
  0x19   : > { %8904 = vst [vmem:[#allocation8_spill] sm:$0xff] %v5316_v17  ;;  %v5334_v26 = vor.u32 %v4944_v23, %v4511_v22  ;;  %v4529_v28 = vld [vmem:[%s5286_s14 + $0x7c] sm:$0xf0]  ;;  %v4527_v29 = vld [vmem:[%s5286_s14 + $0x2c] sm:$0xf] }
  0x1a   : > { %8905 = vst [vmem:[#allocation9_spill] sm:$0xff] %v5330_v24  ;;  %v4946_v30 = vld [vmem:[%s5286_s14 + $0x78] sm:$0xf0]  ;;  %v4937_v31 = vld [vmem:[%s5286_s14 + $0x28] sm:$0xf]  ;;  %v5348_v33 = vor.u32 %v4938_v27, %v4529_v28 }
  0x1b   : > { %8906 = vst [vmem:[#allocation10_spill] sm:$0xff] %v5332_v25  ;;  %v4521_v32 = vld [vmem:[%s5286_s14 + $0x74] sm:$0xf0]  ;;  %v5350_v34 = vor.u32 %v4946_v30, %v4527_v29  ;;  %v4543_v36 = vld [vmem:[%s5286_s14 + $0x3c] sm:$0xf] }
  0x1c   : > { %552 = vrot.lane.b32.xlu2 %v5312_v15, %s5216_s15  ;;  %8907 = vst [vmem:[#allocation11_spill] sm:$0xff] %v5334_v26  ;;  %v5352_v35 = vor.u32 %v4937_v31, %v4521_v32  ;;  %v4948_v37 = vld [vmem:[%s5286_s14 + $0x88] sm:$0xf0]  ;;  %v4939_v38 = vld [vmem:[%s5286_s14 + $0x38] sm:$0xf] }
  0x1d   : > { %548 = vrot.lane.b32.xlu1 %v5314_v16, %s5216_s15  ;;  %544 = vrot.lane.b32.xlu0 %v5316_v17, %s5216_s15  ;;  %8908 = vst [vmem:[#allocation12_spill] sm:$0xff] %v5348_v33  ;;  %v4537_v39 = vld [vmem:[%s5286_s14 + $0x84] sm:$0xf0]  ;;  %v4535_v40 = vld [vmem:[%s5286_s14 + $0x34] sm:$0xf]  ;;  %v5366_v42 = vor.u32 %v4948_v37, %v4543_v36 }
  0x1e   : > { %8909 = vst [vmem:[#allocation13_spill] sm:$0xff] %v5350_v34  ;;  %v4947_v41 = vld [vmem:[%s5286_s14 + $0x80] sm:$0xf0]  ;;  %v5368_v43 = vor.u32 %v4939_v38, %v4537_v39  ;;  %v4940_v45 = vld [vmem:[%s5286_s14 + $0x40] sm:$0xf] }
  0x1f   : > { %8910 = vst [vmem:[#allocation14_spill] sm:$0xff] %v5352_v35  ;;  %v5370_v44 = vor.u32 %v4947_v41, %v4535_v40  ;;  %v4545_v46 = vld [vmem:[%s5286_s14 + $0x8c] sm:$0xf0]  ;;  %v4551_v48 = vld [vmem:[%s5286_s14 + $0x44] sm:$0xf] }
  0x20   : > { %8911 = vst [vmem:[#allocation15_spill] sm:$0xff] %v5366_v42  ;;  %v5380_v47 = vor.u32 %v4940_v45, %v4545_v46  ;;  %v4949_v49 = vld [vmem:[%s5286_s14 + $0x90] sm:$0xf0]  ;;  %v4435_v51 = vld [vmem:[%s5286_s14 + $0x10] sm:$0xf] }
  0x21   : > { %8912 = vst [vmem:[#allocation16_spill] sm:$0xff] %v5368_v43  ;;  %v5414_v50 = vor.u32 %v4949_v49, %v4551_v48  ;;  %v4926_v52 = vld [vmem:[%s5286_s14 + $0x5c] sm:$0xf0]  ;;  %v4427_v53 = vld [vmem:[%s5286_s14 + $0x8] sm:$0xf] }
  0x22   : > { %8913 = vst [vmem:[#allocation17_spill] sm:$0xff] %v5370_v44  ;;  %v4925_v54 = vld [vmem:[%s5286_s14 + $0x54] sm:$0xf0]  ;;  %v4917_v55 = vld [vmem:[%s5286_s14 + $0xc] sm:$0xf]  ;;  %v5428_v57 = vor.u32 %v4926_v52, %v4435_v51 }
  0x23   : > { %8914 = vst [vmem:[#allocation18_spill] sm:$0xff] %v5380_v47  ;;  %v4429_v56 = vld [vmem:[%s5286_s14 + $0x58] sm:$0xf0]  ;;  %v5430_v58 = vor.u32 %v4925_v54, %v4427_v53  ;;  %v4445_v61 = vld [vmem:[%s5286_s14 + $0x68] sm:$0xf0] }
  0x24   : > { %558 = vrot.lane.b32.xlu2 %v5330_v24, %s5216_s15  ;;  %8915 = vst [vmem:[#allocation19_spill] sm:$0xff] %v5414_v50  ;;  %v5432_v59 = vor.u32 %v4917_v55, %v4429_v56  ;;  %v4919_v60 = vld [vmem:[%s5286_s14 + $0x1c] sm:$0xf]  ;;  %v4918_v62 = vld [vmem:[%s5286_s14 + $0x14] sm:$0xf] }
  0x25   : > { %556 = vrot.lane.b32.xlu1 %v5332_v25, %s5216_s15  ;;  %554 = vrot.lane.b32.xlu0 %v5334_v26, %s5216_s15  ;;  %v4437_v0 = vld [vmem:[%s5286_s14 + $0x60] sm:$0xf0]  ;;  %v4443_v1 = vld [vmem:[%s5286_s14 + $0x18] sm:$0xf]  ;;  %v5448_v4 = vor.u32 %v4919_v60, %v4445_v61 }
  0x26   : > { %v4927_v2 = vld [vmem:[%s5286_s14 + $0x64] sm:$0xf0]  ;;  %v5450_v5 = vor.u32 %v4918_v62, %v4437_v0  ;;  %v4929_v10 = vld [vmem:[%s5286_s14 + $0x74] sm:$0xf0]  ;;  %v4451_v11 = vld [vmem:[%s5286_s14 + $0x20] sm:$0xf] }
  0x27   : > { %v5452_v6 = vor.u32 %v4927_v2, %v4443_v1  ;;  %v4459_v9 = vld [vmem:[%s5286_s14 + $0x28] sm:$0xf]  ;;  %v4928_v13 = vld [vmem:[%s5286_s14 + $0x6c] sm:$0xf0]  ;;  %v4920_v14 = vld [vmem:[%s5286_s14 + $0x24] sm:$0xf] }
  0x28   : > { %v4453_v18 = vld [vmem:[%s5286_s14 + $0x70] sm:$0xf0]  ;;  %v5468_v19 = vor.u32 %v4929_v10, %v4459_v9  ;;  %v5470_v20 = vor.u32 %v4928_v13, %v4451_v11  ;;  %v4469_v23 = vld [vmem:[%s5286_s14 + $0x80] sm:$0xf0]  ;;  %v4921_v27 = vld [vmem:[%s5286_s14 + $0x2c] sm:$0xf] }
  0x29   : > { %v5472_v21 = vor.u32 %v4920_v14, %v4453_v18  ;;  %v4922_v22 = vld [vmem:[%s5286_s14 + $0x34] sm:$0xf]  ;;  %v4461_v29 = vld [vmem:[%s5286_s14 + $0x78] sm:$0xf0]  ;;  %v4467_v30 = vld [vmem:[%s5286_s14 + $0x30] sm:$0xf] }
  0x2a   : > { %v4930_v31 = vld [vmem:[%s5286_s14 + $0x7c] sm:$0xf0]  ;;  %v5488_v32 = vor.u32 %v4922_v22, %v4469_v23  ;;  %v5490_v36 = vor.u32 %v4921_v27, %v4461_v29  ;;  %v4951_v39 = vld [vmem:[%s5286_s14 + $0x8c] sm:$0xf0]  ;;  %v4475_v40 = vld [vmem:[%s5286_s14 + $0x38] sm:$0xf] }
  0x2b   : > { %v5492_v37 = vor.u32 %v4930_v31, %v4467_v30  ;;  %v4555_v38 = vld [vmem:[%s5286_s14 + $0x40] sm:$0xf]  ;;  %v4931_v45 = vld [vmem:[%s5286_s14 + $0x84] sm:$0xf0]  ;;  %v4923_v46 = vld [vmem:[%s5286_s14 + $0x3c] sm:$0xf] }
  0x2c   : > { %564 = vrot.lane.b32.xlu2 %v5348_v33, %s5216_s15  ;;  %v4477_v48 = vld [vmem:[%s5286_s14 + $0x88] sm:$0xf0]  ;;  %v5512_v52 = vor.u32 %v4951_v39, %v4555_v38  ;;  %v5514_v53 = vor.u32 %v4931_v45, %v4475_v40  ;;  %v4950_v56 = vld [vmem:[%s5286_s14 + $0x44] sm:$0xf]  ;;  %v4557_v60 = vld [vmem:[%s5286_s14 + $0x90] sm:$0xf0] }
  0x2d   : > { %562 = vrot.lane.b32.xlu1 %v5350_v34, %s5216_s15  ;;  %560 = vrot.lane.b32.xlu0 %v5352_v35, %s5216_s15  ;;  %v5516_v54 = vor.u32 %v4923_v46, %v4477_v48  ;;  %v5532_v0 = vor.u32 %v4950_v56, %v4557_v60  ;;  %v4563_v30 = vld [vmem:[%s5286_s14 + $0x48] sm:$0xf]  ;;  %v4952_v31 = vld [vmem:[%s5286_s14 + $0x94] sm:$0xf0] }
  0x2e   : > { %8916 = vst [vmem:[#allocation20_spill] sm:$0xff] %v5512_v52  ;;  %v5596_v45 = vor.u32 %v4952_v31, %v4563_v30  ;;  %v4567_v46 = vld [vmem:[%s5286_s14 + $0x44] sm:$0xf]  ;;  %v4575_v48 = vld [vmem:[%s5286_s14 + $0xc] sm:$0xf] }
  0x2f   : > { %8917 = vst [vmem:[#allocation21_spill] sm:$0xff] %v5532_v0  ;;  %v4963_v56 = vld [vmem:[%s5286_s14 + $0x58] sm:$0xf0]  ;;  %v4954_v30 = vld [vmem:[%s5286_s14 + $0x90] sm:$0xf0] }
  0x30   : > { %8918 = vst [vmem:[#allocation22_spill] sm:$0xff] %v5596_v45  ;;  %v4953_v31 = vld [vmem:[%s5286_s14 + $0x48] sm:$0xf] }
  0x34   : > { %570 = vrot.lane.b32.xlu2 %v5366_v42, %s5216_s15 }
  0x35   : > { %568 = vrot.lane.b32.xlu1 %v5368_v43, %s5216_s15  ;;  %566 = vrot.lane.b32.xlu0 %v5370_v44, %s5216_s15 }
  0x3c   : > { %597 = vrot.lane.b32.xlu2 %v5316_v17, %s5217_s16  ;;  %v4419_v17 = vld [vmem:[%s5286_s14] sm:$0xf] }
  0x3d   : > { %595 = vrot.lane.b32.xlu1 %v5298_v8, %s5217_s16  ;;  %572 = vrot.lane.b32.xlu0 %v5380_v47, %s5216_s15  ;;  %v4971_v8 = vld [vmem:[%s5286_s14 + $0x98] sm:$0xf0] }
  0x44   : > { %603 = vrot.lane.b32.xlu2 %v5291_v3, %s5217_s16 }
  0x45   : > { %601 = vrot.lane.b32.xlu1 %v5314_v16, %s5217_s16  ;;  %599 = vrot.lane.b32.xlu0 %v5296_v7, %s5217_s16  ;;  %v4968_v7 = vld [vmem:[%s5286_s14 + $0x80] sm:$0xf0] }
  0x4c   : > { %609 = vrot.lane.b32.xlu2 %v5332_v25, %s5217_s16  ;;  %v4601_v25 = vld [vmem:[%s5286_s14 + $0x74] sm:$0xf0] }
  0x4d   : > { %607 = vrot.lane.b32.xlu1 %v5334_v26, %s5217_s16  ;;  %605 = vrot.lane.b32.xlu0 %v5312_v15, %s5217_s16  ;;  %v4965_v26 = vld [vmem:[%s5286_s14 + $0x68] sm:$0xf0] }
  0x54   : > { %615 = vrot.lane.b32.xlu2 %v5350_v34, %s5217_s16 }
  0x55   : > { %613 = vrot.lane.b32.xlu1 %v5352_v35, %s5217_s16  ;;  %611 = vrot.lane.b32.xlu0 %v5330_v24, %s5217_s16  ;;  %v4577_v24 = vld [vmem:[%s5286_s14 + $0x5c] sm:$0xf0] }
  0x5c   : > { %621 = vrot.lane.b32.xlu2 %v5368_v43, %s5217_s16  ;;  %v4585_v43 = vld [vmem:[%s5286_s14 + $0x64] sm:$0xf0] }
  0x5d   : > { %619 = vrot.lane.b32.xlu1 %v5370_v44, %s5217_s16  ;;  %617 = vrot.lane.b32.xlu0 %v5348_v33, %s5217_s16  ;;  %v4956_v33 = vld [vmem:[%s5286_s14 + $0x18] sm:$0xf] }
  0x64   : > { %627 = vrot.lane.b32.xlu2 %v5414_v50, %s5217_s16  ;;  %v4568_v50 = vor.u32 %v4954_v30, %v4567_v46 }
  0x65   : > { %625 = vrot.lane.b32.xlu1 %v5380_v47, %s5217_s16  ;;  %623 = vrot.lane.b32.xlu0 %v5366_v42, %s5217_s16 }
  0x6c   : > { %658 = vrot.lane.b32.xlu2 %v5428_v57, %s5216_s15 }
  0x6d   : > { %654 = vrot.lane.b32.xlu0 %v5430_v58, %s5216_s15  ;;  %656 = vrot.lane.b32.xlu1 %v5432_v59, %s5216_s15 }
  0x6e   : > { %v5443_v63 = vpop.permute.xlu2 %550 }
  0x74   : > { %664 = vrot.lane.b32.xlu2 %v5448_v4, %s5216_s15 }
  0x75   : > { %660 = vrot.lane.b32.xlu0 %v5450_v5, %s5216_s15  ;;  %662 = vrot.lane.b32.xlu1 %v5452_v6, %s5216_s15 }
  0x76   : > { %v5463_v12 = vpop.permute.xlu2 %552 }
  0x7c   : > { %670 = vrot.lane.b32.xlu2 %v5468_v19, %s5216_s15 }
  0x7d   : > { %666 = vrot.lane.b32.xlu0 %v5470_v20, %s5216_s15  ;;  %668 = vrot.lane.b32.xlu1 %v5472_v21, %s5216_s15 }
  0x7e   : > { %v5483_v28 = vpop.permute.xlu2 %558 }
  0x84   : > { %676 = vrot.lane.b32.xlu2 %v5488_v32, %s5216_s15 }
  0x85   : > { %672 = vrot.lane.b32.xlu0 %v5490_v36, %s5216_s15  ;;  %674 = vrot.lane.b32.xlu1 %v5492_v37, %s5216_s15 }
  0x86   : > { %v5503_v41 = vpop.permute.xlu2 %564 }
  0x87   : > { %v5508_v49 = vpop.permute.xlu1 %546  ;;  %v5510_v51 = vpop.permute.xlu0 %542 }
  0x8c   : > { %682 = vrot.lane.b32.xlu2 %v5512_v52, %s5216_s15 }
  0x8d   : > { %678 = vrot.lane.b32.xlu0 %v5514_v53, %s5216_s15  ;;  %680 = vrot.lane.b32.xlu1 %v5516_v54, %s5216_s15 }
  0x8e   : > { %v5524_v55 = vpop.permute.xlu2 %570 }
  0x8f   : > { %v5528_v61 = vpop.permute.xlu1 %548  ;;  %v5530_v62 = vpop.permute.xlu0 %544 }
  0x94   : > { %708 = vrot.lane.b32.xlu2 %v5432_v59, %s5217_s16 }
  0x95   : > { %684 = vrot.lane.b32.xlu0 %v5532_v0, %s5216_s15  ;;  %706 = vrot.lane.b32.xlu1 %v5430_v58, %s5217_s16 }
  0x96   : > { %v5540_v1 = vpop.permute.xlu2 %597 }
  0x97   : > { %v5542_v2 = vpop.permute.xlu1 %556  ;;  %v5544_v9 = vpop.permute.xlu0 %554 }
  0x9c   : > { %714 = vrot.lane.b32.xlu2 %v5452_v6, %s5217_s16 }
  0x9d   : > { %710 = vrot.lane.b32.xlu0 %v5428_v57, %s5217_s16  ;;  %712 = vrot.lane.b32.xlu1 %v5450_v5, %s5217_s16 }
  0x9e   : > { %v5552_v10 = vpop.permute.xlu2 %603 }
  0x9f   : > { %v5554_v11 = vpop.permute.xlu1 %562  ;;  %v5556_v13 = vpop.permute.xlu0 %560 }
  0xa4   : > { %720 = vrot.lane.b32.xlu2 %v5472_v21, %s5217_s16 }
  0xa5   : > { %716 = vrot.lane.b32.xlu0 %v5448_v4, %s5217_s16  ;;  %718 = vrot.lane.b32.xlu1 %v5470_v20, %s5217_s16 }
  0xa6   : > { %v5564_v14 = vpop.permute.xlu2 %609 }
  0xa7   : > { %v5566_v18 = vpop.permute.xlu1 %568  ;;  %v5568_v22 = vpop.permute.xlu0 %566 }
  0xac   : > { %726 = vrot.lane.b32.xlu2 %v5492_v37, %s5217_s16 }
  0xad   : > { %722 = vrot.lane.b32.xlu0 %v5468_v19, %s5217_s16  ;;  %724 = vrot.lane.b32.xlu1 %v5490_v36, %s5217_s16 }
  0xae   : > { %v5576_v23 = vpop.permute.xlu2 %615 }
  0xaf   : > { %v5578_v27 = vpop.permute.xlu1 %595  ;;  %v5580_v29 = vpop.permute.xlu0 %572 }
  0xb4   : > { %732 = vrot.lane.b32.xlu2 %v5516_v54, %s5217_s16 }
  0xb5   : > { %728 = vrot.lane.b32.xlu0 %v5488_v32, %s5217_s16  ;;  %730 = vrot.lane.b32.xlu1 %v5514_v53, %s5217_s16 }
  0xb6   : > { %v5590_v38 = vpop.permute.xlu2 %621 }
  0xb7   : > { %v5592_v39 = vpop.permute.xlu1 %601  ;;  %v5594_v40 = vpop.permute.xlu0 %599 }
  0xbc   : > { %738 = vrot.lane.b32.xlu2 %v5596_v45, %s5217_s16  ;;  %v4569_v45 = vld [vmem:[%s5286_s14 + $0x94] sm:$0xf0] }
  0xbd   : > { %734 = vrot.lane.b32.xlu0 %v5512_v52, %s5217_s16  ;;  %736 = vrot.lane.b32.xlu1 %v5532_v0, %s5217_s16  ;;  %v4576_v52 = vor.u32 %v4963_v56, %v4575_v48  ;;  %v4572_v44 = vor.u32 %v4953_v31, %v4569_v45  ;;  %v4955_v0 = vld [vmem:[%s5286_s14 + $0x10] sm:$0xf]  ;;  %v4583_v48 = vld [vmem:[%s5286_s14 + $0x14] sm:$0xf]  ;;  %v4588_v56 = vor.u32 %v4956_v33, %v4585_v43 }
  0xbe   : > { %v5607_v60 = vpop.permute.xlu2 %627  ;;  %v4964_v45 = vld [vmem:[%s5286_s14 + $0x60] sm:$0xf0]  ;;  %v4957_v33 = vld [vmem:[%s5286_s14 + $0x20] sm:$0xf] }
  0xbf   : > { %8919 = vst [vmem:[#allocation23_spill] sm:$0xff] %v5607_v60  ;;  %v5612_v47 = vpop.permute.xlu1 %607  ;;  %v5614_v42 = vpop.permute.xlu0 %605  ;;  %v4584_v30 = vor.u32 %v4964_v45, %v4583_v48  ;;  %v4599_v31 = vld [vmem:[%s5286_s14 + $0x24] sm:$0xf]  ;;  %v4924_v60 = vld [vmem:[%s5286_s14 + $0x4c] sm:$0xf0] }
  0xc4   : > { %839 = vrot.lane.b32.xlu2 %v4576_v52, %s5217_s16 }
  0xc5   : > { %764 = vrot.lane.b32.xlu0 %v4568_v50, %s5216_s15  ;;  %766 = vrot.lane.b32.xlu1 %v4572_v44, %s5216_s15  ;;  %v4580_v50 = vor.u32 %v4955_v0, %v4577_v24  ;;  %v4591_v44 = vld [vmem:[%s5286_s14 + $0x1c] sm:$0xf]  ;;  %v4593_v24 = vld [vmem:[%s5286_s14 + $0x6c] sm:$0xf0] }
  0xc6   : > { %v5622_v35 = vpop.permute.xlu2 %658  ;;  %v4592_v45 = vor.u32 %v4965_v26, %v4591_v44  ;;  %v4967_v26 = vld [vmem:[%s5286_s14 + $0x78] sm:$0xf0] }
  0xc7   : > { %8920 = vst [vmem:[#allocation24_spill] sm:$0xff] %v5622_v35  ;;  %v5627_v46 = vpop.permute.xlu1 %613  ;;  %v5629_v52 = vpop.permute.xlu0 %611  ;;  %v4966_v35 = vld [vmem:[%s5286_s14 + $0x70] sm:$0xf0] }
  0xc8   : > { %v4600_v48 = vor.u32 %v4966_v35, %v4599_v31  ;;  %v4607_v35 = vld [vmem:[%s5286_s14 + $0x2c] sm:$0xf] }
  0xcc   : > { %845 = vrot.lane.b32.xlu2 %v4588_v56, %s5217_s16  ;;  %v4596_v56 = vor.u32 %v4957_v33, %v4593_v24 }
  0xcd   : > { %841 = vrot.lane.b32.xlu0 %v4580_v50, %s5217_s16  ;;  %843 = vrot.lane.b32.xlu1 %v4584_v30, %s5217_s16  ;;  %v4958_v50 = vld [vmem:[%s5286_s14 + $0x28] sm:$0xf]  ;;  %v4959_v30 = vld [vmem:[%s5286_s14 + $0x30] sm:$0xf] }
  0xce   : > { %v5637_v34 = vpop.permute.xlu2 %664  ;;  %v4604_v24 = vor.u32 %v4958_v50, %v4601_v25  ;;  %v4617_v25 = vld [vmem:[%s5286_s14 + $0x84] sm:$0xf0] }
  0xcf   : > { %8921 = vst [vmem:[#allocation25_spill] sm:$0xff] %v5637_v34  ;;  %v5642_v43 = vpop.permute.xlu1 %619  ;;  %v5644_v0 = vpop.permute.xlu0 %617  ;;  %v4609_v34 = vld [vmem:[%s5286_s14 + $0x7c] sm:$0xf0] }
  0xd0   : > { %v4612_v33 = vor.u32 %v4959_v30, %v4609_v34  ;;  %v4960_v34 = vld [vmem:[%s5286_s14 + $0x38] sm:$0xf] }
  0xd4   : > { %851 = vrot.lane.b32.xlu2 %v4600_v48, %s5217_s16  ;;  %v4608_v48 = vor.u32 %v4967_v26, %v4607_v35 }
  0xd5   : > { %847 = vrot.lane.b32.xlu0 %v4592_v45, %s5217_s16  ;;  %849 = vrot.lane.b32.xlu1 %v4596_v56, %s5217_s16  ;;  %v4615_v45 = vld [vmem:[%s5286_s14 + $0x34] sm:$0xf]  ;;  %v4623_v56 = vld [vmem:[%s5286_s14 + $0x3c] sm:$0xf] }
  0xd6   : > { %v5652_v15 = vpop.permute.xlu2 %670  ;;  %v4616_v26 = vor.u32 %v4968_v7, %v4615_v45  ;;  %v4970_v7 = vld [vmem:[%s5286_s14 + $0x90] sm:$0xf0] }
  0xd7   : > { %8922 = vst [vmem:[#allocation26_spill] sm:$0xff] %v5652_v15  ;;  %v5657_v44 = vpop.permute.xlu1 %625  ;;  %v5659_v31 = vpop.permute.xlu0 %623  ;;  %v4969_v15 = vld [vmem:[%s5286_s14 + $0x88] sm:$0xf0] }
  0xd8   : > { %v4624_v35 = vor.u32 %v4969_v15, %v4623_v56  ;;  %v4631_v15 = vld [vmem:[%s5286_s14 + $0x44] sm:$0xf] }
  0xdc   : > { %857 = vrot.lane.b32.xlu2 %v4612_v33, %s5217_s16  ;;  %v4620_v33 = vor.u32 %v4960_v34, %v4617_v25 }
  0xdd   : > { %853 = vrot.lane.b32.xlu0 %v4604_v24, %s5217_s16  ;;  %855 = vrot.lane.b32.xlu1 %v4608_v48, %s5217_s16  ;;  %v4961_v24 = vld [vmem:[%s5286_s14 + $0x40] sm:$0xf]  ;;  %v4962_v48 = vld [vmem:[%s5286_s14 + $0x48] sm:$0xf] }
  0xde   : > { %v5667_v16 = vpop.permute.xlu2 %676 }
  0xdf   : > { %8923 = vst [vmem:[#allocation27_spill] sm:$0xff] %v5667_v16  ;;  %v5672_v50 = vpop.permute.xlu0 %654  ;;  %v5674_v30 = vpop.permute.xlu1 %656  ;;  %v4633_v16 = vld [vmem:[%s5286_s14 + $0x94] sm:$0xf0] }
  0xe0   : > { %8924 = vst [vmem:[#allocation28_spill] sm:$0xff] %v5672_v50  ;;  %v4625_v50 = vld [vmem:[%s5286_s14 + $0x8c] sm:$0xf0]  ;;  %v4636_v34 = vor.u32 %v4962_v48, %v4633_v16 }
  0xe1   : > { %8925 = vst [vmem:[#allocation29_spill] sm:$0xff] %v5674_v30  ;;  %v4628_v25 = vor.u32 %v4961_v24, %v4625_v50  ;;  %v4420_v24 = vor.u32 %v4924_v60, %v4419_v17 }
  0xe4   : > { %863 = vrot.lane.b32.xlu2 %v4624_v35, %s5217_s16  ;;  %v4632_v35 = vor.u32 %v4970_v7, %v4631_v15 }
  0xe5   : > { %859 = vrot.lane.b32.xlu0 %v4616_v26, %s5217_s16  ;;  %861 = vrot.lane.b32.xlu1 %v4620_v33, %s5217_s16  ;;  %v4639_v26 = vld [vmem:[%s5286_s14 + $0x4c] sm:$0xf]  ;;  %v4916_v33 = vld [vmem:[%s5286_s14 + $0x4] sm:$0xf] }
  0xe6   : > { %v5682_v3 = vpop.permute.xlu2 %682  ;;  %v4640_v50 = vor.u32 %v4971_v8, %v4639_v26  ;;  %v575_v26 = vsel %vm574_vm0, %v5510_v51, %v5530_v62 }
  0xe7   : > { %8926 = vst [vmem:[#allocation30_spill] sm:$0xff] %v5682_v3  ;;  %v5687_v45 = vpop.permute.xlu0 %660  ;;  %v5689_v56 = vpop.permute.xlu1 %662  ;;  %v4421_v3 = vld [vmem:[%s5286_s14 + $0x50] sm:$0xf0] }
  0xe8   : > { %8927 = vst [vmem:[#allocation31_spill] sm:$0xff] %v5687_v45  ;;  %v4424_v16 = vor.u32 %v4916_v33, %v4421_v3 }
  0xe9   : > { %8928 = vst [vmem:[#allocation32_spill] sm:$0xff] %v5689_v56 }
  0xec   : > { %869 = vrot.lane.b32.xlu2 %v4636_v34, %s5217_s16 }
  0xed   : > { %865 = vrot.lane.b32.xlu0 %v4628_v25, %s5217_s16  ;;  %867 = vrot.lane.b32.xlu1 %v4632_v35, %s5217_s16  ;;  %v576_v35 = vsel %vm574_vm0, %v5530_v62, %v5508_v49  ;;  %v577_v62 = vsel %vm574_vm0, %v5508_v49, %v5528_v61 }
  0xee   : > { %v5697_v30 = vpop.permute.xlu2 %708 }
  0xef   : > { %v5702_v45 = vpop.permute.xlu0 %666  ;;  %v5704_v56 = vpop.permute.xlu1 %668 }
  0xf4   : > { %902 = vrot.lane.b32.xlu2 %v4424_v16, %s5218_s17  ;;  %v579_v16 = vsel %vm574_vm0, %v5443_v63, %v5463_v12 }
  0xf5   : > { %871 = vrot.lane.b32.xlu0 %v4640_v50, %s5217_s16  ;;  %900 = vrot.lane.b32.xlu1 %v4420_v24, %s5218_s17 }
  0xf6   : > { %v5709_v48 = vpop.permute.xlu2 %714 }
  0xf7   : > { %v5711_v15 = vpop.permute.xlu0 %672  ;;  %v5713_v7 = vpop.permute.xlu1 %674 }
  0xfc   : > { %908 = vrot.lane.b32.xlu2 %v5428_v57, %s5218_s17 }
  0xfd   : > { %904 = vrot.lane.b32.xlu0 %v5430_v58, %s5218_s17  ;;  %906 = vrot.lane.b32.xlu1 %v5432_v59, %s5218_s17 }
  0xfe   : > { %v5721_v3 = vpop.permute.xlu2 %720 }
  0xff   : > { %v5723_v8 = vpop.permute.xlu0 %678  ;;  %v5725_v17 = vpop.permute.xlu1 %680 }
 0x104   : > { %914 = vrot.lane.b32.xlu2 %v5448_v4, %s5218_s17 }
 0x105   : > { %910 = vrot.lane.b32.xlu0 %v5450_v5, %s5218_s17  ;;  %912 = vrot.lane.b32.xlu1 %v5452_v6, %s5218_s17 }
 0x106   : > { %v5733_v57 = vpop.permute.xlu2 %726 }
 0x107   : > { %v5735_v58 = vpop.permute.xlu0 %684  ;;  %v5737_v59 = vpop.permute.xlu1 %706 }
 0x10c   : > { %920 = vrot.lane.b32.xlu2 %v5468_v19, %s5218_s17  ;;  %v4483_v19 = vld [vmem:[%s5286_s14 + $0x40] sm:$0xf] }
 0x10d   : > { %916 = vrot.lane.b32.xlu0 %v5470_v20, %s5218_s17  ;;  %918 = vrot.lane.b32.xlu1 %v5472_v21, %s5218_s17  ;;  %v4932_v20 = vld [vmem:[%s5286_s14 + $0x8c] sm:$0xf0] }
 0x10e   : > { %v5745_v4 = vpop.permute.xlu2 %732  ;;  %v4484_v25 = vor.u32 %v4932_v20, %v4483_v19  ;;  %v582_v20 = vsel %vm574_vm0, %v5542_v2, %v5483_v28 }
 0x10f   : > { %v5747_v5 = vpop.permute.xlu0 %710  ;;  %v5749_v6 = vpop.permute.xlu1 %712 }
 0x114   : > { %926 = vrot.lane.b32.xlu2 %v5488_v32, %s5218_s17 }
 0x115   : > { %922 = vrot.lane.b32.xlu0 %v5490_v36, %s5218_s17  ;;  %924 = vrot.lane.b32.xlu1 %v5492_v37, %s5218_s17 }
 0x116   : > { %v5759_v60 = vpop.permute.xlu2 %738 }
 0x117   : > { %v5761_v21 = vpop.permute.xlu0 %716  ;;  %v5763_v34 = vpop.permute.xlu1 %718 }
 0x11c   : > { %932 = vrot.lane.b32.xlu2 %v4484_v25, %s5218_s17 }
 0x11d   : > { %928 = vrot.lane.b32.xlu0 %v5514_v53, %s5218_s17  ;;  %930 = vrot.lane.b32.xlu1 %v5516_v54, %s5218_s17 }
 0x11e   : > { %v5770_v32 = vpop.permute.xlu2 %839 }
 0x11f   : > { %v5772_v36 = vpop.permute.xlu0 %722  ;;  %v5774_v37 = vpop.permute.xlu1 %724 }
 0x124   : > { %938 = vrot.lane.b32.xlu2 %v576_v35, %s5218_s17 }
 0x125   : > { %934 = vrot.lane.b32.xlu0 %v5510_v51, %s5218_s17  ;;  %936 = vrot.lane.b32.xlu1 %v575_v26, %s5218_s17  ;;  %v578_v51 = vsel %vm574_vm0, %v5528_v61, %v5443_v63  ;;  %v580_v63 = vsel %vm574_vm0, %v5463_v12, %v5544_v9  ;;  %v581_v61 = vsel %vm574_vm0, %v5544_v9, %v5542_v2 }
 0x126   : > { %v5786_v53 = vpop.permute.xlu2 %845  ;;  %v585_v12 = vsel %vm574_vm0, %v5554_v11, %v5503_v41  ;;  %v583_v2 = vsel %vm574_vm0, %v5483_v28, %v5556_v13  ;;  %v584_v9 = vsel %vm574_vm0, %v5556_v13, %v5554_v11  ;;  %v588_v28 = vsel %vm574_vm0, %v5566_v18, %v5524_v55 }
 0x127   : > { %v5788_v54 = vpop.permute.xlu0 %728  ;;  %v5790_v33 = vpop.permute.xlu1 %730  ;;  %v586_v11 = vsel %vm574_vm0, %v5503_v41, %v5568_v22  ;;  %v587_v13 = vsel %vm574_vm0, %v5568_v22, %v5566_v18  ;;  %v589_v41 = vsel %vm574_vm0, %v5524_v55, %v5580_v29  ;;  %v630_v55 = vsel %vm629_vm1, %v5578_v27, %v5540_v1 }
 0x12c   : > { %944 = vrot.lane.b32.xlu2 %v579_v16, %s5218_s17 }
 0x12d   : > { %940 = vrot.lane.b32.xlu0 %v577_v62, %s5218_s17  ;;  %942 = vrot.lane.b32.xlu1 %v578_v51, %s5218_s17 }
 0x12e   : > { %v5804_v50 = vpop.permute.xlu2 %851 }
 0x12f   : > { %v5806_v24 = vpop.permute.xlu0 %734  ;;  %v5808_v19 = vpop.permute.xlu1 %736 }
 0x134   : > { %950 = vrot.lane.b32.xlu2 %v582_v20, %s5218_s17 }
 0x135   : > { %946 = vrot.lane.b32.xlu0 %v580_v63, %s5218_s17  ;;  %948 = vrot.lane.b32.xlu1 %v581_v61, %s5218_s17 }
 0x136   : > { %v5822_v25 = vpop.permute.xlu2 %857 }
 0x137   : > { %v5824_v35 = vpop.permute.xlu0 %764  ;;  %v5826_v26 = vpop.permute.xlu1 %766 }
 0x13c   : > { %956 = vrot.lane.b32.xlu2 %v585_v12, %s5218_s17 }
 0x13d   : > { %952 = vrot.lane.b32.xlu0 %v583_v2, %s5218_s17  ;;  %954 = vrot.lane.b32.xlu1 %v584_v9, %s5218_s17  ;;  %v632_v2 = vsel %vm629_vm1, %v5594_v40, %v5592_v39  ;;  %v631_v9 = vsel %vm629_vm1, %v5540_v1, %v5594_v40  ;;  %v633_v1 = vsel %vm629_vm1, %v5592_v39, %v5552_v10 }
 0x13e   : > { %v5840_v16 = vpop.permute.xlu2 %863  ;;  %v634_v40 = vsel %vm629_vm1, %v5552_v10, %v5614_v42  ;;  %v638_v39 = vsel %vm629_vm1, %v5629_v52, %v5627_v46  ;;  %v637_v10 = vsel %vm629_vm1, %v5564_v14, %v5629_v52  ;;  %v640_v52 = vsel %vm629_vm1, %v5576_v23, %v5644_v0 }
 0x13f   : > { %v5842_v62 = vpop.permute.xlu0 %841  ;;  %v5844_v51 = vpop.permute.xlu1 %843 }
 0x144   : > { %962 = vrot.lane.b32.xlu2 %v588_v28, %s5218_s17 }
 0x145   : > { %958 = vrot.lane.b32.xlu0 %v586_v11, %s5218_s17  ;;  %960 = vrot.lane.b32.xlu1 %v587_v13, %s5218_s17 }
 0x146   : > { %v5858_v20 = vpop.permute.xlu2 %869 }
 0x147   : > { %v5860_v63 = vpop.permute.xlu0 %847  ;;  %v5862_v61 = vpop.permute.xlu1 %849 }
 0x14c   : > { %968 = vrot.lane.b32.xlu2 %v5578_v27, %s5218_s17  ;;  %v635_v27 = vsel %vm629_vm1, %v5614_v42, %v5612_v47  ;;  %v636_v42 = vsel %vm629_vm1, %v5612_v47, %v5564_v14  ;;  %v641_v47 = vsel %vm629_vm1, %v5644_v0, %v5642_v43  ;;  %v639_v14 = vsel %vm629_vm1, %v5627_v46, %v5576_v23 }
 0x14d   : > { %964 = vrot.lane.b32.xlu0 %v589_v41, %s5218_s17  ;;  %966 = vrot.lane.b32.xlu1 %v5580_v29, %s5218_s17  ;;  %v644_v46 = vsel %vm629_vm1, %v5659_v31, %v5657_v44  ;;  %v642_v23 = vsel %vm629_vm1, %v5642_v43, %v5590_v38  ;;  %v643_v0 = vsel %vm629_vm1, %v5590_v38, %v5659_v31  ;;  %v8940_v38 = vld [vmem:[#allocation5_spill] sm:$0xff] }
 0x14e   : > { %v5872_v18 = vpop.permute.xlu2 %902 }
 0x14f   : > { %8929 = vst [vmem:[#allocation33_spill] sm:$0xff] %v5872_v18  ;;  %v5874_v22 = vpop.permute.xlu0 %853  ;;  %v5876_v12 = vpop.permute.xlu1 %855  ;;  %v8972_v18 = vld [vmem:[#allocation29_spill] sm:$0xff] }
 0x154   : > { %974 = vrot.lane.b32.xlu2 %v632_v2, %s5218_s17 }
 0x155   : > { %970 = vrot.lane.b32.xlu0 %v630_v55, %s5218_s17  ;;  %972 = vrot.lane.b32.xlu1 %v631_v9, %s5218_s17 }
 0x156   : > { %v5890_v28 = vpop.permute.xlu2 %908 }
 0x157   : > { %8930 = vst [vmem:[#allocation34_spill] sm:$0xff] %v5890_v28  ;;  %v5892_v11 = vpop.permute.xlu0 %859  ;;  %v5894_v13 = vpop.permute.xlu1 %861 }
 0x15c   : > { %980 = vrot.lane.b32.xlu2 %v635_v27, %s5218_s17 }
 0x15d   : > { %976 = vrot.lane.b32.xlu0 %v633_v1, %s5218_s17  ;;  %978 = vrot.lane.b32.xlu1 %v634_v40, %s5218_s17 }
 0x15e   : > { %v5908_v41 = vpop.permute.xlu2 %914 }
 0x15f   : > { %8931 = vst [vmem:[#allocation35_spill] sm:$0xff] %v5908_v41  ;;  %v5910_v2 = vpop.permute.xlu0 %865  ;;  %v5912_v55 = vpop.permute.xlu1 %867  ;;  %v8950_v41 = vld [vmem:[#allocation6_spill] sm:$0xff] }
 0x164   : > { %986 = vrot.lane.b32.xlu2 %v638_v39, %s5218_s17 }
 0x165   : > { %982 = vrot.lane.b32.xlu0 %v636_v42, %s5218_s17  ;;  %984 = vrot.lane.b32.xlu1 %v637_v10, %s5218_s17 }
 0x166   : > { %v5926_v9 = vpop.permute.xlu2 %920 }
 0x167   : > { %8932 = vst [vmem:[#allocation36_spill] sm:$0xff] %v5926_v9  ;;  %v5928_v27 = vpop.permute.xlu0 %871  ;;  %v5930_v1 = vpop.permute.xlu1 %900  ;;  %v8961_v9 = vld [vmem:[#allocation16_spill] sm:$0xff] }
 0x168   : > { %8933 = vst [vmem:[#allocation37_spill] sm:$0xff] %v5930_v1 }
 0x16c   : > { %992 = vrot.lane.b32.xlu2 %v641_v47, %s5218_s17 }
 0x16d   : > { %988 = vrot.lane.b32.xlu0 %v639_v14, %s5218_s17  ;;  %990 = vrot.lane.b32.xlu1 %v640_v52, %s5218_s17  ;;  %v8938_v52 = vld [vmem:[#allocation23_spill] sm:$0xff] }
 0x16e   : > { %v5944_v40 = vpop.permute.xlu2 %926  ;;  %v645_v43 = vsel %vm629_vm1, %v5657_v44, %v8938_v52  ;;  %v8945_v44 = vld [vmem:[#allocation7_spill] sm:$0xff] }
 0x16f   : > { %8934 = vst [vmem:[#allocation38_spill] sm:$0xff] %v5944_v40  ;;  %v5946_v39 = vpop.permute.xlu0 %904  ;;  %v5948_v42 = vpop.permute.xlu1 %906  ;;  %v8939_v40 = vld [vmem:[#allocation8_spill] sm:$0xff] }
 0x174   : > { %998 = vrot.lane.b32.xlu2 %v644_v46, %s5218_s17 }
 0x175   : > { %994 = vrot.lane.b32.xlu0 %v642_v23, %s5218_s17  ;;  %996 = vrot.lane.b32.xlu1 %v643_v0, %s5218_s17  ;;  %v8943_v0 = vld [vmem:[#allocation3_spill] sm:$0xff] }
 0x176   : > { %v5962_v10 = vpop.permute.xlu2 %932 }
 0x177   : > { %8935 = vst [vmem:[#allocation39_spill] sm:$0xff] %v5962_v10  ;;  %v5964_v47 = vpop.permute.xlu0 %910  ;;  %v5966_v14 = vpop.permute.xlu1 %912  ;;  %v8944_v10 = vld [vmem:[#allocation4_spill] sm:$0xff] }
 0x178   : > { %8936 = vst [vmem:[#allocation40_spill] sm:$0xff] %v5964_v47 }
 0x179   : > { %8937 = vst [vmem:[#allocation41_spill] sm:$0xff] %v5966_v14  ;;  %v8973_v14 = vld [vmem:[#allocation28_spill] sm:$0xff] }
 0x17c   : > { %1004 = vrot.lane.b32.xlu2 %v8939_v40, %s5218_s17 }
 0x17d   : > { %1000 = vrot.lane.b32.xlu0 %v645_v43, %s5218_s17  ;;  %1002 = vrot.lane.b32.xlu1 %v8940_v38, %s5218_s17  ;;  %v8949_v38 = vld [vmem:[#allocation10_spill] sm:$0xff] }
 0x17e   : > { %v5976_v31 = vpop.permute.xlu2 %938 }
 0x17f   : > { %v5978_v46 = vpop.permute.xlu0 %916  ;;  %v5980_v23 = vpop.permute.xlu1 %918 }
 0x180   : > { %8941 = vst [vmem:[#allocation23_spill] sm:$0xff] %v5978_v46 }
 0x181   : > { %8942 = vst [vmem:[#allocation8_spill] sm:$0xff] %v5980_v23  ;;  %v8955_v23 = vld [vmem:[#allocation13_spill] sm:$0xff] }
 0x184   : > { %1010 = vrot.lane.b32.xlu2 %v8943_v0, %s5218_s17  ;;  %v8951_v0 = vld [vmem:[#allocation11_spill] sm:$0xff] }
 0x185   : > { %1006 = vrot.lane.b32.xlu0 %v8944_v10, %s5218_s17  ;;  %1008 = vrot.lane.b32.xlu1 %v8945_v44, %s5218_s17 }
 0x186   : > { %v5988_v40 = vpop.permute.xlu2 %944 }
 0x187   : > { %8946 = vst [vmem:[#allocation5_spill] sm:$0xff] %v5988_v40  ;;  %v5990_v52 = vpop.permute.xlu0 %922  ;;  %v5992_v43 = vpop.permute.xlu1 %924 }
 0x188   : > { %8947 = vst [vmem:[#allocation3_spill] sm:$0xff] %v5990_v52  ;;  %v8956_v52 = vld [vmem:[#allocation9_spill] sm:$0xff] }
 0x189   : > { %8948 = vst [vmem:[#allocation4_spill] sm:$0xff] %v5992_v43 }
 0x18c   : > { %1016 = vrot.lane.b32.xlu2 %v8949_v38, %s5218_s17  ;;  %v8957_v38 = vld [vmem:[#allocation14_spill] sm:$0xff] }
 0x18d   : > { %1012 = vrot.lane.b32.xlu0 %v8950_v41, %s5218_s17  ;;  %1014 = vrot.lane.b32.xlu1 %v8951_v0, %s5218_s17 }
 0x18e   : > { %v6000_v46 = vpop.permute.xlu2 %950 }
 0x18f   : > { %8952 = vst [vmem:[#allocation7_spill] sm:$0xff] %v6000_v46  ;;  %v6002_v10 = vpop.permute.xlu0 %928  ;;  %v6004_v44 = vpop.permute.xlu1 %930 }
 0x190   : > { %8953 = vst [vmem:[#allocation10_spill] sm:$0xff] %v6002_v10 }
 0x191   : > { %8954 = vst [vmem:[#allocation6_spill] sm:$0xff] %v6004_v44  ;;  %v8962_v44 = vld [vmem:[#allocation12_spill] sm:$0xff] }
 0x194   : > { %1022 = vrot.lane.b32.xlu2 %v8955_v23, %s5218_s17  ;;  %v8963_v23 = vld [vmem:[#allocation17_spill] sm:$0xff] }
 0x195   : > { %1018 = vrot.lane.b32.xlu0 %v8956_v52, %s5218_s17  ;;  %1020 = vrot.lane.b32.xlu1 %v8957_v38, %s5218_s17 }
 0x196   : > { %v6012_v43 = vpop.permute.xlu2 %956 }
 0x197   : > { %8958 = vst [vmem:[#allocation11_spill] sm:$0xff] %v6012_v43  ;;  %v6014_v41 = vpop.permute.xlu0 %934  ;;  %v6016_v0 = vpop.permute.xlu1 %936 }
 0x198   : > { %8959 = vst [vmem:[#allocation13_spill] sm:$0xff] %v6014_v41  ;;  %v8976_v41 = vld [vmem:[#allocation25_spill] sm:$0xff] }
 0x199   : > { %8960 = vst [vmem:[#allocation9_spill] sm:$0xff] %v6016_v0  ;;  %v8977_v0 = vld [vmem:[#allocation32_spill] sm:$0xff] }
 0x19c   : > { %1028 = vrot.lane.b32.xlu2 %v8961_v9, %s5218_s17  ;;  %v8966_v9 = vld [vmem:[#allocation19_spill] sm:$0xff] }
 0x19d   : > { %1024 = vrot.lane.b32.xlu0 %v8962_v44, %s5218_s17  ;;  %1026 = vrot.lane.b32.xlu1 %v8963_v23, %s5218_s17  ;;  %v8967_v44 = vld [vmem:[#allocation15_spill] sm:$0xff]  ;;  %v8968_v23 = vld [vmem:[#allocation18_spill] sm:$0xff] }
 0x19e   : > { %v6024_v10 = vpop.permute.xlu2 %962 }
 0x19f   : > { %8964 = vst [vmem:[#allocation14_spill] sm:$0xff] %v6024_v10  ;;  %v6026_v52 = vpop.permute.xlu0 %940  ;;  %v6028_v38 = vpop.permute.xlu1 %942  ;;  %v6045_v10 = vsel %vm1152_vm2, %v5890_v28, %v5964_v47  ;;  %v690_v28 = vsel %vm574_vm0, %v8977_v0, %v8976_v41 }
 0x1a0   : > { %v6033_v43 = vsel %vm1152_vm2, %v6028_v38, %v5988_v40  ;;  %8969 = vst [vmem:[#allocation12_spill] sm:$0xff] %v6045_v10  ;;  %v8978_v40 = vld [vmem:[#allocation31_spill] sm:$0xff] }
 0x1a1   : > { %8965 = vst [vmem:[#allocation16_spill] sm:$0xff] %v6033_v43  ;;  %1451 = vmatpush.bf16.msra.mxu1 %v6033_v43 }
 0x1a4   : > { %1034 = vrot.lane.b32.xlu2 %v8966_v9, %s5218_s17  ;;  %v8971_v9 = vld [vmem:[#allocation24_spill] sm:$0xff] }
 0x1a5   : > { %1030 = vrot.lane.b32.xlu0 %v8967_v44, %s5218_s17  ;;  %1032 = vrot.lane.b32.xlu1 %v8968_v23, %s5218_s17  ;;  %v687_v44 = vsel %vm574_vm0, %v8972_v18, %v8971_v9  ;;  %v686_v23 = vsel %vm574_vm0, %v8973_v14, %v8972_v18  ;;  %v688_v18 = vsel %vm574_vm0, %v8971_v9, %v8978_v40 }
 0x1a6   : > { %1452 = vmatpush.bf16.msra.mxu1 %v6045_v10  ;;  %v6048_v46 = vpop.permute.xlu2 %968 }
 0x1a7   : > { %v6050_v1 = vpop.permute.xlu0 %946  ;;  %v6052_v43 = vpop.permute.xlu1 %948 }
 0x1a8   : > { %8970 = vst [vmem:[#allocation17_spill] sm:$0xff] %v6052_v43 }
 0x1ac   : > { %1040 = vrot.lane.b32.xlu2 %v687_v44, %s5218_s17 }
 0x1ad   : > { %1036 = vrot.lane.b32.xlu0 %v8973_v14, %s5218_s17  ;;  %1038 = vrot.lane.b32.xlu1 %v686_v23, %s5218_s17  ;;  %v689_v14 = vsel %vm574_vm0, %v8978_v40, %v8977_v0  ;;  %v691_v40 = vsel %vm574_vm0, %v8976_v41, %v5702_v45 }
 0x1ae   : > { %v6064_v10 = vpop.permute.xlu2 %974 }
 0x1af   : > { %v6066_v47 = vpop.permute.xlu0 %952  ;;  %v6068_v43 = vpop.permute.xlu1 %954 }
 0x1b0   : > { %8974 = vst [vmem:[#allocation19_spill] sm:$0xff] %v6066_v47 }
 0x1b1   : > { %8975 = vst [vmem:[#allocation15_spill] sm:$0xff] %v6068_v43  ;;  %v8980_v43 = vld [vmem:[#allocation26_spill] sm:$0xff] }
 0x1b2   : > { %v693_v9 = vsel %vm574_vm0, %v5704_v56, %v8980_v43 }
 0x1b4   : > { %1046 = vrot.lane.b32.xlu2 %v690_v28, %s5218_s17  ;;  %v692_v28 = vsel %vm574_vm0, %v5702_v45, %v5704_v56  ;;  %v694_v45 = vsel %vm574_vm0, %v8980_v43, %v5711_v15  ;;  %v695_v56 = vsel %vm574_vm0, %v5711_v15, %v5713_v7 }
 0x1b5   : > { %1042 = vrot.lane.b32.xlu0 %v688_v18, %s5218_s17  ;;  %1044 = vrot.lane.b32.xlu1 %v689_v14, %s5218_s17 }
 0x1b6   : > { %v6082_v44 = vpop.permute.xlu2 %980 }
 0x1b7   : > { %v6084_v23 = vpop.permute.xlu0 %958  ;;  %v6086_v47 = vpop.permute.xlu1 %960 }
 0x1b8   : > { %8979 = vst [vmem:[#allocation18_spill] sm:$0xff] %v6084_v23  ;;  %v8984_v23 = vld [vmem:[#allocation27_spill] sm:$0xff] }
 0x1b9   : > { %v696_v41 = vsel %vm574_vm0, %v5713_v7, %v8984_v23  ;;  %v697_v15 = vsel %vm574_vm0, %v8984_v23, %v5723_v8  ;;  %v698_v7 = vsel %vm574_vm0, %v5723_v8, %v5725_v17 }
 0x1bc   : > { %1052 = vrot.lane.b32.xlu2 %v693_v9, %s5218_s17 }
 0x1bd   : > { %1048 = vrot.lane.b32.xlu0 %v691_v40, %s5218_s17  ;;  %1050 = vrot.lane.b32.xlu1 %v692_v28, %s5218_s17 }
 0x1be   : > { %v6100_v0 = vpop.permute.xlu2 %986 }
 0x1bf   : > { %8981 = vst [vmem:[#allocation24_spill] sm:$0xff] %v6100_v0  ;;  %v6102_v18 = vpop.permute.xlu0 %964  ;;  %v6104_v14 = vpop.permute.xlu1 %966 }
 0x1c0   : > { %8982 = vst [vmem:[#allocation29_spill] sm:$0xff] %v6102_v18  ;;  %v4973_v18 = vld [vmem:[%s8728_s2 + $0x4] sm:$0xf0] }
 0x1c1   : > { %8983 = vst [vmem:[#allocation28_spill] sm:$0xff] %v6104_v14  ;;  %v8986_v14 = vld [vmem:[#allocation30_spill] sm:$0xff] }
 0x1c2   : > { %v699_v43 = vsel %vm574_vm0, %v5725_v17, %v8986_v14  ;;  %v700_v23 = vsel %vm574_vm0, %v8986_v14, %v5735_v58  ;;  %v740_v14 = vsel %vm629_vm1, %v5737_v59, %v5697_v30 }
 0x1c4   : > { %1058 = vrot.lane.b32.xlu2 %v696_v41, %s5218_s17 }
 0x1c5   : > { %1054 = vrot.lane.b32.xlu0 %v694_v45, %s5218_s17  ;;  %1056 = vrot.lane.b32.xlu1 %v695_v56, %s5218_s17 }
 0x1c6   : > { %v6118_v9 = vpop.permute.xlu2 %992 }
 0x1c7   : > { %8985 = vst [vmem:[#allocation25_spill] sm:$0xff] %v6118_v9  ;;  %v6120_v40 = vpop.permute.xlu0 %970  ;;  %v6122_v28 = vpop.permute.xlu1 %972 }
 0x1cc   : > { %1064 = vrot.lane.b32.xlu2 %v699_v43, %s5218_s17 }
 0x1cd   : > { %1060 = vrot.lane.b32.xlu0 %v697_v15, %s5218_s17  ;;  %1062 = vrot.lane.b32.xlu1 %v698_v7, %s5218_s17  ;;  %v742_v15 = vsel %vm629_vm1, %v5747_v5, %v5749_v6  ;;  %v741_v7 = vsel %vm629_vm1, %v5697_v30, %v5747_v5  ;;  %v743_v30 = vsel %vm629_vm1, %v5749_v6, %v5709_v48 }
 0x1ce   : > { %v6136_v41 = vpop.permute.xlu2 %998  ;;  %v744_v5 = vsel %vm629_vm1, %v5709_v48, %v5761_v21  ;;  %v748_v6 = vsel %vm629_vm1, %v5772_v36, %v5774_v37  ;;  %v746_v48 = vsel %vm629_vm1, %v5763_v34, %v5721_v3 }
 0x1cf   : > { %8987 = vst [vmem:[#allocation32_spill] sm:$0xff] %v6136_v41  ;;  %v6138_v45 = vpop.permute.xlu0 %976  ;;  %v6140_v56 = vpop.permute.xlu1 %978 }
 0x1d4   : > { %1070 = vrot.lane.b32.xlu2 %v5737_v59, %s5218_s17  ;;  %v745_v59 = vsel %vm629_vm1, %v5761_v21, %v5763_v34  ;;  %v747_v21 = vsel %vm629_vm1, %v5721_v3, %v5772_v36  ;;  %v751_v34 = vsel %vm629_vm1, %v5788_v54, %v5790_v33  ;;  %v749_v3 = vsel %vm629_vm1, %v5774_v37, %v5733_v57 }
 0x1d5   : > { %1066 = vrot.lane.b32.xlu0 %v700_v23, %s5218_s17  ;;  %1068 = vrot.lane.b32.xlu1 %v5735_v58, %s5218_s17  ;;  %v750_v36 = vsel %vm629_vm1, %v5733_v57, %v5788_v54  ;;  %v754_v37 = vsel %vm629_vm1, %v5806_v24, %v5808_v19  ;;  %v752_v57 = vsel %vm629_vm1, %v5790_v33, %v5745_v4 }
 0x1d6   : > { %v6150_v8 = vpop.permute.xlu2 %1004  ;;  %v753_v54 = vsel %vm629_vm1, %v5745_v4, %v5806_v24  ;;  %v755_v33 = vsel %vm629_vm1, %v5808_v19, %v5759_v60  ;;  %v8997_v4 = vld [vmem:[#allocation20_spill] sm:$0xff]  ;;  %v8999_v60 = vld [vmem:[#allocation22_spill] sm:$0xff] }
 0x1d7   : > { %v6152_v17 = vpop.permute.xlu0 %982  ;;  %v6154_v43 = vpop.permute.xlu1 %984 }
 0x1dc   : > { %1076 = vrot.lane.b32.xlu2 %v742_v15, %s5218_s17 }
 0x1dd   : > { %1072 = vrot.lane.b32.xlu0 %v740_v14, %s5218_s17  ;;  %1074 = vrot.lane.b32.xlu1 %v741_v7, %s5218_s17 }
 0x1de   : > { %v6168_v58 = vpop.permute.xlu2 %1010 }
 0x1df   : > { %v6170_v23 = vpop.permute.xlu0 %988  ;;  %v6172_v41 = vpop.permute.xlu1 %990 }
 0x1e0   : > { %8988 = vst [vmem:[#allocation31_spill] sm:$0xff] %v6170_v23 }
 0x1e1   : > { %8989 = vst [vmem:[#allocation26_spill] sm:$0xff] %v6172_v41 }
 0x1e4   : > { %1082 = vrot.lane.b32.xlu2 %v745_v59, %s5218_s17 }
 0x1e5   : > { %1078 = vrot.lane.b32.xlu0 %v743_v30, %s5218_s17  ;;  %1080 = vrot.lane.b32.xlu1 %v744_v5, %s5218_s17 }
 0x1e6   : > { %v6186_v15 = vpop.permute.xlu2 %1016 }
 0x1e7   : > { %v6188_v14 = vpop.permute.xlu0 %994  ;;  %v6190_v7 = vpop.permute.xlu1 %996 }
 0x1e8   : > { %8990 = vst [vmem:[#allocation27_spill] sm:$0xff] %v6188_v14  ;;  %v8996_v14 = vld [vmem:[#allocation21_spill] sm:$0xff] }
 0x1e9   : > { %8991 = vst [vmem:[#allocation30_spill] sm:$0xff] %v6190_v7 }
 0x1ec   : > { %1088 = vrot.lane.b32.xlu2 %v748_v6, %s5218_s17 }
 0x1ed   : > { %1084 = vrot.lane.b32.xlu0 %v746_v48, %s5218_s17  ;;  %1086 = vrot.lane.b32.xlu1 %v747_v21, %s5218_s17 }
 0x1ee   : > { %v6204_v59 = vpop.permute.xlu2 %1022 }
 0x1ef   : > { %8992 = vst [vmem:[#allocation42_spill] sm:$0xff] %v6204_v59  ;;  %v6206_v30 = vpop.permute.xlu0 %1000  ;;  %v6208_v5 = vpop.permute.xlu1 %1002 }
 0x1f0   : > { %8993 = vst [vmem:[#allocation43_spill] sm:$0xff] %v6206_v30 }
 0x1f4   : > { %1094 = vrot.lane.b32.xlu2 %v751_v34, %s5218_s17 }
 0x1f5   : > { %1090 = vrot.lane.b32.xlu0 %v749_v3, %s5218_s17  ;;  %1092 = vrot.lane.b32.xlu1 %v750_v36, %s5218_s17 }
 0x1f6   : > { %v6222_v6 = vpop.permute.xlu2 %1028 }
 0x1f7   : > { %8994 = vst [vmem:[#allocation44_spill] sm:$0xff] %v6222_v6  ;;  %v6224_v48 = vpop.permute.xlu0 %1006  ;;  %v6226_v21 = vpop.permute.xlu1 %1008 }
 0x1fc   : > { %1100 = vrot.lane.b32.xlu2 %v754_v37, %s5218_s17 }
 0x1fd   : > { %1096 = vrot.lane.b32.xlu0 %v752_v57, %s5218_s17  ;;  %1098 = vrot.lane.b32.xlu1 %v753_v54, %s5218_s17  ;;  %v768_v54 = vsel %vm574_vm0, %v5580_v29, %v5824_v35 }
 0x1fe   : > { %v6240_v34 = vpop.permute.xlu2 %1034 }
 0x1ff   : > { %8995 = vst [vmem:[#allocation45_spill] sm:$0xff] %v6240_v34  ;;  %v6242_v3 = vpop.permute.xlu0 %1012  ;;  %v6244_v36 = vpop.permute.xlu1 %1014 }
 0x204   : > { %1106 = vrot.lane.b32.xlu2 %v8996_v14, %s5218_s17 }
 0x205   : > { %1102 = vrot.lane.b32.xlu0 %v755_v33, %s5218_s17  ;;  %1104 = vrot.lane.b32.xlu1 %v8997_v4, %s5218_s17  ;;  %v769_v4 = vsel %vm574_vm0, %v5824_v35, %v5826_v26  ;;  %v873_v35 = vsel %vm629_vm1, %v5770_v32, %v5842_v62 }
 0x206   : > { %v6254_v24 = vpop.permute.xlu2 %1040 }
 0x207   : > { %v6256_v37 = vpop.permute.xlu0 %1018  ;;  %v6258_v57 = vpop.permute.xlu1 %1020 }
 0x208   : > { %8998 = vst [vmem:[#allocation21_spill] sm:$0xff] %v6258_v57 }
 0x20c   : > { %1112 = vrot.lane.b32.xlu2 %v768_v54, %s5218_s17 }
 0x20d   : > { %1108 = vrot.lane.b32.xlu0 %v8999_v60, %s5218_s17  ;;  %1110 = vrot.lane.b32.xlu1 %v5508_v49, %s5218_s17  ;;  %v875_v60 = vsel %vm629_vm1, %v5844_v51, %v5786_v53 }
 0x20e   : > { %v6268_v19 = vpop.permute.xlu2 %1046 }
 0x20f   : > { %v6270_v14 = vpop.permute.xlu0 %1024  ;;  %v6272_v33 = vpop.permute.xlu1 %1026 }
 0x210   : > { %9000 = vst [vmem:[#allocation20_spill] sm:$0xff] %v6270_v14 }
 0x211   : > { %9001 = vst [vmem:[#allocation22_spill] sm:$0xff] %v6272_v33  ;;  %v9032_v33 = vld [vmem:[#allocation8_spill] sm:$0xff] }
 0x214   : > { %1118 = vrot.lane.b32.xlu2 %v5770_v32, %s5218_s17  ;;  %v878_v32 = vsel %vm629_vm1, %v5862_v61, %v5804_v50 }
 0x215   : > { %1114 = vrot.lane.b32.xlu0 %v769_v4, %s5218_s17  ;;  %1116 = vrot.lane.b32.xlu1 %v5826_v26, %s5218_s17  ;;  %v874_v4 = vsel %vm629_vm1, %v5842_v62, %v5844_v51  ;;  %v876_v62 = vsel %vm629_vm1, %v5786_v53, %v5860_v63  ;;  %v877_v51 = vsel %vm629_vm1, %v5860_v63, %v5862_v61 }
 0x216   : > { %v6282_v29 = vpop.permute.xlu2 %1052  ;;  %v881_v53 = vsel %vm629_vm1, %v5876_v12, %v5822_v25  ;;  %v879_v63 = vsel %vm629_vm1, %v5804_v50, %v5874_v22  ;;  %v880_v61 = vsel %vm629_vm1, %v5874_v22, %v5876_v12  ;;  %v884_v50 = vsel %vm629_vm1, %v5894_v13, %v5840_v16 }
 0x217   : > { %v6284_v49 = vpop.permute.xlu0 %1030  ;;  %v6286_v54 = vpop.permute.xlu1 %1032  ;;  %v882_v22 = vsel %vm629_vm1, %v5822_v25, %v5892_v11  ;;  %v883_v12 = vsel %vm629_vm1, %v5892_v11, %v5894_v13  ;;  %v885_v25 = vsel %vm629_vm1, %v5840_v16, %v5910_v2  ;;  %v886_v11 = vsel %vm629_vm1, %v5910_v2, %v5912_v55 }
 0x218   : > { %9002 = vst [vmem:[#allocation46_spill] sm:$0xff] %v6284_v49  ;;  %v1203_v49 = vsel %vm1152_vm2, %v6224_v48, %v6226_v21 }
 0x219   : > { %9003 = vst [vmem:[#allocation47_spill] sm:$0xff] %v6286_v54 }
 0x21c   : > { %1124 = vrot.lane.b32.xlu2 %v875_v60, %s5218_s17 }
 0x21d   : > { %1120 = vrot.lane.b32.xlu0 %v873_v35, %s5218_s17  ;;  %1122 = vrot.lane.b32.xlu1 %v874_v4, %s5218_s17 }
 0x21e   : > { %v6300_v26 = vpop.permute.xlu2 %1058 }
 0x21f   : > { %v6302_v7 = vpop.permute.xlu0 %1036  ;;  %v6304_v30 = vpop.permute.xlu1 %1038 }
 0x224   : > { %1130 = vrot.lane.b32.xlu2 %v878_v32, %s5218_s17 }
 0x225   : > { %1126 = vrot.lane.b32.xlu0 %v876_v62, %s5218_s17  ;;  %1128 = vrot.lane.b32.xlu1 %v877_v51, %s5218_s17 }
 0x226   : > { %v6322_v4 = vpop.permute.xlu2 %1064 }
 0x227   : > { %v6318_v60 = vpop.permute.xlu0 %1042  ;;  %v6320_v35 = vpop.permute.xlu1 %1044  ;;  %9004 = vst [vmem:[#allocation48_spill] sm:$0xff] %v6322_v4 }
 0x22c   : > { %1136 = vrot.lane.b32.xlu2 %v881_v53, %s5218_s17 }
 0x22d   : > { %1132 = vrot.lane.b32.xlu0 %v879_v63, %s5218_s17  ;;  %1134 = vrot.lane.b32.xlu1 %v880_v61, %s5218_s17  ;;  %v887_v61 = vsel %vm629_vm1, %v5912_v55, %v5858_v20 }
 0x22e   : > { %v6340_v51 = vpop.permute.xlu2 %1070 }
 0x22f   : > { %v6336_v32 = vpop.permute.xlu0 %1048  ;;  %v6338_v62 = vpop.permute.xlu1 %1050 }
 0x234   : > { %1142 = vrot.lane.b32.xlu2 %v884_v50, %s5218_s17 }
 0x235   : > { %1138 = vrot.lane.b32.xlu0 %v882_v22, %s5218_s17  ;;  %1140 = vrot.lane.b32.xlu1 %v883_v12, %s5218_s17  ;;  %v888_v22 = vsel %vm629_vm1, %v5858_v20, %v5928_v27  ;;  %v1219_v20 = vsel %vm1152_vm2, %v6254_v24, %v6318_v60 }
 0x236   : > { %v6361_v6 = vpop.permute.xlu2 %1076 }
 0x237   : > { %v6354_v53 = vpop.permute.xlu0 %1054  ;;  %v6356_v63 = vpop.permute.xlu1 %1056 }
 0x23c   : > { %1148 = vrot.lane.b32.xlu2 %v887_v61, %s5218_s17 }
 0x23d   : > { %1144 = vrot.lane.b32.xlu0 %v885_v25, %s5218_s17  ;;  %1146 = vrot.lane.b32.xlu1 %v886_v11, %s5218_s17 }
 0x23e   : > { %v6380_v16 = vpop.permute.xlu2 %1082 }
 0x23f   : > { %v6372_v13 = vpop.permute.xlu0 %1060  ;;  %v6374_v50 = vpop.permute.xlu1 %1062 }
 0x240   : > { %9005 = vst [vmem:[#allocation49_spill] sm:$0xff] %v6374_v50 }
 0x245   : > { %1150 = vrot.lane.b32.xlu0 %v888_v22, %s5218_s17 }
 0x246   : > { %v6390_v25 = vpop.permute.xlu2 %1088 }
 0x247   : > { %v6382_v12 = vpop.permute.xlu0 %1066  ;;  %v6384_v2 = vpop.permute.xlu1 %1068 }
 0x248   : > { %9006 = vst [vmem:[#allocation50_spill] sm:$0xff] %v6382_v12 }
 0x249   : > { %9007 = vst [vmem:[#allocation51_spill] sm:$0xff] %v6384_v2 }
 0x24e   : > { %v6405_v54 = vpop.permute.xlu2 %1094 }
 0x24f   : > { %v6386_v55 = vpop.permute.xlu0 %1072  ;;  %v6388_v61 = vpop.permute.xlu1 %1074 }
 0x250   : > { %v1235_v11 = vsel %vm1152_vm2, %v6388_v61, %v6361_v6 }
 0x251   : > { %1453 = vmatpush.bf16.msra.mxu1 %v1235_v11  ;;  %v1187_v11 = vsel %vm1152_vm2, %v6122_v28, %v6064_v10 }
 0x255   : > { %1454 = vmatpush.bf16.msra.mxu1 %v1219_v20  ;;  %v1171_v20 = vsel %vm1152_vm2, %v5976_v31, %v6026_v52 }
 0x256   : > { %v6417_v4 = vpop.permute.xlu2 %1100 }
 0x257   : > { %v6398_v27 = vpop.permute.xlu0 %1078  ;;  %v6400_v22 = vpop.permute.xlu1 %1080  ;;  %9008 = vst [vmem:[#allocation52_spill] sm:$0xff] %v6417_v4 }
 0x259   : > { %1455 = vmatpush.bf16.msra.mxu1 %v1203_v49  ;;  %v1155_v49 = vsel %vm1152_vm2, %v5946_v39, %v5948_v42 }
 0x25d   : > { %1456 = vmatpush.bf16.msra.mxu1 %v1187_v11  ;;  %v4643_v11 = vld [vmem:[%s8728_s2] sm:$0xf] }
 0x25e   : > { %v6434_v4 = vpop.permute.xlu2 %1106 }
 0x25f   : > { %v6410_v34 = vpop.permute.xlu0 %1084  ;;  %v6412_v50 = vpop.permute.xlu1 %1086  ;;  %9009 = vst [vmem:[#allocation53_spill] sm:$0xff] %v6434_v4 }
 0x261   : > { %1457 = vmatpush.bf16.msra.mxu1 %v1171_v20  ;;  %v6432_v20 = vor.u32 %v4973_v18, %v4643_v11 }
 0x265   : > { %1458 = vmatpush.bf16.msra.mxu1 %v1155_v49 }
 0x266   : > { %v6445_v57 = vpop.permute.xlu2 %1112 }
 0x267   : > { %v6422_v12 = vpop.permute.xlu0 %1090  ;;  %v6424_v2 = vpop.permute.xlu1 %1092  ;;  %9014 = vst [vmem:[#allocation58_spill] sm:$0xff] %v6445_v57 }
 0x268   : > { %1459 = vmatmul.bf16.vlgmr.msra.gmra.mxu1 %v6432_v20 }
 0x26e   : > { %v1119_v11 = vpop.permute.xlu2 %1118 }
 0x26f   : > { %v6437_v0 = vpop.permute.xlu0 %1096  ;;  %v6439_v23 = vpop.permute.xlu1 %1098 }
 0x270   : > { %9010 = vst [vmem:[#allocation54_spill] sm:$0xff] %v6437_v0 }
 0x271   : > { %9011 = vst [vmem:[#allocation55_spill] sm:$0xff] %v6439_v23  ;;  %v1233_v23 = vsel %vm1152_vm2, %v6340_v51, %v6386_v55 }
 0x277   : > { %v6441_v41 = vpop.permute.xlu0 %1102  ;;  %v6443_v9 = vpop.permute.xlu1 %1104 }
 0x278   : > { %9012 = vst [vmem:[#allocation56_spill] sm:$0xff] %v6441_v41  ;;  %v1125_v41 = vpop.permute.xlu2 %1124 }
 0x279   : > { %9013 = vst [vmem:[#allocation57_spill] sm:$0xff] %v6443_v9  ;;  %v1217_v9 = vsel %vm1152_vm2, %v6302_v7, %v6304_v30  ;;  %v6476_v7 = vsel %vm1152_vm2, %v6026_v52, %v6028_v38 }
 0x27f   : > { %v6447_v59 = vpop.permute.xlu0 %1108  ;;  %v1111_v14 = vpop.permute.xlu1 %1110 }
 0x280   : > { %9015 = vst [vmem:[#allocation59_spill] sm:$0xff] %v6447_v59  ;;  %v1252_v18 = vsel %vm1152_vm2, %v1111_v14, %v6026_v52  ;;  %v4972_v14 = vld [vmem:[%s8728_s2 + $0x4] sm:$0xf]  ;;  %v9018_v52 = vld [vmem:[#allocation5_spill] sm:$0xff] }
 0x281   : > { %1395 = vmatpush.bf16.msra.mxu0 %v1252_v18  ;;  %v6491_v38 = vsel %vm1152_vm2, %v9018_v52, %v6050_v1 }
 0x285   : > { %1396 = vmatpush.bf16.msra.mxu0 %v1155_v49  ;;  %v4645_v49 = vld [vmem:[%s8728_s2 + $0x8] sm:$0xf0] }
 0x287   : > { %v6451_v4 = vpop.permute.xlu0 %1114  ;;  %v6453_v0 = vpop.permute.xlu1 %1116 }
 0x288   : > { %9016 = vst [vmem:[#allocation60_spill] sm:$0xff] %v6451_v4  ;;  %v6478_v4 = vor.u32 %v4972_v14, %v4645_v49  ;;  %v9020_v49 = vld [vmem:[#allocation9_spill] sm:$0xff] }
 0x289   : > { %9017 = vst [vmem:[#allocation61_spill] sm:$0xff] %v6453_v0  ;;  %1397 = vmatpush.bf16.msra.mxu0 %v1233_v23  ;;  %v1201_v23 = vsel %vm1152_vm2, %v6208_v5, %v6150_v8  ;;  %v1185_v5 = vsel %vm1152_vm2, %v6048_v46, %v6120_v40 }
 0x28d   : > { %1398 = vmatpush.bf16.msra.mxu0 %v1217_v9 }
 0x28f   : > { %v1121_v18 = vpop.permute.xlu0 %1120  ;;  %v1123_v59 = vpop.permute.xlu1 %1122 }
 0x290   : > { %v1256_v51 = vsel %vm1152_vm2, %v1119_v11, %v1121_v18  ;;  %v1257_v57 = vsel %vm1152_vm2, %v1121_v18, %v1123_v59  ;;  %v1258_v9 = vsel %vm1152_vm2, %v1123_v59, %v1125_v41  ;;  %v9019_v59 = vld [vmem:[#allocation34_spill] sm:$0xff]  ;;  %v6498_v11 = vpop.permute.xlu2 %1130  ;;  %v9021_v18 = vld [vmem:[#allocation13_spill] sm:$0xff] }
 0x291   : > { %1399 = vmatpush.bf16.msra.mxu0 %v1201_v23  ;;  %1416 = vmatpush.bf16.msra.mxu2 %v1256_v51  ;;  %v1169_v23 = vsel %vm1152_vm2, %v9021_v18, %v9020_v49  ;;  %v9025_v18 = vld [vmem:[#allocation37_spill] sm:$0xff] }
 0x292   : > { %1444 = vmatpush.bf16.msra.mxu3 %v1257_v57  ;;  %v6496_v57 = vsel %vm1152_vm2, %v5948_v42, %v9019_v59  ;;  %v9022_v42 = vld [vmem:[#allocation41_spill] sm:$0xff]  ;;  %v1234_v59 = vsel %vm1152_vm2, %v6386_v55, %v6388_v61  ;;  %v9026_v55 = vld [vmem:[#allocation15_spill] sm:$0xff] }
 0x293   : > { %v9027_v61 = vld [vmem:[#allocation19_spill] sm:$0xff] }
 0x294   : > { %4649 = vmatmul.msk.bf16.vlgmr.msra.gmra.mxu2 %vm1391_vm3, %v6478_v4 }
 0x295   : > { %1423 = vmatpush.bf16.msrb.mxu2 %v6476_v7  ;;  %4650 = vmatmul.msk.bf16.vlgmr.msra.gmra.mxu3 %vm1391_vm3, %v6478_v4 }
 0x296   : > { %1472 = vmatpush.bf16.msrb.mxu3 %v1258_v9  ;;  %1400 = vmatpush.bf16.msra.mxu0 %v1185_v5  ;;  %v9023_v5 = vld [vmem:[#allocation40_spill] sm:$0xff] }
 0x297   : > { %v1127_v46 = vpop.permute.xlu0 %1126  ;;  %v1129_v14 = vpop.permute.xlu1 %1128  ;;  %v6511_v52 = vsel %vm1152_vm2, %v9023_v5, %v9022_v42  ;;  %v1843_v5 = vld [vmem:[%s8729_s3] sm:$0xff] }
 0x298   : > { %v1260_v51 = vsel %vm1152_vm2, %v1127_v46, %v1129_v14  ;;  %v1261_v9 = vsel %vm1152_vm2, %v1129_v14, %v6498_v11  ;;  %v9024_v14 = vld [vmem:[#allocation33_spill] sm:$0xff]  ;;  %v1259_v0 = vsel %vm1152_vm2, %v1125_v41, %v1127_v46  ;;  %v1202_v41 = vsel %vm1152_vm2, %v6150_v8, %v6224_v48  ;;  %v9033_v46 = vld [vmem:[#allocation23_spill] sm:$0xff] }
 0x299   : > { %1424 = vmatpush.bf16.msrb.mxu2 %v6496_v57  ;;  %1528 = vmatpush.bf16.msrb.mxu1 %v1260_v51  ;;  %v6532_v51 = vsel %vm1152_vm2, %v9027_v61, %v9026_v55  ;;  %v9031_v55 = vld [vmem:[#allocation36_spill] sm:$0xff]  ;;  %v1204_v8 = vsel %vm1152_vm2, %v6226_v21, %v6168_v58  ;;  %v1240_v48 = vsel %vm1152_vm2, %v6410_v34, %v6412_v50 }
 0x29a   : > { %1479 = vmatpush.bf16.msra.mxu3 %v6491_v38  ;;  %1401 = vmatpush.bf16.msra.mxu0 %v1169_v23  ;;  %v1153_v23 = vsel %vm1152_vm2, %v9025_v18, %v9024_v14  ;;  %9028 = vst [vmem:[#allocation5_spill] sm:$0xff] %v6532_v51  ;;  %v1218_v18 = vsel %vm1152_vm2, %v6304_v30, %v6254_v24  ;;  %v1887_v24 = vld [vmem:[%s8730_s4] sm:$0xff] }
 0x29b   : > { %v6554_v30 = vsel %vm1152_vm2, %v9032_v33, %v9031_v55  ;;  %v1188_v21 = vsel %vm1152_vm2, %v6064_v10, %v6138_v45  ;;  %v1208_v10 = vsel %vm1152_vm2, %v6186_v15, %v6256_v37 }
 0x29c   : > { %4653 = vmatmul.msk.bf16.vlgmr.msrb.gmra.mxu1 %vm1391_vm3, %v6478_v4 }
 0x29d   : > { %1425 = vmatpush.bf16.msrb.mxu2 %v1234_v59  ;;  %1556 = vmatpush.bf16.msra.mxu1 %v1261_v9  ;;  %v5219_v9 = vmov 0   ;;  %v1236_v59 = vsel %vm1152_vm2, %v6361_v6, %v6398_v27  ;;  %v9029_v6 = vld [vmem:[#allocation7_spill] sm:$0xff] }
 0x29e   : > { %1480 = vmatpush.bf16.msra.mxu3 %v6511_v52  ;;  %5045 = vset.pattern.permute.xlu1 %v5219_v9  ;;  %3787 = vst [vmem:[%s6522_s28] sm:$0xff] %v5219_v9 }
 0x29f   : > { %1402 = vmatpush.bf16.msra.mxu0 %v1153_v23  ;;  %3788 = vst [vmem:[%s6522_s28 + $0x50] sm:$0xff] %v5219_v9  ;;  %1847 = vperm.xlu1 %5045, %v1843_v5   ;;  %v9030_v23 = vld [vmem:[#allocation17_spill] sm:$0xff]  ;;  %v9034_v5 = vld [vmem:[#allocation35_spill] sm:$0xff] }
 0x2a0   : > { %2029 = vst [vmem:[#allocation2] sm:$0xff] %v5219_v9  ;;  %5047 = vset.pattern.permute.xlu0 %v5219_v9  ;;  %5046 = vset.pattern.permute.xlu2 %v5219_v9 }
 0x2a1   : > { %1591 = vmatpush.bf16.msrb.mxu1 %v6532_v51  ;;  %1426 = vmatpush.bf16.msrb.mxu2 %v1218_v18  ;;  %2030 = vst [vmem:[#allocation2 + $0x50] sm:$0xff] %v5219_v9  ;;  %v1176_v51 = vsel %vm1152_vm2, %v9030_v23, %v9029_v6  ;;  %v1238_v18 = vsel %vm1152_vm2, %v6400_v22, %v6380_v16 }
 0x2a2   : > { %1481 = vmatpush.bf16.msra.mxu3 %v1236_v59  ;;  %1403 = vmatmul.bf16.vlgmr.msra.gmra.mxu0 %v6432_v20  ;;  %2063 = vst [vmem:[#allocation2 + $0x48] sm:$0xff] %v5219_v9  ;;  %v1888_v59 = vld [vmem:[%s8730_s4 + $0x8] sm:$0xff] }
 0x2a3   : > { %1500 = vmatpush.bf16.msrb.mxu0 %v1259_v0  ;;  %v1220_v0 = vsel %vm1152_vm2, %v6318_v60, %v6320_v35  ;;  %2064 = vst [vmem:[#allocation2 + $0x98] sm:$0xff] %v5219_v9  ;;  %v1160_v60 = vsel %vm1152_vm2, %v9034_v5, %v9033_v46  ;;  %1891 = vperm.xlu0 %5047, %v1887_v24   ;;  %v1137_v24 = vpop.permute.xlu2 %1136 }
 0x2a4   : > { %3821 = vst [vmem:[%s6522_s28 + $0x48] sm:$0xff] %v5219_v9 }
 0x2a5   : > { %1592 = vmatpush.bf16.msrb.mxu1 %v6554_v30  ;;  %1427 = vmatpush.bf16.msrb.mxu2 %v1202_v41  ;;  %3822 = vst [vmem:[%s6522_s28 + $0x98] sm:$0xff] %v5219_v9  ;;  %v1186_v9 = vsel %vm1152_vm2, %v6120_v40, %v6122_v28  ;;  %v1170_v40 = vsel %vm1152_vm2, %v9020_v49, %v5976_v31  ;;  %v6605_v41 = vpop.permute.xlu0 %1132 }
 0x2a6   : > { %1482 = vmatpush.bf16.msra.mxu3 %v1220_v0  ;;  %v1224_v0 = vsel %vm1152_vm2, %v6338_v62, %v6282_v29  ;;  %v1222_v28 = vsel %vm1152_vm2, %v6268_v19, %v6336_v32  ;;  %v1154_v31 = vsel %vm1152_vm2, %v9024_v14, %v5946_v39  ;;  %v6614_v49 = vsel %vm1152_vm2, %v6050_v1, %v9030_v23  ;;  %v1844_v23 = vld [vmem:[%s8729_s3 + $0x8] sm:$0xff] }
 0x2a7   : > { %1535 = vmatpush.bf16.msra.mxu0 %v1176_v51  ;;  %4651 = vmatmul.msk.bf16.vlgmr.msrb.gmra.mxu3 %vm1391_vm3, %v6478_v4  ;;  %v1192_v39 = vsel %vm1152_vm2, %v6152_v17, %v6154_v43  ;;  %v6630_v1 = vsel %vm1152_vm2, %v9029_v6, %v9027_v61  ;;  %v6636_v14 = vsel %vm1152_vm2, %v9022_v42, %v9034_v5 }
 0x2a8   : > { %1896 = vperm.xlu1 %5045, %v1888_v59   ;;  %v6646_v61 = vsel %vm1152_vm2, %v9033_v46, %v9032_v33  ;;  %v1237_v42 = vsel %vm1152_vm2, %v6398_v27, %v6400_v22  ;;  %1852 = vperm.xlu2 %5046, %v1844_v23   ;;  %v1135_v33 = vpop.permute.xlu1 %1134  ;;  %v1221_v22 = vsel %vm1152_vm2, %v6320_v35, %v6268_v19  ;;  %v9035_v46 = vld [vmem:[#allocation14_spill] sm:$0xff] }
 0x2a9   : > { %1593 = vmatpush.bf16.msrb.mxu1 %v1240_v48  ;;  %1428 = vmatpush.bf16.msrb.mxu2 %v1186_v9  ;;  %v1205_v19 = vsel %vm1152_vm2, %v6168_v58, %v6242_v3  ;;  %v9036_v35 = vld [vmem:[#allocation18_spill] sm:$0xff]  ;;  %v1189_v58 = vsel %vm1152_vm2, %v6138_v45, %v6140_v56  ;;  %v1244_v9 = vsel %vm1152_vm2, %v6424_v2, %v6405_v54 }
 0x2aa   : > { %1483 = vmatpush.bf16.msra.mxu3 %v1204_v8  ;;  %v9039_v59 = vld [vmem:[#allocation38_spill] sm:$0xff]  ;;  %v9041_v8 = vld [vmem:[#allocation3_spill] sm:$0xff]  ;;  %v1242_v45 = vsel %vm1152_vm2, %v6390_v25, %v6422_v12 }
 0x2ab   : > { %1536 = vmatpush.bf16.msra.mxu0 %v1160_v60  ;;  %v1163_v23 = vsel %vm1152_vm2, %v9031_v55, %v9041_v8 }
 0x2ac   : > { %4654 = vmatmul.msk.bf16.vlgmr.msra.gmra.mxu1 %vm1391_vm3, %v6478_v4 }
 0x2ad   : > { %1594 = vmatpush.bf16.msrb.mxu1 %v1224_v0  ;;  %1429 = vmatpush.bf16.msrb.mxu2 %v1170_v40  ;;  %v6652_v6 = vpop.permute.xlu0 %1138  ;;  %v9044_v0 = vld [vmem:[#allocation22_spill] sm:$0xff]  ;;  %v9045_v40 = vld [vmem:[#allocation20_spill] sm:$0xff] }
 0x2ae   : > { %1484 = vmatpush.bf16.msra.mxu3 %v1188_v21  ;;  %v1265_v27 = vsel %vm1152_vm2, %v1137_v24, %v6652_v6 }
 0x2af   : > { %1537 = vmatpush.bf16.msra.mxu0 %v1238_v18  ;;  %v9043_v18 = vld [vmem:[#allocation12_spill] sm:$0xff] }
 0x2b0   : > { %v6722_v21 = vpop.permute.xlu1 %1140 }
 0x2b1   : > { %1595 = vmatpush.bf16.msrb.mxu1 %v1208_v10  ;;  %1430 = vmatpush.bf16.msrb.mxu2 %v1154_v31  ;;  %v9047_v31 = vld [vmem:[#allocation42_spill] sm:$0xff] }
 0x2b2   : > { %1485 = vmatpush.bf16.msra.mxu3 %v6476_v7  ;;  %4652 = vmatmul.msk.bf16.vlgmr.msrb.gmra.mxu0 %vm1391_vm3, %v6478_v4  ;;  %v1206_v7 = vsel %vm1152_vm2, %v6242_v3, %v6244_v36  ;;  %v9040_v3 = vld [vmem:[#allocation4_spill] sm:$0xff] }
 0x2b3   : > { %1538 = vmatpush.bf16.msra.mxu0 %v1222_v28  ;;  %v1164_v48 = vsel %vm1152_vm2, %v9041_v8, %v9040_v3  ;;  %v1212_v28 = vsel %vm1152_vm2, %v9045_v40, %v9044_v0  ;;  %v9061_v8 = vld [vmem:[#allocation6_spill] sm:$0xff] }
 0x2b4   : > { %1431 = vmatmul.bf16.vlgmr.msrb.gmra.mxu2 %v6432_v20 }
 0x2b5   : > { %1507 = vmatpush.bf16.msra.mxu2 %v6614_v49  ;;  %1596 = vmatpush.bf16.msrb.mxu1 %v1192_v39  ;;  %v9049_v39 = vld [vmem:[#allocation25_spill] sm:$0xff] }
 0x2b6   : > { %1486 = vmatpush.bf16.msra.mxu3 %v6496_v57  ;;  %v1190_v57 = vsel %vm1152_vm2, %v6140_v56, %v6082_v44  ;;  %v1228_v56 = vsel %vm1152_vm2, %v6300_v26, %v6372_v13 }
 0x2b7   : > { %1539 = vmatpush.bf16.msra.mxu0 %v1206_v7 }
 0x2b8   : > { %v6767_v55 = vpop.permute.xlu1 %1146 }
 0x2b9   : > { %1508 = vmatpush.bf16.msra.mxu2 %v6636_v14  ;;  %1487 = vmatmul.bf16.vlgmr.msra.gmra.mxu3 %v6432_v20 }
 0x2ba   : > { %1563 = vmatpush.bf16.msrb.mxu3 %v6630_v1  ;;  %1597 = vmatpush.bf16.msrb.mxu1 %v1176_v51  ;;  %v1239_v51 = vsel %vm1152_vm2, %v6380_v16, %v6410_v34  ;;  %v6673_v34 = vsel %vm1152_vm2, %v6086_v47, %v9035_v46  ;;  %v1223_v16 = vsel %vm1152_vm2, %v6336_v32, %v6338_v62 }
 0x2bb   : > { %1540 = vmatpush.bf16.msra.mxu0 %v1190_v57  ;;  %v1207_v62 = vsel %vm1152_vm2, %v6244_v36, %v6186_v15  ;;  %v1191_v15 = vsel %vm1152_vm2, %v6082_v44, %v6152_v17  ;;  %v9042_v36 = vld [vmem:[#allocation16_spill] sm:$0xff]  ;;  %v1262_v44 = vsel %vm1152_vm2, %v6498_v11, %v6605_v41  ;;  %v1226_v17 = vsel %vm1152_vm2, %v6354_v53, %v6356_v63  ;;  %v9046_v11 = vld [vmem:[#allocation15_spill] sm:$0xff]  ;;  %v9050_v57 = vld [vmem:[#allocation26_spill] sm:$0xff] }
 0x2bd   : > { %1509 = vmatpush.bf16.msra.mxu2 %v1237_v42  ;;  %v1196_v42 = vsel %vm1152_vm2, %v9050_v57, %v9049_v39 }
 0x2be   : > { %1564 = vmatpush.bf16.msrb.mxu3 %v6646_v61  ;;  %1598 = vmatpush.bf16.msrb.mxu1 %v1160_v60  ;;  %v9038_v60 = vld [vmem:[#allocation10_spill] sm:$0xff] }
 0x2bf   : > { %1541 = vmatpush.bf16.msra.mxu0 %v6491_v38  ;;  %v1263_v38 = vsel %vm1152_vm2, %v6605_v41, %v1135_v33  ;;  %v6689_v32 = vsel %vm1152_vm2, %v9039_v59, %v9038_v60  ;;  %v1264_v41 = vsel %vm1152_vm2, %v1135_v33, %v1137_v24  ;;  %v9051_v24 = vld [vmem:[#allocation31_spill] sm:$0xff]  ;;  %v9052_v33 = vld [vmem:[#allocation24_spill] sm:$0xff] }
 0x2c1   : > { %1510 = vmatpush.bf16.msra.mxu2 %v1221_v22  ;;  %1599 = vmatmul.bf16.vlgmr.msrb.gmra.mxu1 %v6432_v20  ;;  %v1145_v22 = vpop.permute.xlu0 %1144 }
 0x2c2   : > { %1565 = vmatpush.bf16.msrb.mxu3 %v1239_v51  ;;  %1668 = vmatpush.bf16.msra.mxu1 %v1265_v27  ;;  %v1194_v51 = vsel %vm1152_vm2, %v9052_v33, %v9051_v24  ;;  %v6762_v27 = vsel %vm1152_vm2, %v9040_v3, %v9039_v59  ;;  %v9060_v3 = vld [vmem:[#allocation57_spill] sm:$0xff] }
 0x2c3   : > { %1542 = vmatpush.bf16.msra.mxu0 %v6511_v52  ;;  %v9037_v52 = vld [vmem:[#allocation11_spill] sm:$0xff] }
 0x2c4   : > { %v1180_v5 = vsel %vm1152_vm2, %v9037_v52, %v9036_v35  ;;  %v6733_v10 = vsel %vm1152_vm2, %v9046_v11, %v9037_v52  ;;  %v9068_v11 = vld [vmem:[#allocation48_spill] sm:$0xff] }
 0x2c5   : > { %1511 = vmatpush.bf16.msra.mxu2 %v1205_v19  ;;  %v1269_v19 = vsel %vm1152_vm2, %v1145_v22, %v6767_v55 }
 0x2c6   : > { %1703 = vmatpush.bf16.msrb.mxu1 %v6673_v34  ;;  %1566 = vmatpush.bf16.msrb.mxu3 %v1223_v16  ;;  %v1243_v16 = vsel %vm1152_vm2, %v6422_v12, %v6424_v2  ;;  %v1227_v12 = vsel %vm1152_vm2, %v6356_v63, %v6300_v26  ;;  %v9056_v2 = vld [vmem:[#allocation58_spill] sm:$0xff]  ;;  %v1193_v63 = vsel %vm1152_vm2, %v6154_v43, %v9052_v33 }
 0x2c7   : > { %1612 = vmatpush.bf16.msrb.mxu0 %v1263_v38  ;;  %v9053_v38 = vld [vmem:[#allocation5_spill] sm:$0xff]  ;;  %v9065_v43 = vld [vmem:[#allocation54_spill] sm:$0xff] }
 0x2c8   : > { %1543 = vmatmul.bf16.vlgmr.msra.gmra.mxu0 %v6432_v20 }
 0x2c9   : > { %1512 = vmatpush.bf16.msra.mxu2 %v1189_v58  ;;  %v9059_v58 = vld [vmem:[#allocation53_spill] sm:$0xff] }
 0x2ca   : > { %1704 = vmatpush.bf16.msrb.mxu1 %v6689_v32  ;;  %1567 = vmatpush.bf16.msrb.mxu3 %v1207_v62  ;;  %v9058_v62 = vld [vmem:[#allocation59_spill] sm:$0xff] }
 0x2cb   : > { %1647 = vmatpush.bf16.msra.mxu0 %v1180_v5  ;;  %v1251_v26 = vsel %vm1152_vm2, %v9059_v58, %v9058_v62 }
 0x2cd   : > { %1513 = vmatpush.bf16.msra.mxu2 %v9042_v36 }
 0x2ce   : > { %1705 = vmatpush.bf16.msrb.mxu1 %v1244_v9  ;;  %1568 = vmatpush.bf16.msrb.mxu3 %v1191_v15  ;;  %v9062_v9 = vld [vmem:[#allocation56_spill] sm:$0xff] }
 0x2cf   : > { %1648 = vmatpush.bf16.msra.mxu0 %v1164_v48  ;;  %v9063_v15 = vld [vmem:[#allocation52_spill] sm:$0xff] }
 0x2d0   : > { %v1248_v36 = vsel %vm1152_vm2, %v9063_v15, %v9062_v9 }
 0x2d1   : > { %1514 = vmatpush.bf16.msra.mxu2 %v9043_v18  ;;  %4658 = vmatmul.msk.bf16.vlgmr.msra.gmra.mxu1 %vm1391_vm3, %v6478_v4 }
 0x2d2   : > { %1706 = vmatpush.bf16.msrb.mxu1 %v1228_v56  ;;  %1569 = vmatpush.bf16.msrb.mxu3 %v6614_v49  ;;  %v9048_v49 = vld [vmem:[#allocation21_spill] sm:$0xff]  ;;  %v9064_v56 = vld [vmem:[#allocation55_spill] sm:$0xff] }
 0x2d3   : > { %1649 = vmatpush.bf16.msra.mxu0 %v1242_v45  ;;  %v1210_v7 = vsel %vm1152_vm2, %v9048_v49, %v9047_v31  ;;  %v1195_v45 = vsel %vm1152_vm2, %v9051_v24, %v9050_v57  ;;  %v1246_v18 = vsel %vm1152_vm2, %v9065_v43, %v9064_v56  ;;  %v9075_v24 = vld [vmem:[#allocation32_spill] sm:$0xff] }
 0x2d4   : > { %1515 = vmatmul.bf16.vlgmr.msra.gmra.mxu2 %v6432_v20 }
 0x2d5   : > { %1584 = vmatpush.bf16.msrb.mxu2 %v1262_v44  ;;  %v9066_v44 = vld [vmem:[#allocation51_spill] sm:$0xff] }
 0x2d6   : > { %1707 = vmatpush.bf16.msrb.mxu1 %v1212_v28  ;;  %1570 = vmatpush.bf16.msrb.mxu3 %v6636_v14  ;;  %v6750_v14 = vsel %vm1152_vm2, %v9036_v35, %v6086_v47  ;;  %v1241_v47 = vsel %vm1152_vm2, %v6412_v50, %v6390_v25  ;;  %v1225_v50 = vsel %vm1152_vm2, %v6282_v29, %v6354_v53  ;;  %v9054_v25 = vld [vmem:[#allocation61_spill] sm:$0xff]  ;;  %v9055_v35 = vld [vmem:[#allocation60_spill] sm:$0xff] }
 0x2d7   : > { %1650 = vmatpush.bf16.msra.mxu0 %v1226_v17  ;;  %v1255_v52 = vsel %vm1152_vm2, %v9055_v35, %v9054_v25  ;;  %v1209_v53 = vsel %vm1152_vm2, %v6256_v37, %v9048_v49  ;;  %v1211_v37 = vsel %vm1152_vm2, %v9047_v31, %v9045_v40  ;;  %v9067_v17 = vld [vmem:[#allocation50_spill] sm:$0xff]  ;;  %v1266_v28 = vsel %vm1152_vm2, %v6652_v6, %v6722_v21  ;;  %v9070_v31 = vld [vmem:[#allocation45_spill] sm:$0xff]  ;;  %v9071_v49 = vld [vmem:[#allocation47_spill] sm:$0xff] }
 0x2d8   : > { %4656 = vmatmul.msk.bf16.vlgmr.msrb.gmra.mxu0 %vm1391_vm3, %v6478_v4  ;;  %v1232_v40 = vsel %vm1152_vm2, %v9067_v17, %v9066_v44 }
 0x2d9   : > { %1619 = vmatpush.bf16.msra.mxu2 %v6733_v10  ;;  %1571 = vmatmul.bf16.vlgmr.msrb.gmra.mxu3 %v6432_v20 }
 0x2da   : > { %1640 = vmatpush.bf16.msra.mxu3 %v1264_v41  ;;  %1708 = vmatpush.bf16.msrb.mxu1 %v1196_v42  ;;  %v9074_v42 = vld [vmem:[#allocation43_spill] sm:$0xff] }
 0x2db   : > { %1651 = vmatpush.bf16.msra.mxu0 %v1210_v7  ;;  %v1216_v7 = vsel %vm1152_vm2, %v9071_v49, %v9070_v31  ;;  %v1200_v33 = vsel %vm1152_vm2, %v9075_v24, %v9074_v42 }
 0x2dd   : > { %1620 = vmatpush.bf16.msra.mxu2 %v1163_v23 }
 0x2de   : > { %1675 = vmatpush.bf16.msrb.mxu3 %v6750_v14  ;;  %1709 = vmatpush.bf16.msrb.mxu1 %v1180_v5  ;;  %v1143_v5 = vpop.permute.xlu2 %1142 }
 0x2df   : > { %1652 = vmatpush.bf16.msra.mxu0 %v1194_v51  ;;  %v1267_v29 = vsel %vm1152_vm2, %v6722_v21, %v1143_v5  ;;  %v1268_v6 = vsel %vm1152_vm2, %v1143_v5, %v1145_v22  ;;  %v9072_v21 = vld [vmem:[#allocation46_spill] sm:$0xff] }
 0x2e0   : > { %v9076_v51 = vld [vmem:[#allocation30_spill] sm:$0xff] }
 0x2e1   : > { %1621 = vmatpush.bf16.msra.mxu2 %v1241_v47  ;;  %v9077_v47 = vld [vmem:[#allocation27_spill] sm:$0xff] }
 0x2e2   : > { %1676 = vmatpush.bf16.msrb.mxu3 %v6762_v27  ;;  %1710 = vmatpush.bf16.msrb.mxu1 %v1164_v48  ;;  %v1249_v48 = vsel %vm1152_vm2, %v9061_v8, %v9060_v3  ;;  %v1198_v22 = vsel %vm1152_vm2, %v9077_v47, %v9076_v51 }
 0x2e3   : > { %1653 = vmatpush.bf16.msra.mxu0 %v9053_v38  ;;  %v9078_v38 = vld [vmem:[#allocation28_spill] sm:$0xff] }
 0x2e4   : > { %4655 = vmatmul.msk.bf16.vlgmr.msrb.gmra.mxu2 %vm1391_vm3, %v6478_v4 }
 0x2e5   : > { %1622 = vmatpush.bf16.msra.mxu2 %v1225_v50  ;;  %1711 = vmatmul.bf16.vlgmr.msrb.gmra.mxu1 %v6432_v20  ;;  %v9079_v50 = vld [vmem:[#allocation39_spill] sm:$0xff] }
 0x2e6   : > { %1677 = vmatpush.bf16.msrb.mxu3 %v1243_v16  ;;  %1780 = vmatpush.bf16.msra.mxu1 %v1269_v19  ;;  %v1250_v19 = vsel %vm1152_vm2, %v9060_v3, %v9059_v58  ;;  %v1168_v25 = vsel %vm1152_vm2, %v9061_v8, %v9079_v50  ;;  %v4999_v3 = vld [vmem:[#allocation2 + $0x50] sm:$0xf0] }
 0x2e7   : > { %1654 = vmatpush.bf16.msra.mxu0 %v6554_v30  ;;  %v9057_v30 = vld [vmem:[#allocation29_spill] sm:$0xff] }
 0x2e8   : > { %v1253_v59 = vsel %vm1152_vm2, %v9057_v30, %v9056_v2  ;;  %v1184_v16 = vsel %vm1152_vm2, %v9057_v30, %v9078_v38 }
 0x2e9   : > { %1623 = vmatpush.bf16.msra.mxu2 %v1209_v53  ;;  %4657 = vmatmul.msk.bf16.vlgmr.msra.gmra.mxu3 %vm1391_vm3, %v6478_v4  ;;  %v1460_v53 = vpop.f32.mrf.mxu1 }
 0x2ea   : > { %1815 = vmatpush.bf16.msrb.mxu1 %v1255_v52  ;;  %1678 = vmatpush.bf16.msrb.mxu3 %v1227_v12  ;;  %v1247_v52 = vsel %vm1152_vm2, %v9064_v56, %v9063_v15 }
 0x2eb   : > { %1724 = vmatpush.bf16.msrb.mxu0 %v1267_v29 }
 0x2ec   : > { %1655 = vmatmul.bf16.vlgmr.msra.gmra.mxu0 %v6432_v20 }
 0x2ed   : > { %1624 = vmatpush.bf16.msra.mxu2 %v1193_v63  ;;  %v4735_v63 = vld [vmem:[#allocation2 + $0x4] sm:$0xf] }
 0x2ee   : > { %1816 = vmatpush.bf16.msrb.mxu1 %v1251_v26  ;;  %1679 = vmatpush.bf16.msrb.mxu3 %v1211_v37 }
 0x2ef   : > { %1759 = vmatpush.bf16.msra.mxu0 %v1253_v59 }
 0x2f1   : > { %1625 = vmatpush.bf16.msra.mxu2 %v6630_v1  ;;  %v9069_v1 = vld [vmem:[#allocation49_spill] sm:$0xff] }
 0x2f2   : > { %1817 = vmatpush.bf16.msrb.mxu1 %v1248_v36  ;;  %1680 = vmatpush.bf16.msrb.mxu3 %v1195_v45  ;;  %v1230_v41 = vsel %vm1152_vm2, %v9069_v1, %v9068_v11  ;;  %v1229_v5 = vsel %vm1152_vm2, %v6372_v13, %v9069_v1  ;;  %v1215_v13 = vsel %vm1152_vm2, %v9072_v21, %v9071_v49 }
 0x2f3   : > { %1760 = vmatpush.bf16.msra.mxu0 %v1249_v48 }
 0x2f5   : > { %1626 = vmatpush.bf16.msra.mxu2 %v6646_v61  ;;  %v1183_v61 = vsel %vm1152_vm2, %v9035_v46, %v9057_v30  ;;  %4662 = vmatmul.msk.bf16.vlgmr.msra.gmra.mxu1 %vm1391_vm3, %v6478_v4  ;;  %v1254_v46 = vsel %vm1152_vm2, %v9056_v2, %v9055_v35  ;;  %v1151_v35 = vpop.permute.xlu0 %1150 }
 0x2f6   : > { %1818 = vmatpush.bf16.msrb.mxu1 %v1232_v40  ;;  %1681 = vmatpush.bf16.msrb.mxu3 %v6733_v10  ;;  %v9073_v10 = vld [vmem:[#allocation44_spill] sm:$0xff] }
 0x2f7   : > { %1761 = vmatpush.bf16.msra.mxu0 %v1246_v18  ;;  %v1214_v57 = vsel %vm1152_vm2, %v9073_v10, %v9072_v21  ;;  %v1213_v29 = vsel %vm1152_vm2, %v9044_v0, %v9073_v10  ;;  %v1199_v0 = vsel %vm1152_vm2, %v9076_v51, %v9075_v24 }
 0x2f8   : > { %1627 = vmatmul.bf16.vlgmr.msra.gmra.mxu2 %v6432_v20 }
 0x2f9   : > { %1696 = vmatpush.bf16.msrb.mxu2 %v1266_v28  ;;  %v6930_v28 = vld [vmem:[%s8726_s0] sm:$0xff] }
 0x2fa   : > { %1819 = vmatpush.bf16.msrb.mxu1 %v1216_v7  ;;  %1682 = vmatpush.bf16.msrb.mxu3 %v1163_v23  ;;  %v1167_v23 = vsel %vm1152_vm2, %v9038_v60, %v9061_v8  ;;  %v1245_v60 = vsel %vm1152_vm2, %v6405_v54, %v9065_v43  ;;  %v1149_v54 = vpop.permute.xlu2 %1148  ;;  %v6917_v8 = vor.u32 %v4999_v3, %v4735_v63  ;;  %v6943_v42 = vperm.slane %v6930_v28, 1 }
 0x2fb   : > { %1762 = vmatpush.bf16.msra.mxu0 %v1230_v41  ;;  %v1271_v12 = vsel %vm1152_vm2, %v1149_v54, %v1151_v35  ;;  %v1270_v2 = vsel %vm1152_vm2, %v6767_v55, %v1149_v54  ;;  %v6953_v38 = vperm.slane %v6930_v28, 3 }
 0x2fc   : > { %4660 = vmatmul.msk.bf16.vlgmr.msrb.gmra.mxu0 %vm1391_vm3, %v6478_v4  ;;  %2258 = vrot.lane.b32.xlu2 %v6917_v8, %s5216_s15  ;;  %9081 = vst [vmem:[#allocation9_spill] sm:$0xff] %v6943_v42 }
 0x2fd   : > { %1731 = vmatpush.bf16.msra.mxu2 %v1183_v61  ;;  %1683 = vmatmul.bf16.vlgmr.msrb.gmra.mxu3 %v6432_v20  ;;  %9083 = vst [vmem:[#allocation41_spill] sm:$0xff] %v6953_v38 }
 0x2fe   : > { %1752 = vmatpush.bf16.msra.mxu3 %v1268_v6  ;;  %1820 = vmatpush.bf16.msrb.mxu1 %v1200_v33  ;;  %v6938_v6 = vperm.slane %v6930_v28, 0 }
 0x2ff   : > { %1763 = vmatpush.bf16.msra.mxu0 %v1214_v57 }
 0x300   : > { %9080 = vst [vmem:[#allocation34_spill] sm:$0xff] %v6938_v6 }
 0x301   : > { %1732 = vmatpush.bf16.msra.mxu2 %v1167_v23 }
 0x302   : > { %1787 = vmatpush.bf16.msrb.mxu3 %v1254_v46  ;;  %1821 = vmatpush.bf16.msrb.mxu1 %v1184_v16  ;;  %v6933_v1 = vpop.permute.xlu2 %1852  ;;  %v6949_v46 = vperm.slane %v6930_v28, 2 }
 0x303   : > { %1764 = vmatpush.bf16.msra.mxu0 %v1198_v22 }
 0x304   : > { %9082 = vst [vmem:[#allocation13_spill] sm:$0xff] %v6949_v46 }
 0x305   : > { %1733 = vmatpush.bf16.msra.mxu2 %v1245_v60 }
 0x306   : > { %1788 = vmatpush.bf16.msrb.mxu3 %v1250_v19  ;;  %1822 = vmatpush.bf16.msrb.mxu1 %v1168_v25 }
 0x307   : > { %1765 = vmatpush.bf16.msra.mxu0 %v6673_v34  ;;  %v1231_v34 = vsel %vm1152_vm2, %v9068_v11, %v9067_v17 }
 0x308   : > { %4659 = vmatmul.msk.bf16.vlgmr.msrb.gmra.mxu2 %vm1391_vm3, %v6478_v4 }
 0x309   : > { %1734 = vmatpush.bf16.msra.mxu2 %v1229_v5  ;;  %1823 = vmatmul.bf16.vlgmr.msrb.gmra.mxu1 %v6432_v20 }
 0x30a   : > { %1789 = vmatpush.bf16.msrb.mxu3 %v1247_v52 }
 0x30b   : > { %1766 = vmatpush.bf16.msra.mxu0 %v6689_v32  ;;  %v1197_v32 = vsel %vm1152_vm2, %v9049_v39, %v9077_v47  ;;  %v1462_v39 = vpop.f32.mrf.mxu1 }
 0x30d   : > { %1735 = vmatpush.bf16.msra.mxu2 %v1213_v29  ;;  %4661 = vmatmul.msk.bf16.vlgmr.msra.gmra.mxu3 %vm1391_vm3, %v6478_v4 }
 0x30e   : > { %1790 = vmatpush.bf16.msrb.mxu3 %v1231_v34  ;;  %1767 = vmatmul.bf16.vlgmr.msra.gmra.mxu0 %v6432_v20 }
 0x30f   : > { %1836 = vmatpush.bf16.msrb.mxu0 %v1271_v12 }
 0x311   : > { %1736 = vmatpush.bf16.msra.mxu2 %v1197_v32  ;;  %v6921_v36 = vpop.permute.xlu1 %1847 }
 0x312   : > { %1791 = vmatpush.bf16.msrb.mxu3 %v1215_v13 }
 0x315   : > { %1737 = vmatpush.bf16.msra.mxu2 %v6750_v14  ;;  %v6924_v56 = vpop.permute.xlu0 %1891 }
 0x316   : > { %1792 = vmatpush.bf16.msrb.mxu3 %v1199_v0 }
 0x317   : > { %v1418_v62 = vpop.f32.mrf.mxu2 }
 0x318   : > { %v1446_v30 = vpop.f32.mrf.mxu3 }
 0x319   : > { %1738 = vmatpush.bf16.msra.mxu2 %v6762_v27  ;;  %v6911_v14 = vpop.f32.mrf.mxu1 }
 0x31a   : > { %1793 = vmatpush.bf16.msrb.mxu3 %v1183_v61  ;;  %v6945_v24 = vpop.permute.xlu1 %1896 }
 0x31c   : > { %1739 = vmatmul.bf16.vlgmr.msra.gmra.mxu2 %v6432_v20 }
 0x31d   : > { %1808 = vmatpush.bf16.msrb.mxu2 %v1270_v2 }
 0x31e   : > { %1794 = vmatpush.bf16.msrb.mxu3 %v1167_v23  ;;  %4664 = vmatmul.msk.bf16.vlgmr.msrb.gmra.mxu0 %vm1391_vm3, %v6478_v4 }
 0x31f   : > { %v1404_v59 = vpop.f32.mrf.mxu0  ;;  %v1420_v37 = vpop.f32.mrf.mxu2 }
 0x320   : > { %v1448_v27 = vpop.f32.mrf.mxu3  ;;  %v1419_v48 = vadd.f32 %v1418_v62, %v1404_v59 }
 0x321   : > { %1795 = vmatmul.bf16.vlgmr.msrb.gmra.mxu3 %v6432_v20  ;;  %v6915_v26 = vpop.f32.mrf.mxu1 }
 0x327   : > { %v1406_v55 = vpop.f32.mrf.mxu0 }
 0x328   : > { %v1421_v17 = vadd.f32 %v1420_v37, %v1406_v55 }
 0x329   : > { %v1558_v45 = vpop.f32.mrf.mxu1 }
 0x32a   : > { %v1474_v58 = vpop.f32.mrf.mxu3  ;;  %v1871_v21 = vmul.f32 %v6933_v1, %v1421_v17 }
 0x32b   : > { %v1475_v15 = vadd.f32 %v1474_v58, %v1460_v53 }
 0x32c   : > { %4663 = vmatmul.msk.bf16.vlgmr.msrb.gmra.mxu2 %vm1391_vm3, %v6478_v4  ;;  %v1855_v4 = vmul.f32 %v6921_v36, %v1419_v48  ;;  %v1915_v25 = vadd.f32 %v6945_v24, %v1871_v21 }
 0x32d   : > { %v1857_v44 = vmul.f32 %v6921_v36, %v1475_v15 }
 0x32e   : > { %v1899_v11 = vadd.f32 %v6924_v56, %v1855_v4  ;;  %v1947_v2 = vmax.f32 %v1915_v25, 0.0 }
 0x32f   : > { %v1502_v20 = vpop.f32.mrf.mxu0  ;;  %v1901_v61 = vadd.f32 %v6924_v56, %v1857_v44 }
 0x330   : > { %v1931_v57 = vmax.f32 %v1899_v11, 0.0  ;;  %v2013_v58 = vmul.f32 %v6938_v6, %v1947_v2 }
 0x331   : > { %v1560_v51 = vpop.f32.mrf.mxu1  ;;  %v1933_v22 = vmax.f32 %v1901_v61, 0.0 }
 0x332   : > { %v1476_v9 = vpop.f32.mrf.mxu3  ;;  %v1997_v35 = vmul.f32 %v6938_v6, %v1931_v57 }
 0x333   : > { %v1477_v49 = vadd.f32 %v1476_v9, %v1462_v39  ;;  %v1999_v29 = vmul.f32 %v6949_v46, %v1933_v22 }
 0x335   : > { %v1873_v60 = vmul.f32 %v6933_v1, %v1477_v49 }
 0x337   : > { %v1432_v43 = vpop.f32.mrf.mxu2  ;;  %v1504_v18 = vpop.f32.mrf.mxu0  ;;  %v1917_v0 = vadd.f32 %v6945_v24, %v1873_v60  ;;  %v6990_v60 = vperm.slane %v6930_v28, 4 }
 0x338   : > { %v1447_v40 = vadd.f32 %v1446_v30, %v1432_v43 }
 0x339   : > { %v1949_v62 = vmax.f32 %v1917_v0, 0.0  ;;  %9087 = vst [vmem:[#allocation19_spill] sm:$0xff] %v6990_v60 }
 0x33a   : > { %v1856_v41 = vmul.f32 %v6921_v36, %v1447_v40 }
 0x33b   : > { %v2015_v9 = vmul.f32 %v6949_v46, %v1949_v62 }
 0x33c   : > { %v1488_v31 = vpop.f32.mrf.mxu3  ;;  %v1900_v10 = vadd.f32 %v6924_v56, %v1856_v41 }
 0x33d   : > { %v1503_v7 = vadd.f32 %v1502_v20, %v1488_v31 }
 0x33e   : > { %v1932_v23 = vmax.f32 %v1900_v10, 0.0  ;;  %v1600_v63 = vpop.f32.mrf.mxu1 }
 0x33f   : > { %v1858_v33 = vmul.f32 %v6921_v36, %v1503_v7  ;;  %v1434_v16 = vpop.f32.mrf.mxu2 }
 0x340   : > { %v1449_v50 = vadd.f32 %v1448_v27, %v1434_v16  ;;  %v1998_v52 = vmul.f32 %v6943_v42, %v1932_v23  ;;  %v6982_v23 = vperm.slane %v6930_v28, 5 }
 0x341   : > { %v1902_v47 = vadd.f32 %v6924_v56, %v1858_v33 }
 0x342   : > { %v1872_v54 = vmul.f32 %v6933_v1, %v1449_v50  ;;  %v2031_v12 = vpack.c.bf16 %v1998_v52, %v1997_v35  ;;  %9085 = vst [vmem:[#allocation33_spill] sm:$0xff] %v6982_v23 }
 0x343   : > { %v1934_v5 = vmax.f32 %v1902_v47, 0.0 }
 0x344   : > { %v1490_v34 = vpop.f32.mrf.mxu3  ;;  %v1916_v53 = vadd.f32 %v6945_v24, %v1872_v54  ;;  %2047 = vst [vmem:[#allocation2 + $0x8] sm:$0xff] %v2031_v12 }
 0x345   : > { %v1544_v19 = vpop.f32.mrf.mxu0  ;;  %v2000_v13 = vmul.f32 %v6953_v38, %v1934_v5  ;;  %v1505_v32 = vadd.f32 %v1504_v18, %v1490_v34 }
 0x346   : > { %v1948_v59 = vmax.f32 %v1916_v53, 0.0  ;;  %v1559_v48 = vadd.f32 %v1558_v45, %v1544_v19  ;;  %v1602_v17 = vpop.f32.mrf.mxu1 }
 0x347   : > { %v2032_v39 = vpack.c.bf16 %v2000_v13, %v1999_v29  ;;  %v1874_v30 = vmul.f32 %v6933_v1, %v1505_v32 }
 0x348   : > { %v2014_v37 = vmul.f32 %v6943_v42, %v1948_v59  ;;  %v1860_v43 = vmul.f32 %v6921_v36, %v1559_v48  ;;  %v4817_v42 = vld [vmem:[#allocation2 + $0x94] sm:$0xf0] }
 0x349   : > { %2048 = vst [vmem:[#allocation2 + $0x10] sm:$0xff] %v2032_v39  ;;  %v1918_v27 = vadd.f32 %v6945_v24, %v1874_v30 }
 0x34a   : > { %v2039_v20 = vpack.c.bf16 %v2014_v37, %v2013_v58  ;;  %v1904_v40 = vadd.f32 %v6924_v56, %v1860_v43 }
 0x34b   : > { %v1950_v3 = vmax.f32 %v1918_v27, 0.0  ;;  %v4743_v44 = vld [vmem:[#allocation2 + $0xc] sm:$0xf]  ;;  %v4991_v41 = vld [vmem:[#allocation2 + $0x8] sm:$0xf] }
 0x34c   : > { %2055 = vst [vmem:[#allocation2 + $0x58] sm:$0xff] %v2039_v20  ;;  %v1936_v33 = vmax.f32 %v1904_v40, 0.0  ;;  %v7015_v40 = vperm.slane %v6930_v28, 6 }
 0x34d   : > { %v1546_v55 = vpop.f32.mrf.mxu0  ;;  %v2016_v15 = vmul.f32 %v6953_v38, %v1950_v3  ;;  %v5011_v38 = vld [vmem:[#allocation2 + $0x48] sm:$0xf] }
 0x34e   : > { %v1561_v61 = vadd.f32 %v1560_v51, %v1546_v55  ;;  %v2002_v25 = vmul.f32 %v6982_v23, %v1936_v33  ;;  %v1670_v34 = vpop.f32.mrf.mxu1  ;;  %9090 = vst [vmem:[#allocation36_spill] sm:$0xff] %v7015_v40 }
 0x34f   : > { %v2040_v4 = vpack.c.bf16 %v2016_v15, %v2015_v9  ;;  %v7009_v9 = vperm.slane %v6930_v28, 7 }
 0x350   : > { %v4992_v10 = vld [vmem:[#allocation2 + $0x10] sm:$0xf]  ;;  %v4751_v5 = vld [vmem:[#allocation2 + $0x14] sm:$0xf] }
 0x351   : > { %2056 = vst [vmem:[#allocation2 + $0x60] sm:$0xff] %v2040_v4 }
 0x352   : > { %9089 = vst [vmem:[#allocation17_spill] sm:$0xff] %v7009_v9 }
 0x353   : > { %v5000_v11 = vld [vmem:[#allocation2 + $0x58] sm:$0xf0]  ;;  %v4737_v31 = vld [vmem:[#allocation2 + $0x54] sm:$0xf0] }
 0x354   : > { %v6972_v7 = vor.u32 %v5000_v11, %v4743_v44  ;;  %v6974_v45 = vor.u32 %v4991_v41, %v4737_v31 }
 0x355   : > { %v1614_v18 = vpop.f32.mrf.mxu0 }
 0x356   : > { %9084 = vst [vmem:[#allocation40_spill] sm:$0xff] %v6972_v7  ;;  %2262 = vrot.lane.b32.xlu2 %v6972_v7, %s5216_s15  ;;  %2260 = vrot.lane.b32.xlu1 %v6974_v45, %s5216_s15  ;;  %v1615_v35 = vadd.f32 %v1614_v18, %v1600_v63  ;;  %v1672_v20 = vpop.f32.mrf.mxu1 }
 0x357   : > { %v1516_v49 = vpop.f32.mrf.mxu2 }
 0x358   : > { %v1531_v21 = vadd.f32 %v6911_v14, %v1516_v49  ;;  %v4745_v57 = vld [vmem:[#allocation2 + $0x5c] sm:$0xf0]  ;;  %v1876_v14 = vmul.f32 %v6933_v1, %v1561_v61  ;;  %v5001_v50 = vld [vmem:[#allocation2 + $0x60] sm:$0xf0]  ;;  %v1862_v0 = vmul.f32 %v6921_v36, %v1615_v35 }
 0x359   : > { %v6985_v22 = vor.u32 %v4992_v10, %v4745_v57  ;;  %v6995_v12 = vor.u32 %v5001_v50, %v4751_v5 }
 0x35a   : > { %v1859_v47 = vmul.f32 %v6921_v36, %v1531_v21  ;;  %v1920_v29 = vadd.f32 %v6945_v24, %v1876_v14  ;;  %v1906_v62 = vadd.f32 %v6924_v56, %v1862_v0 }
 0x35b   : > { %9086 = vst [vmem:[#allocation37_spill] sm:$0xff] %v6985_v22  ;;  %2264 = vrot.lane.b32.xlu0 %v6985_v22, %s5216_s15 }
 0x35c   : > { %v1572_v51 = vpop.f32.mrf.mxu3  ;;  %v1903_v19 = vadd.f32 %v6924_v56, %v1859_v47  ;;  %9088 = vst [vmem:[#allocation7_spill] sm:$0xff] %v6995_v12  ;;  %v1952_v59 = vmax.f32 %v1920_v29, 0.0  ;;  %v1938_v48 = vmax.f32 %v1906_v62, 0.0 }
 0x35d   : > { %v1616_v16 = vpop.f32.mrf.mxu0 }
 0x35e   : > { %v1935_v52 = vmax.f32 %v1903_v19, 0.0  ;;  %2266 = vrot.lane.b32.xlu1 %v6995_v12, %s5216_s15  ;;  %v1617_v37 = vadd.f32 %v1616_v16, %v1602_v17  ;;  %v2004_v11 = vmul.f32 %v7009_v9, %v1938_v48 }
 0x35f   : > { %v1518_v54 = vpop.f32.mrf.mxu2 }
 0x360   : > { %v2001_v13 = vmul.f32 %v6990_v60, %v1935_v52  ;;  %v1533_v32 = vadd.f32 %v6915_v26, %v1518_v54  ;;  %v2018_v26 = vmul.f32 %v6982_v23, %v1952_v59  ;;  %v1878_v18 = vmul.f32 %v6933_v1, %v1617_v37 }
 0x362   : > { %v2033_v53 = vpack.c.bf16 %v2002_v25, %v2001_v13  ;;  %v1875_v2 = vmul.f32 %v6933_v1, %v1533_v32  ;;  %v1922_v61 = vadd.f32 %v6945_v24, %v1878_v18  ;;  %v7036_v32 = vld [vmem:[%s8726_s0 + $0x8] sm:$0xff] }
 0x364   : > { %v1574_v30 = vpop.f32.mrf.mxu3  ;;  %2049 = vst [vmem:[#allocation2 + $0x18] sm:$0xff] %v2033_v53  ;;  %v1919_v27 = vadd.f32 %v6945_v24, %v1875_v2  ;;  %v1954_v50 = vmax.f32 %v1922_v61, 0.0 }
 0x366   : > { %v1951_v55 = vmax.f32 %v1919_v27, 0.0  ;;  %v2020_v13 = vmul.f32 %v7009_v9, %v1954_v50  ;;  %v7040_v27 = vperm.slane %v7036_v32, 1 }
 0x367   : > { %v1586_v58 = vpop.f32.mrf.mxu2 }
 0x368   : > { %v2017_v63 = vmul.f32 %v6990_v60, %v1951_v55  ;;  %v1587_v3 = vadd.f32 %v1586_v58, %v1572_v51  ;;  %v1712_v51 = vpop.f32.mrf.mxu1  ;;  %9093 = vst [vmem:[#allocation35_spill] sm:$0xff] %v7040_v27 }
 0x369   : > { %v1656_v39 = vpop.f32.mrf.mxu0 }
 0x36a   : > { %v2041_v15 = vpack.c.bf16 %v2018_v26, %v2017_v63  ;;  %v1861_v4 = vmul.f32 %v6921_v36, %v1587_v3  ;;  %v1671_v31 = vadd.f32 %v1670_v34, %v1656_v39  ;;  %v7046_v26 = vperm.slane %v7036_v32, 0 }
 0x36b   : > { %v4759_v47 = vld [vmem:[#allocation2 + $0x1c] sm:$0xf]  ;;  %v4993_v14 = vld [vmem:[#allocation2 + $0x18] sm:$0xf] }
 0x36c   : > { %2057 = vst [vmem:[#allocation2 + $0x68] sm:$0xff] %v2041_v15  ;;  %v1905_v44 = vadd.f32 %v6924_v56, %v1861_v4  ;;  %v1642_v17 = vpop.f32.mrf.mxu3  ;;  %v1864_v16 = vmul.f32 %v6921_v36, %v1671_v31 }
 0x36d   : > { %9094 = vst [vmem:[#allocation14_spill] sm:$0xff] %v7046_v26 }
 0x36e   : > { %v1937_v41 = vmax.f32 %v1905_v44, 0.0  ;;  %v1908_v29 = vadd.f32 %v6924_v56, %v1864_v16 }
 0x36f   : > { %v1588_v49 = vpop.f32.mrf.mxu2 }
 0x370   : > { %v2003_v21 = vmul.f32 %v7015_v40, %v1937_v41  ;;  %v1589_v10 = vadd.f32 %v1588_v49, %v1574_v30  ;;  %v1940_v59 = vmax.f32 %v1908_v29, 0.0  ;;  %v1714_v37 = vpop.f32.mrf.mxu1 }
 0x371   : > { %v1658_v43 = vpop.f32.mrf.mxu0 }
 0x372   : > { %v2034_v57 = vpack.c.bf16 %v2004_v11, %v2003_v21  ;;  %v1877_v33 = vmul.f32 %v6933_v1, %v1589_v10  ;;  %v1673_v2 = vadd.f32 %v1672_v20, %v1658_v43  ;;  %v2006_v3 = vmul.f32 %v7040_v27, %v1940_v59 }
 0x373   : > { %v5002_v28 = vld [vmem:[#allocation2 + $0x68] sm:$0xf0]  ;;  %v4753_v19 = vld [vmem:[#allocation2 + $0x64] sm:$0xf0] }
 0x374   : > { %2050 = vst [vmem:[#allocation2 + $0x20] sm:$0xff] %v2034_v57  ;;  %v1921_v25 = vadd.f32 %v6945_v24, %v1877_v33  ;;  %v7023_v52 = vor.u32 %v5002_v28, %v4759_v47  ;;  %v7025_v5 = vor.u32 %v4993_v14, %v4753_v19  ;;  %v1644_v34 = vpop.f32.mrf.mxu3  ;;  %v1880_v55 = vmul.f32 %v6933_v1, %v1673_v2 }
 0x376   : > { %9091 = vst [vmem:[#allocation8_spill] sm:$0xff] %v7023_v52  ;;  %v1953_v54 = vmax.f32 %v1921_v25, 0.0  ;;  %2270 = vrot.lane.b32.xlu0 %v7023_v52, %s5216_s15  ;;  %2268 = vrot.lane.b32.xlu2 %v7025_v5, %s5216_s15  ;;  %v1924_v43 = vadd.f32 %v6945_v24, %v1880_v55 }
 0x377   : > { %9092 = vst [vmem:[#allocation23_spill] sm:$0xff] %v7025_v5 }
 0x378   : > { %v2019_v0 = vmul.f32 %v7015_v40, %v1953_v54  ;;  %v1956_v33 = vmax.f32 %v1924_v43, 0.0 }
 0x379   : > { %v1726_v35 = vpop.f32.mrf.mxu0 }
 0x37a   : > { %v2042_v30 = vpack.c.bf16 %v2020_v13, %v2019_v0  ;;  %v1727_v48 = vadd.f32 %v1726_v35, %v1712_v51  ;;  %v1782_v51 = vpop.f32.mrf.mxu1  ;;  %v2022_v50 = vmul.f32 %v7040_v27, %v1956_v33 }
 0x37b   : > { %v1628_v53 = vpop.f32.mrf.mxu2  ;;  %v4994_v49 = vld [vmem:[#allocation2 + $0x20] sm:$0xf] }
 0x37c   : > { %v1643_v39 = vadd.f32 %v1642_v17, %v1628_v53  ;;  %2058 = vst [vmem:[#allocation2 + $0x70] sm:$0xff] %v2042_v30  ;;  %v4767_v17 = vld [vmem:[#allocation2 + $0x24] sm:$0xf]  ;;  %v1866_v21 = vmul.f32 %v6921_v36, %v1727_v48  ;;  %v7067_v53 = vperm.slane %v7036_v32, 3  ;;  %v7072_v30 = vperm.slane %v7036_v32, 2 }
 0x37e   : > { %v1863_v62 = vmul.f32 %v6921_v36, %v1643_v39  ;;  %v1910_v28 = vadd.f32 %v6924_v56, %v1866_v21  ;;  %9097 = vst [vmem:[#allocation10_spill] sm:$0xff] %v7067_v53 }
 0x37f   : > { %9098 = vst [vmem:[#allocation38_spill] sm:$0xff] %v7072_v30 }
 0x380   : > { %v1907_v58 = vadd.f32 %v6924_v56, %v1863_v62  ;;  %v1684_v4 = vpop.f32.mrf.mxu3  ;;  %v1942_v0 = vmax.f32 %v1910_v28, 0.0 }
 0x381   : > { %v1728_v63 = vpop.f32.mrf.mxu0 }
 0x382   : > { %v1939_v20 = vmax.f32 %v1907_v58, 0.0  ;;  %v1729_v25 = vadd.f32 %v1728_v63, %v1714_v37  ;;  %v2008_v62 = vmul.f32 %v7067_v53, %v1942_v0 }
 0x383   : > { %v1630_v15 = vpop.f32.mrf.mxu2  ;;  %v5003_v31 = vld [vmem:[#allocation2 + $0x70] sm:$0xf0]  ;;  %v4761_v61 = vld [vmem:[#allocation2 + $0x6c] sm:$0xf0] }
 0x384   : > { %v2005_v18 = vmul.f32 %v7046_v26, %v1939_v20  ;;  %v1645_v44 = vadd.f32 %v1644_v34, %v1630_v15  ;;  %v7053_v10 = vor.u32 %v5003_v31, %v4767_v17  ;;  %v7055_v57 = vor.u32 %v4994_v49, %v4761_v61 }
 0x385   : > { %v1882_v2 = vmul.f32 %v6933_v1, %v1729_v25 }
 0x386   : > { %v2035_v11 = vpack.c.bf16 %v2006_v3, %v2005_v18  ;;  %v1879_v41 = vmul.f32 %v6933_v1, %v1645_v44  ;;  %9095 = vst [vmem:[#allocation18_spill] sm:$0xff] %v7053_v10  ;;  %2274 = vrot.lane.b32.xlu2 %v7053_v10, %s5216_s15  ;;  %2272 = vrot.lane.b32.xlu1 %v7055_v57, %s5216_s15  ;;  %v1784_v3 = vpop.f32.mrf.mxu1 }
 0x387   : > { %9096 = vst [vmem:[#allocation11_spill] sm:$0xff] %v7055_v57  ;;  %v1926_v58 = vadd.f32 %v6945_v24, %v1882_v2  ;;  %v7098_v2 = vperm.slane %v7036_v32, 4 }
 0x388   : > { %2051 = vst [vmem:[#allocation2 + $0x28] sm:$0xff] %v2035_v11  ;;  %v1923_v47 = vadd.f32 %v6945_v24, %v1879_v41  ;;  %v1686_v34 = vpop.f32.mrf.mxu3 }
 0x389   : > { %v1958_v11 = vmax.f32 %v1926_v58, 0.0  ;;  %9102 = vst [vmem:[#allocation12_spill] sm:$0xff] %v7098_v2 }
 0x38a   : > { %v1955_v16 = vmax.f32 %v1923_v47, 0.0 }
 0x38b   : > { %v1768_v14 = vpop.f32.mrf.mxu0  ;;  %v1698_v19 = vpop.f32.mrf.mxu2 }
 0x38c   : > { %v2021_v35 = vmul.f32 %v7046_v26, %v1955_v16  ;;  %v1699_v54 = vadd.f32 %v1698_v19, %v1684_v4  ;;  %v1783_v37 = vadd.f32 %v1782_v51, %v1768_v14  ;;  %v2024_v51 = vmul.f32 %v7067_v53, %v1958_v11  ;;  %v4811_v53 = vld [vmem:[#allocation2 + $0x48] sm:$0xf]  ;;  %v5010_v26 = vld [vmem:[#allocation2 + $0x94] sm:$0xf0] }
 0x38d   : > { %v7317_v60 = vor.u32 %v5010_v26, %v4811_v53  ;;  %v4823_v26 = vld [vmem:[#allocation2 + $0xc] sm:$0xf]  ;;  %v4820_v53 = vor.u32 %v5011_v38, %v4817_v42 }
 0x38e   : > { %v2043_v29 = vpack.c.bf16 %v2022_v50, %v2021_v35  ;;  %v1865_v13 = vmul.f32 %v6921_v36, %v1699_v54  ;;  %v1868_v41 = vmul.f32 %v6921_v36, %v1783_v37  ;;  %v1824_v35 = vpop.f32.mrf.mxu1 }
 0x38f   : > { %v4995_v18 = vld [vmem:[#allocation2 + $0x28] sm:$0xf]  ;;  %v4775_v61 = vld [vmem:[#allocation2 + $0x2c] sm:$0xf]  ;;  %9113 = vst [vmem:[#allocation61_spill] sm:$0xff] %v7317_v60 }
 0x390   : > { %2059 = vst [vmem:[#allocation2 + $0x78] sm:$0xff] %v2043_v29  ;;  %v1909_v39 = vadd.f32 %v6924_v56, %v1865_v13  ;;  %v1754_v43 = vpop.f32.mrf.mxu3  ;;  %v1912_v28 = vadd.f32 %v6924_v56, %v1868_v41  ;;  %v7094_v13 = vperm.slane %v7036_v32, 5 }
 0x392   : > { %v1941_v59 = vmax.f32 %v1909_v39, 0.0  ;;  %v1944_v29 = vmax.f32 %v1912_v28, 0.0  ;;  %9101 = vst [vmem:[#allocation16_spill] sm:$0xff] %v7094_v13 }
 0x393   : > { %v1700_v55 = vpop.f32.mrf.mxu2  ;;  %v1770_v48 = vpop.f32.mrf.mxu0 }
 0x394   : > { %v2007_v63 = vmul.f32 %v7072_v30, %v1941_v59  ;;  %v1701_v20 = vadd.f32 %v1700_v55, %v1686_v34  ;;  %v1785_v33 = vadd.f32 %v1784_v3, %v1770_v48  ;;  %v2010_v58 = vmul.f32 %v7094_v13, %v1944_v29 }
 0x396   : > { %v2036_v15 = vpack.c.bf16 %v2008_v62, %v2007_v63  ;;  %v1881_v4 = vmul.f32 %v6933_v1, %v1701_v20  ;;  %v1884_v50 = vmul.f32 %v6933_v1, %v1785_v33  ;;  %v1826_v11 = vpop.f32.mrf.mxu1 }
 0x397   : > { %v4769_v44 = vld [vmem:[#allocation2 + $0x74] sm:$0xf0]  ;;  %v5004_v17 = vld [vmem:[#allocation2 + $0x78] sm:$0xf0] }
 0x398   : > { %2052 = vst [vmem:[#allocation2 + $0x30] sm:$0xff] %v2036_v15  ;;  %v1925_v31 = vadd.f32 %v6945_v24, %v1881_v4  ;;  %v7080_v49 = vor.u32 %v4995_v18, %v4769_v44  ;;  %v7082_v21 = vor.u32 %v5004_v17, %v4775_v61  ;;  %v1756_v39 = vpop.f32.mrf.mxu3  ;;  %v1928_v59 = vadd.f32 %v6945_v24, %v1884_v50 }
 0x39a   : > { %9099 = vst [vmem:[#allocation4_spill] sm:$0xff] %v7080_v49  ;;  %v1957_v47 = vmax.f32 %v1925_v31, 0.0  ;;  %2276 = vrot.lane.b32.xlu0 %v7080_v49, %s5216_s15  ;;  %2278 = vrot.lane.b32.xlu1 %v7082_v21, %s5216_s15  ;;  %v1960_v20 = vmax.f32 %v1928_v59, 0.0  ;;  %v7124_v59 = vperm.slane %v7036_v32, 6 }
 0x39b   : > { %9100 = vst [vmem:[#allocation3_spill] sm:$0xff] %v7082_v21  ;;  %v1838_v34 = vpop.f32.mrf.mxu0 }
 0x39c   : > { %v2023_v14 = vmul.f32 %v7072_v30, %v1957_v47  ;;  %v1839_v37 = vadd.f32 %v1838_v34, %v1824_v35  ;;  %v7119_v34 = vperm.slane %v7036_v32, 7  ;;  %9106 = vst [vmem:[#allocation42_spill] sm:$0xff] %v7124_v59 }
 0x39e   : > { %v2044_v25 = vpack.c.bf16 %v2024_v51, %v2023_v14  ;;  %v1870_v17 = vmul.f32 %v6921_v36, %v1839_v37  ;;  %v2026_v51 = vmul.f32 %v7094_v13, %v1960_v20  ;;  %9105 = vst [vmem:[#allocation15_spill] sm:$0xff] %v7119_v34 }
 0x39f   : > { %v1740_v16 = vpop.f32.mrf.mxu2  ;;  %v4783_v4 = vld [vmem:[#allocation2 + $0x34] sm:$0xf]  ;;  %v4996_v18 = vld [vmem:[#allocation2 + $0x30] sm:$0xf] }
 0x3a0   : > { %v1755_v19 = vadd.f32 %v1754_v43, %v1740_v16  ;;  %2060 = vst [vmem:[#allocation2 + $0x80] sm:$0xff] %v2044_v25  ;;  %v1914_v14 = vadd.f32 %v6924_v56, %v1870_v17 }
 0x3a2   : > { %v1867_v54 = vmul.f32 %v6921_v36, %v1755_v19  ;;  %v1946_v29 = vmax.f32 %v1914_v14, 0.0 }
 0x3a3   : > { %v1840_v33 = vpop.f32.mrf.mxu0 }
 0x3a4   : > { %v1911_v0 = vadd.f32 %v6924_v56, %v1867_v54  ;;  %v1796_v47 = vpop.f32.mrf.mxu3  ;;  %v1841_v19 = vadd.f32 %v1840_v33, %v1826_v11  ;;  %v2012_v37 = vmul.f32 %v7119_v34, %v1946_v29  ;;  %v4975_v29 = vld [vmem:[#allocation2 + $0xc] sm:$0xf] }
 0x3a6   : > { %v1943_v62 = vmax.f32 %v1911_v0, 0.0  ;;  %v1886_v0 = vmul.f32 %v6933_v1, %v1841_v19  ;;  %v7173_v19 = vpop.permute.xlu2 %2258 }
 0x3a7   : > { %v1742_v55 = vpop.f32.mrf.mxu2  ;;  %v5005_v43 = vld [vmem:[#allocation2 + $0x80] sm:$0xf0]  ;;  %v4777_v44 = vld [vmem:[#allocation2 + $0x7c] sm:$0xf0] }
 0x3a8   : > { %v2009_v63 = vmul.f32 %v7098_v2, %v1943_v62  ;;  %v1757_v3 = vadd.f32 %v1756_v39, %v1742_v55  ;;  %v7106_v31 = vor.u32 %v5005_v43, %v4783_v4  ;;  %v7108_v61 = vor.u32 %v4996_v18, %v4777_v44 }
 0x3aa   : > { %v2037_v48 = vpack.c.bf16 %v2010_v58, %v2009_v63  ;;  %v1883_v15 = vmul.f32 %v6933_v1, %v1757_v3  ;;  %9103 = vst [vmem:[#allocation22_spill] sm:$0xff] %v7106_v31  ;;  %2282 = vrot.lane.b32.xlu0 %v7106_v31, %s5216_s15  ;;  %2280 = vrot.lane.b32.xlu2 %v7108_v61, %s5216_s15 }
 0x3ab   : > { %9104 = vst [vmem:[#allocation20_spill] sm:$0xff] %v7108_v61  ;;  %v1930_v63 = vadd.f32 %v6945_v24, %v1886_v0 }
 0x3ac   : > { %2053 = vst [vmem:[#allocation2 + $0x38] sm:$0xff] %v2037_v48  ;;  %v1927_v41 = vadd.f32 %v6945_v24, %v1883_v15  ;;  %v1798_v55 = vpop.f32.mrf.mxu3 }
 0x3ad   : > { %v1962_v18 = vmax.f32 %v1930_v63, 0.0  ;;  %v4675_v63 = vld [vmem:[#allocation2 + $0x8] sm:$0xf] }
 0x3ae   : > { %v1959_v16 = vmax.f32 %v1927_v41, 0.0 }
 0x3af   : > { %v1810_v28 = vpop.f32.mrf.mxu2 }
 0x3b0   : > { %v2025_v50 = vmul.f32 %v7098_v2, %v1959_v16  ;;  %v1811_v25 = vadd.f32 %v1810_v28, %v1796_v47 }
 0x3b2   : > { %v2045_v35 = vpack.c.bf16 %v2026_v51, %v2025_v50  ;;  %v1869_v54 = vmul.f32 %v6921_v36, %v1811_v25  ;;  %v4984_v50 = vld [vmem:[#allocation2 + $0x5c] sm:$0xf0]  ;;  %v4677_v25 = vld [vmem:[#allocation2 + $0x58] sm:$0xf0] }
 0x3b3   : > { %v4791_v15 = vld [vmem:[#allocation2 + $0x3c] sm:$0xf]  ;;  %v4997_v43 = vld [vmem:[#allocation2 + $0x38] sm:$0xf]  ;;  %v7183_v0 = vor.u32 %v4975_v29, %v4677_v25  ;;  %v4699_v25 = vld [vmem:[#allocation2 + $0x20] sm:$0xf] }
 0x3b4   : > { %2061 = vst [vmem:[#allocation2 + $0x88] sm:$0xff] %v2045_v35  ;;  %v1913_v39 = vadd.f32 %v6924_v56, %v1869_v54  ;;  %v4683_v35 = vld [vmem:[#allocation2 + $0x10] sm:$0xf] }
 0x3b5   : > { %v7181_v54 = vor.u32 %v4984_v50, %v4683_v35  ;;  %v4980_v50 = vld [vmem:[#allocation2 + $0x34] sm:$0xf] }
 0x3b6   : > { %v1945_v62 = vmax.f32 %v1913_v39, 0.0  ;;  %v7191_v39 = vpop.permute.xlu2 %2262 }
 0x3b7   : > { %v1812_v58 = vpop.f32.mrf.mxu2 }
 0x3b8   : > { %v2011_v36 = vmul.f32 %v7124_v59, %v1945_v62  ;;  %v1813_v3 = vadd.f32 %v1812_v58, %v1798_v55  ;;  %v4693_v62 = vld [vmem:[#allocation2 + $0x68] sm:$0xf0]  ;;  %v4983_v55 = vld [vmem:[#allocation2 + $0x54] sm:$0xf0]  ;;  %v4985_v58 = vld [vmem:[#allocation2 + $0x64] sm:$0xf0] }
 0x3ba   : > { %v2038_v20 = vpack.c.bf16 %v2012_v37, %v2011_v36  ;;  %v1885_v48 = vmul.f32 %v6933_v1, %v1813_v3  ;;  %v2028_v1 = vmul.f32 %v7119_v34, %v1962_v18  ;;  %v4977_v37 = vld [vmem:[#allocation2 + $0x1c] sm:$0xf]  ;;  %v7195_v3 = vor.u32 %v4983_v55, %v4675_v63  ;;  %v4707_v18 = vld [vmem:[#allocation2 + $0x28] sm:$0xf] }
 0x3bb   : > { %v5006_v4 = vld [vmem:[#allocation2 + $0x88] sm:$0xf0]  ;;  %v4785_v56 = vld [vmem:[#allocation2 + $0x84] sm:$0xf0]  ;;  %v7193_v36 = vor.u32 %v4977_v37, %v4693_v62  ;;  %v4715_v62 = vld [vmem:[#allocation2 + $0x30] sm:$0xf] }
 0x3bc   : > { %2054 = vst [vmem:[#allocation2 + $0x40] sm:$0xff] %v2038_v20  ;;  %v1929_v32 = vadd.f32 %v6945_v24, %v1885_v48  ;;  %v7131_v44 = vor.u32 %v5006_v4, %v4791_v15  ;;  %v7133_v17 = vor.u32 %v4997_v43, %v4785_v56  ;;  %v4691_v20 = vld [vmem:[#allocation2 + $0x18] sm:$0xf]  ;;  %v4685_v43 = vld [vmem:[#allocation2 + $0x60] sm:$0xf0] }
 0x3bd   : > { %v7197_v48 = vor.u32 %v4985_v58, %v4691_v20  ;;  %v4987_v4 = vld [vmem:[#allocation2 + $0x74] sm:$0xf0]  ;;  %v4701_v56 = vld [vmem:[#allocation2 + $0x70] sm:$0xf0]  ;;  %v4709_v20 = vld [vmem:[#allocation2 + $0x78] sm:$0xf0] }
 0x3be   : > { %9107 = vst [vmem:[#allocation21_spill] sm:$0xff] %v7131_v44  ;;  %v1961_v11 = vmax.f32 %v1929_v32, 0.0  ;;  %2286 = vrot.lane.b32.xlu2 %v7131_v44, %s5216_s15  ;;  %2284 = vrot.lane.b32.xlu1 %v7133_v17, %s5216_s15  ;;  %v4976_v32 = vld [vmem:[#allocation2 + $0x14] sm:$0xf] }
 0x3bf   : > { %9108 = vst [vmem:[#allocation25_spill] sm:$0xff] %v7133_v17 }
 0x3c0   : > { %v2027_v41 = vmul.f32 %v7124_v59, %v1961_v11  ;;  %v7207_v11 = vor.u32 %v4987_v4, %v4707_v18  ;;  %v4725_v4 = vld [vmem:[#allocation2 + $0x88] sm:$0xf0] }
 0x3c2   : > { %v2046_v33 = vpack.c.bf16 %v2028_v1, %v2027_v41  ;;  %v7209_v1 = vor.u32 %v4976_v32, %v4685_v43  ;;  %v4978_v41 = vld [vmem:[#allocation2 + $0x24] sm:$0xf] }
 0x3c3   : > { %v4998_v24 = vld [vmem:[#allocation2 + $0x40] sm:$0xf]  ;;  %v4799_v28 = vld [vmem:[#allocation2 + $0x44] sm:$0xf] }
 0x3c4   : > { %2062 = vst [vmem:[#allocation2 + $0x90] sm:$0xff] %v2046_v33  ;;  %v7211_v33 = vor.u32 %v4978_v41, %v4701_v56  ;;  %v4803_v43 = vld [vmem:[#allocation2 + $0x40] sm:$0xf]  ;;  %v4979_v56 = vld [vmem:[#allocation2 + $0x2c] sm:$0xf] }
 0x3c5   : > { %v7239_v32 = vor.u32 %v4979_v56, %v4709_v20  ;;  %v4981_v41 = vld [vmem:[#allocation2 + $0x3c] sm:$0xf]  ;;  %v5008_v56 = vld [vmem:[#allocation2 + $0x44] sm:$0xf] }
 0x3c6   : > { %2312 = vrot.lane.b32.xlu2 %v6974_v45, %s5217_s16  ;;  %2310 = vrot.lane.b32.xlu1 %v6917_v8, %s5217_s16 }
 0x3c8   : > { %v7227_v58 = vpop.permute.xlu1 %2260 }
 0x3cb   : > { %v4793_v47 = vld [vmem:[#allocation2 + $0x8c] sm:$0xf0]  ;;  %v5007_v51 = vld [vmem:[#allocation2 + $0x90] sm:$0xf0] }
 0x3cc   : > { %v7145_v16 = vor.u32 %v4998_v24, %v4793_v47  ;;  %v7171_v14 = vor.u32 %v5007_v51, %v4799_v28  ;;  %v4717_v47 = vld [vmem:[#allocation2 + $0x80] sm:$0xf0]  ;;  %v4986_v51 = vld [vmem:[#allocation2 + $0x6c] sm:$0xf0]  ;;  %v4988_v28 = vld [vmem:[#allocation2 + $0x7c] sm:$0xf0] }
 0x3cd   : > { %v7221_v35 = vor.u32 %v4980_v50, %v4717_v47  ;;  %v7223_v29 = vor.u32 %v4986_v51, %v4699_v25  ;;  %v7225_v55 = vor.u32 %v4988_v28, %v4715_v62  ;;  %v5009_v63 = vld [vmem:[#allocation2 + $0x8c] sm:$0xf0]  ;;  %v7241_v47 = vor.u32 %v4981_v41, %v4725_v4  ;;  %v4989_v50 = vld [vmem:[#allocation2 + $0x84] sm:$0xf0]  ;;  %v4723_v25 = vld [vmem:[#allocation2 + $0x38] sm:$0xf] }
 0x3ce   : > { %9109 = vst [vmem:[#allocation26_spill] sm:$0xff] %v7145_v16  ;;  %2288 = vrot.lane.b32.xlu0 %v7145_v16, %s5216_s15  ;;  %2318 = vrot.lane.b32.xlu2 %v6995_v12, %s5217_s16  ;;  %v7237_v18 = vor.u32 %v5009_v63, %v4803_v43  ;;  %v7253_v62 = vor.u32 %v4989_v50, %v4723_v25  ;;  %v7259_v63 = vpop.permute.xlu0 %2264  ;;  %v4805_v43 = vld [vmem:[#allocation2 + $0x90] sm:$0xf0]  ;;  %v5016_v12 = vld [vmem:[#allocation2 + $0x28] sm:$0xf] }
 0x3cf   : > { %2316 = vrot.lane.b32.xlu1 %v6985_v22, %s5217_s16  ;;  %9110 = vst [vmem:[#allocation31_spill] sm:$0xff] %v7171_v14  ;;  %v7267_v41 = vor.u32 %v5008_v56, %v4805_v43  ;;  %v4865_v22 = vld [vmem:[#allocation2 + $0x84] sm:$0xf0] }
 0x3d0   : > { %v7205_v15 = vpop.permute.xlu2 %2268  ;;  %9111 = vst [vmem:[#allocation24_spill] sm:$0xff] %v7237_v18  ;;  %v7249_v51 = vpop.permute.xlu1 %2266 }
 0x3d1   : > { %9112 = vst [vmem:[#allocation5_spill] sm:$0xff] %v7267_v41 }
 0x3d6   : > { %2314 = vrot.lane.b32.xlu0 %v6972_v7, %s5217_s16  ;;  %2324 = vrot.lane.b32.xlu2 %v7055_v57, %s5217_s16  ;;  %v5025_v7 = vld [vmem:[#allocation2 + $0x78] sm:$0xf0] }
 0x3d7   : > { %2322 = vrot.lane.b32.xlu1 %v7023_v52, %s5217_s16  ;;  %v5013_v52 = vld [vmem:[#allocation2 + $0x10] sm:$0xf]  ;;  %v4839_v57 = vld [vmem:[#allocation2 + $0x1c] sm:$0xf] }
 0x3de   : > { %2320 = vrot.lane.b32.xlu0 %v7025_v5, %s5217_s16  ;;  %2330 = vrot.lane.b32.xlu2 %v7082_v21, %s5217_s16  ;;  %v5024_v5 = vld [vmem:[#allocation2 + $0x70] sm:$0xf0]  ;;  %v4841_v21 = vld [vmem:[#allocation2 + $0x6c] sm:$0xf0] }
 0x3df   : > { %2328 = vrot.lane.b32.xlu1 %v7080_v49, %s5217_s16  ;;  %v5014_v49 = vld [vmem:[#allocation2 + $0x18] sm:$0xf] }
 0x3e0   : > { %v7219_v24 = vpop.permute.xlu2 %2274 }
 0x3e6   : > { %2326 = vrot.lane.b32.xlu0 %v7053_v10, %s5217_s16  ;;  %2336 = vrot.lane.b32.xlu2 %v7133_v17, %s5217_s16  ;;  %v5022_v10 = vld [vmem:[#allocation2 + $0x60] sm:$0xf0] }
 0x3e7   : > { %2334 = vrot.lane.b32.xlu1 %v7106_v31, %s5217_s16  ;;  %v4833_v31 = vld [vmem:[#allocation2 + $0x64] sm:$0xf0]  ;;  %v4815_v17 = vld [vmem:[#allocation2 + $0x44] sm:$0xf] }
 0x3e8   : > { %v7273_v50 = vpop.permute.xlu0 %2270  ;;  %v4836_v38 = vor.u32 %v5014_v49, %v4833_v31 }
 0x3ee   : > { %2332 = vrot.lane.b32.xlu0 %v7108_v61, %s5217_s16  ;;  %2342 = vrot.lane.b32.xlu2 %v7171_v14, %s5217_s16  ;;  %v5021_v14 = vld [vmem:[#allocation2 + $0x58] sm:$0xf0]  ;;  %v5012_v61 = vld [vmem:[#allocation2 + $0x90] sm:$0xf0] }
 0x3ef   : > { %2340 = vrot.lane.b32.xlu1 %v7145_v16, %s5217_s16  ;;  %v4816_v42 = vor.u32 %v5012_v61, %v4815_v17  ;;  %v4847_v61 = vld [vmem:[#allocation2 + $0x24] sm:$0xf] }
 0x3f0   : > { %v4848_v31 = vor.u32 %v5024_v5, %v4847_v61 }
 0x3f6   : > { %2338 = vrot.lane.b32.xlu0 %v7131_v44, %s5217_s16  ;;  %2372 = vrot.lane.b32.xlu2 %v7181_v54, %s5216_s15  ;;  %v4824_v44 = vor.u32 %v5021_v14, %v4823_v26  ;;  %v4831_v14 = vld [vmem:[#allocation2 + $0x14] sm:$0xf] }
 0x3f7   : > { %2370 = vrot.lane.b32.xlu1 %v7183_v0, %s5216_s15  ;;  %v4832_v26 = vor.u32 %v5022_v10, %v4831_v14  ;;  %v5015_v10 = vld [vmem:[#allocation2 + $0x20] sm:$0xf] }
 0x3f8   : > { %v7263_v20 = vpop.permute.xlu1 %2272  ;;  %v4844_v17 = vor.u32 %v5015_v10, %v4841_v21  ;;  %v4855_v21 = vld [vmem:[#allocation2 + $0x2c] sm:$0xf] }
 0x3f9   : > { %v4856_v61 = vor.u32 %v5025_v7, %v4855_v21  ;;  %v5018_v7 = vld [vmem:[#allocation2 + $0x38] sm:$0xf] }
 0x3fe   : > { %2378 = vrot.lane.b32.xlu2 %v7193_v36, %s5216_s15  ;;  %2368 = vrot.lane.b32.xlu0 %v7195_v3, %s5216_s15 }
 0x3ff   : > { %2376 = vrot.lane.b32.xlu1 %v7197_v48, %s5216_s15 }
 0x404   : > { %v7235_v37 = vpop.permute.xlu2 %2280 }
 0x406   : > { %2384 = vrot.lane.b32.xlu2 %v7207_v11, %s5216_s15  ;;  %2374 = vrot.lane.b32.xlu0 %v7209_v1, %s5216_s15 }
 0x407   : > { %2382 = vrot.lane.b32.xlu1 %v7211_v33, %s5216_s15 }
 0x40c   : > { %v7277_v25 = vpop.permute.xlu1 %2278  ;;  %v7285_v43 = vpop.permute.xlu0 %2276 }
 0x40e   : > { %2390 = vrot.lane.b32.xlu2 %v7221_v35, %s5216_s15  ;;  %2380 = vrot.lane.b32.xlu0 %v7223_v29, %s5216_s15 }
 0x40f   : > { %2388 = vrot.lane.b32.xlu1 %v7225_v55, %s5216_s15 }
 0x416   : > { %2396 = vrot.lane.b32.xlu2 %v7237_v18, %s5216_s15  ;;  %2386 = vrot.lane.b32.xlu0 %v7239_v32, %s5216_s15 }
 0x417   : > { %2394 = vrot.lane.b32.xlu1 %v7241_v47, %s5216_s15 }
 0x418   : > { %v7251_v28 = vpop.permute.xlu2 %2286 }
 0x41c   : > { %v7297_v2 = vpop.permute.xlu0 %2282 }
 0x41e   : > { %2392 = vrot.lane.b32.xlu0 %v7253_v62, %s5216_s15  ;;  %2422 = vrot.lane.b32.xlu2 %v7183_v0, %s5217_s16 }
 0x41f   : > { %2420 = vrot.lane.b32.xlu1 %v7195_v3, %s5217_s16 }
 0x420   : > { %v7265_v4 = vpop.permute.xlu2 %2312 }
 0x426   : > { %2398 = vrot.lane.b32.xlu0 %v7267_v41, %s5216_s15  ;;  %2428 = vrot.lane.b32.xlu2 %v7197_v48, %s5217_s16 }
 0x427   : > { %2426 = vrot.lane.b32.xlu1 %v7209_v1, %s5217_s16 }
 0x428   : > { %v7279_v34 = vpop.permute.xlu2 %2318 }
 0x42e   : > { %2424 = vrot.lane.b32.xlu0 %v7181_v54, %s5217_s16  ;;  %2434 = vrot.lane.b32.xlu2 %v7211_v33, %s5217_s16 }
 0x42f   : > { %2432 = vrot.lane.b32.xlu1 %v7223_v29, %s5217_s16 }
 0x430   : > { %v7289_v56 = vpop.permute.xlu1 %2284  ;;  %v7291_v59 = vpop.permute.xlu2 %2324 }
 0x436   : > { %2430 = vrot.lane.b32.xlu0 %v7193_v36, %s5217_s16  ;;  %2440 = vrot.lane.b32.xlu2 %v7225_v55, %s5217_s16 }
 0x437   : > { %2438 = vrot.lane.b32.xlu1 %v7239_v32, %s5217_s16 }
 0x438   : > { %v7301_v13 = vpop.permute.xlu1 %2310  ;;  %v7303_v30 = vpop.permute.xlu2 %2330 }
 0x43e   : > { %2436 = vrot.lane.b32.xlu0 %v7207_v11, %s5217_s16  ;;  %2446 = vrot.lane.b32.xlu2 %v7241_v47, %s5217_s16 }
 0x43f   : > { %2444 = vrot.lane.b32.xlu1 %v7253_v62, %s5217_s16 }
 0x440   : > { %v7311_v27 = vpop.permute.xlu0 %2288  ;;  %v7313_v40 = vpop.permute.xlu2 %2336 }
 0x441   : > { %v7315_v9 = vpop.permute.xlu1 %2316 }
 0x446   : > { %2442 = vrot.lane.b32.xlu0 %v7221_v35, %s5217_s16  ;;  %2452 = vrot.lane.b32.xlu2 %v7317_v60, %s5217_s16 }
 0x447   : > { %2450 = vrot.lane.b32.xlu1 %v7267_v41, %s5217_s16 }
 0x448   : > { %v7325_v23 = vpop.permute.xlu0 %2314  ;;  %v7327_v46 = vpop.permute.xlu2 %2342 }
 0x449   : > { %9114 = vst [vmem:[#allocation60_spill] sm:$0xff] %v7327_v46  ;;  %v7329_v6 = vpop.permute.xlu1 %2322 }
 0x44e   : > { %2448 = vrot.lane.b32.xlu0 %v7237_v18, %s5217_s16  ;;  %2553 = vrot.lane.b32.xlu2 %v4824_v44, %s5217_s16 }
 0x44f   : > { %2480 = vrot.lane.b32.xlu1 %v4820_v53, %s5216_s15 }
 0x450   : > { %v7335_v60 = vpop.permute.xlu0 %2320  ;;  %v7337_v41 = vpop.permute.xlu2 %2372 }
 0x451   : > { %9115 = vst [vmem:[#allocation58_spill] sm:$0xff] %v7337_v41  ;;  %v7339_v16 = vpop.permute.xlu1 %2328  ;;  %v4825_v41 = vld [vmem:[#allocation2 + $0x5c] sm:$0xf0] }
 0x452   : > { %v4828_v49 = vor.u32 %v5013_v52, %v4825_v41  ;;  %v5017_v52 = vld [vmem:[#allocation2 + $0x30] sm:$0xf] }
 0x456   : > { %2478 = vrot.lane.b32.xlu0 %v4816_v42, %s5216_s15  ;;  %2559 = vrot.lane.b32.xlu2 %v4836_v38, %s5217_s16 }
 0x457   : > { %2557 = vrot.lane.b32.xlu1 %v4832_v26, %s5217_s16  ;;  %v5023_v26 = vld [vmem:[#allocation2 + $0x68] sm:$0xf0] }
 0x458   : > { %v7344_v44 = vpop.permute.xlu0 %2326  ;;  %v7346_v53 = vpop.permute.xlu2 %2378  ;;  %v4840_v5 = vor.u32 %v5023_v26, %v4839_v57  ;;  %v4871_v57 = vld [vmem:[#allocation2 + $0x3c] sm:$0xf] }
 0x459   : > { %9116 = vst [vmem:[#allocation29_spill] sm:$0xff] %v7346_v53  ;;  %v7348_v18 = vpop.permute.xlu1 %2334  ;;  %v4857_v53 = vld [vmem:[#allocation2 + $0x7c] sm:$0xf0] }
 0x45a   : > { %v4860_v41 = vor.u32 %v5017_v52, %v4857_v53  ;;  %v4868_v52 = vor.u32 %v5018_v7, %v4865_v22  ;;  %v4879_v22 = vld [vmem:[#allocation2 + $0x44] sm:$0xf] }
 0x45e   : > { %2555 = vrot.lane.b32.xlu0 %v4828_v49, %s5217_s16  ;;  %2565 = vrot.lane.b32.xlu2 %v4848_v31, %s5217_s16 }
 0x45f   : > { %2563 = vrot.lane.b32.xlu1 %v4844_v17, %s5217_s16  ;;  %v4849_v17 = vld [vmem:[#allocation2 + $0x74] sm:$0xf0] }
 0x460   : > { %v7353_v42 = vpop.permute.xlu0 %2332  ;;  %v7355_v38 = vpop.permute.xlu2 %2384  ;;  %v4852_v53 = vor.u32 %v5016_v12, %v4849_v17  ;;  %v5028_v12 = vld [vmem:[#allocation2 + $0x90] sm:$0xf0] }
 0x461   : > { %9117 = vst [vmem:[#allocation59_spill] sm:$0xff] %v7355_v38  ;;  %v7357_v14 = vpop.permute.xlu1 %2340  ;;  %v5027_v38 = vld [vmem:[#allocation2 + $0x88] sm:$0xf0] }
 0x462   : > { %v4872_v26 = vor.u32 %v5027_v38, %v4871_v57  ;;  %v4863_v38 = vld [vmem:[#allocation2 + $0x34] sm:$0xf]  ;;  %v4880_v57 = vor.u32 %v5028_v12, %v4879_v22 }
 0x466   : > { %2561 = vrot.lane.b32.xlu0 %v4840_v5, %s5217_s16  ;;  %2571 = vrot.lane.b32.xlu2 %v4860_v41, %s5217_s16  ;;  %v5020_v5 = vld [vmem:[#allocation2 + $0x48] sm:$0xf]  ;;  %v4881_v41 = vld [vmem:[#allocation2 + $0x94] sm:$0xf0] }
 0x467   : > { %2569 = vrot.lane.b32.xlu1 %v4856_v61, %s5217_s16  ;;  %v4884_v46 = vor.u32 %v5020_v5, %v4881_v41  ;;  %v4873_v41 = vld [vmem:[#allocation2 + $0x8c] sm:$0xf0] }
 0x468   : > { %v7362_v49 = vpop.permute.xlu0 %2338  ;;  %v7364_v31 = vpop.permute.xlu2 %2390 }
 0x469   : > { %9118 = vst [vmem:[#allocation53_spill] sm:$0xff] %v7364_v31  ;;  %v7366_v10 = vpop.permute.xlu1 %2370 }
 0x46a   : > { %9119 = vst [vmem:[#allocation57_spill] sm:$0xff] %v7366_v10  ;;  %v5026_v10 = vld [vmem:[#allocation2 + $0x80] sm:$0xf0] }
 0x46b   : > { %v4864_v17 = vor.u32 %v5026_v10, %v4863_v38  ;;  %v5019_v38 = vld [vmem:[#allocation2 + $0x40] sm:$0xf] }
 0x46c   : > { %v4876_v22 = vor.u32 %v5019_v38, %v4873_v41  ;;  %v4731_v41 = vld [vmem:[#allocation2 + $0x40] sm:$0xf]  ;;  %v2291_v38 = vsel %vm574_vm0, %v7227_v58, %v7191_v39 }
 0x46e   : > { %2567 = vrot.lane.b32.xlu0 %v4852_v53, %s5217_s16  ;;  %2577 = vrot.lane.b32.xlu2 %v4872_v26, %s5217_s16  ;;  %v4974_v53 = vld [vmem:[#allocation2 + $0x4] sm:$0xf]  ;;  %v4669_v26 = vld [vmem:[#allocation2 + $0x50] sm:$0xf0] }
 0x46f   : > { %2575 = vrot.lane.b32.xlu1 %v4868_v52, %s5217_s16  ;;  %v4672_v10 = vor.u32 %v4974_v53, %v4669_v26 }
 0x470   : > { %v7371_v21 = vpop.permute.xlu0 %2368  ;;  %v7373_v61 = vpop.permute.xlu2 %2396 }
 0x471   : > { %9120 = vst [vmem:[#allocation6_spill] sm:$0xff] %v7371_v21  ;;  %v7375_v31 = vpop.permute.xlu1 %2376 }
 0x472   : > { %9121 = vst [vmem:[#allocation56_spill] sm:$0xff] %v7373_v61  ;;  %v4667_v61 = vld [vmem:[#allocation2] sm:$0xf] }
 0x473   : > { %9122 = vst [vmem:[#allocation52_spill] sm:$0xff] %v7375_v31  ;;  %v4982_v31 = vld [vmem:[#allocation2 + $0x4c] sm:$0xf0] }
 0x474   : > { %v4668_v12 = vor.u32 %v4982_v31, %v4667_v61 }
 0x476   : > { %2573 = vrot.lane.b32.xlu0 %v4864_v17, %s5217_s16  ;;  %2583 = vrot.lane.b32.xlu2 %v4884_v46, %s5217_s16  ;;  %v4887_v46 = vld [vmem:[#allocation2 + $0x4c] sm:$0xf]  ;;  %v5029_v17 = vld [vmem:[#allocation2 + $0x98] sm:$0xf0] }
 0x477   : > { %2581 = vrot.lane.b32.xlu1 %v4880_v57, %s5217_s16 }
 0x478   : > { %v7380_v7 = vpop.permute.xlu0 %2374  ;;  %v7382_v52 = vpop.permute.xlu2 %2422 }
 0x479   : > { %9123 = vst [vmem:[#allocation55_spill] sm:$0xff] %v7380_v7  ;;  %v7384_v5 = vpop.permute.xlu1 %2382 }
 0x47a   : > { %9124 = vst [vmem:[#allocation54_spill] sm:$0xff] %v7384_v5  ;;  %v4888_v5 = vor.u32 %v5029_v17, %v4887_v46  ;;  %v2294_v46 = vsel %vm574_vm0, %v7249_v51, %v7205_v15 }
 0x47e   : > { %2579 = vrot.lane.b32.xlu0 %v4876_v22, %s5217_s16  ;;  %2616 = vrot.lane.b32.xlu2 %v4672_v10, %s5218_s17 }
 0x47f   : > { %2614 = vrot.lane.b32.xlu1 %v4668_v12, %s5218_s17 }
 0x480   : > { %v7389_v57 = vpop.permute.xlu0 %2380  ;;  %v7391_v7 = vpop.permute.xlu2 %2428 }
 0x481   : > { %v7393_v21 = vpop.permute.xlu1 %2388 }
 0x486   : > { %2585 = vrot.lane.b32.xlu0 %v4888_v5, %s5217_s16  ;;  %2622 = vrot.lane.b32.xlu2 %v7181_v54, %s5218_s17  ;;  %v4990_v5 = vld [vmem:[#allocation2 + $0x8c] sm:$0xf0] }
 0x487   : > { %2620 = vrot.lane.b32.xlu1 %v7183_v0, %s5218_s17  ;;  %v4732_v10 = vor.u32 %v4990_v5, %v4731_v41  ;;  %v2292_v41 = vsel %vm574_vm0, %v7191_v39, %v7259_v63 }
 0x488   : > { %v7400_v31 = vpop.permute.xlu0 %2386  ;;  %v7402_v61 = vpop.permute.xlu2 %2434 }
 0x489   : > { %v7404_v53 = vpop.permute.xlu1 %2394 }
 0x48e   : > { %2618 = vrot.lane.b32.xlu0 %v7195_v3, %s5218_s17  ;;  %2628 = vrot.lane.b32.xlu2 %v7193_v36, %s5218_s17 }
 0x48f   : > { %2626 = vrot.lane.b32.xlu1 %v7197_v48, %s5218_s17 }
 0x490   : > { %v7412_v26 = vpop.permute.xlu0 %2392  ;;  %v7414_v54 = vpop.permute.xlu2 %2440 }
 0x491   : > { %v7416_v0 = vpop.permute.xlu1 %2420 }
 0x496   : > { %2624 = vrot.lane.b32.xlu0 %v7209_v1, %s5218_s17  ;;  %2634 = vrot.lane.b32.xlu2 %v7207_v11, %s5218_s17 }
 0x497   : > { %2632 = vrot.lane.b32.xlu1 %v7211_v33, %s5218_s17 }
 0x498   : > { %v7424_v3 = vpop.permute.xlu0 %2398  ;;  %v7426_v36 = vpop.permute.xlu2 %2446 }
 0x499   : > { %v7428_v48 = vpop.permute.xlu1 %2426 }
 0x49e   : > { %2630 = vrot.lane.b32.xlu0 %v7223_v29, %s5218_s17  ;;  %2640 = vrot.lane.b32.xlu2 %v7221_v35, %s5218_s17 }
 0x49f   : > { %2638 = vrot.lane.b32.xlu1 %v7225_v55, %s5218_s17 }
 0x4a0   : > { %v7436_v1 = vpop.permute.xlu0 %2424  ;;  %v7438_v11 = vpop.permute.xlu2 %2452 }
 0x4a1   : > { %v7440_v33 = vpop.permute.xlu1 %2432 }
 0x4a6   : > { %2636 = vrot.lane.b32.xlu0 %v7239_v32, %s5218_s17  ;;  %2646 = vrot.lane.b32.xlu2 %v4732_v10, %s5218_s17  ;;  %v2290_v32 = vsel %vm574_vm0, %v7173_v19, %v7227_v58 }
 0x4a7   : > { %2644 = vrot.lane.b32.xlu1 %v7241_v47, %s5218_s17 }
 0x4a8   : > { %v7447_v35 = vpop.permute.xlu0 %2430  ;;  %v7449_v29 = vpop.permute.xlu2 %2553 }
 0x4a9   : > { %v7451_v55 = vpop.permute.xlu1 %2438 }
 0x4ae   : > { %2642 = vrot.lane.b32.xlu0 %v7253_v62, %s5218_s17  ;;  %2652 = vrot.lane.b32.xlu2 %v2291_v38, %s5218_s17  ;;  %v2293_v62 = vsel %vm574_vm0, %v7259_v63, %v7249_v51  ;;  %v2297_v51 = vsel %vm574_vm0, %v7263_v20, %v7219_v24  ;;  %v2295_v63 = vsel %vm574_vm0, %v7205_v15, %v7273_v50 }
 0x4af   : > { %2650 = vrot.lane.b32.xlu1 %v2290_v32, %s5218_s17  ;;  %v2298_v15 = vsel %vm574_vm0, %v7219_v24, %v7285_v43  ;;  %v2301_v24 = vsel %vm574_vm0, %v7235_v37, %v7297_v2 }
 0x4b0   : > { %v7463_v47 = vpop.permute.xlu0 %2436  ;;  %v7465_v12 = vpop.permute.xlu2 %2559 }
 0x4b1   : > { %v7467_v22 = vpop.permute.xlu1 %2444 }
 0x4b6   : > { %2648 = vrot.lane.b32.xlu0 %v7173_v19, %s5218_s17  ;;  %2658 = vrot.lane.b32.xlu2 %v2294_v46, %s5218_s17  ;;  %v2296_v19 = vsel %vm574_vm0, %v7273_v50, %v7263_v20  ;;  %v2300_v20 = vsel %vm574_vm0, %v7277_v25, %v7235_v37  ;;  %v2299_v46 = vsel %vm574_vm0, %v7285_v43, %v7277_v25 }
 0x4b7   : > { %2656 = vrot.lane.b32.xlu1 %v2293_v62, %s5218_s17  ;;  %v2303_v50 = vsel %vm574_vm0, %v7289_v56, %v7251_v28  ;;  %v2302_v25 = vsel %vm574_vm0, %v7297_v2, %v7289_v56  ;;  %v2346_v2 = vsel %vm629_vm1, %v7325_v23, %v7315_v9  ;;  %v2345_v37 = vsel %vm629_vm1, %v7265_v4, %v7325_v23 }
 0x4b8   : > { %v7479_v58 = vpop.permute.xlu0 %2442  ;;  %v7481_v17 = vpop.permute.xlu2 %2565  ;;  %v2348_v23 = vsel %vm629_vm1, %v7279_v34, %v7335_v60 }
 0x4b9   : > { %v7483_v5 = vpop.permute.xlu1 %2450 }
 0x4be   : > { %2654 = vrot.lane.b32.xlu0 %v2292_v41, %s5218_s17  ;;  %2664 = vrot.lane.b32.xlu2 %v2297_v51, %s5218_s17 }
 0x4bf   : > { %2662 = vrot.lane.b32.xlu1 %v2296_v19, %s5218_s17 }
 0x4c0   : > { %v7497_v10 = vpop.permute.xlu0 %2448  ;;  %v7499_v38 = vpop.permute.xlu2 %2571 }
 0x4c1   : > { %v7501_v32 = vpop.permute.xlu1 %2480 }
 0x4c6   : > { %2660 = vrot.lane.b32.xlu0 %v2295_v63, %s5218_s17  ;;  %2670 = vrot.lane.b32.xlu2 %v2300_v20, %s5218_s17 }
 0x4c7   : > { %2668 = vrot.lane.b32.xlu1 %v2299_v46, %s5218_s17 }
 0x4c8   : > { %v7515_v62 = vpop.permute.xlu0 %2478  ;;  %v7517_v41 = vpop.permute.xlu2 %2577 }
 0x4c9   : > { %v7519_v51 = vpop.permute.xlu1 %2557 }
 0x4ce   : > { %2666 = vrot.lane.b32.xlu0 %v2298_v15, %s5218_s17  ;;  %2676 = vrot.lane.b32.xlu2 %v2303_v50, %s5218_s17  ;;  %v2304_v15 = vsel %vm574_vm0, %v7251_v28, %v7311_v27  ;;  %v2349_v28 = vsel %vm629_vm1, %v7335_v60, %v7329_v6  ;;  %v2351_v60 = vsel %vm629_vm1, %v7291_v59, %v7344_v44 }
 0x4cf   : > { %2674 = vrot.lane.b32.xlu1 %v2302_v25, %s5218_s17 }
 0x4d0   : > { %v7533_v19 = vpop.permute.xlu0 %2555  ;;  %v7535_v63 = vpop.permute.xlu2 %2583 }
 0x4d1   : > { %v7537_v20 = vpop.permute.xlu1 %2563 }
 0x4d6   : > { %2672 = vrot.lane.b32.xlu0 %v2301_v24, %s5218_s17  ;;  %2682 = vrot.lane.b32.xlu2 %v7301_v13, %s5218_s17 }
 0x4d7   : > { %2680 = vrot.lane.b32.xlu1 %v7311_v27, %s5218_s17 }
 0x4d8   : > { %v7547_v43 = vpop.permute.xlu0 %2561  ;;  %v7549_v56 = vpop.permute.xlu2 %2616 }
 0x4d9   : > { %9125 = vst [vmem:[#allocation51_spill] sm:$0xff] %v7549_v56  ;;  %v7551_v46 = vpop.permute.xlu1 %2569 }
 0x4de   : > { %2678 = vrot.lane.b32.xlu0 %v2304_v15, %s5218_s17  ;;  %2688 = vrot.lane.b32.xlu2 %v2346_v2, %s5218_s17  ;;  %v2344_v15 = vsel %vm629_vm1, %v7301_v13, %v7265_v4  ;;  %v2352_v13 = vsel %vm629_vm1, %v7344_v44, %v7339_v16  ;;  %v2347_v4 = vsel %vm629_vm1, %v7315_v9, %v7279_v34 }
 0x4df   : > { %2686 = vrot.lane.b32.xlu1 %v2345_v37, %s5218_s17  ;;  %v2355_v9 = vsel %vm629_vm1, %v7353_v42, %v7348_v18  ;;  %v2350_v34 = vsel %vm629_vm1, %v7329_v6, %v7291_v59  ;;  %v2354_v44 = vsel %vm629_vm1, %v7303_v30, %v7353_v42  ;;  %v2358_v6 = vsel %vm629_vm1, %v7362_v49, %v7357_v14 }
 0x4e0   : > { %v7565_v50 = vpop.permute.xlu0 %2567  ;;  %v7567_v25 = vpop.permute.xlu2 %2622  ;;  %v2353_v59 = vsel %vm629_vm1, %v7339_v16, %v7303_v30  ;;  %v2357_v42 = vsel %vm629_vm1, %v7313_v40, %v7362_v49  ;;  %v2356_v30 = vsel %vm629_vm1, %v7348_v18, %v7313_v40  ;;  %v9137_v40 = vld [vmem:[#allocation7_spill] sm:$0xff] }
 0x4e1   : > { %9126 = vst [vmem:[#allocation50_spill] sm:$0xff] %v7567_v25  ;;  %v7569_v24 = vpop.permute.xlu1 %2575 }
 0x4e6   : > { %2694 = vrot.lane.b32.xlu2 %v2349_v28, %s5218_s17  ;;  %2684 = vrot.lane.b32.xlu0 %v2344_v15, %s5218_s17 }
 0x4e7   : > { %2692 = vrot.lane.b32.xlu1 %v2348_v23, %s5218_s17 }
 0x4e8   : > { %v7583_v2 = vpop.permute.xlu0 %2573  ;;  %v7585_v37 = vpop.permute.xlu2 %2628 }
 0x4e9   : > { %9127 = vst [vmem:[#allocation48_spill] sm:$0xff] %v7585_v37  ;;  %v7587_v56 = vpop.permute.xlu1 %2581 }
 0x4ee   : > { %2700 = vrot.lane.b32.xlu2 %v2352_v13, %s5218_s17  ;;  %2690 = vrot.lane.b32.xlu0 %v2347_v4, %s5218_s17 }
 0x4ef   : > { %2698 = vrot.lane.b32.xlu1 %v2351_v60, %s5218_s17 }
 0x4f0   : > { %v7601_v28 = vpop.permute.xlu0 %2579  ;;  %v7603_v15 = vpop.permute.xlu2 %2634 }
 0x4f1   : > { %9128 = vst [vmem:[#allocation49_spill] sm:$0xff] %v7603_v15  ;;  %v7605_v23 = vpop.permute.xlu1 %2614  ;;  %v9147_v15 = vld [vmem:[#allocation23_spill] sm:$0xff] }
 0x4f6   : > { %2706 = vrot.lane.b32.xlu2 %v2355_v9, %s5218_s17  ;;  %2696 = vrot.lane.b32.xlu0 %v2350_v34, %s5218_s17 }
 0x4f7   : > { %2704 = vrot.lane.b32.xlu1 %v2354_v44, %s5218_s17 }
 0x4f8   : > { %v7619_v13 = vpop.permute.xlu0 %2585  ;;  %v7621_v4 = vpop.permute.xlu2 %2640 }
 0x4f9   : > { %9129 = vst [vmem:[#allocation45_spill] sm:$0xff] %v7619_v13  ;;  %v7623_v60 = vpop.permute.xlu1 %2620 }
 0x4fa   : > { %9130 = vst [vmem:[#allocation47_spill] sm:$0xff] %v7621_v4  ;;  %v9142_v4 = vld [vmem:[#allocation40_spill] sm:$0xff] }
 0x4fe   : > { %2712 = vrot.lane.b32.xlu2 %v2358_v6, %s5218_s17  ;;  %2702 = vrot.lane.b32.xlu0 %v2353_v59, %s5218_s17  ;;  %v9136_v59 = vld [vmem:[#allocation60_spill] sm:$0xff] }
 0x4ff   : > { %2710 = vrot.lane.b32.xlu1 %v2357_v42, %s5218_s17  ;;  %v2359_v42 = vsel %vm629_vm1, %v7357_v14, %v9136_v59  ;;  %v9143_v14 = vld [vmem:[#allocation8_spill] sm:$0xff] }
 0x500   : > { %v7637_v9 = vpop.permute.xlu0 %2618  ;;  %v7639_v34 = vpop.permute.xlu2 %2646 }
 0x501   : > { %9131 = vst [vmem:[#allocation46_spill] sm:$0xff] %v7639_v34  ;;  %v7641_v44 = vpop.permute.xlu1 %2626  ;;  %v9141_v34 = vld [vmem:[#allocation11_spill] sm:$0xff] }
 0x502   : > { %9132 = vst [vmem:[#allocation44_spill] sm:$0xff] %v7641_v44 }
 0x506   : > { %2718 = vrot.lane.b32.xlu2 %v6974_v45, %s5218_s17  ;;  %2708 = vrot.lane.b32.xlu0 %v2356_v30, %s5218_s17  ;;  %v9138_v45 = vld [vmem:[#allocation37_spill] sm:$0xff] }
 0x507   : > { %2716 = vrot.lane.b32.xlu1 %v6917_v8, %s5218_s17 }
 0x508   : > { %v7651_v16 = vpop.permute.xlu0 %2624  ;;  %v7653_v49 = vpop.permute.xlu2 %2652 }
 0x509   : > { %9133 = vst [vmem:[#allocation43_spill] sm:$0xff] %v7651_v16  ;;  %v7655_v6 = vpop.permute.xlu1 %2632  ;;  %v9167_v16 = vld [vmem:[#allocation31_spill] sm:$0xff] }
 0x50a   : > { %9134 = vst [vmem:[#allocation32_spill] sm:$0xff] %v7653_v49 }
 0x50b   : > { %9135 = vst [vmem:[#allocation30_spill] sm:$0xff] %v7655_v6 }
 0x50e   : > { %2724 = vrot.lane.b32.xlu2 %v9137_v40, %s5218_s17  ;;  %2714 = vrot.lane.b32.xlu0 %v2359_v42, %s5218_s17 }
 0x50f   : > { %2722 = vrot.lane.b32.xlu1 %v9138_v45, %s5218_s17  ;;  %v9146_v45 = vld [vmem:[#allocation3_spill] sm:$0xff] }
 0x510   : > { %v7665_v18 = vpop.permute.xlu0 %2630  ;;  %v2659_v8 = vpop.permute.xlu2 %2658 }
 0x511   : > { %9139 = vst [vmem:[#allocation27_spill] sm:$0xff] %v7665_v18  ;;  %v7667_v30 = vpop.permute.xlu1 %2638 }
 0x512   : > { %9140 = vst [vmem:[#allocation28_spill] sm:$0xff] %v7667_v30  ;;  %v9148_v30 = vld [vmem:[#allocation4_spill] sm:$0xff] }
 0x516   : > { %2730 = vrot.lane.b32.xlu2 %v9141_v34, %s5218_s17  ;;  %2720 = vrot.lane.b32.xlu0 %v9142_v4, %s5218_s17 }
 0x517   : > { %2728 = vrot.lane.b32.xlu1 %v9143_v14, %s5218_s17 }
 0x518   : > { %v7675_v59 = vpop.permute.xlu0 %2636  ;;  %v2665_v42 = vpop.permute.xlu2 %2664 }
 0x519   : > { %9144 = vst [vmem:[#allocation39_spill] sm:$0xff] %v7675_v59  ;;  %v7677_v40 = vpop.permute.xlu1 %2644  ;;  %v9151_v59 = vld [vmem:[#allocation25_spill] sm:$0xff] }
 0x51a   : > { %9145 = vst [vmem:[#allocation60_spill] sm:$0xff] %v7677_v40  ;;  %v9152_v40 = vld [vmem:[#allocation18_spill] sm:$0xff] }
 0x51e   : > { %2736 = vrot.lane.b32.xlu2 %v9146_v45, %s5218_s17  ;;  %2726 = vrot.lane.b32.xlu0 %v9147_v15, %s5218_s17  ;;  %v9153_v45 = vld [vmem:[#allocation22_spill] sm:$0xff] }
 0x51f   : > { %2734 = vrot.lane.b32.xlu1 %v9148_v30, %s5218_s17 }
 0x520   : > { %v7685_v34 = vpop.permute.xlu0 %2642  ;;  %v2671_v4 = vpop.permute.xlu2 %2670 }
 0x521   : > { %9149 = vst [vmem:[#allocation7_spill] sm:$0xff] %v7685_v34  ;;  %v2651_v6 = vpop.permute.xlu1 %2650 }
 0x522   : > { %v7689_v14 = vsel %vm1152_vm2, %v2651_v6, %v7653_v49 }
 0x523   : > { %9150 = vst [vmem:[#allocation37_spill] sm:$0xff] %v7689_v14  ;;  %v2455_v14 = vsel %vm629_vm1, %v7382_v52, %v7436_v1 }
 0x526   : > { %2742 = vrot.lane.b32.xlu2 %v9151_v59, %s5218_s17  ;;  %2732 = vrot.lane.b32.xlu0 %v9152_v40, %s5218_s17  ;;  %v9156_v59 = vld [vmem:[#allocation20_spill] sm:$0xff]  ;;  %v9157_v40 = vld [vmem:[#allocation26_spill] sm:$0xff] }
 0x527   : > { %2740 = vrot.lane.b32.xlu1 %v9153_v45, %s5218_s17 }
 0x528   : > { %v2649_v15 = vpop.permute.xlu0 %2648  ;;  %v7697_v18 = vpop.permute.xlu2 %2676 }
 0x529   : > { %9154 = vst [vmem:[#allocation11_spill] sm:$0xff] %v7697_v18  ;;  %v2657_v30 = vpop.permute.xlu1 %2656  ;;  %v7700_v34 = vsel %vm1152_vm2, %v2649_v15, %v2651_v6 }
 0x52a   : > { %v7703_v37 = vsel %vm1152_vm2, %v2657_v30, %v2659_v8 }
 0x52b   : > { %9155 = vst [vmem:[#allocation40_spill] sm:$0xff] %v7703_v37  ;;  %v9170_v37 = vld [vmem:[#allocation58_spill] sm:$0xff] }
 0x52e   : > { %2824 = vrot.lane.b32.xlu2 %v7191_v39, %s5218_s17  ;;  %2738 = vrot.lane.b32.xlu0 %v9156_v59, %s5218_s17  ;;  %v2454_v39 = vsel %vm629_vm1, %v7416_v0, %v7382_v52  ;;  %v9160_v59 = vld [vmem:[#allocation21_spill] sm:$0xff] }
 0x52f   : > { %2746 = vrot.lane.b32.xlu1 %v9157_v40, %s5218_s17  ;;  %v7730_v40 = vsel %vm1152_vm2, %v7623_v60, %v7567_v25  ;;  %v9165_v25 = vld [vmem:[#allocation57_spill] sm:$0xff] }
 0x530   : > { %v7711_v45 = vpop.permute.xlu0 %2654  ;;  %v2683_v49 = vpop.permute.xlu2 %2682  ;;  %9161 = vst [vmem:[#allocation23_spill] sm:$0xff] %v7730_v40 }
 0x531   : > { %v2663_v13 = vpop.permute.xlu1 %2662  ;;  %v7715_v6 = vsel %vm1152_vm2, %v7711_v45, %v2657_v30 }
 0x532   : > { %9158 = vst [vmem:[#allocation8_spill] sm:$0xff] %v7715_v6  ;;  %v7718_v15 = vsel %vm1152_vm2, %v2663_v13, %v2665_v42  ;;  %3135 = vmatpush.bf16.msra.mxu0 %v7715_v6 }
 0x533   : > { %9159 = vst [vmem:[#allocation3_spill] sm:$0xff] %v7718_v15 }
 0x536   : > { %2744 = vrot.lane.b32.xlu0 %v9160_v59, %s5218_s17  ;;  %2786 = vrot.lane.b32.xlu2 %v2454_v39, %s5218_s17 }
 0x537   : > { %2784 = vrot.lane.b32.xlu1 %v7416_v0, %s5218_s17  ;;  %3136 = vmatpush.bf16.msra.mxu0 %v7730_v40  ;;  %v9166_v0 = vld [vmem:[#allocation6_spill] sm:$0xff] }
 0x538   : > { %v2661_v30 = vpop.permute.xlu0 %2660  ;;  %v2689_v6 = vpop.permute.xlu2 %2688  ;;  %v2400_v40 = vsel %vm574_vm0, %v9166_v0, %v9165_v25 }
 0x539   : > { %v2669_v15 = vpop.permute.xlu1 %2668  ;;  %v7736_v44 = vsel %vm1152_vm2, %v2659_v8, %v2661_v30  ;;  %v7739_v59 = vsel %vm1152_vm2, %v2661_v30, %v2663_v13 }
 0x53a   : > { %9162 = vst [vmem:[#allocation4_spill] sm:$0xff] %v7736_v44  ;;  %v7742_v39 = vsel %vm1152_vm2, %v2669_v15, %v2671_v4  ;;  %v9169_v44 = vld [vmem:[#allocation55_spill] sm:$0xff] }
 0x53b   : > { %9163 = vst [vmem:[#allocation25_spill] sm:$0xff] %v7739_v59 }
 0x53c   : > { %9164 = vst [vmem:[#allocation18_spill] sm:$0xff] %v7742_v39 }
 0x53e   : > { %2748 = vrot.lane.b32.xlu0 %v9167_v16, %s5218_s17  ;;  %2788 = vrot.lane.b32.xlu2 %v2455_v14, %s5218_s17  ;;  %v2402_v16 = vsel %vm574_vm0, %v9170_v37, %v9169_v44  ;;  %v2456_v14 = vsel %vm629_vm1, %v7436_v1, %v7428_v48  ;;  %v2401_v1 = vsel %vm574_vm0, %v9165_v25, %v9170_v37 }
 0x53f   : > { %2752 = vrot.lane.b32.xlu1 %v2400_v40, %s5218_s17  ;;  %v2588_v37 = vsel %vm629_vm1, %v7533_v19, %v7519_v51 }
 0x540   : > { %v2667_v13 = vpop.permute.xlu0 %2666  ;;  %v2695_v8 = vpop.permute.xlu2 %2694 }
 0x541   : > { %v2675_v30 = vpop.permute.xlu1 %2674  ;;  %v7755_v39 = vsel %vm1152_vm2, %v2665_v42, %v2667_v13  ;;  %v7758_v59 = vsel %vm1152_vm2, %v2667_v13, %v2669_v15 }
 0x542   : > { %v7762_v52 = vsel %vm1152_vm2, %v2675_v30, %v7697_v18 }
 0x543   : > { %9168 = vst [vmem:[#allocation22_spill] sm:$0xff] %v7762_v52 }
 0x546   : > { %2750 = vrot.lane.b32.xlu0 %v9166_v0, %s5218_s17  ;;  %2756 = vrot.lane.b32.xlu2 %v2402_v16, %s5218_s17  ;;  %v2457_v0 = vsel %vm629_vm1, %v7428_v48, %v7391_v7  ;;  %v2458_v48 = vsel %vm629_vm1, %v7391_v7, %v7447_v35 }
 0x547   : > { %2790 = vrot.lane.b32.xlu1 %v2456_v14, %s5218_s17 }
 0x548   : > { %v2673_v42 = vpop.permute.xlu0 %2672  ;;  %v2701_v15 = vpop.permute.xlu2 %2700 }
 0x549   : > { %v7774_v40 = vpop.permute.xlu1 %2680  ;;  %v7777_v13 = vsel %vm1152_vm2, %v2671_v4, %v2673_v42  ;;  %v7780_v18 = vsel %vm1152_vm2, %v2673_v42, %v2675_v30  ;;  %v2587_v4 = vsel %vm629_vm1, %v7449_v29, %v7533_v19  ;;  %v2459_v19 = vsel %vm629_vm1, %v7447_v35, %v7440_v33 }
 0x54a   : > { %9171 = vst [vmem:[#allocation20_spill] sm:$0xff] %v7774_v40 }
 0x54e   : > { %2754 = vrot.lane.b32.xlu0 %v2401_v1, %s5218_s17  ;;  %2792 = vrot.lane.b32.xlu2 %v2457_v0, %s5218_s17 }
 0x54f   : > { %2834 = vrot.lane.b32.xlu1 %v2587_v4, %s5218_s17 }
 0x550   : > { %v7794_v30 = vpop.permute.xlu0 %2678  ;;  %v2707_v16 = vpop.permute.xlu2 %2706 }
 0x551   : > { %9172 = vst [vmem:[#allocation26_spill] sm:$0xff] %v7794_v30  ;;  %v2687_v14 = vpop.permute.xlu1 %2686 }
 0x552   : > { %v7797_v25 = vsel %vm1152_vm2, %v2687_v14, %v2689_v6 }
 0x556   : > { %2794 = vrot.lane.b32.xlu2 %v2458_v48, %s5218_s17  ;;  %2832 = vrot.lane.b32.xlu0 %v7449_v29, %s5218_s17  ;;  %v9173_v29 = vld [vmem:[#allocation52_spill] sm:$0xff] }
 0x557   : > { %2836 = vrot.lane.b32.xlu1 %v2588_v37, %s5218_s17  ;;  %v2403_v37 = vsel %vm574_vm0, %v9169_v44, %v9173_v29 }
 0x558   : > { %v2685_v42 = vpop.permute.xlu0 %2684  ;;  %v7809_v1 = vpop.permute.xlu2 %2712 }
 0x559   : > { %v2693_v0 = vpop.permute.xlu1 %2692  ;;  %v7812_v4 = vsel %vm1152_vm2, %v2683_v49, %v2685_v42  ;;  %v7815_v7 = vsel %vm1152_vm2, %v2685_v42, %v2687_v14  ;;  %v2589_v49 = vsel %vm629_vm1, %v7519_v51, %v7465_v12  ;;  %v9174_v51 = vld [vmem:[#allocation29_spill] sm:$0xff] }
 0x55a   : > { %v7818_v48 = vsel %vm1152_vm2, %v2693_v0, %v2695_v8 }
 0x55e   : > { %2796 = vrot.lane.b32.xlu2 %v2459_v19, %s5218_s17  ;;  %2758 = vrot.lane.b32.xlu0 %v2403_v37, %s5218_s17  ;;  %v2460_v19 = vsel %vm629_vm1, %v7440_v33, %v7402_v61  ;;  %v2404_v37 = vsel %vm574_vm0, %v9173_v29, %v9174_v51 }
 0x55f   : > { %2838 = vrot.lane.b32.xlu1 %v2589_v49, %s5218_s17 }
 0x560   : > { %v2691_v14 = vpop.permute.xlu0 %2690  ;;  %v7832_v42 = vpop.permute.xlu2 %2718 }
 0x561   : > { %v2699_v40 = vpop.permute.xlu1 %2698  ;;  %v7835_v35 = vsel %vm1152_vm2, %v2689_v6, %v2691_v14  ;;  %v7838_v30 = vsel %vm1152_vm2, %v2691_v14, %v2693_v0  ;;  %v2590_v6 = vsel %vm629_vm1, %v7465_v12, %v7547_v43  ;;  %v2405_v12 = vsel %vm574_vm0, %v9174_v51, %v7389_v57 }
 0x562   : > { %v7841_v44 = vsel %vm1152_vm2, %v2699_v40, %v2701_v15 }
 0x566   : > { %2798 = vrot.lane.b32.xlu2 %v2460_v19, %s5218_s17  ;;  %2760 = vrot.lane.b32.xlu0 %v2404_v37, %s5218_s17  ;;  %v2461_v19 = vsel %vm629_vm1, %v7402_v61, %v7463_v47 }
 0x567   : > { %2840 = vrot.lane.b32.xlu1 %v2590_v6, %s5218_s17 }
 0x568   : > { %v2697_v0 = vpop.permute.xlu0 %2696  ;;  %v7855_v49 = vpop.permute.xlu2 %2724 }
 0x569   : > { %v2705_v14 = vpop.permute.xlu1 %2704  ;;  %v7858_v33 = vsel %vm1152_vm2, %v2695_v8, %v2697_v0  ;;  %v7861_v52 = vsel %vm1152_vm2, %v2697_v0, %v2699_v40  ;;  %v2591_v8 = vsel %vm629_vm1, %v7547_v43, %v7537_v20  ;;  %v2462_v43 = vsel %vm629_vm1, %v7463_v47, %v7451_v55 }
 0x56a   : > { %v7864_v29 = vsel %vm1152_vm2, %v2705_v14, %v2707_v16 }
 0x56e   : > { %2800 = vrot.lane.b32.xlu2 %v2461_v19, %s5218_s17  ;;  %2762 = vrot.lane.b32.xlu0 %v2405_v12, %s5218_s17  ;;  %v9176_v19 = vld [vmem:[#allocation54_spill] sm:$0xff] }
 0x56f   : > { %2842 = vrot.lane.b32.xlu1 %v2591_v8, %s5218_s17  ;;  %v2406_v12 = vsel %vm574_vm0, %v7389_v57, %v9176_v19 }
 0x570   : > { %v2703_v40 = vpop.permute.xlu0 %2702  ;;  %v7878_v37 = vpop.permute.xlu2 %2730 }
 0x571   : > { %v2711_v6 = vpop.permute.xlu1 %2710  ;;  %v7881_v61 = vsel %vm1152_vm2, %v2701_v15, %v2703_v40  ;;  %v7884_v0 = vsel %vm1152_vm2, %v2703_v40, %v2705_v14  ;;  %v2592_v15 = vsel %vm629_vm1, %v7537_v20, %v7481_v17  ;;  %v2463_v20 = vsel %vm629_vm1, %v7451_v55, %v7414_v54 }
 0x572   : > { %v7888_v51 = vsel %vm1152_vm2, %v2711_v6, %v7809_v1 }
 0x573   : > { %9175 = vst [vmem:[#allocation21_spill] sm:$0xff] %v7888_v51 }
 0x576   : > { %2802 = vrot.lane.b32.xlu2 %v2462_v43, %s5218_s17  ;;  %2764 = vrot.lane.b32.xlu0 %v2406_v12, %s5218_s17  ;;  %v9178_v43 = vld [vmem:[#allocation59_spill] sm:$0xff] }
 0x577   : > { %2844 = vrot.lane.b32.xlu1 %v2592_v15, %s5218_s17  ;;  %v2407_v12 = vsel %vm574_vm0, %v9176_v19, %v9178_v43 }
 0x578   : > { %v2709_v14 = vpop.permute.xlu0 %2708  ;;  %v7902_v8 = vpop.permute.xlu2 %2736 }
 0x579   : > { %v2717_v40 = vpop.permute.xlu1 %2716  ;;  %v7905_v47 = vsel %vm1152_vm2, %v2707_v16, %v2709_v14  ;;  %v7908_v51 = vsel %vm1152_vm2, %v2709_v14, %v2711_v6  ;;  %v2593_v16 = vsel %vm629_vm1, %v7481_v17, %v7565_v50  ;;  %v2408_v17 = vsel %vm574_vm0, %v9178_v43, %v7400_v31 }
 0x57a   : > { %9177 = vst [vmem:[#allocation57_spill] sm:$0xff] %v7908_v51  ;;  %v7912_v57 = vsel %vm1152_vm2, %v2717_v40, %v7832_v42  ;;  %v2464_v40 = vsel %vm629_vm1, %v7414_v54, %v7479_v58 }
 0x57e   : > { %2804 = vrot.lane.b32.xlu2 %v2463_v20, %s5218_s17  ;;  %2766 = vrot.lane.b32.xlu0 %v2407_v12, %s5218_s17 }
 0x57f   : > { %2846 = vrot.lane.b32.xlu1 %v2593_v16, %s5218_s17 }
 0x580   : > { %v2715_v6 = vpop.permute.xlu0 %2714  ;;  %v7926_v15 = vpop.permute.xlu2 %2742 }
 0x581   : > { %v2723_v14 = vpop.permute.xlu1 %2722  ;;  %v7930_v55 = vsel %vm1152_vm2, %v7809_v1, %v2715_v6  ;;  %v2594_v1 = vsel %vm629_vm1, %v7565_v50, %v7551_v46  ;;  %v2465_v50 = vsel %vm629_vm1, %v7479_v58, %v7467_v22 }
 0x582   : > { %9179 = vst [vmem:[#allocation6_spill] sm:$0xff] %v7930_v55  ;;  %v7934_v19 = vsel %vm1152_vm2, %v2723_v14, %v7855_v49 }
 0x586   : > { %2806 = vrot.lane.b32.xlu2 %v2464_v40, %s5218_s17  ;;  %2768 = vrot.lane.b32.xlu0 %v2408_v17, %s5218_s17  ;;  %v2409_v40 = vsel %vm574_vm0, %v7400_v31, %v7393_v21  ;;  %v7974_v17 = vsel %vm1152_vm2, %v7637_v9, %v7623_v60  ;;  %v2482_v60 = vsel %vm574_vm0, %v7311_v27, %v7515_v62 }
 0x587   : > { %2848 = vrot.lane.b32.xlu1 %v2594_v1, %s5218_s17 }
 0x588   : > { %v7948_v20 = vpop.permute.xlu0 %2720  ;;  %v2825_v12 = vpop.permute.xlu2 %2824 }
 0x589   : > { %v2729_v16 = vpop.permute.xlu1 %2728  ;;  %v2965_v54 = vsel %vm1152_vm2, %v2825_v12, %v7711_v45  ;;  %v7954_v43 = vsel %vm1152_vm2, %v7948_v20, %v2723_v14  ;;  %v2595_v14 = vsel %vm629_vm1, %v7551_v46, %v7499_v38 }
 0x58a   : > { %3107 = vmatpush.bf16.msra.mxu2 %v2965_v54  ;;  %v7958_v6 = vsel %vm1152_vm2, %v2729_v16, %v7878_v37 }
 0x58e   : > { %2808 = vrot.lane.b32.xlu2 %v2465_v50, %s5218_s17  ;;  %2770 = vrot.lane.b32.xlu0 %v2409_v40, %s5218_s17  ;;  %v9180_v50 = vld [vmem:[#allocation53_spill] sm:$0xff] }
 0x58f   : > { %2850 = vrot.lane.b32.xlu1 %v2595_v14, %s5218_s17  ;;  %3108 = vmatpush.bf16.msra.mxu2 %v7974_v17  ;;  %v2410_v40 = vsel %vm574_vm0, %v7393_v21, %v9180_v50 }
 0x590   : > { %v2727_v58 = vpop.permute.xlu0 %2726  ;;  %v2787_v1 = vpop.permute.xlu2 %2786 }
 0x591   : > { %v2735_v31 = vpop.permute.xlu1 %2734  ;;  %v7980_v12 = vsel %vm1152_vm2, %v7855_v49, %v2727_v58  ;;  %v7983_v54 = vsel %vm1152_vm2, %v2727_v58, %v2729_v16  ;;  %v2596_v49 = vsel %vm629_vm1, %v7499_v38, %v7583_v2 }
 0x592   : > { %v7987_v46 = vsel %vm1152_vm2, %v2735_v31, %v7902_v8 }
 0x596   : > { %2826 = vrot.lane.b32.xlu2 %v2482_v60, %s5218_s17  ;;  %2772 = vrot.lane.b32.xlu0 %v2410_v40, %s5218_s17  ;;  %v2412_v40 = vsel %vm574_vm0, %v7412_v26, %v7404_v53 }
 0x597   : > { %2852 = vrot.lane.b32.xlu1 %v2596_v49, %s5218_s17  ;;  %v2411_v49 = vsel %vm574_vm0, %v9180_v50, %v7412_v26  ;;  %v2483_v26 = vsel %vm574_vm0, %v7515_v62, %v7501_v32  ;;  %v2466_v50 = vsel %vm629_vm1, %v7467_v22, %v7426_v36 }
 0x598   : > { %v2733_v16 = vpop.permute.xlu0 %2732  ;;  %v8001_v14 = vpop.permute.xlu2 %2788 }
 0x599   : > { %v2741_v58 = vpop.permute.xlu1 %2740  ;;  %v2947_v27 = vsel %vm1152_vm2, %v2787_v1, %v8001_v14  ;;  %v8007_v21 = vsel %vm1152_vm2, %v7878_v37, %v2733_v16  ;;  %v8010_v60 = vsel %vm1152_vm2, %v2733_v16, %v2735_v31  ;;  %v9181_v37 = vld [vmem:[#allocation24_spill] sm:$0xff] }
 0x59a   : > { %3137 = vmatpush.bf16.msra.mxu0 %v2947_v27  ;;  %v8014_v38 = vsel %vm1152_vm2, %v2741_v58, %v7926_v15 }
 0x59e   : > { %2776 = vrot.lane.b32.xlu2 %v2412_v40, %s5218_s17  ;;  %2774 = vrot.lane.b32.xlu0 %v2411_v49, %s5218_s17 }
 0x59f   : > { %2818 = vrot.lane.b32.xlu1 %v9181_v37, %s5218_s17 }
 0x5a0   : > { %v2739_v31 = vpop.permute.xlu0 %2738  ;;  %v8026_v16 = vpop.permute.xlu2 %2756 }
 0x5a1   : > { %v2747_v27 = vpop.permute.xlu1 %2746  ;;  %v8030_v55 = vsel %vm1152_vm2, %v7902_v8, %v2739_v31  ;;  %v8033_v51 = vsel %vm1152_vm2, %v2739_v31, %v2741_v58  ;;  %v2467_v8 = vsel %vm629_vm1, %v7426_v36, %v7497_v10  ;;  %v2597_v36 = vsel %vm629_vm1, %v7583_v2, %v7569_v24  ;;  %v9182_v31 = vld [vmem:[#allocation5_spill] sm:$0xff] }
 0x5a6   : > { %2828 = vrot.lane.b32.xlu2 %v2483_v26, %s5218_s17  ;;  %2810 = vrot.lane.b32.xlu0 %v2466_v50, %s5218_s17 }
 0x5a7   : > { %2812 = vrot.lane.b32.xlu1 %v2467_v8, %s5218_s17 }
 0x5a8   : > { %v2745_v58 = vpop.permute.xlu0 %2744  ;;  %v8054_v22 = vpop.permute.xlu2 %2792 }
 0x5a9   : > { %v2785_v40 = vpop.permute.xlu1 %2784  ;;  %v8049_v49 = vsel %vm1152_vm2, %v7926_v15, %v2745_v58  ;;  %v8052_v62 = vsel %vm1152_vm2, %v2745_v58, %v2747_v27  ;;  %v2598_v15 = vsel %vm629_vm1, %v7569_v24, %v7517_v41  ;;  %v9183_v58 = vld [vmem:[#allocation56_spill] sm:$0xff]  ;;  %v2468_v24 = vsel %vm629_vm1, %v7497_v10, %v7483_v5 }
 0x5aa   : > { %v2946_v37 = vsel %vm1152_vm2, %v2785_v40, %v2787_v1  ;;  %v2413_v2 = vsel %vm574_vm0, %v7404_v53, %v9183_v58  ;;  %v9184_v40 = vld [vmem:[#allocation61_spill] sm:$0xff]  ;;  %v2469_v53 = vsel %vm629_vm1, %v7483_v5, %v7438_v11  ;;  %v2599_v10 = vsel %vm629_vm1, %v7517_v41, %v7601_v28 }
 0x5ab   : > { %3109 = vmatpush.bf16.msra.mxu2 %v2946_v37  ;;  %v2414_v5 = vsel %vm574_vm0, %v9183_v58, %v7424_v3  ;;  %v2600_v41 = vsel %vm629_vm1, %v7601_v28, %v7587_v56  ;;  %v5031_v28 = vld [vmem:[%s8731_s5 + $0x4] sm:$0xf0] }
 0x5ae   : > { %2820 = vrot.lane.b32.xlu2 %v9182_v31, %s5218_s17  ;;  %2854 = vrot.lane.b32.xlu0 %v2597_v36, %s5218_s17 }
 0x5af   : > { %2856 = vrot.lane.b32.xlu1 %v2598_v15, %s5218_s17 }
 0x5b0   : > { %v2749_v26 = vpop.permute.xlu0 %2748  ;;  %v8070_v8 = vpop.permute.xlu2 %2794 }
 0x5b1   : > { %v2753_v50 = vpop.permute.xlu1 %2752  ;;  %v8068_v1 = vsel %vm1152_vm2, %v2747_v27, %v2749_v26 }
 0x5b6   : > { %2822 = vrot.lane.b32.xlu2 %v9184_v40, %s5218_s17  ;;  %2778 = vrot.lane.b32.xlu0 %v2413_v2, %s5218_s17 }
 0x5b7   : > { %2814 = vrot.lane.b32.xlu1 %v2468_v24, %s5218_s17 }
 0x5b8   : > { %v2751_v37 = vpop.permute.xlu0 %2750  ;;  %v8088_v31 = vpop.permute.xlu2 %2796 }
 0x5b9   : > { %v8082_v27 = vpop.permute.xlu1 %2790  ;;  %v2930_v36 = vsel %vm1152_vm2, %v2751_v37, %v2753_v50 }
 0x5ba   : > { %3110 = vmatpush.bf16.msra.mxu2 %v2930_v36 }
 0x5be   : > { %2816 = vrot.lane.b32.xlu2 %v2469_v53, %s5218_s17  ;;  %2830 = vrot.lane.b32.xlu0 %v7501_v32, %s5218_s17  ;;  %v2601_v32 = vsel %vm629_vm1, %v7587_v56, %v7535_v63  ;;  %v4891_v56 = vld [vmem:[%s8731_s5] sm:$0xf]  ;;  %v9186_v53 = vld [vmem:[#allocation40_spill] sm:$0xff] }
 0x5bf   : > { %2858 = vrot.lane.b32.xlu1 %v2599_v10, %s5218_s17  ;;  %3111 = vmatpush.bf16.msra.mxu2 %v7912_v57  ;;  %v4893_v57 = vld [vmem:[%s8731_s5 + $0x8] sm:$0xf0]  ;;  %v8140_v36 = vor.u32 %v5031_v28, %v4891_v56  ;;  %v3555_v10 = vld [vmem:[%s8732_s6] sm:$0xff] }
 0x5c0   : > { %v8098_v15 = vpop.permute.xlu0 %2754  ;;  %v8131_v58 = vpop.permute.xlu2 %2798 }
 0x5c1   : > { %v2835_v26 = vpop.permute.xlu1 %2834  ;;  %v2931_v11 = vsel %vm1152_vm2, %v2753_v50, %v8098_v15  ;;  %v2915_v50 = vsel %vm1152_vm2, %v7832_v42, %v7948_v20  ;;  %v9185_v42 = vld [vmem:[#allocation51_spill] sm:$0xff] }
 0x5c2   : > { %3138 = vmatpush.bf16.msra.mxu0 %v2931_v11  ;;  %v2866_v20 = vsel %vm1152_vm2, %v7605_v23, %v9185_v42  ;;  %v9187_v11 = vld [vmem:[#allocation4_spill] sm:$0xff]  ;;  %v9188_v23 = vld [vmem:[#allocation43_spill] sm:$0xff]  ;;  %v2867_v28 = vsel %vm1152_vm2, %v9185_v42, %v7637_v9  ;;  %v9193_v9 = vld [vmem:[#allocation25_spill] sm:$0xff] }
 0x5c3   : > { %3112 = vmatpush.bf16.msra.mxu2 %v7812_v4  ;;  %v5030_v4 = vld [vmem:[%s8731_s5 + $0x4] sm:$0xf]  ;;  %v9194_v42 = vld [vmem:[#allocation48_spill] sm:$0xff] }
 0x5c6   : > { %2780 = vrot.lane.b32.xlu0 %v2414_v5, %s5218_s17  ;;  %2862 = vrot.lane.b32.xlu2 %v2601_v32, %s5218_s17  ;;  %v9190_v32 = vld [vmem:[#allocation37_spill] sm:$0xff] }
 0x5c7   : > { %2860 = vrot.lane.b32.xlu1 %v2600_v41, %s5218_s17  ;;  %3113 = vmatpush.bf16.msra.mxu2 %v7700_v34  ;;  %v8134_v34 = vor.u32 %v5030_v4, %v4893_v57  ;;  %v9191_v41 = vld [vmem:[#allocation44_spill] sm:$0xff] }
 0x5c8   : > { %3139 = vmatpush.bf16.msra.mxu0 %v2915_v50  ;;  %v2833_v2 = vpop.permute.xlu0 %2832  ;;  %v8166_v4 = vsel %vm1152_vm2, %v9188_v23, %v9191_v41  ;;  %v8169_v50 = vpop.permute.xlu2 %2800 }
 0x5c9   : > { %v2837_v40 = vpop.permute.xlu1 %2836  ;;  %v2969_v24 = vsel %vm1152_vm2, %v2833_v2, %v2835_v26  ;;  %v2948_v2 = vsel %vm1152_vm2, %v8001_v14, %v8082_v27  ;;  %v2932_v14 = vsel %vm1152_vm2, %v8098_v15, %v8026_v16  ;;  %v3599_v15 = vld [vmem:[%s8733_s7] sm:$0xff] }
 0x5ca   : > { %v2970_v37 = vsel %vm1152_vm2, %v2835_v26, %v2837_v40  ;;  %3128 = vmatpush.bf16.msra.mxu3 %v2969_v24  ;;  %v3556_v26 = vld [vmem:[%s8732_s6 + $0x8] sm:$0xff]  ;;  %v2949_v24 = vsel %vm1152_vm2, %v8082_v27, %v8054_v22 }
 0x5cb   : > { %3114 = vmatpush.bf16.msra.mxu2 %v2866_v20  ;;  %3156 = vmatpush.bf16.msra.mxu1 %v2970_v37  ;;  %v9192_v37 = vld [vmem:[#allocation45_spill] sm:$0xff] }
 0x5cc   : > { %3140 = vmatpush.bf16.msra.mxu0 %v7815_v7  ;;  %v9189_v7 = vld [vmem:[#allocation50_spill] sm:$0xff]  ;;  %v2602_v20 = vsel %vm629_vm1, %v7535_v63, %v9192_v37  ;;  %v8200_v63 = vsel %vm1152_vm2, %v9191_v41, %v9194_v42  ;;  %v9196_v41 = vld [vmem:[#allocation27_spill] sm:$0xff] }
 0x5cd   : > { %4897 = vmatmul.msk.bf16.vlgmr.msra.gmra.mxu3 %vm1391_vm3, %v8134_v34  ;;  %v8159_v5 = vsel %vm1152_vm2, %v9189_v7, %v9188_v23 }
 0x5ce   : > { %3163 = vmatpush.bf16.msrb.mxu3 %v9186_v53  ;;  %3115 = vmatmul.bf16.vlgmr.msra.gmra.mxu2 %v8140_v36 }
 0x5cf   : > { %3191 = vmatpush.bf16.msrb.mxu1 %v9187_v11  ;;  %2782 = vrot.lane.b32.xlu0 %v7424_v3, %s5218_s17 }
 0x5d0   : > { %3559 = vperm.xlu1 %5045, %v3555_v10   ;;  %3564 = vperm.xlu2 %5046, %v3556_v26   ;;  %v2759_v57 = vpop.permute.xlu0 %2758  ;;  %v8207_v7 = vpop.permute.xlu2 %2802 }
 0x5d1   : > { %3141 = vmatpush.bf16.msra.mxu0 %v9190_v32  ;;  %v2839_v3 = vpop.permute.xlu1 %2838  ;;  %4898 = vmatmul.msk.bf16.vlgmr.msra.gmra.mxu1 %vm1391_vm3, %v8134_v34  ;;  %v2933_v27 = vsel %vm1152_vm2, %v8026_v16, %v2759_v57  ;;  %v2950_v16 = vsel %vm1152_vm2, %v8054_v22, %v8070_v8  ;;  %v9195_v32 = vld [vmem:[#allocation3_spill] sm:$0xff] }
 0x5d2   : > { %3164 = vmatpush.bf16.msrb.mxu3 %v8159_v5  ;;  %v2971_v56 = vsel %vm1152_vm2, %v2837_v40, %v2839_v3  ;;  %v3600_v40 = vld [vmem:[%s8733_s7 + $0x8] sm:$0xff] }
 0x5d3   : > { %3192 = vmatpush.bf16.msrb.mxu1 %v8166_v4  ;;  %3184 = vmatpush.bf16.msrb.mxu2 %v2971_v56  ;;  %v9197_v56 = vld [vmem:[#allocation32_spill] sm:$0xff] }
 0x5d5   : > { %3142 = vmatpush.bf16.msra.mxu0 %v2867_v28  ;;  %v2884_v28 = vsel %vm1152_vm2, %v9197_v56, %v7711_v45 }
 0x5d6   : > { %3165 = vmatpush.bf16.msrb.mxu3 %v2948_v2  ;;  %v2951_v2 = vsel %vm1152_vm2, %v8070_v8, %v8088_v31  ;;  %v9199_v8 = vld [vmem:[#allocation23_spill] sm:$0xff] }
 0x5d7   : > { %3193 = vmatpush.bf16.msrb.mxu1 %v2949_v24  ;;  %3219 = vmatpush.bf16.msra.mxu2 %v9193_v9 }
 0x5d8   : > { %2864 = vrot.lane.b32.xlu0 %v2602_v20, %s5218_s17  ;;  %3143 = vmatmul.bf16.vlgmr.msra.gmra.mxu0 %v8140_v36  ;;  %v2761_v10 = vpop.permute.xlu0 %2760 }
 0x5d9   : > { %3608 = vperm.xlu1 %5045, %v3600_v40   ;;  %v2841_v26 = vpop.permute.xlu1 %2840 }
 0x5da   : > { %3166 = vmatpush.bf16.msrb.mxu3 %v2932_v14  ;;  %v2972_v23 = vsel %vm1152_vm2, %v2839_v3, %v2841_v26  ;;  %v8220_v3 = vsel %vm1152_vm2, %v9194_v42, %v9196_v41  ;;  %v9202_v42 = vld [vmem:[#allocation18_spill] sm:$0xff] }
 0x5db   : > { %3194 = vmatpush.bf16.msrb.mxu1 %v2933_v27  ;;  %3220 = vmatpush.bf16.msra.mxu2 %v8200_v63  ;;  %v2953_v27 = vsel %vm1152_vm2, %v8131_v58, %v8169_v50 }
 0x5dc   : > { %3212 = vmatpush.bf16.msrb.mxu0 %v2972_v23 }
 0x5de   : > { %3167 = vmatpush.bf16.msrb.mxu3 %v7954_v43  ;;  %4899 = vmatmul.msk.bf16.vlgmr.msrb.gmra.mxu2 %vm1391_vm3, %v8134_v34  ;;  %v2934_v43 = vsel %vm1152_vm2, %v2759_v57, %v2761_v10  ;;  %v8234_v57 = vpop.permute.xlu2 %2804 }
 0x5df   : > { %3195 = vmatpush.bf16.msrb.mxu1 %v7934_v19  ;;  %3221 = vmatpush.bf16.msra.mxu2 %v2950_v16 }
 0x5e0   : > { %3247 = vmatpush.bf16.msra.mxu0 %v9195_v32  ;;  %3603 = vperm.xlu0 %5047, %v3599_v15   ;;  %v2763_v22 = vpop.permute.xlu0 %2762 }
 0x5e1   : > { %v2843_v19 = vpop.permute.xlu1 %2842 }
 0x5e2   : > { %3168 = vmatpush.bf16.msrb.mxu3 %v7797_v25  ;;  %v9198_v25 = vld [vmem:[#allocation8_spill] sm:$0xff]  ;;  %v2973_v24 = vsel %vm1152_vm2, %v2841_v26, %v2843_v19  ;;  %v9203_v26 = vld [vmem:[#allocation39_spill] sm:$0xff] }
 0x5e3   : > { %3196 = vmatpush.bf16.msrb.mxu1 %v7835_v35  ;;  %3222 = vmatpush.bf16.msra.mxu2 %v2934_v43  ;;  %v2935_v35 = vsel %vm1152_vm2, %v2761_v10, %v2763_v22 }
 0x5e4   : > { %3248 = vmatpush.bf16.msra.mxu0 %v8220_v3 }
 0x5e6   : > { %3169 = vmatpush.bf16.msrb.mxu3 %v2884_v28 }
 0x5e7   : > { %3197 = vmatpush.bf16.msrb.mxu1 %v9198_v25  ;;  %3223 = vmatpush.bf16.msra.mxu2 %v7980_v12 }
 0x5e8   : > { %3249 = vmatpush.bf16.msra.mxu0 %v2951_v2  ;;  %v2765_v45 = vpop.permute.xlu0 %2764 }
 0x5e9   : > { %4900 = vmatmul.msk.bf16.vlgmr.msrb.gmra.mxu0 %vm1391_vm3, %v8134_v34  ;;  %v2845_v40 = vpop.permute.xlu1 %2844  ;;  %v2936_v10 = vsel %vm1152_vm2, %v2763_v22, %v2765_v45  ;;  %v9204_v22 = vld [vmem:[#allocation28_spill] sm:$0xff] }
 0x5ea   : > { %3170 = vmatpush.bf16.msrb.mxu3 %v7974_v17  ;;  %v2974_v12 = vsel %vm1152_vm2, %v2843_v19, %v2845_v40  ;;  %v8250_v17 = vpop.permute.xlu2 %2806  ;;  %v8304_v19 = vsel %vm1152_vm2, %v9203_v26, %v9204_v22 }
 0x5eb   : > { %3198 = vmatpush.bf16.msrb.mxu1 %v9199_v8  ;;  %3224 = vmatpush.bf16.msra.mxu2 %v7838_v30  ;;  %v9200_v30 = vld [vmem:[#allocation30_spill] sm:$0xff]  ;;  %v2956_v2 = vsel %vm1152_vm2, %v8234_v57, %v8250_v17 }
 0x5ec   : > { %3250 = vmatpush.bf16.msra.mxu0 %v2935_v35  ;;  %v8256_v37 = vsel %vm1152_vm2, %v9196_v41, %v9200_v30 }
 0x5ed   : > { %3171 = vmatmul.bf16.vlgmr.msrb.gmra.mxu3 %v8140_v36 }
 0x5ee   : > { %3240 = vmatpush.bf16.msra.mxu3 %v2973_v24  ;;  %3199 = vmatmul.bf16.vlgmr.msrb.gmra.mxu1 %v8140_v36 }
 0x5ef   : > { %3268 = vmatpush.bf16.msra.mxu1 %v2974_v12  ;;  %3225 = vmatpush.bf16.msra.mxu2 %v9186_v53 }
 0x5f0   : > { %3251 = vmatpush.bf16.msra.mxu0 %v7983_v54  ;;  %v2767_v20 = vpop.permute.xlu0 %2766  ;;  %v9201_v54 = vld [vmem:[#allocation49_spill] sm:$0xff] }
 0x5f1   : > { %v8263_v53 = vsel %vm1152_vm2, %v9200_v30, %v9201_v54  ;;  %v2847_v14 = vpop.permute.xlu1 %2846  ;;  %v9208_v30 = vld [vmem:[#allocation26_spill] sm:$0xff] }
 0x5f2   : > { %3275 = vmatpush.bf16.msrb.mxu3 %v7755_v39 }
 0x5f3   : > { %3303 = vmatpush.bf16.msrb.mxu1 %v7758_v59  ;;  %3226 = vmatpush.bf16.msra.mxu2 %v8159_v5  ;;  %v2952_v5 = vsel %vm1152_vm2, %v8088_v31, %v8131_v58  ;;  %v2937_v31 = vsel %vm1152_vm2, %v2765_v45, %v2767_v20  ;;  %v8285_v58 = vpop.permute.xlu2 %2808 }
 0x5f4   : > { %3252 = vmatpush.bf16.msra.mxu0 %v7818_v48  ;;  %v2975_v48 = vsel %vm1152_vm2, %v2845_v40, %v2847_v14 }
 0x5f6   : > { %3276 = vmatpush.bf16.msrb.mxu3 %v8256_v37  ;;  %3227 = vmatmul.bf16.vlgmr.msra.gmra.mxu2 %v8140_v36 }
 0x5f7   : > { %3304 = vmatpush.bf16.msrb.mxu1 %v8263_v53  ;;  %3296 = vmatpush.bf16.msrb.mxu2 %v2975_v48 }
 0x5f8   : > { %3253 = vmatpush.bf16.msra.mxu0 %v9187_v11  ;;  %v8281_v11 = vsel %vm1152_vm2, %v9201_v54, %v9203_v26  ;;  %v2769_v23 = vpop.permute.xlu0 %2768 }
 0x5f9   : > { %v2849_v15 = vpop.permute.xlu1 %2848  ;;  %v2938_v41 = vsel %vm1152_vm2, %v2767_v20, %v2769_v23 }
 0x5fa   : > { %3277 = vmatpush.bf16.msrb.mxu3 %v2952_v5  ;;  %v2976_v16 = vsel %vm1152_vm2, %v2847_v14, %v2849_v15 }
 0x5fb   : > { %3331 = vmatpush.bf16.msra.mxu2 %v9202_v42  ;;  %3305 = vmatpush.bf16.msrb.mxu1 %v2953_v27 }
 0x5fc   : > { %3254 = vmatpush.bf16.msra.mxu0 %v8166_v4  ;;  %v2954_v4 = vsel %vm1152_vm2, %v8169_v50, %v8207_v7 }
 0x5fd   : > { %4901 = vmatmul.msk.bf16.vlgmr.msra.gmra.mxu3 %vm1391_vm3, %v8134_v34 }
 0x5fe   : > { %3278 = vmatpush.bf16.msrb.mxu3 %v2936_v10  ;;  %4902 = vmatmul.msk.bf16.vlgmr.msra.gmra.mxu1 %vm1391_vm3, %v8134_v34 }
 0x5ff   : > { %3332 = vmatpush.bf16.msra.mxu2 %v8281_v11  ;;  %3306 = vmatpush.bf16.msrb.mxu1 %v2937_v31  ;;  %v9211_v31 = vld [vmem:[#allocation57_spill] sm:$0xff] }
 0x600   : > { %3255 = vmatmul.bf16.vlgmr.msra.gmra.mxu0 %v8140_v36  ;;  %v2771_v43 = vpop.permute.xlu0 %2770 }
 0x601   : > { %3324 = vmatpush.bf16.msrb.mxu0 %v2976_v16  ;;  %v2851_v56 = vpop.permute.xlu1 %2850 }
 0x602   : > { %3279 = vmatpush.bf16.msrb.mxu3 %v7958_v6  ;;  %v8308_v6 = vpop.permute.xlu2 %2826  ;;  %v2977_v28 = vsel %vm1152_vm2, %v2849_v15, %v2851_v56 }
 0x603   : > { %3333 = vmatpush.bf16.msra.mxu2 %v2954_v4  ;;  %3307 = vmatpush.bf16.msrb.mxu1 %v8007_v21 }
 0x605   : > { %3359 = vmatpush.bf16.msra.mxu0 %v7777_v13 }
 0x606   : > { %3280 = vmatpush.bf16.msrb.mxu3 %v7858_v33  ;;  %4903 = vmatmul.msk.bf16.vlgmr.msrb.gmra.mxu2 %vm1391_vm3, %v8134_v34  ;;  %v2955_v33 = vsel %vm1152_vm2, %v8207_v7, %v8234_v57  ;;  %v9206_v7 = vld [vmem:[#allocation47_spill] sm:$0xff] }
 0x607   : > { %3334 = vmatpush.bf16.msra.mxu2 %v2938_v41  ;;  %3308 = vmatpush.bf16.msrb.mxu1 %v7861_v52  ;;  %v2939_v52 = vsel %vm1152_vm2, %v2769_v23, %v2771_v43 }
 0x608   : > { %v2773_v21 = vpop.permute.xlu0 %2772 }
 0x609   : > { %3360 = vmatpush.bf16.msra.mxu0 %v8304_v19  ;;  %v2853_v50 = vpop.permute.xlu1 %2852  ;;  %v2940_v45 = vsel %vm1152_vm2, %v2771_v43, %v2773_v21 }
 0x60a   : > { %3281 = vmatpush.bf16.msrb.mxu3 %v9193_v9  ;;  %v9205_v9 = vld [vmem:[#allocation22_spill] sm:$0xff] }
 0x60b   : > { %3335 = vmatpush.bf16.msra.mxu2 %v8010_v60  ;;  %3309 = vmatpush.bf16.msrb.mxu1 %v9195_v32  ;;  %v2978_v60 = vsel %vm1152_vm2, %v2851_v56, %v2853_v50  ;;  %v8338_v32 = vsel %vm1152_vm2, %v9204_v22, %v9206_v7 }
 0x60d   : > { %3361 = vmatpush.bf16.msra.mxu0 %v2955_v33  ;;  %v9212_v33 = vld [vmem:[#allocation21_spill] sm:$0xff] }
 0x60e   : > { %3282 = vmatpush.bf16.msrb.mxu3 %v8200_v63 }
 0x60f   : > { %3336 = vmatpush.bf16.msra.mxu2 %v7841_v44  ;;  %3310 = vmatpush.bf16.msrb.mxu1 %v8220_v3  ;;  %v8329_v44 = vpop.permute.xlu2 %2776 }
 0x610   : > { %4904 = vmatmul.msk.bf16.vlgmr.msrb.gmra.mxu0 %vm1391_vm3, %v8134_v34  ;;  %v2775_v63 = vpop.permute.xlu0 %2774 }
 0x611   : > { %3362 = vmatpush.bf16.msra.mxu0 %v2939_v52  ;;  %3283 = vmatmul.bf16.vlgmr.msrb.gmra.mxu3 %v8140_v36  ;;  %v8340_v3 = vpop.permute.xlu1 %2818  ;;  %v2941_v57 = vsel %vm1152_vm2, %v2773_v21, %v2775_v63  ;;  %v2942_v5 = vsel %vm1152_vm2, %v2775_v63, %v8329_v44  ;;  %v3675_v63 = vld [vmem:[%s5286_s14 + $0x8] sm:$0xff] }
 0x612   : > { %3352 = vmatpush.bf16.msra.mxu3 %v2977_v28  ;;  %3311 = vmatmul.bf16.vlgmr.msrb.gmra.mxu1 %v8140_v36 }
 0x613   : > { %3380 = vmatpush.bf16.msra.mxu1 %v2978_v60  ;;  %3337 = vmatpush.bf16.msra.mxu2 %v7755_v39  ;;  %v9207_v39 = vld [vmem:[#allocation7_spill] sm:$0xff] }
 0x615   : > { %3363 = vmatpush.bf16.msra.mxu0 %v7987_v46  ;;  %v8347_v46 = vsel %vm1152_vm2, %v9206_v7, %v9207_v39  ;;  %v9214_v7 = vld [vmem:[#allocation20_spill] sm:$0xff] }
 0x616   : > { %3387 = vmatpush.bf16.msrb.mxu3 %v7780_v18 }
 0x617   : > { %3415 = vmatpush.bf16.msrb.mxu1 %v9205_v9  ;;  %3338 = vmatpush.bf16.msra.mxu2 %v8256_v37  ;;  %v8358_v25 = vpop.permute.xlu2 %2828  ;;  %v2966_v37 = vsel %vm1152_vm2, %v9208_v30, %v8308_v6 }
 0x618   : > { %v2811_v35 = vpop.permute.xlu0 %2810 }
 0x619   : > { %3364 = vmatpush.bf16.msra.mxu0 %v7881_v61  ;;  %v2957_v61 = vsel %vm1152_vm2, %v8250_v17, %v8285_v58  ;;  %v8361_v24 = vpop.permute.xlu1 %2812 }
 0x61a   : > { %3388 = vmatpush.bf16.msrb.mxu3 %v8338_v32  ;;  %3339 = vmatmul.bf16.vlgmr.msra.gmra.mxu2 %v8140_v36  ;;  %v2959_v14 = vsel %vm1152_vm2, %v2811_v35, %v8361_v24 }
 0x61b   : > { %3416 = vmatpush.bf16.msrb.mxu1 %v8347_v46 }
 0x61d   : > { %3365 = vmatpush.bf16.msra.mxu0 %v7758_v59 }
 0x61e   : > { %3389 = vmatpush.bf16.msrb.mxu3 %v2956_v2  ;;  %v3691_v2 = vunpack.c.l.bf16 %v3675_v63 }
 0x61f   : > { %3417 = vmatpush.bf16.msrb.mxu1 %v2957_v61  ;;  %v8373_v12 = vpop.permute.xlu2 %2820 }
 0x620   : > { %v2855_v59 = vpop.permute.xlu0 %2854  ;;  %v2963_v15 = vsel %vm1152_vm2, %v8340_v3, %v8373_v12 }
 0x621   : > { %3366 = vmatpush.bf16.msra.mxu0 %v8263_v53  ;;  %4905 = vmatmul.msk.bf16.vlgmr.msra.gmra.mxu3 %vm1391_vm3, %v8134_v34  ;;  %v2979_v8 = vsel %vm1152_vm2, %v2853_v50, %v2855_v59  ;;  %v2857_v40 = vpop.permute.xlu1 %2856 }
 0x622   : > { %3390 = vmatpush.bf16.msrb.mxu3 %v2940_v45  ;;  %4906 = vmatmul.msk.bf16.vlgmr.msra.gmra.mxu1 %vm1391_vm3, %v8134_v34  ;;  %v2980_v17 = vsel %vm1152_vm2, %v2855_v59, %v2857_v40 }
 0x623   : > { %3418 = vmatpush.bf16.msrb.mxu1 %v2941_v57  ;;  %3408 = vmatpush.bf16.msrb.mxu2 %v2979_v8  ;;  %v3692_v57 = vunpack.c.h.bf16 %v3675_v63 }
 0x624   : > { %3367 = vmatmul.bf16.vlgmr.msra.gmra.mxu0 %v8140_v36 }
 0x625   : > { %3436 = vmatpush.bf16.msrb.mxu0 %v2980_v17 }
 0x626   : > { %3391 = vmatpush.bf16.msrb.mxu3 %v8030_v55 }
 0x627   : > { %3419 = vmatpush.bf16.msrb.mxu1 %v8033_v51  ;;  %v9209_v51 = vld [vmem:[#allocation11_spill] sm:$0xff]  ;;  %v2823_v48 = vpop.permute.xlu2 %2822 }
 0x628   : > { %v8384_v55 = vsel %vm1152_vm2, %v9209_v51, %v9208_v30  ;;  %v2779_v54 = vpop.permute.xlu0 %2778  ;;  %v2964_v41 = vsel %vm1152_vm2, %v8373_v12, %v2823_v48  ;;  %v3683_v51 = vld [vmem:[%s5286_s14 + $0x58] sm:$0xff] }
 0x629   : > { %3443 = vmatpush.bf16.msra.mxu2 %v8384_v55  ;;  %3471 = vmatpush.bf16.msra.mxu0 %v2966_v37  ;;  %v2815_v53 = vpop.permute.xlu1 %2814  ;;  %v2943_v27 = vsel %vm1152_vm2, %v8329_v44, %v2779_v54 }
 0x62a   : > { %3392 = vmatpush.bf16.msrb.mxu3 %v7884_v0  ;;  %4907 = vmatmul.msk.bf16.vlgmr.msrb.gmra.mxu2 %vm1391_vm3, %v8134_v34  ;;  %v9210_v0 = vld [vmem:[#allocation60_spill] sm:$0xff] }
 0x62b   : > { %3420 = vmatpush.bf16.msrb.mxu1 %v7864_v29  ;;  %v8394_v29 = vsel %vm1152_vm2, %v9207_v39, %v9210_v0  ;;  %v2962_v20 = vsel %vm1152_vm2, %v9210_v0, %v8340_v3 }
 0x62d   : > { %3444 = vmatpush.bf16.msra.mxu2 %v8394_v29  ;;  %3472 = vmatpush.bf16.msra.mxu0 %v2962_v20 }
 0x62e   : > { %3393 = vmatpush.bf16.msrb.mxu3 %v9202_v42 }
 0x62f   : > { %3421 = vmatpush.bf16.msrb.mxu1 %v7777_v13  ;;  %v2958_v13 = vsel %vm1152_vm2, %v8285_v58, %v2811_v35  ;;  %v2817_v23 = vpop.permute.xlu2 %2816 }
 0x630   : > { %v2831_v42 = vpop.permute.xlu0 %2830 }
 0x631   : > { %3445 = vmatpush.bf16.msra.mxu2 %v2958_v13  ;;  %3473 = vmatpush.bf16.msra.mxu0 %v2959_v14  ;;  %v2859_v10 = vpop.permute.xlu1 %2858  ;;  %v9217_v14 = vld [vmem:[#allocation9_spill] sm:$0xff] }
 0x632   : > { %3394 = vmatpush.bf16.msrb.mxu3 %v8281_v11  ;;  %v2981_v26 = vsel %vm1152_vm2, %v2857_v40, %v2859_v10  ;;  %v2967_v11 = vsel %vm1152_vm2, %v8308_v6, %v8358_v25 }
 0x633   : > { %3422 = vmatpush.bf16.msrb.mxu1 %v8304_v19  ;;  %v2961_v19 = vsel %vm1152_vm2, %v2815_v53, %v2817_v23 }
 0x634   : > { %4908 = vmatmul.msk.bf16.vlgmr.msrb.gmra.mxu0 %vm1391_vm3, %v8134_v34 }
 0x635   : > { %3395 = vmatmul.bf16.vlgmr.msrb.gmra.mxu3 %v8140_v36  ;;  %3446 = vmatpush.bf16.msra.mxu2 %v2942_v5  ;;  %v3707_v5 = vunpack.c.l.bf16 %v3683_v51 }
 0x636   : > { %3423 = vmatmul.bf16.vlgmr.msrb.gmra.mxu1 %v8140_v36  ;;  %3474 = vmatpush.bf16.msra.mxu0 %v2943_v27 }
 0x637   : > { %3464 = vmatpush.bf16.msra.mxu3 %v2981_v26 }
 0x638   : > { %v2781_v58 = vpop.permute.xlu0 %2780 }
 0x639   : > { %3447 = vmatpush.bf16.msra.mxu2 %v8014_v38  ;;  %v2861_v16 = vpop.permute.xlu1 %2860  ;;  %v2968_v38 = vsel %vm1152_vm2, %v8358_v25, %v2831_v42  ;;  %v9215_v25 = vld [vmem:[#allocation46_spill] sm:$0xff] }
 0x63a   : > { %3475 = vmatpush.bf16.msra.mxu0 %v8049_v49  ;;  %v2982_v4 = vsel %vm1152_vm2, %v2859_v10, %v2861_v16  ;;  %v2863_v49 = vpop.permute.xlu2 %2862  ;;  %v2881_v35 = vsel %vm1152_vm2, %v9210_v0, %v9215_v25 }
 0x63b   : > { %3499 = vmatpush.bf16.msrb.mxu3 %v2967_v11  ;;  %3492 = vmatpush.bf16.msra.mxu1 %v2982_v4  ;;  %v2983_v22 = vsel %vm1152_vm2, %v2861_v16, %v2863_v49  ;;  %v3708_v11 = vunpack.c.h.bf16 %v3683_v51 }
 0x63d   : > { %3448 = vmatpush.bf16.msra.mxu2 %v7905_v47  ;;  %v2960_v47 = vsel %vm1152_vm2, %v8361_v24, %v2815_v53  ;;  %v9216_v53 = vld [vmem:[#allocation34_spill] sm:$0xff] }
 0x63e   : > { %3476 = vmatpush.bf16.msra.mxu0 %v9211_v31 }
 0x63f   : > { %3500 = vmatpush.bf16.msrb.mxu3 %v2963_v15  ;;  %3527 = vmatpush.bf16.msrb.mxu1 %v2968_v38 }
 0x641   : > { %3449 = vmatpush.bf16.msra.mxu2 %v7780_v18  ;;  %v2944_v18 = vsel %vm1152_vm2, %v2779_v54, %v2781_v58  ;;  %v2783_v43 = vpop.permute.xlu0 %2782 }
 0x642   : > { %3477 = vmatpush.bf16.msra.mxu0 %v9205_v9  ;;  %v2945_v56 = vsel %vm1152_vm2, %v2781_v58, %v2783_v43  ;;  %v8453_v44 = vpop.permute.xlu1 %3559  ;;  %v8473_v12 = vpop.permute.xlu2 %3564 }
 0x643   : > { %3501 = vmatpush.bf16.msrb.mxu3 %v2960_v47  ;;  %3528 = vmatpush.bf16.msrb.mxu1 %v2964_v41 }
 0x645   : > { %4909 = vmatmul.msk.bf16.vlgmr.msra.gmra.mxu3 %vm1391_vm3, %v8134_v34  ;;  %3450 = vmatpush.bf16.msra.mxu2 %v8338_v32  ;;  %v2897_v32 = vsel %vm1152_vm2, %v9208_v30, %v9214_v7 }
 0x646   : > { %4910 = vmatmul.msk.bf16.vlgmr.msra.gmra.mxu1 %vm1391_vm3, %v8134_v34  ;;  %3478 = vmatpush.bf16.msra.mxu0 %v8347_v46 }
 0x647   : > { %3502 = vmatpush.bf16.msrb.mxu3 %v2944_v18  ;;  %3529 = vmatpush.bf16.msrb.mxu1 %v2961_v19 }
 0x648   : > { %3451 = vmatmul.bf16.vlgmr.msra.gmra.mxu2 %v8140_v36 }
 0x649   : > { %3520 = vmatpush.bf16.msrb.mxu2 %v2983_v22  ;;  %3479 = vmatmul.bf16.vlgmr.msra.gmra.mxu0 %v8140_v36 }
 0x64a   : > { %v2865_v6 = vpop.permute.xlu0 %2864 }
 0x64b   : > { %3503 = vmatpush.bf16.msrb.mxu3 %v8052_v62  ;;  %3530 = vmatpush.bf16.msrb.mxu1 %v2945_v56  ;;  %v2984_v21 = vsel %vm1152_vm2, %v2863_v49, %v2865_v6  ;;  %v9213_v62 = vld [vmem:[#allocation6_spill] sm:$0xff]  ;;  %v8478_v0 = vpop.permute.xlu1 %3608  ;;  %v3676_v56 = vld [vmem:[%s5286_s14 + $0x10] sm:$0xff] }
 0x64c   : > { %3548 = vmatpush.bf16.msrb.mxu0 %v2984_v21  ;;  %v3693_v63 = vunpack.c.l.bf16 %v3676_v56 }
 0x64e   : > { %v3158_v50 = vpop.f32.mrf.mxu1 }
 0x64f   : > { %3504 = vmatpush.bf16.msrb.mxu3 %v9212_v33  ;;  %3531 = vmatpush.bf16.msrb.mxu1 %v8068_v1 }
 0x650   : > { %v3130_v52 = vpop.f32.mrf.mxu3 }
 0x651   : > { %v3116_v28 = vpop.f32.mrf.mxu2 }
 0x652   : > { %v3131_v60 = vadd.f32 %v3130_v52, %v3116_v28  ;;  %v8465_v3 = vpop.permute.xlu0 %3603 }
 0x653   : > { %3505 = vmatpush.bf16.msrb.mxu3 %v8384_v55  ;;  %3532 = vmatpush.bf16.msrb.mxu1 %v9213_v62 }
 0x654   : > { %v3567_v9 = vmul.f32 %v8453_v44, %v3131_v60 }
 0x655   : > { %v3144_v1 = vpop.f32.mrf.mxu0 }
 0x656   : > { %v3159_v39 = vadd.f32 %v3158_v50, %v3144_v1  ;;  %v3611_v46 = vadd.f32 %v8465_v3, %v3567_v9  ;;  %v3160_v40 = vpop.f32.mrf.mxu1  ;;  %v3694_v50 = vunpack.c.h.bf16 %v3676_v56 }
 0x657   : > { %3506 = vmatpush.bf16.msrb.mxu3 %v8394_v29  ;;  %3533 = vmatpush.bf16.msrb.mxu1 %v2897_v32 }
 0x658   : > { %4911 = vmatmul.msk.bf16.vlgmr.msrb.gmra.mxu2 %vm1391_vm3, %v8134_v34  ;;  %v3643_v61 = vmax.f32 %v3611_v46, 0.0  ;;  %v3132_v45 = vpop.f32.mrf.mxu3 }
 0x659   : > { %4912 = vmatmul.msk.bf16.vlgmr.msrb.gmra.mxu0 %vm1391_vm3, %v8134_v34  ;;  %v3568_v34 = vmul.f32 %v8453_v44, %v3159_v39  ;;  %v3118_v59 = vpop.f32.mrf.mxu2  ;;  %v3684_v39 = vld [vmem:[%s5286_s14 + $0x60] sm:$0xff] }
 0x65a   : > { %3507 = vmatmul.bf16.vlgmr.msrb.gmra.mxu3 %v8140_v36  ;;  %v3133_v8 = vadd.f32 %v3132_v45, %v3118_v59  ;;  %v3723_v17 = vadd.f32 %v3691_v2, %v3643_v61  ;;  %v9219_v59 = vld [vmem:[#allocation13_spill] sm:$0xff] }
 0x65b   : > { %v3612_v24 = vadd.f32 %v8465_v3, %v3568_v34  ;;  %3534 = vmatpush.bf16.msrb.mxu1 %v2881_v35  ;;  %v3710_v35 = vunpack.c.h.bf16 %v3684_v39 }
 0x65c   : > { %v3583_v37 = vmul.f32 %v8473_v12, %v3133_v8  ;;  %v3755_v13 = vmul.f32 %v3723_v17, %v9216_v53 }
 0x65d   : > { %v3644_v30 = vmax.f32 %v3612_v24, 0.0  ;;  %v3146_v55 = vpop.f32.mrf.mxu0  ;;  %v9218_v24 = vld [vmem:[#allocation41_spill] sm:$0xff] }
 0x65e   : > { %3535 = vmatmul.bf16.vlgmr.msrb.gmra.mxu1 %v8140_v36  ;;  %v3161_v20 = vadd.f32 %v3160_v40, %v3146_v55  ;;  %v3627_v54 = vadd.f32 %v8478_v0, %v3583_v37 }
 0x65f   : > { %v3724_v29 = vadd.f32 %v3692_v57, %v3644_v30 }
 0x660   : > { %v3584_v27 = vmul.f32 %v8473_v12, %v3161_v20  ;;  %v3659_v42 = vmax.f32 %v3627_v54, 0.0 }
 0x661   : > { %v3756_v48 = vmul.f32 %v3724_v29, %v9217_v14  ;;  %v3186_v31 = vpop.f32.mrf.mxu2  ;;  %v3709_v29 = vunpack.c.l.bf16 %v3684_v39 }
 0x662   : > { %v3628_v26 = vadd.f32 %v8478_v0, %v3584_v27  ;;  %v3739_v36 = vadd.f32 %v3707_v5, %v3659_v42 }
 0x663   : > { %v3789_v10 = vpack.c.bf16 %v3756_v48, %v3755_v13  ;;  %v5048_v16 = vpack.i.bf16 %v3756_v48, %v3755_v13  ;;  %v3677_v13 = vld [vmem:[%s5286_s14 + $0x18] sm:$0xff] }
 0x664   : > { %v3660_v23 = vmax.f32 %v3628_v26, 0.0  ;;  %v3771_v4 = vmul.f32 %v3739_v36, %v9216_v53  ;;  %v3696_v26 = vunpack.c.h.bf16 %v3677_v13 }
 0x665   : > { %3805 = vst [vmem:[%s6522_s28 + $0x8] sm:$0xff] %v3789_v10  ;;  %5049 = vrot.lane.b32.xlu2 %v5048_v16, %s5216_s15 }
 0x666   : > { %v3214_v15 = vpop.f32.mrf.mxu0  ;;  %v3740_v58 = vadd.f32 %v3708_v11, %v3660_v23 }
 0x668   : > { %v3772_v38 = vmul.f32 %v3740_v58, %v9217_v14 }
 0x669   : > { %v3188_v43 = vpop.f32.mrf.mxu2 }
 0x66a   : > { %v3797_v47 = vpack.c.bf16 %v3772_v38, %v3771_v4  ;;  %v5053_v22 = vpack.i.bf16 %v3772_v38, %v3771_v4 }
 0x66b   : > { %v3200_v49 = vpop.f32.mrf.mxu1 }
 0x66c   : > { %v3215_v18 = vadd.f32 %v3214_v15, %v3200_v49  ;;  %3813 = vst [vmem:[%s6522_s28 + $0x58] sm:$0xff] %v3797_v47  ;;  %5054 = vrot.lane.b32.xlu0 %v5053_v22, %s5216_s15  ;;  %v3695_v47 = vunpack.c.l.bf16 %v3677_v13  ;;  %v3685_v22 = vld [vmem:[%s5286_s14 + $0x68] sm:$0xff] }
 0x66e   : > { %v3570_v41 = vmul.f32 %v8453_v44, %v3215_v18  ;;  %v3216_v33 = vpop.f32.mrf.mxu0 }
 0x670   : > { %v3614_v19 = vadd.f32 %v8465_v3, %v3570_v41  ;;  %v3172_v6 = vpop.f32.mrf.mxu3 }
 0x671   : > { %v3187_v21 = vadd.f32 %v3186_v31, %v3172_v6 }
 0x672   : > { %v3646_v52 = vmax.f32 %v3614_v19, 0.0 }
 0x673   : > { %v3569_v62 = vmul.f32 %v8453_v44, %v3187_v21  ;;  %v3202_v28 = vpop.f32.mrf.mxu1 }
 0x674   : > { %v3217_v60 = vadd.f32 %v3216_v33, %v3202_v28  ;;  %v3726_v7 = vadd.f32 %v3694_v50, %v3646_v52 }
 0x675   : > { %v3613_v9 = vadd.f32 %v8465_v3, %v3569_v62 }
 0x676   : > { %v3586_v1 = vmul.f32 %v8473_v12, %v3217_v60  ;;  %v3758_v57 = vmul.f32 %v3726_v7, %v9218_v24  ;;  %v3712_v60 = vunpack.c.h.bf16 %v3685_v22  ;;  %v9221_v7 = vld [vmem:[#allocation19_spill] sm:$0xff] }
 0x677   : > { %v3645_v32 = vmax.f32 %v3613_v9, 0.0 }
 0x678   : > { %v3630_v46 = vadd.f32 %v8478_v0, %v3586_v1  ;;  %v3174_v2 = vpop.f32.mrf.mxu3 }
 0x679   : > { %v3725_v34 = vadd.f32 %v3693_v63, %v3645_v32  ;;  %v3189_v61 = vadd.f32 %v3188_v43, %v3174_v2  ;;  %v3228_v25 = vpop.f32.mrf.mxu2  ;;  %v9220_v63 = vld [vmem:[#allocation33_spill] sm:$0xff] }
 0x67a   : > { %v3662_v40 = vmax.f32 %v3630_v46, 0.0  ;;  %v3711_v46 = vunpack.c.l.bf16 %v3685_v22 }
 0x67b   : > { %v3757_v8 = vmul.f32 %v3725_v34, %v9219_v59  ;;  %v3585_v17 = vmul.f32 %v8473_v12, %v3189_v61  ;;  %v3270_v30 = vpop.f32.mrf.mxu1 }
 0x67c   : > { %v3742_v54 = vadd.f32 %v3710_v35, %v3662_v40 }
 0x67d   : > { %v3256_v45 = vpop.f32.mrf.mxu0  ;;  %v3790_v51 = vpack.c.bf16 %v3758_v57, %v3757_v8  ;;  %v3629_v55 = vadd.f32 %v8478_v0, %v3585_v17  ;;  %v5068_v10 = vpack.i.bf16 %v3758_v57, %v3757_v8 }
 0x67e   : > { %v3271_v37 = vadd.f32 %v3270_v30, %v3256_v45  ;;  %v3774_v36 = vmul.f32 %v3742_v54, %v9218_v24  ;;  %v3678_v30 = vld [vmem:[%s5286_s14 + $0x20] sm:$0xff] }
 0x67f   : > { %3806 = vst [vmem:[%s6522_s28 + $0x10] sm:$0xff] %v3790_v51  ;;  %v3661_v53 = vmax.f32 %v3629_v55, 0.0  ;;  %5069 = vrot.lane.b32.xlu0 %v5068_v10, %s5216_s15 }
 0x680   : > { %v3572_v20 = vmul.f32 %v8453_v44, %v3271_v37  ;;  %v3242_v48 = vpop.f32.mrf.mxu3 }
 0x681   : > { %v3741_v5 = vadd.f32 %v3709_v29, %v3661_v53  ;;  %v3243_v27 = vadd.f32 %v3242_v48, %v3228_v25  ;;  %v3230_v42 = vpop.f32.mrf.mxu2  ;;  %v3698_v48 = vunpack.c.h.bf16 %v3678_v30 }
 0x682   : > { %v3616_v14 = vadd.f32 %v8465_v3, %v3572_v20 }
 0x683   : > { %v3773_v23 = vmul.f32 %v3741_v5, %v9219_v59  ;;  %v3571_v15 = vmul.f32 %v8453_v44, %v3243_v27  ;;  %v3272_v58 = vpop.f32.mrf.mxu1 }
 0x684   : > { %v3648_v31 = vmax.f32 %v3616_v14, 0.0 }
 0x685   : > { %v3258_v11 = vpop.f32.mrf.mxu0  ;;  %v3798_v4 = vpack.c.bf16 %v3774_v36, %v3773_v23  ;;  %v3615_v38 = vadd.f32 %v8465_v3, %v3571_v15  ;;  %v5073_v51 = vpack.i.bf16 %v3774_v36, %v3773_v23 }
 0x686   : > { %v3273_v16 = vadd.f32 %v3272_v58, %v3258_v11  ;;  %v3858_v18 = vld [vmem:[%s6522_s28 + $0xc] sm:$0xff]  ;;  %v3728_v41 = vadd.f32 %v3696_v26, %v3648_v31  ;;  %v3697_v11 = vunpack.c.l.bf16 %v3678_v30 }
 0x687   : > { %3814 = vst [vmem:[%s6522_s28 + $0x60] sm:$0xff] %v3798_v4  ;;  %v3647_v43 = vmax.f32 %v3615_v38, 0.0  ;;  %v3860_v19 = vunpack.c.l.bf16 %v3858_v18  ;;  %v3861_v56 = vunpack.c.h.bf16 %v3858_v18  ;;  %v3686_v4 = vld [vmem:[%s5286_s14 + $0x70] sm:$0xff] }
 0x688   : > { %v3588_v49 = vmul.f32 %v8473_v12, %v3273_v16  ;;  %v3244_v33 = vpop.f32.mrf.mxu3  ;;  %v3760_v1 = vmul.f32 %v3728_v41, %v9220_v63 }
 0x689   : > { %v3727_v21 = vadd.f32 %v3695_v47, %v3647_v43  ;;  %v3245_v52 = vadd.f32 %v3244_v33, %v3230_v42  ;;  %v5058_v50 = vpack.i.bf16 %v3861_v56, %v3860_v19  ;;  %v3298_v62 = vpop.f32.mrf.mxu2  ;;  %v3714_v19 = vunpack.c.h.bf16 %v3686_v4  ;;  %v9222_v56 = vld [vmem:[#allocation17_spill] sm:$0xff]  ;;  %v9223_v33 = vld [vmem:[#allocation36_spill] sm:$0xff] }
 0x68a   : > { %v3632_v6 = vadd.f32 %v8478_v0, %v3588_v49 }
 0x68b   : > { %v3759_v32 = vmul.f32 %v3727_v21, %v9221_v7  ;;  %v3587_v39 = vmul.f32 %v8473_v12, %v3245_v52  ;;  %5059 = vrot.lane.b32.xlu1 %v5058_v50, %s5216_s15 }
 0x68c   : > { %v3664_v28 = vmax.f32 %v3632_v6, 0.0 }
 0x68d   : > { %v3326_v9 = vpop.f32.mrf.mxu0  ;;  %v3791_v34 = vpack.c.bf16 %v3760_v1, %v3759_v32  ;;  %v3631_v61 = vadd.f32 %v8478_v0, %v3587_v39  ;;  %v5088_v49 = vpack.i.bf16 %v3760_v1, %v3759_v32  ;;  %v3713_v1 = vunpack.c.l.bf16 %v3686_v4 }
 0x68e   : > { %v3744_v35 = vadd.f32 %v3712_v60, %v3664_v28  ;;  %v3859_v45 = vld [vmem:[%s6522_s28 + $0x5c] sm:$0xff] }
 0x68f   : > { %v3312_v2 = vpop.f32.mrf.mxu1  ;;  %3807 = vst [vmem:[%s6522_s28 + $0x18] sm:$0xff] %v3791_v34  ;;  %v3663_v24 = vmax.f32 %v3631_v61, 0.0  ;;  %v3862_v59 = vunpack.c.l.bf16 %v3859_v45  ;;  %v3863_v8 = vunpack.c.h.bf16 %v3859_v45  ;;  %v3679_v61 = vld [vmem:[%s5286_s14 + $0x28] sm:$0xff] }
 0x690   : > { %v3327_v25 = vadd.f32 %v3326_v9, %v3312_v2  ;;  %v3776_v53 = vmul.f32 %v3744_v35, %v9220_v63 }
 0x691   : > { %v3743_v40 = vadd.f32 %v3711_v46, %v3663_v24  ;;  %v5063_v55 = vpack.i.bf16 %v3863_v8, %v3862_v59  ;;  %v3300_v29 = vpop.f32.mrf.mxu2  ;;  %v3700_v8 = vunpack.c.h.bf16 %v3679_v61 }
 0x692   : > { %v3574_v57 = vmul.f32 %v8453_v44, %v3327_v25 }
 0x693   : > { %v3775_v13 = vmul.f32 %v3743_v40, %v9221_v7  ;;  %5074 = vrot.lane.b32.xlu1 %v5073_v51, %s5216_s15  ;;  %5064 = vrot.lane.b32.xlu2 %v5063_v55, %s5216_s15 }
 0x694   : > { %v3618_v17 = vadd.f32 %v8465_v3, %v3574_v57  ;;  %v3284_v37 = vpop.f32.mrf.mxu3 }
 0x695   : > { %v3299_v20 = vadd.f32 %v3298_v62, %v3284_v37  ;;  %v3328_v54 = vpop.f32.mrf.mxu0  ;;  %v3799_v42 = vpack.c.bf16 %v3776_v53, %v3775_v13  ;;  %v5093_v45 = vpack.i.bf16 %v3776_v53, %v3775_v13  ;;  %v3699_v13 = vunpack.c.l.bf16 %v3679_v61 }
 0x696   : > { %v3650_v14 = vmax.f32 %v3618_v17, 0.0  ;;  %v3918_v36 = vld [vmem:[%s6522_s28 + $0x14] sm:$0xff] }
 0x697   : > { %v3573_v5 = vmul.f32 %v8453_v44, %v3299_v20  ;;  %v3314_v27 = vpop.f32.mrf.mxu1  ;;  %3815 = vst [vmem:[%s6522_s28 + $0x68] sm:$0xff] %v3799_v42  ;;  %v3920_v31 = vunpack.c.l.bf16 %v3918_v36  ;;  %v3921_v15 = vunpack.c.h.bf16 %v3918_v36  ;;  %v3687_v42 = vld [vmem:[%s5286_s14 + $0x78] sm:$0xff] }
 0x698   : > { %v3329_v10 = vadd.f32 %v3328_v54, %v3314_v27  ;;  %v3730_v58 = vadd.f32 %v3698_v48, %v3650_v14  ;;  %v3716_v4 = vunpack.c.h.bf16 %v3687_v42 }
 0x699   : > { %v3617_v26 = vadd.f32 %v8465_v3, %v3573_v5  ;;  %v5078_v18 = vpack.i.bf16 %v3921_v15, %v3920_v31 }
 0x69a   : > { %v3590_v23 = vmul.f32 %v8473_v12, %v3329_v10  ;;  %v3762_v6 = vmul.f32 %v3730_v58, %v9222_v56 }
 0x69b   : > { %v3649_v16 = vmax.f32 %v3617_v26, 0.0  ;;  %5089 = vrot.lane.b32.xlu1 %v5088_v49, %s5216_s15  ;;  %5079 = vrot.lane.b32.xlu2 %v5078_v18, %s5216_s15  ;;  %v9225_v49 = vld [vmem:[#allocation14_spill] sm:$0xff] }
 0x69c   : > { %v3634_v38 = vadd.f32 %v8478_v0, %v3590_v23  ;;  %v3286_v47 = vpop.f32.mrf.mxu3 }
 0x69d   : > { %v3340_v41 = vpop.f32.mrf.mxu2  ;;  %v3729_v43 = vadd.f32 %v3697_v11, %v3649_v16  ;;  %v3301_v22 = vadd.f32 %v3300_v29, %v3286_v47 }
 0x69e   : > { %v3666_v52 = vmax.f32 %v3634_v38, 0.0  ;;  %v3919_v7 = vld [vmem:[%s6522_s28 + $0x64] sm:$0xff] }
 0x69f   : > { %v3761_v21 = vmul.f32 %v3729_v43, %v9223_v33  ;;  %v3589_v50 = vmul.f32 %v8473_v12, %v3301_v22  ;;  %v3382_v28 = vpop.f32.mrf.mxu1  ;;  %v3922_v39 = vunpack.c.l.bf16 %v3919_v7  ;;  %v3923_v46 = vunpack.c.h.bf16 %v3919_v7  ;;  %v9224_v38 = vld [vmem:[#allocation35_spill] sm:$0xff]  ;;  %v3680_v7 = vld [vmem:[%s5286_s14 + $0x30] sm:$0xff] }
 0x6a0   : > { %v3746_v2 = vadd.f32 %v3714_v19, %v3666_v52  ;;  %v3715_v22 = vunpack.c.l.bf16 %v3687_v42 }
 0x6a1   : > { %v3368_v62 = vpop.f32.mrf.mxu0  ;;  %v3792_v9 = vpack.c.bf16 %v3762_v6, %v3761_v21  ;;  %v3633_v63 = vadd.f32 %v8478_v0, %v3589_v50  ;;  %v5083_v24 = vpack.i.bf16 %v3923_v46, %v3922_v39  ;;  %v5108_v23 = vpack.i.bf16 %v3762_v6, %v3761_v21 }
 0x6a2   : > { %v3383_v60 = vadd.f32 %v3382_v28, %v3368_v62  ;;  %v3778_v17 = vmul.f32 %v3746_v2, %v9222_v56 }
 0x6a3   : > { %3808 = vst [vmem:[%s6522_s28 + $0x20] sm:$0xff] %v3792_v9  ;;  %v3665_v34 = vmax.f32 %v3633_v63, 0.0  ;;  %5094 = vrot.lane.b32.xlu2 %v5093_v45, %s5216_s15  ;;  %5084 = vrot.lane.b32.xlu0 %v5083_v24, %s5216_s15  ;;  %v3702_v45 = vunpack.c.h.bf16 %v3680_v7 }
 0x6a4   : > { %v3576_v32 = vmul.f32 %v8453_v44, %v3383_v60  ;;  %v3354_v35 = vpop.f32.mrf.mxu3 }
 0x6a5   : > { %v3745_v57 = vadd.f32 %v3713_v1, %v3665_v34  ;;  %v3355_v59 = vadd.f32 %v3354_v35, %v3340_v41  ;;  %v3342_v40 = vpop.f32.mrf.mxu2 }
 0x6a6   : > { %v3620_v25 = vadd.f32 %v8465_v3, %v3576_v32 }
 0x6a7   : > { %v3777_v30 = vmul.f32 %v3745_v57, %v9223_v33  ;;  %v3575_v51 = vmul.f32 %v8453_v44, %v3355_v59  ;;  %v3384_v29 = vpop.f32.mrf.mxu1 }
 0x6a8   : > { %v3652_v37 = vmax.f32 %v3620_v25, 0.0 }
 0x6a9   : > { %v3370_v55 = vpop.f32.mrf.mxu0  ;;  %v3800_v54 = vpack.c.bf16 %v3778_v17, %v3777_v30  ;;  %v3619_v53 = vadd.f32 %v8465_v3, %v3575_v51  ;;  %v5113_v46 = vpack.i.bf16 %v3778_v17, %v3777_v30  ;;  %v3701_v17 = vunpack.c.l.bf16 %v3680_v7 }
 0x6aa   : > { %v3385_v20 = vadd.f32 %v3384_v29, %v3370_v55  ;;  %v3978_v48 = vld [vmem:[%s6522_s28 + $0x1c] sm:$0xff]  ;;  %v3732_v5 = vadd.f32 %v3700_v8, %v3652_v37 }
 0x6ab   : > { %3816 = vst [vmem:[%s6522_s28 + $0x70] sm:$0xff] %v3800_v54  ;;  %v3651_v27 = vmax.f32 %v3619_v53, 0.0  ;;  %v3980_v10 = vunpack.c.l.bf16 %v3978_v48  ;;  %v3981_v26 = vunpack.c.h.bf16 %v3978_v48  ;;  %5109 = vrot.lane.b32.xlu2 %v5108_v23, %s5216_s15  ;;  %v3688_v53 = vld [vmem:[%s5286_s14 + $0x80] sm:$0xff] }
 0x6ac   : > { %v3592_v14 = vmul.f32 %v8473_v12, %v3385_v20  ;;  %v3356_v36 = vpop.f32.mrf.mxu3  ;;  %v3764_v47 = vmul.f32 %v3732_v5, %v9224_v38 }
 0x6ad   : > { %v3731_v31 = vadd.f32 %v3699_v13, %v3651_v27  ;;  %v3357_v15 = vadd.f32 %v3356_v36, %v3342_v40  ;;  %v5098_v58 = vpack.i.bf16 %v3981_v26, %v3980_v10  ;;  %v3410_v21 = vpop.f32.mrf.mxu2  ;;  %v3718_v10 = vunpack.c.h.bf16 %v3688_v53  ;;  %v9226_v26 = vld [vmem:[#allocation10_spill] sm:$0xff] }
 0x6ae   : > { %v3636_v11 = vadd.f32 %v8478_v0, %v3592_v14  ;;  %v9227_v36 = vld [vmem:[#allocation38_spill] sm:$0xff] }
 0x6af   : > { %v3763_v18 = vmul.f32 %v3731_v31, %v9225_v49  ;;  %v3591_v41 = vmul.f32 %v8473_v12, %v3357_v15  ;;  %5099 = vrot.lane.b32.xlu0 %v5098_v58, %s5216_s15 }
 0x6b0   : > { %v3668_v16 = vmax.f32 %v3636_v11, 0.0 }
 0x6b1   : > { %v3438_v43 = vpop.f32.mrf.mxu0  ;;  %v3793_v56 = vpack.c.bf16 %v3764_v47, %v3763_v18  ;;  %v3635_v6 = vadd.f32 %v8478_v0, %v3591_v41  ;;  %v5128_v5 = vpack.i.bf16 %v3764_v47, %v3763_v18 }
 0x6b2   : > { %v3748_v52 = vadd.f32 %v3716_v4, %v3668_v16  ;;  %v3979_v50 = vld [vmem:[%s6522_s28 + $0x6c] sm:$0xff] }
 0x6b3   : > { %v3424_v19 = vpop.f32.mrf.mxu1  ;;  %3809 = vst [vmem:[%s6522_s28 + $0x28] sm:$0xff] %v3793_v56  ;;  %v3667_v62 = vmax.f32 %v3635_v6, 0.0  ;;  %v3982_v60 = vunpack.c.l.bf16 %v3979_v50  ;;  %v3983_v9 = vunpack.c.h.bf16 %v3979_v50 }
 0x6b4   : > { %v3439_v33 = vadd.f32 %v3438_v43, %v3424_v19  ;;  %v3780_v34 = vmul.f32 %v3748_v52, %v9224_v38  ;;  %v3717_v38 = vunpack.c.l.bf16 %v3688_v53 }
 0x6b5   : > { %v3747_v63 = vadd.f32 %v3715_v22, %v3667_v62  ;;  %v5103_v39 = vpack.i.bf16 %v3983_v9, %v3982_v60  ;;  %v3412_v51 = vpop.f32.mrf.mxu2  ;;  %v3681_v9 = vld [vmem:[%s5286_s14 + $0x38] sm:$0xff] }
 0x6b6   : > { %v3578_v28 = vmul.f32 %v8453_v44, %v3439_v33 }
 0x6b7   : > { %v3779_v61 = vmul.f32 %v3747_v63, %v9225_v49  ;;  %5104 = vrot.lane.b32.xlu1 %v5103_v39, %s5216_s15  ;;  %5114 = vrot.lane.b32.xlu0 %v5113_v46, %s5216_s15 }
 0x6b8   : > { %v3622_v1 = vadd.f32 %v8465_v3, %v3578_v28  ;;  %v3396_v32 = vpop.f32.mrf.mxu3 }
 0x6b9   : > { %v3411_v2 = vadd.f32 %v3410_v21, %v3396_v32  ;;  %v3440_v25 = vpop.f32.mrf.mxu0  ;;  %v3801_v59 = vpack.c.bf16 %v3780_v34, %v3779_v61  ;;  %v5133_v19 = vpack.i.bf16 %v3780_v34, %v3779_v61 }
 0x6ba   : > { %v3654_v35 = vmax.f32 %v3622_v1, 0.0  ;;  %v4038_v30 = vld [vmem:[%s6522_s28 + $0x24] sm:$0xff] }
 0x6bb   : > { %v3577_v24 = vmul.f32 %v8453_v44, %v3411_v2  ;;  %v3426_v57 = vpop.f32.mrf.mxu1  ;;  %3817 = vst [vmem:[%s6522_s28 + $0x78] sm:$0xff] %v3801_v59  ;;  %v4040_v55 = vunpack.c.l.bf16 %v4038_v30  ;;  %v4041_v29 = vunpack.c.h.bf16 %v4038_v30  ;;  %v3704_v2 = vunpack.c.h.bf16 %v3681_v9 }
 0x6bc   : > { %v3441_v8 = vadd.f32 %v3440_v25, %v3426_v57  ;;  %v3734_v20 = vadd.f32 %v3702_v45, %v3654_v35  ;;  %v3703_v59 = vunpack.c.l.bf16 %v3681_v9 }
 0x6bd   : > { %v3621_v40 = vadd.f32 %v8465_v3, %v3577_v24  ;;  %v5118_v48 = vpack.i.bf16 %v4041_v29, %v4040_v55 }
 0x6be   : > { %v3594_v37 = vmul.f32 %v8473_v12, %v3441_v8  ;;  %v3766_v11 = vmul.f32 %v3734_v20, %v9226_v26 }
 0x6bf   : > { %v3653_v54 = vmax.f32 %v3621_v40, 0.0  ;;  %5119 = vrot.lane.b32.xlu1 %v5118_v48, %s5216_s15  ;;  %5129 = vrot.lane.b32.xlu0 %v5128_v5, %s5216_s15  ;;  %v9228_v5 = vld [vmem:[#allocation16_spill] sm:$0xff] }
 0x6c0   : > { %v3638_v13 = vadd.f32 %v8478_v0, %v3594_v37  ;;  %v3398_v14 = vpop.f32.mrf.mxu3  ;;  %v3689_v37 = vld [vmem:[%s5286_s14 + $0x88] sm:$0xff] }
 0x6c1   : > { %v3733_v27 = vadd.f32 %v3701_v17, %v3653_v54  ;;  %v3413_v42 = vadd.f32 %v3412_v51, %v3398_v14 }
 0x6c2   : > { %v3670_v31 = vmax.f32 %v3638_v13, 0.0  ;;  %v4039_v47 = vld [vmem:[%s6522_s28 + $0x74] sm:$0xff]  ;;  %v3720_v13 = vunpack.c.h.bf16 %v3689_v37 }
 0x6c3   : > { %v3765_v23 = vmul.f32 %v3733_v27, %v9227_v36  ;;  %v3593_v15 = vmul.f32 %v8473_v12, %v3413_v42  ;;  %v3494_v58 = vpop.f32.mrf.mxu1  ;;  %v4042_v49 = vunpack.c.l.bf16 %v4039_v47  ;;  %v4043_v18 = vunpack.c.h.bf16 %v4039_v47  ;;  %v9229_v42 = vld [vmem:[#allocation12_spill] sm:$0xff] }
 0x6c4   : > { %v3750_v41 = vadd.f32 %v3718_v10, %v3670_v31 }
 0x6c5   : > { %v3794_v16 = vpack.c.bf16 %v3766_v11, %v3765_v23  ;;  %v3637_v4 = vadd.f32 %v8478_v0, %v3593_v15  ;;  %v5123_v56 = vpack.i.bf16 %v4043_v18, %v4042_v49  ;;  %v5148_v61 = vpack.i.bf16 %v3766_v11, %v3765_v23 }
 0x6c6   : > { %v3480_v22 = vpop.f32.mrf.mxu0  ;;  %v3782_v21 = vmul.f32 %v3750_v41, %v9226_v26  ;;  %v3719_v15 = vunpack.c.l.bf16 %v3689_v37 }
 0x6c7   : > { %3810 = vst [vmem:[%s6522_s28 + $0x30] sm:$0xff] %v3794_v16  ;;  %v3669_v43 = vmax.f32 %v3637_v4, 0.0  ;;  %v3495_v33 = vadd.f32 %v3494_v58, %v3480_v22  ;;  %5134 = vrot.lane.b32.xlu1 %v5133_v19, %s5216_s15  ;;  %5124 = vrot.lane.b32.xlu2 %v5123_v56, %s5216_s15  ;;  %v3682_v19 = vld [vmem:[%s5286_s14 + $0x40] sm:$0xff] }
 0x6c8   : > { %v3466_v62 = vpop.f32.mrf.mxu3 }
 0x6c9   : > { %v3749_v6 = vadd.f32 %v3717_v38, %v3669_v43  ;;  %v3580_v50 = vmul.f32 %v8453_v44, %v3495_v33 }
 0x6cb   : > { %v3781_v52 = vmul.f32 %v3749_v6, %v9227_v36  ;;  %v3624_v60 = vadd.f32 %v8465_v3, %v3580_v50  ;;  %v3452_v63 = vpop.f32.mrf.mxu2  ;;  %v3496_v1 = vpop.f32.mrf.mxu1  ;;  %v3705_v50 = vunpack.c.l.bf16 %v3682_v19 }
 0x6cc   : > { %v3467_v32 = vadd.f32 %v3466_v62, %v3452_v63 }
 0x6cd   : > { %v3802_v28 = vpack.c.bf16 %v3782_v21, %v3781_v52  ;;  %v3656_v25 = vmax.f32 %v3624_v60, 0.0  ;;  %v5153_v14 = vpack.i.bf16 %v3782_v21, %v3781_v52 }
 0x6ce   : > { %v4098_v7 = vld [vmem:[%s6522_s28 + $0x2c] sm:$0xff]  ;;  %v3482_v34 = vpop.f32.mrf.mxu0  ;;  %v3579_v35 = vmul.f32 %v8453_v44, %v3467_v32 }
 0x6cf   : > { %3818 = vst [vmem:[%s6522_s28 + $0x80] sm:$0xff] %v3802_v28  ;;  %v4100_v39 = vunpack.c.l.bf16 %v4098_v7  ;;  %v4101_v46 = vunpack.c.h.bf16 %v4098_v7  ;;  %v3497_v45 = vadd.f32 %v3496_v1, %v3482_v34  ;;  %5149 = vrot.lane.b32.xlu1 %v5148_v61, %s5216_s15  ;;  %v3736_v40 = vadd.f32 %v3704_v2, %v3656_v25 }
 0x6d0   : > { %v3623_v57 = vadd.f32 %v8465_v3, %v3579_v35  ;;  %v3468_v51 = vpop.f32.mrf.mxu3  ;;  %v3706_v7 = vunpack.c.h.bf16 %v3682_v19 }
 0x6d1   : > { %v5138_v24 = vpack.i.bf16 %v4101_v46, %v4100_v39  ;;  %v3596_v8 = vmul.f32 %v8473_v12, %v3497_v45  ;;  %v3768_v27 = vmul.f32 %v3736_v40, %v9228_v5  ;;  %v3690_v46 = vld [vmem:[%s5286_s14 + $0x90] sm:$0xff]  ;;  %s4915_s14 = sshll.u32 %s9233_s10, 7 }
 0x6d2   : > { %v3655_v17 = vmax.f32 %v3623_v57, 0.0  ;;  %s8649_s27 = scalar_lea.vmem %s8735_s9, %s4915_s14 }
 0x6d3   : > { %5139 = vrot.lane.b32.xlu2 %v5138_v24, %s5216_s15  ;;  %v3640_v30 = vadd.f32 %v8478_v0, %v3596_v8  ;;  %v3454_v55 = vpop.f32.mrf.mxu2  ;;  %v8627_v8 = vpop.permute.xlu2 %5049 }
 0x6d4   : > { %v3735_v20 = vadd.f32 %v3703_v59, %v3655_v17  ;;  %v3469_v54 = vadd.f32 %v3468_v51, %v3454_v55  ;;  %v3721_v59 = vunpack.c.l.bf16 %v3690_v46  ;;  %v9231_v51 = vld [vmem:[#allocation15_spill] sm:$0xff] }
 0x6d5   : > { %v3672_v26 = vmax.f32 %v3640_v30, 0.0  ;;  %v9230_v30 = vld [vmem:[#allocation42_spill] sm:$0xff] }
 0x6d6   : > { %v4099_v29 = vld [vmem:[%s6522_s28 + $0x7c] sm:$0xff]  ;;  %v3767_v10 = vmul.f32 %v3735_v20, %v9229_v42  ;;  %v3595_v11 = vmul.f32 %v8473_v12, %v3469_v54  ;;  %v3550_v4 = vpop.f32.mrf.mxu0 }
 0x6d7   : > { %v4102_v53 = vunpack.c.l.bf16 %v4099_v29  ;;  %v4103_v48 = vunpack.c.h.bf16 %v4099_v29  ;;  %v3752_v58 = vadd.f32 %v3720_v13, %v3672_v26  ;;  %v3824_v54 = vld [vmem:[%s6522_s28 + $0x58] sm:$0xff]   ;;  %v3722_v13 = vunpack.c.h.bf16 %v3690_v46 }
 0x6d8   : > { %v3795_v23 = vpack.c.bf16 %v3768_v27, %v3767_v10  ;;  %v3639_v31 = vadd.f32 %v8478_v0, %v3595_v11  ;;  %v5168_v18 = vpack.i.bf16 %v3768_v27, %v3767_v10  ;;  %v3826_v26 = vunpack.c.l.bf16 %v3824_v54 }
 0x6d9   : > { %v5143_v36 = vpack.i.bf16 %v4103_v48, %v4102_v53  ;;  %v3784_v43 = vmul.f32 %v3752_v58, %v9228_v5  ;;  %v3855_v58 = vunpack.c.h.bf16 %v3824_v54 }
 0x6da   : > { %3811 = vst [vmem:[%s6522_s28 + $0x38] sm:$0xff] %v3795_v23  ;;  %v3671_v16 = vmax.f32 %v3639_v31, 0.0 }
 0x6db   : > { %5154 = vrot.lane.b32.xlu2 %v5153_v14, %s5216_s15  ;;  %5144 = vrot.lane.b32.xlu0 %v5143_v36, %s5216_s15  ;;  %v3522_v38 = vpop.f32.mrf.mxu2  ;;  %v3536_v56 = vpop.f32.mrf.mxu1 }
 0x6dc   : > { %v3751_v47 = vadd.f32 %v3719_v15, %v3671_v16  ;;  %v3551_v33 = vadd.f32 %v3550_v4, %v3536_v56 }
 0x6dd   : > { %v3508_v49 = vpop.f32.mrf.mxu3 }
 0x6de   : > { %v3523_v41 = vadd.f32 %v3522_v38, %v3508_v49  ;;  %v3783_v22 = vmul.f32 %v3751_v47, %v9229_v42  ;;  %v3582_v62 = vmul.f32 %v8453_v44, %v3551_v33  ;;  %v3552_v25 = vpop.f32.mrf.mxu0 }
 0x6e0   : > { %v3581_v6 = vmul.f32 %v8453_v44, %v3523_v41  ;;  %v3803_v21 = vpack.c.bf16 %v3784_v43, %v3783_v22  ;;  %v3626_v1 = vadd.f32 %v8465_v3, %v3582_v62  ;;  %v5055_v44 = vpop.permute.xlu0 %5054  ;;  %v5173_v36 = vpack.i.bf16 %v3784_v43, %v3783_v22 }
 0x6e1   : > { %v4158_v28 = vld [vmem:[%s6522_s28 + $0x34] sm:$0xff]  ;;  %v5057_v40 = vunpack.i.h.bf16 %v5055_v44  ;;  %v5056_v17 = vunpack.i.l.bf16 %v5055_v44 }
 0x6e2   : > { %v3625_v52 = vadd.f32 %v8465_v3, %v3581_v6  ;;  %3819 = vst [vmem:[%s6522_s28 + $0x88] sm:$0xff] %v3803_v21  ;;  %v4160_v60 = vunpack.c.l.bf16 %v4158_v28  ;;  %v4161_v9 = vunpack.c.h.bf16 %v4158_v28  ;;  %v3658_v61 = vmax.f32 %v3626_v1, 0.0  ;;  %v3823_v21 = vld [vmem:[%s6522_s28 + $0x8] sm:$0xff]  }
 0x6e3   : > { %5169 = vrot.lane.b32.xlu2 %v5168_v18, %s5216_s15  ;;  %v3524_v32 = vpop.f32.mrf.mxu2  ;;  %v3538_v45 = vpop.f32.mrf.mxu1  ;;  %v3847_v10 = vsel %vm574_vm0, %v5056_v17, %v5057_v40 }
 0x6e4   : > { %v3657_v63 = vmax.f32 %v3625_v52, 0.0  ;;  %v5158_v2 = vpack.i.bf16 %v4161_v9, %v4160_v60  ;;  %v3738_v24 = vadd.f32 %v3706_v7, %v3658_v61  ;;  %v3553_v3 = vadd.f32 %v3552_v25, %v3538_v45  ;;  %v3884_v60 = vld [vmem:[%s6522_s28 + $0x10] sm:$0xff]  }
 0x6e5   : > { %v3510_v39 = vpop.f32.mrf.mxu3  ;;  %v3851_v15 = vadd.f32 %v3847_v10, %v3826_v26  ;;  %v5052_v52 = vunpack.i.h.bf16 %v8627_v8  ;;  %v3886_v46 = vunpack.c.l.bf16 %v3884_v60  ;;  %v3914_v44 = vunpack.c.h.bf16 %v3884_v60 }
 0x6e6   : > { %v3737_v34 = vadd.f32 %v3705_v50, %v3657_v63  ;;  %v3525_v35 = vadd.f32 %v3524_v32, %v3510_v39  ;;  %5159 = vrot.lane.b32.xlu0 %v5158_v2, %s5216_s15  ;;  %v3770_v55 = vmul.f32 %v3738_v24, %v9231_v51  ;;  %v3598_v20 = vmul.f32 %v8473_v12, %v3553_v3 }
 0x6e7   : > { %v3857_v49 = vadd.f32 %v3855_v58, %v3851_v15  ;;  %v5051_v50 = vunpack.i.l.bf16 %v8627_v8  ;;  %v3825_v39 = vunpack.c.l.bf16 %v3823_v21 }
 0x6e8   : > { %v3597_v57 = vmul.f32 %v8473_v12, %v3525_v35  ;;  %v3769_v37 = vmul.f32 %v3737_v34, %v9230_v30  ;;  %v3642_v42 = vadd.f32 %v8478_v0, %v3598_v20  ;;  %v3854_v20 = vunpack.c.h.bf16 %v3823_v21 }
 0x6e9   : > { %v4159_v53 = vld [vmem:[%s6522_s28 + $0x84] sm:$0xff]  ;;  %v3846_v2 = vsel %vm574_vm0, %v5051_v50, %v5052_v52 }
 0x6ea   : > { %v3641_v29 = vadd.f32 %v8478_v0, %v3597_v57  ;;  %v4162_v14 = vunpack.c.l.bf16 %v4159_v53  ;;  %v4163_v48 = vunpack.c.h.bf16 %v4159_v53  ;;  %v3796_v5 = vpack.c.bf16 %v3770_v55, %v3769_v37 }
 0x6eb   : > { %v3674_v31 = vmax.f32 %v3642_v42, 0.0  ;;  %v5178_v22 = vpack.i.bf16 %v3770_v55, %v3769_v37 }
 0x6ec   : > { %v3673_v27 = vmax.f32 %v3641_v29, 0.0  ;;  %v5163_v11 = vpack.i.bf16 %v4163_v48, %v4162_v14  ;;  %3812 = vst [vmem:[%s6522_s28 + $0x40] sm:$0xff] %v3796_v5 }
 0x6ed   : > { %v3754_v12 = vadd.f32 %v3722_v13, %v3674_v31  ;;  %v5065_v16 = vpop.permute.xlu2 %5064  ;;  %v3885_v31 = vld [vmem:[%s6522_s28 + $0x60] sm:$0xff]  }
 0x6ee   : > { %v3753_v23 = vadd.f32 %v3721_v59, %v3673_v27  ;;  %5164 = vrot.lane.b32.xlu1 %v5163_v11, %s5216_s15  ;;  %5174 = vrot.lane.b32.xlu0 %v5173_v36, %s5216_s15  ;;  %v5067_v38 = vunpack.i.h.bf16 %v5065_v16  ;;  %v5066_v47 = vunpack.i.l.bf16 %v5065_v16  ;;  %v3887_v58 = vunpack.c.l.bf16 %v3885_v31 }
 0x6ef   : > { %v3786_v4 = vmul.f32 %v3754_v12, %v9231_v51 }
 0x6f0   : > { %v3785_v0 = vmul.f32 %v3753_v23, %v9230_v30  ;;  %v3877_v41 = vsel %vm574_vm0, %v5066_v47, %v5067_v38  ;;  %v3850_v30 = vadd.f32 %v3846_v2, %v3825_v39  ;;  %v3915_v47 = vunpack.c.h.bf16 %v3885_v31 }
 0x6f1   : > { %v3881_v43 = vadd.f32 %v3877_v41, %v3857_v49  ;;  %v5070_v63 = vpop.permute.xlu0 %5069 }
 0x6f2   : > { %v3804_v18 = vpack.c.bf16 %v3786_v4, %v3785_v0  ;;  %v5183_v28 = vpack.i.bf16 %v3786_v4, %v3785_v0  ;;  %v5072_v1 = vunpack.i.h.bf16 %v5070_v63  ;;  %v5071_v7 = vunpack.i.l.bf16 %v5070_v63  ;;  %v3945_v63 = vld [vmem:[%s6522_s28 + $0x68] sm:$0xff]  }
 0x6f3   : > { %v4218_v19 = vld [vmem:[%s6522_s28 + $0x3c] sm:$0xff]  ;;  %v3883_v33 = vmul.f32 0.25, %v3881_v43  ;;  %v4278_v32 = vld [vmem:[%s6522_s28 + $0x44] sm:$0xff]  ;;  %v3856_v5 = vadd.f32 %v3854_v20, %v3850_v30  ;;  %v3947_v2 = vunpack.c.l.bf16 %v3945_v63 }
 0x6f4   : > { %3820 = vst [vmem:[%s6522_s28 + $0x90] sm:$0xff] %v3804_v18  ;;  %v4220_v56 = vunpack.c.l.bf16 %v4218_v19  ;;  %v4221_v6 = vunpack.c.h.bf16 %v4218_v19  ;;  %5184 = vrot.lane.b32.xlu2 %v5183_v28, %s5216_s15  ;;  %v3906_v25 = vsel %vm574_vm0, %v5071_v7, %v5072_v1  ;;  %v4280_v57 = vunpack.c.l.bf16 %v4278_v32  ;;  %v3944_v43 = vld [vmem:[%s6522_s28 + $0x18] sm:$0xff]  }
 0x6f5   : > { %4312 = vst [vmem:[%s8649_s27 + $0x40] sm:$0xff] %v3883_v33  ;;  %v5080_v9 = vpop.permute.xlu2 %5079  ;;  %v3910_v24 = vadd.f32 %v3906_v25, %v3886_v46  ;;  %v4281_v59 = vunpack.c.h.bf16 %v4278_v32  ;;  %v3946_v33 = vunpack.c.l.bf16 %v3944_v43  ;;  %v3974_v60 = vunpack.c.h.bf16 %v3944_v43 }
 0x6f6   : > { %5179 = vrot.lane.b32.xlu1 %v5178_v22, %s5216_s15  ;;  %v5188_v62 = vpack.i.bf16 %v4221_v6, %v4220_v56  ;;  %v5082_v34 = vunpack.i.h.bf16 %v5080_v9  ;;  %v5081_v61 = vunpack.i.l.bf16 %v5080_v9 }
 0x6f7   : > { %v3916_v37 = vadd.f32 %v3914_v44, %v3910_v24  ;;  %v5198_v13 = vpack.i.bf16 %v4281_v59, %v4280_v57  ;;  %v4005_v24 = vld [vmem:[%s6522_s28 + $0x70] sm:$0xff]   ;;  %v3975_v57 = vunpack.c.h.bf16 %v3945_v63 }
 0x6f8   : > { %5189 = vrot.lane.b32.xlu0 %v5188_v62, %s5216_s15  ;;  %v3936_v51 = vsel %vm574_vm0, %v5081_v61, %v5082_v34 }
 0x6f9   : > { %v3940_v53 = vadd.f32 %v3936_v51, %v3916_v37 }
 0x6fb   : > { %v4219_v35 = vld [vmem:[%s6522_s28 + $0x8c] sm:$0xff]  ;;  %v4279_v45 = vld [vmem:[%s6522_s28 + $0x94] sm:$0xff]  ;;  %v3942_v27 = vmul.f32 0.25, %v3940_v53 }
 0x6fc   : > { %v4222_v3 = vunpack.c.l.bf16 %v4219_v35  ;;  %v4223_v8 = vunpack.c.h.bf16 %v4219_v35  ;;  %v4282_v40 = vunpack.c.l.bf16 %v4279_v45  ;;  %v4283_v17 = vunpack.c.h.bf16 %v4279_v45  ;;  %5199 = vrot.lane.b32.xlu2 %v5198_v13, %s5216_s15 }
 0x6fd   : > { %v5060_v54 = vpop.permute.xlu1 %5059  ;;  %4305 = vst [vmem:[%s8649_s27 + $0x8] sm:$0xff] %v3942_v27  ;;  %v5095_v12 = vpop.permute.xlu2 %5094 }
 0x6fe   : > { %v5193_v55 = vpack.i.bf16 %v4223_v8, %v4222_v3  ;;  %v5203_v29 = vpack.i.bf16 %v4283_v17, %v4282_v40  ;;  %v5062_v14 = vunpack.i.h.bf16 %v5060_v54  ;;  %v5061_v48 = vunpack.i.l.bf16 %v5060_v54  ;;  %v4004_v8 = vld [vmem:[%s6522_s28 + $0x20] sm:$0xff]  }
 0x6ff   : > { %v5097_v62 = vunpack.i.h.bf16 %v5095_v12  ;;  %v5096_v28 = vunpack.i.l.bf16 %v5095_v12 }
 0x700   : > { %5194 = vrot.lane.b32.xlu1 %v5193_v55, %s5216_s15  ;;  %5204 = vrot.lane.b32.xlu0 %v5203_v29, %s5216_s15  ;;  %v3876_v42 = vsel %vm574_vm0, %v5061_v48, %v5062_v14  ;;  %v4007_v29 = vunpack.c.l.bf16 %v4005_v24  ;;  %v4006_v14 = vunpack.c.l.bf16 %v4004_v8 }
 0x701   : > { %v3880_v10 = vadd.f32 %v3876_v42, %v3856_v5  ;;  %v3967_v39 = vsel %vm574_vm0, %v5096_v28, %v5097_v62  ;;  %v4035_v5 = vunpack.c.h.bf16 %v4005_v24 }
 0x702   : > { %v3971_v25 = vadd.f32 %v3967_v39, %v3947_v2 }
 0x703   : > { %v3882_v26 = vmul.f32 0.25, %v3880_v10 }
 0x704   : > { %v3977_v55 = vadd.f32 %v3975_v57, %v3971_v25 }
 0x705   : > { %4304 = vst [vmem:[%s8649_s27] sm:$0xff] %v3882_v26  ;;  %v5075_v11 = vpop.permute.xlu1 %5074  ;;  %v5110_v21 = vpop.permute.xlu2 %5109 }
 0x706   : > { %v5077_v36 = vunpack.i.h.bf16 %v5075_v11  ;;  %v5076_v23 = vunpack.i.l.bf16 %v5075_v11  ;;  %v5112_v35 = vunpack.i.h.bf16 %v5110_v21  ;;  %v5111_v45 = vunpack.i.l.bf16 %v5110_v21 }
 0x708   : > { %v3907_v15 = vsel %vm574_vm0, %v5076_v23, %v5077_v36  ;;  %v4026_v51 = vsel %vm574_vm0, %v5111_v45, %v5112_v35  ;;  %v4064_v23 = vld [vmem:[%s6522_s28 + $0x28] sm:$0xff]  }
 0x709   : > { %v3911_v0 = vadd.f32 %v3907_v15, %v3887_v58  ;;  %v4030_v42 = vadd.f32 %v4026_v51, %v4006_v14  ;;  %v4034_v15 = vunpack.c.h.bf16 %v4004_v8 }
 0x70b   : > { %v3917_v22 = vadd.f32 %v3915_v47, %v3911_v0 }
 0x70d   : > { %v5090_v16 = vpop.permute.xlu1 %5089 }
 0x70e   : > { %v5092_v4 = vunpack.i.h.bf16 %v5090_v16  ;;  %v5091_v38 = vunpack.i.l.bf16 %v5090_v16 }
 0x710   : > { %v3966_v56 = vsel %vm574_vm0, %v5091_v38, %v5092_v4 }
 0x711   : > { %v3970_v50 = vadd.f32 %v3966_v56, %v3946_v33 }
 0x713   : > { %v3976_v32 = vadd.f32 %v3974_v60, %v3970_v50 }
 0x715   : > { %v5085_v49 = vpop.permute.xlu0 %5084 }
 0x716   : > { %v5087_v18 = vunpack.i.h.bf16 %v5085_v49  ;;  %v5086_v41 = vunpack.i.l.bf16 %v5085_v49  ;;  %v4036_v49 = vadd.f32 %v4034_v15, %v4030_v42 }
 0x718   : > { %v3937_v19 = vsel %vm574_vm0, %v5086_v41, %v5087_v18  ;;  %v4066_v18 = vunpack.c.l.bf16 %v4064_v23 }
 0x719   : > { %v3941_v6 = vadd.f32 %v3937_v19, %v3917_v22 }
 0x71b   : > { %v3943_v52 = vmul.f32 0.25, %v3941_v6  ;;  %v4094_v6 = vunpack.c.h.bf16 %v4064_v23 }
 0x71d   : > { %4313 = vst [vmem:[%s8649_s27 + $0x48] sm:$0xff] %v3943_v52 }
 0x721   : > { %v5100_v9 = vpop.permute.xlu0 %5099  ;;  %v5125_v61 = vpop.permute.xlu2 %5124 }
 0x722   : > { %v5102_v1 = vunpack.i.h.bf16 %v5100_v9  ;;  %v5101_v7 = vunpack.i.l.bf16 %v5100_v9  ;;  %v5127_v20 = vunpack.i.h.bf16 %v5125_v61  ;;  %v5126_v54 = vunpack.i.l.bf16 %v5125_v61 }
 0x724   : > { %v3996_v46 = vsel %vm574_vm0, %v5101_v7, %v5102_v1  ;;  %v4057_v11 = vsel %vm574_vm0, %v5126_v54, %v5127_v20  ;;  %v4065_v1 = vld [vmem:[%s6522_s28 + $0x78] sm:$0xff]   ;;  %v4125_v54 = vld [vmem:[%s6522_s28 + $0x80] sm:$0xff]  }
 0x725   : > { %v4000_v34 = vadd.f32 %v3996_v46, %v3976_v32  ;;  %v4067_v32 = vunpack.c.l.bf16 %v4065_v1  ;;  %v4095_v46 = vunpack.c.h.bf16 %v4065_v1 }
 0x727   : > { %v4002_v44 = vmul.f32 0.25, %v4000_v34 }
 0x729   : > { %4306 = vst [vmem:[%s8649_s27 + $0x10] sm:$0xff] %v4002_v44  ;;  %v5105_v59 = vpop.permute.xlu1 %5104  ;;  %v5115_v3 = vpop.permute.xlu0 %5114 }
 0x72a   : > { %v5107_v40 = vunpack.i.h.bf16 %v5105_v59  ;;  %v5106_v17 = vunpack.i.l.bf16 %v5105_v59  ;;  %v5117_v30 = vunpack.i.h.bf16 %v5115_v3  ;;  %v5116_v37 = vunpack.i.l.bf16 %v5115_v3  ;;  %v4124_v3 = vld [vmem:[%s6522_s28 + $0x30] sm:$0xff]  }
 0x72c   : > { %v3997_v53 = vsel %vm574_vm0, %v5106_v17, %v5107_v40  ;;  %v4027_v13 = vsel %vm574_vm0, %v5116_v37, %v5117_v30  ;;  %v4126_v17 = vunpack.c.l.bf16 %v4124_v3 }
 0x72d   : > { %v4001_v48 = vadd.f32 %v3997_v53, %v3977_v55  ;;  %v4031_v27 = vadd.f32 %v4027_v13, %v4007_v29  ;;  %v5140_v36 = vpop.permute.xlu2 %5139  ;;  %v4154_v29 = vunpack.c.h.bf16 %v4124_v3 }
 0x72e   : > { %v5142_v41 = vunpack.i.h.bf16 %v5140_v36  ;;  %v5141_v43 = vunpack.i.l.bf16 %v5140_v36  ;;  %v4155_v36 = vunpack.c.h.bf16 %v4125_v54 }
 0x72f   : > { %v4003_v10 = vmul.f32 0.25, %v4001_v48  ;;  %v4037_v26 = vadd.f32 %v4035_v5, %v4031_v27  ;;  %v4127_v27 = vunpack.c.l.bf16 %v4125_v54 }
 0x730   : > { %v4116_v50 = vsel %vm574_vm0, %v5141_v43, %v5142_v41  ;;  %v4244_v41 = vld [vmem:[%s6522_s28 + $0x40] sm:$0xff]  }
 0x731   : > { %4314 = vst [vmem:[%s8649_s27 + $0x50] sm:$0xff] %v4003_v10  ;;  %v4061_v31 = vadd.f32 %v4057_v11, %v4037_v26  ;;  %v5120_v12 = vpop.permute.xlu1 %5119  ;;  %v5130_v58 = vpop.permute.xlu0 %5129 }
 0x732   : > { %v5122_v16 = vunpack.i.h.bf16 %v5120_v12  ;;  %v5121_v0 = vunpack.i.l.bf16 %v5120_v12  ;;  %v5132_v4 = vunpack.i.h.bf16 %v5130_v58  ;;  %v5131_v38 = vunpack.i.l.bf16 %v5130_v58 }
 0x733   : > { %v4063_v47 = vmul.f32 0.25, %v4061_v31 }
 0x734   : > { %v4056_v22 = vsel %vm574_vm0, %v5121_v0, %v5122_v16  ;;  %v4086_v19 = vsel %vm574_vm0, %v5131_v38, %v5132_v4  ;;  %v4184_v38 = vld [vmem:[%s6522_s28 + $0x38] sm:$0xff]  }
 0x735   : > { %4315 = vst [vmem:[%s8649_s27 + $0x58] sm:$0xff] %v4063_v47  ;;  %v4060_v56 = vadd.f32 %v4056_v22, %v4036_v49  ;;  %v4090_v33 = vadd.f32 %v4086_v19, %v4066_v18  ;;  %v5155_v34 = vpop.permute.xlu2 %5154  ;;  %v4186_v43 = vunpack.c.l.bf16 %v4184_v38  ;;  %v4214_v1 = vunpack.c.h.bf16 %v4184_v38 }
 0x736   : > { %v5157_v51 = vunpack.i.h.bf16 %v5155_v34  ;;  %v5156_v55 = vunpack.i.l.bf16 %v5155_v34 }
 0x737   : > { %v4062_v21 = vmul.f32 0.25, %v4060_v56  ;;  %v4096_v52 = vadd.f32 %v4094_v6, %v4090_v33  ;;  %v4246_v6 = vunpack.c.l.bf16 %v4244_v41 }
 0x738   : > { %v4147_v48 = vsel %vm574_vm0, %v5156_v55, %v5157_v51 }
 0x739   : > { %4307 = vst [vmem:[%s8649_s27 + $0x18] sm:$0xff] %v4062_v21  ;;  %v4120_v62 = vadd.f32 %v4116_v50, %v4096_v52  ;;  %v5135_v60 = vpop.permute.xlu1 %5134  ;;  %v4151_v10 = vadd.f32 %v4147_v48, %v4127_v27 }
 0x73a   : > { %v5137_v9 = vunpack.i.h.bf16 %v5135_v60  ;;  %v5136_v63 = vunpack.i.l.bf16 %v5135_v60 }
 0x73b   : > { %v4122_v28 = vmul.f32 0.25, %v4120_v62  ;;  %v4157_v16 = vadd.f32 %v4155_v36, %v4151_v10 }
 0x73c   : > { %v4087_v7 = vsel %vm574_vm0, %v5136_v63, %v5137_v9 }
 0x73d   : > { %4308 = vst [vmem:[%s8649_s27 + $0x20] sm:$0xff] %v4122_v28  ;;  %v4091_v39 = vadd.f32 %v4087_v7, %v4067_v32  ;;  %v5170_v37 = vpop.permute.xlu2 %5169  ;;  %v4245_v32 = vld [vmem:[%s6522_s28 + $0x90] sm:$0xff]  }
 0x73e   : > { %v5172_v12 = vunpack.i.h.bf16 %v5170_v37  ;;  %v5171_v58 = vunpack.i.l.bf16 %v5170_v37 }
 0x73f   : > { %v4097_v45 = vadd.f32 %v4095_v46, %v4091_v39  ;;  %v4185_v39 = vld [vmem:[%s6522_s28 + $0x88] sm:$0xff]   ;;  %v4274_v46 = vunpack.c.h.bf16 %v4244_v41 }
 0x740   : > { %v4206_v49 = vsel %vm574_vm0, %v5171_v58, %v5172_v12  ;;  %v4215_v55 = vunpack.c.h.bf16 %v4185_v39 }
 0x741   : > { %v5150_v61 = vpop.permute.xlu1 %5149  ;;  %v4210_v56 = vadd.f32 %v4206_v49, %v4186_v43 }
 0x742   : > { %v5152_v24 = vunpack.i.h.bf16 %v5150_v61  ;;  %v5151_v57 = vunpack.i.l.bf16 %v5150_v61 }
 0x744   : > { %v4146_v40 = vsel %vm574_vm0, %v5151_v57, %v5152_v24  ;;  %v4247_v57 = vunpack.c.l.bf16 %v4245_v32 }
 0x745   : > { %v4150_v30 = vadd.f32 %v4146_v40, %v4126_v17 }
 0x747   : > { %v4156_v14 = vadd.f32 %v4154_v29, %v4150_v30 }
 0x74d   : > { %v5145_v2 = vpop.permute.xlu0 %5144 }
 0x74e   : > { %v5147_v25 = vunpack.i.h.bf16 %v5145_v2  ;;  %v5146_v35 = vunpack.i.l.bf16 %v5145_v2  ;;  %v5185_v11 = vpop.permute.xlu2 %5184 }
 0x74f   : > { %v5187_v52 = vunpack.i.h.bf16 %v5185_v11  ;;  %v5186_v50 = vunpack.i.l.bf16 %v5185_v11 }
 0x750   : > { %v4117_v44 = vsel %vm574_vm0, %v5146_v35, %v5147_v25  ;;  %v4216_v25 = vadd.f32 %v4214_v1, %v4210_v56 }
 0x751   : > { %v4121_v59 = vadd.f32 %v4117_v44, %v4097_v45  ;;  %v4267_v35 = vsel %vm574_vm0, %v5186_v50, %v5187_v52 }
 0x752   : > { %v4271_v17 = vadd.f32 %v4267_v35, %v4247_v57 }
 0x753   : > { %v4123_v8 = vmul.f32 0.25, %v4121_v59  ;;  %v4187_v59 = vunpack.c.l.bf16 %v4185_v39 }
 0x755   : > { %4316 = vst [vmem:[%s8649_s27 + $0x60] sm:$0xff] %v4123_v8 }
 0x756   : > { %v5200_v22 = vpop.permute.xlu2 %5199 }
 0x757   : > { %v5202_v60 = vunpack.i.h.bf16 %v5200_v22  ;;  %v5201_v9 = vunpack.i.l.bf16 %v5200_v22 }
 0x758   : > { %v5160_v20 = vpop.permute.xlu0 %5159 }
 0x759   : > { %v5162_v53 = vunpack.i.h.bf16 %v5160_v20  ;;  %v5161_v13 = vunpack.i.l.bf16 %v5160_v20  ;;  %v4296_v3 = vsel %vm574_vm0, %v5201_v9, %v5202_v60  ;;  %v4275_v20 = vunpack.c.h.bf16 %v4245_v32 }
 0x75b   : > { %v4176_v5 = vsel %vm574_vm0, %v5161_v13, %v5162_v53  ;;  %v4277_v27 = vadd.f32 %v4275_v20, %v4271_v17 }
 0x75c   : > { %v4180_v42 = vadd.f32 %v4176_v5, %v4156_v14 }
 0x75e   : > { %v4182_v26 = vmul.f32 0.25, %v4180_v42 }
 0x760   : > { %4309 = vst [vmem:[%s8649_s27 + $0x28] sm:$0xff] %v4182_v26  ;;  %v5165_v23 = vpop.permute.xlu1 %5164  ;;  %v5175_v4 = vpop.permute.xlu0 %5174 }
 0x761   : > { %v5167_v31 = vunpack.i.h.bf16 %v5165_v23  ;;  %v5166_v15 = vunpack.i.l.bf16 %v5165_v23  ;;  %v5177_v62 = vunpack.i.h.bf16 %v5175_v4  ;;  %v5176_v28 = vunpack.i.l.bf16 %v5175_v4 }
 0x763   : > { %v4177_v0 = vsel %vm574_vm0, %v5166_v15, %v5167_v31  ;;  %v4207_v45 = vsel %vm574_vm0, %v5176_v28, %v5177_v62 }
 0x764   : > { %v4181_v47 = vadd.f32 %v4177_v0, %v4157_v16  ;;  %v4211_v30 = vadd.f32 %v4207_v45, %v4187_v59 }
 0x766   : > { %v4183_v18 = vmul.f32 0.25, %v4181_v47  ;;  %v4217_v5 = vadd.f32 %v4215_v55, %v4211_v30 }
 0x768   : > { %4317 = vst [vmem:[%s8649_s27 + $0x68] sm:$0xff] %v4183_v18  ;;  %v5180_v19 = vpop.permute.xlu1 %5179 }
 0x769   : > { %v5182_v33 = vunpack.i.h.bf16 %v5180_v19  ;;  %v5181_v21 = vunpack.i.l.bf16 %v5180_v19 }
 0x76a   : > { %v5190_v7 = vpop.permute.xlu0 %5189 }
 0x76b   : > { %v4266_v63 = vsel %vm574_vm0, %v5181_v21, %v5182_v33  ;;  %v5192_v34 = vunpack.i.h.bf16 %v5190_v7  ;;  %v5191_v61 = vunpack.i.l.bf16 %v5190_v7 }
 0x76c   : > { %v4270_v2 = vadd.f32 %v4266_v63, %v4246_v6 }
 0x76d   : > { %v4236_v24 = vsel %vm574_vm0, %v5191_v61, %v5192_v34 }
 0x76e   : > { %v4276_v44 = vadd.f32 %v4274_v46, %v4270_v2  ;;  %v4240_v8 = vadd.f32 %v4236_v24, %v4216_v25 }
 0x770   : > { %v4300_v40 = vadd.f32 %v4296_v3, %v4276_v44  ;;  %v4242_v37 = vmul.f32 0.25, %v4240_v8 }
 0x772   : > { %v4302_v51 = vmul.f32 0.25, %v4300_v40  ;;  %4310 = vst [vmem:[%s8649_s27 + $0x30] sm:$0xff] %v4242_v37  ;;  %v5195_v29 = vpop.permute.xlu1 %5194  ;;  %v5205_v54 = vpop.permute.xlu0 %5204 }
 0x773   : > { %v5197_v53 = vunpack.i.h.bf16 %v5195_v29  ;;  %v5196_v13 = vunpack.i.l.bf16 %v5195_v29  ;;  %v5207_v14 = vunpack.i.h.bf16 %v5205_v54  ;;  %v5206_v48 = vunpack.i.l.bf16 %v5205_v54 }
 0x774   : > { %4311 = vst [vmem:[%s8649_s27 + $0x38] sm:$0xff] %v4302_v51 }
 0x775   : > { %v4237_v42 = vsel %vm574_vm0, %v5196_v13, %v5197_v53  ;;  %v4297_v10 = vsel %vm574_vm0, %v5206_v48, %v5207_v14 }
 0x776   : > { %v4241_v26 = vadd.f32 %v4237_v42, %v4217_v5  ;;  %v4301_v11 = vadd.f32 %v4297_v10, %v4277_v27 }
 0x778   : > { %v4243_v36 = vmul.f32 0.25, %v4241_v26  ;;  %v4303_v23 = vmul.f32 0.25, %v4301_v11 }
 0x77a   : > { %4318 = vst [vmem:[%s8649_s27 + $0x70] sm:$0xff] %v4243_v36 }
 0x77b   : > { %4319 = vst [vmem:[%s8649_s27 + $0x78] sm:$0xff] %v4303_v23 }
 0x77c PF: > { %s20_s30 = sadd.s32 1, %s5214_s30  }
 0x77d   : > { %p17_p4 = scmp.ge.s32.totalorder %s20_s30, 4  }
 0x77f   :  { %19 = sbr.rel (!%p17_p4) target bundleno = 1 (0x1), region = 94 }

</bundles_post_ra>
